<compile_context>
chip_gen: v5e
topology: v5e:2x2
jax: 0.10.0
libtpu: 0.0.40
codegen_flags: <defaults>
</compile_context>

<pallas_src>
import functools

import jax
import jax.numpy as jnp
from jax import lax
from jax.experimental import pallas as pl
from jax.experimental.pallas import tpu as pltpu

TS_PAD = 128            # head logits padded to one full 128-lane vreg
NEG_BIG = -1e9          # logit for padded tag lanes (exp underflows to 0)
_STATIC_UNROLL_MAX_T = 32   # static time-loop unroll threshold (scale guard)


def _round_up(x, m):
    return (x + m - 1) // m * m


# ----------------------------------------------------------------------------
# Kernel 1: fused 3-layer bidirectional LSTM (single invocation).
# Row layout of all (T*Bp, ...) buffers: row = t * Bp + b  (time-major),
# Bp = batch padded to a multiple of 8 -> every per-step slice is tile-aligned.
# ----------------------------------------------------------------------------
def _build_lstm_kernel(T, Bp, H, num_layers):
    last = num_layers - 1

    def kernel(xg0_f_ref, xg0_b_ref, whh_ref, wih_ref, b_ref,
               out_f_ref, out_b_ref, xg_f_ref, xg_b_ref, hf_ref, hb_ref):

        def run_layer(src_f, src_b, whh_f, whh_b, dst_f, dst_b):
            # Interleaved fwd/bwd recurrence: the two directions are fully
            # independent within a layer, so computing both in one step body
            # lets their MXU pushes / EUP work overlap.
            def step(s, carry):
                h_f, c_f, h_b, c_b = carry
                rf = s * Bp
                rb = (T - 1 - s) * Bp
                if not isinstance(s, int):           # dynamic (fori_loop) path
                    rf = pl.multiple_of(rf, Bp)
                    rb = pl.multiple_of(rb, Bp)
                g_f = src_f[pl.ds(rf, Bp), :] + jnp.dot(
                    h_f, whh_f, preferred_element_type=jnp.float32)   # (Bp,4H)
                g_b = src_b[pl.ds(rb, Bp), :] + jnp.dot(
                    h_b, whh_b, preferred_element_type=jnp.float32)
                # PyTorch gate order i, f, g, o.  Full-width sigmoid/tanh: at
                # H < 128 the whole (Bp, 4H) row sits in one lane tile, so
                # lane-slicing i/f/o vs g would only add relayouts.
                # TODO(synk): slice gate lanes for the EUP when H >= 128.
                sg_f = jax.nn.sigmoid(g_f)
                tg_f = jnp.tanh(g_f)
                sg_b = jax.nn.sigmoid(g_b)
                tg_b = jnp.tanh(g_b)
                c_f = sg_f[:, H:2 * H] * c_f + sg_f[:, 0:H] * tg_f[:, 2 * H:3 * H]
                h_f = sg_f[:, 3 * H:4 * H] * jnp.tanh(c_f)
                c_b = sg_b[:, H:2 * H] * c_b + sg_b[:, 0:H] * tg_b[:, 2 * H:3 * H]
                h_b = sg_b[:, 3 * H:4 * H] * jnp.tanh(c_b)
                dst_f[pl.ds(rf, Bp), :] = h_f        # aligned (Bp,H) store
                dst_b[pl.ds(rb, Bp), :] = h_b
                return h_f, c_f, h_b, c_b

            z = jnp.zeros((Bp, H), jnp.float32)
            carry = (z, z, z, z)
            if T <= _STATIC_UNROLL_MAX_T:
                for s in range(T):                   # static unroll (demo sizes)
                    carry = step(s, carry)
            else:
                # Scale guard: bound live ranges / instruction footprint.
                lax.fori_loop(0, T, step, carry)

        for layer in range(num_layers):
            if layer == 0:
                # Layer-0 gates are read directly from the input refs
                # (no VMEM->VMEM staging copy).
                src_f, src_b = xg0_f_ref, xg0_b_ref
            else:
                # Bulk input-gate projection for this layer: one well-shaped
                # (T*Bp, H)@(H, 4H) matmul per (direction, source-direction);
                # nothing input-related remains on the serial recurrence path.
                hf_prev = hf_ref[...]                # (T*Bp, H) prev layer fwd
                hb_prev = hb_ref[...]                # (T*Bp, H) prev layer bwd
                li_f = (layer - 1) * 2
                li_b = li_f + 1
                xg_f_ref[...] = (
                    jnp.dot(hf_prev, wih_ref[2 * li_f],
                            preferred_element_type=jnp.float32)
                    + jnp.dot(hb_prev, wih_ref[2 * li_f + 1],
                              preferred_element_type=jnp.float32)
                    + b_ref[li_f])
                xg_b_ref[...] = (
                    jnp.dot(hf_prev, wih_ref[2 * li_b],
                            preferred_element_type=jnp.float32)
                    + jnp.dot(hb_prev, wih_ref[2 * li_b + 1],
                              preferred_element_type=jnp.float32)
                    + b_ref[li_b])
                src_f, src_b = xg_f_ref, xg_b_ref
            # Last layer writes its hidden states straight into the outputs.
            dst_f, dst_b = (out_f_ref, out_b_ref) if layer == last else (hf_ref, hb_ref)
            run_layer(src_f, src_b,
                      whh_ref[2 * layer], whh_ref[2 * layer + 1],
                      dst_f, dst_b)

    return kernel


def bilstm_fused(x, params):
    """3-layer bidirectional LSTM, zero initial state.  x: (B,T,Din) -> (B,T,2H)."""
    B, T, Din = x.shape
    whh_all = params["whh_all"]                      # (2*num_layers, H, 4H)
    num_dirs, H, _ = whh_all.shape
    num_layers = num_dirs // 2

    # Pad the batch to a sublane multiple so every per-step recurrence access
    # is an aligned (Bp, .) tile.  Pad rows carry garbage but are row-wise
    # independent and sliced off below.
    Bp = _round_up(B, 8)
    if Bp != B:
        x = jnp.pad(x, ((0, Bp - B), (0, 0), (0, 0)))

    # Hoisted layer-0 input projection: one (T*Bp, Din)@(Din, 4H) XLA matmul
    # per direction (no recurrence -> plain pipelined matmul); rows t*Bp + b.
    x_flat = jnp.transpose(x, (1, 0, 2)).reshape(T * Bp, Din)
    xg0_f = x_flat @ params["wih0_f"] + params["b0_f"]
    xg0_b = x_flat @ params["wih0_b"] + params["b0_b"]

    TB = T * Bp
    # TODO(synk): at realistic T/B/H the (TB,4H) gate buffers must be chunked
    # over T (or held in bf16) to stay under the scoped VMEM limit on v7x.
    kernel = _build_lstm_kernel(T, Bp, H, num_layers)

    flops = ((num_layers - 1) * 2 * 2 * 2 * TB * H * 4 * H       # bulk gate matmuls
             + num_layers * 2 * T * 2 * Bp * H * 4 * H           # recurrence matmuls
             + num_layers * 2 * TB * 4 * H * 8)                  # gate VPU math (rough)
    trans = num_layers * 2 * TB * 9 * H
    bytes_accessed = 4 * (2 * TB * 4 * H + whh_all.size + params["wih_hi"].size
                          + params["b_hi"].size + 2 * TB * H)

    out_f, out_b = pl.pallas_call(
        kernel,
        out_shape=(jax.ShapeDtypeStruct((TB, H), jnp.float32),
                   jax.ShapeDtypeStruct((TB, H), jnp.float32)),
        grid=(1,),
        in_specs=[
            pl.BlockSpec((TB, 4 * H), lambda i: (0, 0)),
            pl.BlockSpec((TB, 4 * H), lambda i: (0, 0)),
            pl.BlockSpec(whh_all.shape, lambda i: (0, 0, 0)),
            pl.BlockSpec(params["wih_hi"].shape, lambda i: (0, 0, 0)),
            pl.BlockSpec(params["b_hi"].shape, lambda i: (0, 0, 0)),
        ],
        out_specs=(pl.BlockSpec((TB, H), lambda i: (0, 0)),
                   pl.BlockSpec((TB, H), lambda i: (0, 0))),
        scratch_shapes=[
            pltpu.VMEM((TB, 4 * H), jnp.float32),   # fwd input gates (layers >= 1)
            pltpu.VMEM((TB, 4 * H), jnp.float32),   # bwd input gates
            pltpu.VMEM((TB, H), jnp.float32),       # previous-layer fwd hidden
            pltpu.VMEM((TB, H), jnp.float32),       # previous-layer bwd hidden
        ],
        compiler_params=pltpu.CompilerParams(dimension_semantics=("arbitrary",)),
        cost_estimate=pl.CostEstimate(flops=int(flops), transcendentals=int(trans),
                                      bytes_accessed=int(bytes_accessed)),
    )(xg0_f, xg0_b, whh_all, params["wih_hi"], params["b_hi"])

    # (t*Bp + b, H) x 2 dirs -> (B, T, 2H) with [forward ; backward] features.
    # TODO(synk): this reorder is one small XLA pass between the two kernels;
    # removing it needs a Mosaic-side 3D transpose in the head (not worth the
    # lowering risk at these shapes).
    hidden = (jnp.concatenate([out_f, out_b], axis=-1)
              .reshape(T, Bp, 2 * H)[:, :B]
              .transpose(1, 0, 2))
    return hidden


# ----------------------------------------------------------------------------
# Kernel 2: biaffine head, gridded over the batch ("parallel" -> both TCs on
# v7x).  Per batch element: relu projections, predicate-first W_R contraction,
# softmax + per-token CE nll, one lane-dense (T, 128) output slab.
# ----------------------------------------------------------------------------
def _build_head_kernel(T, H, tagset):
    def kernel(h_ref, p_ref, wnp_ref, bnp_ref, wp_ref, bp_ref,
               wm_ref, wi_ref, wj_ref, wc_ref, tgt_ref, out_ref):
        hw = jnp.maximum(
            jnp.dot(h_ref[0], wnp_ref[...],
                    preferred_element_type=jnp.float32) + bnp_ref[...], 0.0)   # (T, H)
        pe = jnp.maximum(
            jnp.dot(p_ref[0], wp_ref[...],
                    preferred_element_type=jnp.float32) + bp_ref[...], 0.0)    # (1, H)

        # Biaffine: contract W_R with the predicate vector FIRST.
        #   weff[i, t] = sum_{j<H} W_R3[i,t,j] * pe[j] + W_R3[i,t,H]
        weff = (jnp.dot(pe, wm_ref[...], preferred_element_type=jnp.float32)
                + wi_ref[...]).reshape(H, TS_PAD)                              # (H, 128)
        tag = (jnp.dot(hw, weff, preferred_element_type=jnp.float32)
               + jnp.dot(pe, wj_ref[...], preferred_element_type=jnp.float32)
               + wc_ref[...])            # padded tag lanes receive -1e9 here  (T, 128)

        # softmax over (padded) tag lanes
        m = jnp.max(tag, axis=1, keepdims=True)
        e = jnp.exp(tag - m)
        s = jnp.sum(e, axis=1, keepdims=True)
        probs = e / s                    # padded lanes are exactly 0

        # per-token cross-entropy nll with ignore_index == 0
        logz = m + jnp.log(s)                                        # (T, 1)
        tgt = tgt_ref[0]                                             # (T, 1) int32
        lane = jax.lax.broadcasted_iota(jnp.int32, (T, TS_PAD), 1)
        picked = jnp.sum(jnp.where(lane == tgt, tag, 0.0), axis=1, keepdims=True)
        valid = (tgt != 0).astype(jnp.float32)
        nll = (logz - picked) * valid

        # Lane-dense output slab:
        #   lanes [0:tagset] softmax probs, lane tagset = nll, lane tagset+1 = valid
        out_ref[0] = jnp.where(lane == tagset, nll,
                               jnp.where(lane == tagset + 1, valid, probs))

    return kernel


def biaffine_head(hidden, pred_h, params, tgt3, *, tagset):
    B, T, H2 = hidden.shape
    H = params["Wnp_t"].shape[1]
    assert tagset + 2 <= TS_PAD
    pred3 = pred_h.reshape(B, 1, H2)

    # TODO(synk): at realistic hdim the (H, H*128) wm operand must be tiled over
    # the i-dimension (reduction grid axis + accumulator) to stay VMEM-resident.
    flops = B * (2 * T * H2 * H + 2 * H2 * H + 2 * H * H * TS_PAD
                 + 2 * T * H * TS_PAD + 2 * H * TS_PAD)
    trans = B * T * (TS_PAD + 2)
    bytes_accessed = 4 * (hidden.size + pred3.size + params["wm"].size
                          + params["wi"].size + params["wj"].size + params["wc"].size
                          + params["Wnp_t"].size + params["Wp_t"].size
                          + B * T * TS_PAD + tgt3.size)

    kernel = _build_head_kernel(T, H, tagset)
    out = pl.pallas_call(
        kernel,
        out_shape=jax.ShapeDtypeStruct((B, T, TS_PAD), jnp.float32),
        grid=(B,),
        in_specs=[
            pl.BlockSpec((1, T, H2), lambda b: (b, 0, 0)),
            pl.BlockSpec((1, 1, H2), lambda b: (b, 0, 0)),
            pl.BlockSpec((H2, H), lambda b: (0, 0)),
            pl.BlockSpec((1, H), lambda b: (0, 0)),
            pl.BlockSpec((H2, H), lambda b: (0, 0)),
            pl.BlockSpec((1, H), lambda b: (0, 0)),
            pl.BlockSpec((H, H * TS_PAD), lambda b: (0, 0)),
            pl.BlockSpec((1, H * TS_PAD), lambda b: (0, 0)),
            pl.BlockSpec((H, TS_PAD), lambda b: (0, 0)),
            pl.BlockSpec((1, TS_PAD), lambda b: (0, 0)),
            pl.BlockSpec((1, T, 1), lambda b: (b, 0, 0)),
        ],
        out_specs=pl.BlockSpec((1, T, TS_PAD), lambda b: (b, 0, 0)),
        compiler_params=pltpu.CompilerParams(dimension_semantics=("parallel",)),
        cost_estimate=pl.CostEstimate(flops=int(flops), transcendentals=int(trans),
                                      bytes_accessed=int(bytes_accessed)),
    )(hidden, pred3, params["Wnp_t"], params["bnp"], params["Wp_t"], params["bp"],
      params["wm"], params["wi"], params["wj"], params["wc"], tgt3)
    return out


# ----------------------------------------------------------------------------
# Parameter init (deterministic, in-script; shapes follow the module __init__).
# W_R is decomposed once into the predicate-first form (pure re-layout).
# ----------------------------------------------------------------------------
def _decompose_w_r(W_R, H, TS):
    W3 = W_R.reshape(H + 1, TS, H + 1)                    # [i, t, j]
    pad_t2 = ((0, 0), (0, TS_PAD - TS))
    pad_t3 = ((0, 0), (0, 0), (0, TS_PAD - TS))
    # main term: wm[j, i*TS_PAD + t] = W3[i, t, j]   (i<H, j<H)
    wm = jnp.pad(jnp.transpose(W3[:H, :, :H], (2, 0, 1)), pad_t3).reshape(H, H * TS_PAD)
    # hw-bias term (j == H): wi[0, i*TS_PAD + t] = W3[i, t, H]
    wi = jnp.pad(W3[:H, :, H], pad_t2).reshape(1, H * TS_PAD)
    # pe-bias term (i == H): wj[j, t] = W3[H, t, j]
    wj = jnp.pad(W3[H, :, :H].T, pad_t2)
    # constant term (i == j == H); padded lanes get a very negative logit
    wc = jnp.concatenate(
        [W3[H, :, H], jnp.full((TS_PAD - TS,), NEG_BIG, jnp.float32)])[None, :]
    return wm, wi, wj, wc


def init_params(key, *, vword, vpos, vframe, sent_edim, pos_edim, hdim, tagset,
                num_layers=3):
    Din = 3 * sent_edim + pos_edim + 16                   # SRL input dim
    keys = iter(jax.random.split(key, 64))

    def rnd(shape, scale=0.1):
        return jax.random.normal(next(keys), shape, jnp.float32) * scale

    emb = dict(
        word_SRL=rnd((vword, sent_edim)),
        word_fixed=rnd((vword, sent_edim)),               # stands in for pretrained table
        p_lemma=rnd((vframe, sent_edim)),
        pos=rnd((vpos, pos_edim)),
        region=rnd((2, 16)),
    )

    wih0, b0 = {}, {}
    whh_list, wih_hi_list, b_hi_list = [], [], []
    in_dim = Din
    for layer in range(num_layers):
        for d in ("f", "b"):
            wih_t = rnd((4 * hdim, in_dim)).T             # (in_dim, 4H) for x @ W
            whh_t = rnd((4 * hdim, hdim)).T               # (H, 4H)
            bias = (rnd((4 * hdim,)) + rnd((4 * hdim,)))[None, :]   # b_ih + b_hh
            whh_list.append(whh_t)
            if layer == 0:
                wih0[d] = wih_t
                b0[d] = bias
            else:
                wih_hi_list.append(wih_t[:hdim])          # rows fed by fwd half
                wih_hi_list.append(wih_t[hdim:])          # rows fed by bwd half
                b_hi_list.append(bias)
        in_dim = 2 * hdim

    Wnp = rnd((hdim, 2 * hdim)); bnp = rnd((hdim,))
    Wp = rnd((hdim, 2 * hdim)); bp = rnd((hdim,))
    W_R = jax.random.uniform(next(keys), (hdim + 1, tagset * (hdim + 1)), jnp.float32)
    wm, wi, wj, wc = _decompose_w_r(W_R, hdim, tagset)

    return dict(
        emb=emb,
        VR_embedding=jnp.zeros((1, Din), jnp.float32),    # module inits it to zeros
        wih0_f=wih0["f"], wih0_b=wih0["b"], b0_f=b0["f"], b0_b=b0["b"],
        whh_all=jnp.stack(whh_list, 0),                   # (6, H, 4H)
        wih_hi=jnp.stack(wih_hi_list, 0),                 # (8, H, 4H)
        b_hi=jnp.stack(b_hi_list, 0),                     # (4, 1, 4H)
        Wnp_t=Wnp.T, bnp=bnp[None, :],
        Wp_t=Wp.T, bp=bp[None, :],
        wm=wm, wi=wi, wj=wj, wc=wc,
    )


# ----------------------------------------------------------------------------
# Forward pass (mirrors BiLSTMTagger.forward; eval-mode: dropouts are identity).
# ----------------------------------------------------------------------------
def forward(params, sentence, p_sentence, pos_tags, lengths, target_idx_in,
            region_marks, sent_pred_lemmas_idx, targets, *, tagset):
    B, L = sentence.shape
    T = L + 1
    emb = params["emb"]

    # Embedding lookups + feature concat (XLA gathers; kept outside Pallas).
    embeds_SRL = emb["word_SRL"][sentence]
    fixed_embeds = emb["word_fixed"][p_sentence]
    lemma_embeds = emb["p_lemma"][sent_pred_lemmas_idx]
    pos_embeds = emb["pos"][pos_tags]
    region_embeds = emb["region"][region_marks]
    feats = jnp.concatenate(
        [embeds_SRL, fixed_embeds, lemma_embeds, pos_embeds, region_embeds], axis=2)

    # prepend virtual-root token (VR_embedding + zeros)
    vr = jnp.broadcast_to(params["VR_embedding"][None, :, :], (B, 1, feats.shape[-1]))
    x = jnp.concatenate([vr, feats], axis=1)              # (B, T, Din)

    # nn.Dropout(p=0.3) layers are identity in eval mode (assumed here).
    # TODO(synk): pack_padded_sequence variable-length semantics not implemented;
    # demo assumes all lengths == L, so sort/pack/unsort are identities.
    hidden = bilstm_fused(x, params)                      # (B, T, 2H)

    # predicate hidden states (target index shifted by +1 for the VR token)
    t_idx = target_idx_in + 1
    pred_h = hidden[jnp.arange(B), t_idx]                 # (B, 2H)
    tgt3 = targets.reshape(B, T, 1).astype(jnp.int32)

    out = biaffine_head(hidden, pred_h, params, tgt3, tagset=tagset)
    SRLprobs = out[:, :, :tagset].reshape(B * T, tagset)  # rows ordered b*T + l
    nll_sum = jnp.sum(out[:, :, tagset])
    valid = jnp.sum(out[:, :, tagset + 1])
    SRLloss = nll_sum / jnp.maximum(valid, 1.0)           # CE mean, ignore_index=0
    return SRLloss, SRLprobs


if __name__ == "__main__":
    key = jax.random.PRNGKey(0)
    B, L = 2, 8                      # batch, sentence length (seq in kernel is L+1=9)
    sent_edim, pos_edim, hdim = 32, 16, 32   # -> SRL input dim = 3*32+16+16 = 128
    vword, vpos, vframe, tagset = 50, 12, 30, 10

    pkey, dkey = jax.random.split(key)
    params = init_params(pkey, vword=vword, vpos=vpos, vframe=vframe,
                         sent_edim=sent_edim, pos_edim=pos_edim,
                         hdim=hdim, tagset=tagset)

    ks = jax.random.split(dkey, 8)
    sentence = jax.random.randint(ks[0], (B, L), 0, vword)
    p_sentence = jax.random.randint(ks[1], (B, L), 0, vword)
    pos_tags = jax.random.randint(ks[2], (B, L), 0, vpos)
    sent_pred_lemmas_idx = jax.random.randint(ks[3], (B, L), 0, vframe)
    region_marks = jax.random.randint(ks[4], (B, L), 0, 2)
    targets = jax.random.randint(ks[5], (B, L + 1), 0, tagset)
    target_idx_in = jnp.array([2, 5], dtype=jnp.int32)
    lengths = jnp.full((B,), L, dtype=jnp.int32)

    fwd = jax.jit(functools.partial(forward, tagset=tagset))
    loss, probs = fwd(params, sentence, p_sentence, pos_tags, lengths,
                      target_idx_in, region_marks, sent_pred_lemmas_idx, targets)
    jax.block_until_ready((loss, probs))
    assert probs.shape == (B * (L + 1), tagset)
    assert bool(jnp.isfinite(loss))
    print("KERNEL_OK")
</pallas_src>

<mosaic_0001>
module attributes {stable_mosaic.version = 11 : i64} {
  func.func @kernel(%arg0: i32, %arg1: memref<1x9x64xf32, #tpu.memory_space<vmem>>, %arg2: memref<1x1x64xf32, #tpu.memory_space<vmem>>, %arg3: memref<64x32xf32, #tpu.memory_space<vmem>>, %arg4: memref<1x32xf32, #tpu.memory_space<vmem>>, %arg5: memref<64x32xf32, #tpu.memory_space<vmem>>, %arg6: memref<1x32xf32, #tpu.memory_space<vmem>>, %arg7: memref<32x4096xf32, #tpu.memory_space<vmem>>, %arg8: memref<1x4096xf32, #tpu.memory_space<vmem>>, %arg9: memref<32x128xf32, #tpu.memory_space<vmem>>, %arg10: memref<1x128xf32, #tpu.memory_space<vmem>>, %arg11: memref<1x9x1xi32, #tpu.memory_space<vmem>>, %arg12: memref<1x9x128xf32, #tpu.memory_space<vmem>>) attributes {dimension_semantics = [#tpu.dimension_semantics<parallel>], iteration_bounds = array<i64: 2>, scalar_prefetch = 0 : i64, scratch_operands = 0 : i64, tpu.core_type = #tpu.core_type<tc>, window_params = [{transform_indices = @transform_0, window_bounds = array<i64: 1, 9, 64>}, {transform_indices = @transform_1, window_bounds = array<i64: 1, 1, 64>}, {pipeline_mode = #tpu.pipeline_mode<synchronous>, transform_indices = @transform_2, window_bounds = array<i64: 64, 32>}, {pipeline_mode = #tpu.pipeline_mode<synchronous>, transform_indices = @transform_3, window_bounds = array<i64: 1, 32>}, {pipeline_mode = #tpu.pipeline_mode<synchronous>, transform_indices = @transform_4, window_bounds = array<i64: 64, 32>}, {pipeline_mode = #tpu.pipeline_mode<synchronous>, transform_indices = @transform_5, window_bounds = array<i64: 1, 32>}, {pipeline_mode = #tpu.pipeline_mode<synchronous>, transform_indices = @transform_6, window_bounds = array<i64: 32, 4096>}, {pipeline_mode = #tpu.pipeline_mode<synchronous>, transform_indices = @transform_7, window_bounds = array<i64: 1, 4096>}, {pipeline_mode = #tpu.pipeline_mode<synchronous>, transform_indices = @transform_8, window_bounds = array<i64: 32, 128>}, {pipeline_mode = #tpu.pipeline_mode<synchronous>, transform_indices = @transform_9, window_bounds = array<i64: 1, 128>}, {transform_indices = @transform_10, window_bounds = array<i64: 1, 9, 1>}, {transform_indices = @transform_11, window_bounds = array<i64: 1, 9, 128>}]} {
    %c0 = arith.constant 0 : index
    %c0_0 = arith.constant 0 : index
    %c0_1 = arith.constant 0 : index
    %0 = vector.load %arg1[%c0, %c0_0, %c0_1] : memref<1x9x64xf32, #tpu.memory_space<vmem>>, vector<1x9x64xf32>
    %1 = vector.shape_cast %0 : vector<1x9x64xf32> to vector<9x64xf32>
    %c0_2 = arith.constant 0 : index
    %c0_3 = arith.constant 0 : index
    %2 = vector.load %arg3[%c0_2, %c0_3] : memref<64x32xf32, #tpu.memory_space<vmem>>, vector<64x32xf32>
    %cst = arith.constant dense<0.000000e+00> : vector<9x32xf32>
    %3 = tpu.matmul %1, %2, %cst {dimension_numbers = #tpu.dot_dimension_numbers<[1], [0], [0], [1], [0, 0, 1, 1], [], []>} : vector<9x64xf32>, vector<64x32xf32>, vector<9x32xf32> -> vector<9x32xf32>
    %c0_4 = arith.constant 0 : index
    %c0_5 = arith.constant 0 : index
    %4 = vector.load %arg4[%c0_4, %c0_5] : memref<1x32xf32, #tpu.memory_space<vmem>>, vector<1x32xf32>
    %5 = vector.broadcast %4 : vector<1x32xf32> to vector<9x32xf32>
    %6 = arith.addf %3, %5 : vector<9x32xf32>
    %cst_6 = arith.constant 0.000000e+00 : f32
    %7 = vector.broadcast %cst_6 : f32 to vector<9x32xf32>
    %8 = arith.maximumf %6, %7 : vector<9x32xf32>
    %c0_7 = arith.constant 0 : index
    %c0_8 = arith.constant 0 : index
    %c0_9 = arith.constant 0 : index
    %9 = vector.load %arg2[%c0_7, %c0_8, %c0_9] : memref<1x1x64xf32, #tpu.memory_space<vmem>>, vector<1x1x64xf32>
    %10 = vector.shape_cast %9 : vector<1x1x64xf32> to vector<1x64xf32>
    %c0_10 = arith.constant 0 : index
    %c0_11 = arith.constant 0 : index
    %11 = vector.load %arg5[%c0_10, %c0_11] : memref<64x32xf32, #tpu.memory_space<vmem>>, vector<64x32xf32>
    %cst_12 = arith.constant dense<0.000000e+00> : vector<1x32xf32>
    %12 = tpu.matmul %10, %11, %cst_12 {dimension_numbers = #tpu.dot_dimension_numbers<[1], [0], [0], [1], [0, 0, 1, 1], [], []>} : vector<1x64xf32>, vector<64x32xf32>, vector<1x32xf32> -> vector<1x32xf32>
    %c0_13 = arith.constant 0 : index
    %c0_14 = arith.constant 0 : index
    %13 = vector.load %arg6[%c0_13, %c0_14] : memref<1x32xf32, #tpu.memory_space<vmem>>, vector<1x32xf32>
    %14 = arith.addf %12, %13 : vector<1x32xf32>
    %cst_15 = arith.constant 0.000000e+00 : f32
    %15 = vector.broadcast %cst_15 : f32 to vector<1x32xf32>
    %16 = arith.maximumf %14, %15 : vector<1x32xf32>
    %c0_16 = arith.constant 0 : index
    %c0_17 = arith.constant 0 : index
    %17 = vector.load %arg7[%c0_16, %c0_17] : memref<32x4096xf32, #tpu.memory_space<vmem>>, vector<32x4096xf32>
    %cst_18 = arith.constant dense<0.000000e+00> : vector<1x4096xf32>
    %18 = tpu.matmul %16, %17, %cst_18 {dimension_numbers = #tpu.dot_dimension_numbers<[1], [0], [0], [1], [0, 0, 1, 1], [], []>} : vector<1x32xf32>, vector<32x4096xf32>, vector<1x4096xf32> -> vector<1x4096xf32>
    %c0_19 = arith.constant 0 : index
    %c0_20 = arith.constant 0 : index
    %19 = vector.load %arg8[%c0_19, %c0_20] : memref<1x4096xf32, #tpu.memory_space<vmem>>, vector<1x4096xf32>
    %20 = arith.addf %18, %19 : vector<1x4096xf32>
    %21 = vector.shape_cast %20 : vector<1x4096xf32> to vector<32x128xf32>
    %cst_21 = arith.constant dense<0.000000e+00> : vector<9x128xf32>
    %22 = tpu.matmul %8, %21, %cst_21 {dimension_numbers = #tpu.dot_dimension_numbers<[1], [0], [0], [1], [0, 0, 1, 1], [], []>} : vector<9x32xf32>, vector<32x128xf32>, vector<9x128xf32> -> vector<9x128xf32>
    %c0_22 = arith.constant 0 : index
    %c0_23 = arith.constant 0 : index
    %23 = vector.load %arg9[%c0_22, %c0_23] : memref<32x128xf32, #tpu.memory_space<vmem>>, vector<32x128xf32>
    %cst_24 = arith.constant dense<0.000000e+00> : vector<1x128xf32>
    %24 = tpu.matmul %16, %23, %cst_24 {dimension_numbers = #tpu.dot_dimension_numbers<[1], [0], [0], [1], [0, 0, 1, 1], [], []>} : vector<1x32xf32>, vector<32x128xf32>, vector<1x128xf32> -> vector<1x128xf32>
    %25 = vector.broadcast %24 : vector<1x128xf32> to vector<9x128xf32>
    %26 = arith.addf %22, %25 : vector<9x128xf32>
    %c0_25 = arith.constant 0 : index
    %c0_26 = arith.constant 0 : index
    %27 = vector.load %arg10[%c0_25, %c0_26] : memref<1x128xf32, #tpu.memory_space<vmem>>, vector<1x128xf32>
    %28 = vector.broadcast %27 : vector<1x128xf32> to vector<9x128xf32>
    %29 = arith.addf %26, %28 : vector<9x128xf32>
    %cst_27 = arith.constant dense<0xFF800000> : vector<9xf32>
    %30 = vector.multi_reduction <maximumf>, %29, %cst_27 [1] : vector<9x128xf32> to vector<9xf32>
    %31 = vector.shape_cast %30 : vector<9xf32> to vector<9x1xf32>
    %32 = vector.broadcast %31 : vector<9x1xf32> to vector<9x128xf32>
    %33 = arith.subf %29, %32 : vector<9x128xf32>
    %34 = math.exp %33 : vector<9x128xf32>
    %cst_28 = arith.constant dense<0.000000e+00> : vector<9xf32>
    %35 = vector.multi_reduction <add>, %34, %cst_28 [1] : vector<9x128xf32> to vector<9xf32>
    %36 = vector.shape_cast %35 : vector<9xf32> to vector<9x1xf32>
    %37 = vector.broadcast %36 : vector<9x1xf32> to vector<9x128xf32>
    %38 = arith.divf %34, %37 : vector<9x128xf32>
    %39 = math.log %36 : vector<9x1xf32>
    %40 = arith.addf %31, %39 : vector<9x1xf32>
    %c0_29 = arith.constant 0 : index
    %c0_30 = arith.constant 0 : index
    %c0_31 = arith.constant 0 : index
    %41 = vector.load %arg11[%c0_29, %c0_30, %c0_31] : memref<1x9x1xi32, #tpu.memory_space<vmem>>, vector<1x9x1xi32>
    %42 = vector.shape_cast %41 : vector<1x9x1xi32> to vector<9x1xi32>
    %43 = tpu.iota {dimensions = array<i32: 1>} : vector<9x128xi32>
    %44 = vector.broadcast %42 : vector<9x1xi32> to vector<9x128xi32>
    %45 = arith.cmpi eq, %43, %44 : vector<9x128xi32>
    %cst_32 = arith.constant 0.000000e+00 : f32
    %46 = vector.broadcast %cst_32 : f32 to vector<9x128xf32>
    %47 = arith.select %45, %29, %46 : vector<9x128xi1>, vector<9x128xf32>
    %cst_33 = arith.constant dense<0.000000e+00> : vector<9xf32>
    %48 = vector.multi_reduction <add>, %47, %cst_33 [1] : vector<9x128xf32> to vector<9xf32>
    %49 = vector.shape_cast %48 : vector<9xf32> to vector<9x1xf32>
    %c0_i32 = arith.constant 0 : i32
    %50 = vector.broadcast %c0_i32 : i32 to vector<9x1xi32>
    %51 = arith.cmpi ne, %42, %50 : vector<9x1xi32>
    %52 = arith.extui %51 : vector<9x1xi1> to vector<9x1xi32>
    %53 = arith.sitofp %52 : vector<9x1xi32> to vector<9x1xf32>
    %54 = arith.subf %40, %49 : vector<9x1xf32>
    %55 = arith.mulf %54, %53 : vector<9x1xf32>
    %c10_i32 = arith.constant 10 : i32
    %56 = vector.broadcast %c10_i32 : i32 to vector<9x128xi32>
    %57 = arith.cmpi eq, %43, %56 : vector<9x128xi32>
    %c11_i32 = arith.constant 11 : i32
    %58 = vector.broadcast %c11_i32 : i32 to vector<9x128xi32>
    %59 = arith.cmpi eq, %43, %58 : vector<9x128xi32>
    %60 = vector.shape_cast %53 : vector<9x1xf32> to vector<9x1xf32>
    %61 = vector.broadcast %60 : vector<9x1xf32> to vector<9x128xf32>
    %62 = arith.select %59, %61, %38 : vector<9x128xi1>, vector<9x128xf32>
    %63 = vector.shape_cast %55 : vector<9x1xf32> to vector<9x1xf32>
    %64 = vector.broadcast %63 : vector<9x1xf32> to vector<9x128xf32>
    %65 = arith.select %57, %64, %62 : vector<9x128xi1>, vector<9x128xf32>
    %c0_34 = arith.constant 0 : index
    %c0_35 = arith.constant 0 : index
    %c0_36 = arith.constant 0 : index
    %66 = vector.load %arg12[%c0_34, %c0_35, %c0_36] : memref<1x9x128xf32, #tpu.memory_space<vmem>>, vector<1x9x128xf32>
    %67 = vector.shape_cast %66 : vector<1x9x128xf32> to vector<9x128xf32>
    %68 = vector.shape_cast %65 : vector<9x128xf32> to vector<1x9x128xf32>
    tpu.vector_store %arg12[%c0_34, %c0_35, %c0_36], %68 {strides = array<i32>} : memref<1x9x128xf32, #tpu.memory_space<vmem>>, vector<1x9x128xf32>,
    return
  }
  func.func @transform_0(%arg0: i32) -> (i32, i32, i32) {
    %c0_i32 = arith.constant 0 : i32
    %c0_i32_0 = arith.constant 0 : i32
    %c0_i32_1 = arith.constant 0 : i32
    return %arg0, %c0_i32, %c0_i32_0 : i32, i32, i32
  }
  func.func @transform_1(%arg0: i32) -> (i32, i32, i32) {
    %c0_i32 = arith.constant 0 : i32
    %c0_i32_0 = arith.constant 0 : i32
    %c0_i32_1 = arith.constant 0 : i32
    return %arg0, %c0_i32, %c0_i32_0 : i32, i32, i32
  }
  func.func @transform_2(%arg0: i32) -> (i32, i32) {
    %c0_i32 = arith.constant 0 : i32
    %c0_i32_0 = arith.constant 0 : i32
    %c0_i32_1 = arith.constant 0 : i32
    return %c0_i32, %c0_i32_0 : i32, i32
  }
  func.func @transform_3(%arg0: i32) -> (i32, i32) {
    %c0_i32 = arith.constant 0 : i32
    %c0_i32_0 = arith.constant 0 : i32
    %c0_i32_1 = arith.constant 0 : i32
    return %c0_i32, %c0_i32_0 : i32, i32
  }
  func.func @transform_4(%arg0: i32) -> (i32, i32) {
    %c0_i32 = arith.constant 0 : i32
    %c0_i32_0 = arith.constant 0 : i32
    %c0_i32_1 = arith.constant 0 : i32
    return %c0_i32, %c0_i32_0 : i32, i32
  }
  func.func @transform_5(%arg0: i32) -> (i32, i32) {
    %c0_i32 = arith.constant 0 : i32
    %c0_i32_0 = arith.constant 0 : i32
    %c0_i32_1 = arith.constant 0 : i32
    return %c0_i32, %c0_i32_0 : i32, i32
  }
  func.func @transform_6(%arg0: i32) -> (i32, i32) {
    %c0_i32 = arith.constant 0 : i32
    %c0_i32_0 = arith.constant 0 : i32
    %c0_i32_1 = arith.constant 0 : i32
    return %c0_i32, %c0_i32_0 : i32, i32
  }
  func.func @transform_7(%arg0: i32) -> (i32, i32) {
    %c0_i32 = arith.constant 0 : i32
    %c0_i32_0 = arith.constant 0 : i32
    %c0_i32_1 = arith.constant 0 : i32
    return %c0_i32, %c0_i32_0 : i32, i32
  }
  func.func @transform_8(%arg0: i32) -> (i32, i32) {
    %c0_i32 = arith.constant 0 : i32
    %c0_i32_0 = arith.constant 0 : i32
    %c0_i32_1 = arith.constant 0 : i32
    return %c0_i32, %c0_i32_0 : i32, i32
  }
  func.func @transform_9(%arg0: i32) -> (i32, i32) {
    %c0_i32 = arith.constant 0 : i32
    %c0_i32_0 = arith.constant 0 : i32
    %c0_i32_1 = arith.constant 0 : i32
    return %c0_i32, %c0_i32_0 : i32, i32
  }
  func.func @transform_10(%arg0: i32) -> (i32, i32, i32) {
    %c0_i32 = arith.constant 0 : i32
    %c0_i32_0 = arith.constant 0 : i32
    %c0_i32_1 = arith.constant 0 : i32
    return %arg0, %c0_i32, %c0_i32_0 : i32, i32, i32
  }
  func.func @transform_11(%arg0: i32) -> (i32, i32, i32) {
    %c0_i32 = arith.constant 0 : i32
    %c0_i32_0 = arith.constant 0 : i32
    %c0_i32_1 = arith.constant 0 : i32
    return %arg0, %c0_i32, %c0_i32_0 : i32, i32, i32
  }
}

module attributes {stable_mosaic.version = 11 : i64} {
  func.func @kernel(%arg0: i32, %arg1: memref<72x128xf32, #tpu.memory_space<vmem>>, %arg2: memref<72x128xf32, #tpu.memory_space<vmem>>, %arg3: memref<6x32x128xf32, #tpu.memory_space<vmem>>, %arg4: memref<8x32x128xf32, #tpu.memory_space<vmem>>, %arg5: memref<4x1x128xf32, #tpu.memory_space<vmem>>, %arg6: memref<72x32xf32, #tpu.memory_space<vmem>>, %arg7: memref<72x32xf32, #tpu.memory_space<vmem>>, %arg8: memref<72x128xf32, #tpu.memory_space<vmem>>, %arg9: memref<72x128xf32, #tpu.memory_space<vmem>>, %arg10: memref<72x32xf32, #tpu.memory_space<vmem>>, %arg11: memref<72x32xf32, #tpu.memory_space<vmem>>) attributes {dimension_semantics = [#tpu.dimension_semantics<arbitrary>], iteration_bounds = array<i64: 1>, scalar_prefetch = 0 : i64, scratch_operands = 4 : i64, tpu.core_type = #tpu.core_type<tc>, window_params = [{pipeline_mode = #tpu.pipeline_mode<synchronous>, transform_indices = @transform_0, window_bounds = array<i64: 72, 128>}, {pipeline_mode = #tpu.pipeline_mode<synchronous>, transform_indices = @transform_1, window_bounds = array<i64: 72, 128>}, {pipeline_mode = #tpu.pipeline_mode<synchronous>, transform_indices = @transform_2, window_bounds = array<i64: 6, 32, 128>}, {pipeline_mode = #tpu.pipeline_mode<synchronous>, transform_indices = @transform_3, window_bounds = array<i64: 8, 32, 128>}, {pipeline_mode = #tpu.pipeline_mode<synchronous>, transform_indices = @transform_4, window_bounds = array<i64: 4, 1, 128>}, {pipeline_mode = #tpu.pipeline_mode<synchronous>, transform_indices = @transform_5, window_bounds = array<i64: 72, 32>}, {pipeline_mode = #tpu.pipeline_mode<synchronous>, transform_indices = @transform_6, window_bounds = array<i64: 72, 32>}]} {
    %c0 = arith.constant 0 : index
    %c0_0 = arith.constant 0 : index
    %c0_1 = arith.constant 0 : index
    %0 = vector.load %arg3[%c0, %c0_0, %c0_1] : memref<6x32x128xf32, #tpu.memory_space<vmem>>, vector<1x32x128xf32>
    %1 = vector.shape_cast %0 : vector<1x32x128xf32> to vector<32x128xf32>
    %c1 = arith.constant 1 : index
    %c0_2 = arith.constant 0 : index
    %c0_3 = arith.constant 0 : index
    %2 = vector.load %arg3[%c1, %c0_2, %c0_3] : memref<6x32x128xf32, #tpu.memory_space<vmem>>, vector<1x32x128xf32>
    %3 = vector.shape_cast %2 : vector<1x32x128xf32> to vector<32x128xf32>
    %cst = arith.constant 0.000000e+00 : f32
    %4 = vector.broadcast %cst : f32 to vector<8x32xf32>
    %c0_4 = arith.constant 0 : index
    %c0_5 = arith.constant 0 : index
    %5 = vector.load %arg1[%c0_4, %c0_5] : memref<72x128xf32, #tpu.memory_space<vmem>>, vector<8x128xf32>
    %cst_6 = arith.constant dense<0.000000e+00> : vector<8x128xf32>
    %6 = tpu.matmul %4, %1, %cst_6 {dimension_numbers = #tpu.dot_dimension_numbers<[1], [0], [0], [1], [0, 0, 1, 1], [], []>} : vector<8x32xf32>, vector<32x128xf32>, vector<8x128xf32> -> vector<8x128xf32>
    %7 = arith.addf %5, %6 : vector<8x128xf32>
    %c64 = arith.constant 64 : index
    %c0_7 = arith.constant 0 : index
    %8 = vector.load %arg2[%c64, %c0_7] : memref<72x128xf32, #tpu.memory_space<vmem>>, vector<8x128xf32>
    %cst_8 = arith.constant dense<0.000000e+00> : vector<8x128xf32>
    %9 = tpu.matmul %4, %3, %cst_8 {dimension_numbers = #tpu.dot_dimension_numbers<[1], [0], [0], [1], [0, 0, 1, 1], [], []>} : vector<8x32xf32>, vector<32x128xf32>, vector<8x128xf32> -> vector<8x128xf32>
    %10 = arith.addf %8, %9 : vector<8x128xf32>
    %11 = arith.negf %7 : vector<8x128xf32>
    %12 = math.exp %11 : vector<8x128xf32>
    %cst_9 = arith.constant 1.000000e+00 : f32
    %13 = vector.broadcast %cst_9 : f32 to vector<8x128xf32>
    %14 = arith.addf %13, %12 : vector<8x128xf32>
    %15 = arith.divf %13, %14 : vector<8x128xf32>
    %16 = math.tanh %7 : vector<8x128xf32>
    %17 = arith.negf %10 : vector<8x128xf32>
    %18 = math.exp %17 : vector<8x128xf32>
    %cst_10 = arith.constant 1.000000e+00 : f32
    %19 = vector.broadcast %cst_10 : f32 to vector<8x128xf32>
    %20 = arith.addf %19, %18 : vector<8x128xf32>
    %21 = arith.divf %19, %20 : vector<8x128xf32>
    %22 = math.tanh %10 : vector<8x128xf32>
    %23 = vector.extract_strided_slice %15 {offsets = [0, 32], sizes = [8, 32], strides = [1, 1]} : vector<8x128xf32> to vector<8x32xf32>
    %24 = arith.mulf %23, %4 : vector<8x32xf32>
    %25 = vector.extract_strided_slice %15 {offsets = [0, 0], sizes = [8, 32], strides = [1, 1]} : vector<8x128xf32> to vector<8x32xf32>
    %26 = vector.extract_strided_slice %16 {offsets = [0, 64], sizes = [8, 32], strides = [1, 1]} : vector<8x128xf32> to vector<8x32xf32>
    %27 = arith.mulf %25, %26 : vector<8x32xf32>
    %28 = arith.addf %24, %27 : vector<8x32xf32>
    %29 = vector.extract_strided_slice %15 {offsets = [0, 96], sizes = [8, 32], strides = [1, 1]} : vector<8x128xf32> to vector<8x32xf32>
    %30 = math.tanh %28 : vector<8x32xf32>
    %31 = arith.mulf %29, %30 : vector<8x32xf32>
    %32 = vector.extract_strided_slice %21 {offsets = [0, 32], sizes = [8, 32], strides = [1, 1]} : vector<8x128xf32> to vector<8x32xf32>
    %33 = arith.mulf %32, %4 : vector<8x32xf32>
    %34 = vector.extract_strided_slice %21 {offsets = [0, 0], sizes = [8, 32], strides = [1, 1]} : vector<8x128xf32> to vector<8x32xf32>
    %35 = vector.extract_strided_slice %22 {offsets = [0, 64], sizes = [8, 32], strides = [1, 1]} : vector<8x128xf32> to vector<8x32xf32>
    %36 = arith.mulf %34, %35 : vector<8x32xf32>
    %37 = arith.addf %33, %36 : vector<8x32xf32>
    %38 = vector.extract_strided_slice %21 {offsets = [0, 96], sizes = [8, 32], strides = [1, 1]} : vector<8x128xf32> to vector<8x32xf32>
    %39 = math.tanh %37 : vector<8x32xf32>
    %40 = arith.mulf %38, %39 : vector<8x32xf32>
    %c0_11 = arith.constant 0 : index
    %c0_12 = arith.constant 0 : index
    %41 = vector.load %arg10[%c0_11, %c0_12] : memref<72x32xf32, #tpu.memory_space<vmem>>, vector<8x32xf32>
    tpu.vector_store %arg10[%c0_11, %c0_12], %31 {strides = array<i32>} : memref<72x32xf32, #tpu.memory_space<vmem>>, vector<8x32xf32>,
    %c64_13 = arith.constant 64 : index
    %c0_14 = arith.constant 0 : index
    %42 = vector.load %arg11[%c64_13, %c0_14] : memref<72x32xf32, #tpu.memory_space<vmem>>, vector<8x32xf32>
    tpu.vector_store %arg11[%c64_13, %c0_14], %40 {strides = array<i32>} : memref<72x32xf32, #tpu.memory_space<vmem>>, vector<8x32xf32>,
    %c8 = arith.constant 8 : index
    %c0_15 = arith.constant 0 : index
    %43 = vector.load %arg1[%c8, %c0_15] : memref<72x128xf32, #tpu.memory_space<vmem>>, vector<8x128xf32>
    %cst_16 = arith.constant dense<0.000000e+00> : vector<8x128xf32>
    %44 = tpu.matmul %31, %1, %cst_16 {dimension_numbers = #tpu.dot_dimension_numbers<[1], [0], [0], [1], [0, 0, 1, 1], [], []>} : vector<8x32xf32>, vector<32x128xf32>, vector<8x128xf32> -> vector<8x128xf32>
    %45 = arith.addf %43, %44 : vector<8x128xf32>
    %c56 = arith.constant 56 : index
    %c0_17 = arith.constant 0 : index
    %46 = vector.load %arg2[%c56, %c0_17] : memref<72x128xf32, #tpu.memory_space<vmem>>, vector<8x128xf32>
    %cst_18 = arith.constant dense<0.000000e+00> : vector<8x128xf32>
    %47 = tpu.matmul %40, %3, %cst_18 {dimension_numbers = #tpu.dot_dimension_numbers<[1], [0], [0], [1], [0, 0, 1, 1], [], []>} : vector<8x32xf32>, vector<32x128xf32>, vector<8x128xf32> -> vector<8x128xf32>
    %48 = arith.addf %46, %47 : vector<8x128xf32>
    %49 = arith.negf %45 : vector<8x128xf32>
    %50 = math.exp %49 : vector<8x128xf32>
    %cst_19 = arith.constant 1.000000e+00 : f32
    %51 = vector.broadcast %cst_19 : f32 to vector<8x128xf32>
    %52 = arith.addf %51, %50 : vector<8x128xf32>
    %53 = arith.divf %51, %52 : vector<8x128xf32>
    %54 = math.tanh %45 : vector<8x128xf32>
    %55 = arith.negf %48 : vector<8x128xf32>
    %56 = math.exp %55 : vector<8x128xf32>
    %cst_20 = arith.constant 1.000000e+00 : f32
    %57 = vector.broadcast %cst_20 : f32 to vector<8x128xf32>
    %58 = arith.addf %57, %56 : vector<8x128xf32>
    %59 = arith.divf %57, %58 : vector<8x128xf32>
    %60 = math.tanh %48 : vector<8x128xf32>
    %61 = vector.extract_strided_slice %53 {offsets = [0, 32], sizes = [8, 32], strides = [1, 1]} : vector<8x128xf32> to vector<8x32xf32>
    %62 = arith.mulf %61, %28 : vector<8x32xf32>
    %63 = vector.extract_strided_slice %53 {offsets = [0, 0], sizes = [8, 32], strides = [1, 1]} : vector<8x128xf32> to vector<8x32xf32>
    %64 = vector.extract_strided_slice %54 {offsets = [0, 64], sizes = [8, 32], strides = [1, 1]} : vector<8x128xf32> to vector<8x32xf32>
    %65 = arith.mulf %63, %64 : vector<8x32xf32>
    %66 = arith.addf %62, %65 : vector<8x32xf32>
    %67 = vector.extract_strided_slice %53 {offsets = [0, 96], sizes = [8, 32], strides = [1, 1]} : vector<8x128xf32> to vector<8x32xf32>
    %68 = math.tanh %66 : vector<8x32xf32>
    %69 = arith.mulf %67, %68 : vector<8x32xf32>
    %70 = vector.extract_strided_slice %59 {offsets = [0, 32], sizes = [8, 32], strides = [1, 1]} : vector<8x128xf32> to vector<8x32xf32>
    %71 = arith.mulf %70, %37 : vector<8x32xf32>
    %72 = vector.extract_strided_slice %59 {offsets = [0, 0], sizes = [8, 32], strides = [1, 1]} : vector<8x128xf32> to vector<8x32xf32>
    %73 = vector.extract_strided_slice %60 {offsets = [0, 64], sizes = [8, 32], strides = [1, 1]} : vector<8x128xf32> to vector<8x32xf32>
    %74 = arith.mulf %72, %73 : vector<8x32xf32>
    %75 = arith.addf %71, %74 : vector<8x32xf32>
    %76 = vector.extract_strided_slice %59 {offsets = [0, 96], sizes = [8, 32], strides = [1, 1]} : vector<8x128xf32> to vector<8x32xf32>
    %77 = math.tanh %75 : vector<8x32xf32>
    %78 = arith.mulf %76, %77 : vector<8x32xf32>
    %c8_21 = arith.constant 8 : index
    %c0_22 = arith.constant 0 : index
    %79 = vector.load %arg10[%c8_21, %c0_22] : memref<72x32xf32, #tpu.memory_space<vmem>>, vector<8x32xf32>
    tpu.vector_store %arg10[%c8_21, %c0_22], %69 {strides = array<i32>} : memref<72x32xf32, #tpu.memory_space<vmem>>, vector<8x32xf32>,
    %c56_23 = arith.constant 56 : index
    %c0_24 = arith.constant 0 : index
    %80 = vector.load %arg11[%c56_23, %c0_24] : memref<72x32xf32, #tpu.memory_space<vmem>>, vector<8x32xf32>
    tpu.vector_store %arg11[%c56_23, %c0_24], %78 {strides = array<i32>} : memref<72x32xf32, #tpu.memory_space<vmem>>, vector<8x32xf32>,
    %c16 = arith.constant 16 : index
    %c0_25 = arith.constant 0 : index
    %81 = vector.load %arg1[%c16, %c0_25] : memref<72x128xf32, #tpu.memory_space<vmem>>, vector<8x128xf32>
    %cst_26 = arith.constant dense<0.000000e+00> : vector<8x128xf32>
    %82 = tpu.matmul %69, %1, %cst_26 {dimension_numbers = #tpu.dot_dimension_numbers<[1], [0], [0], [1], [0, 0, 1, 1], [], []>} : vector<8x32xf32>, vector<32x128xf32>, vector<8x128xf32> -> vector<8x128xf32>
    %83 = arith.addf %81, %82 : vector<8x128xf32>
    %c48 = arith.constant 48 : index
    %c0_27 = arith.constant 0 : index
    %84 = vector.load %arg2[%c48, %c0_27] : memref<72x128xf32, #tpu.memory_space<vmem>>, vector<8x128xf32>
    %cst_28 = arith.constant dense<0.000000e+00> : vector<8x128xf32>
    %85 = tpu.matmul %78, %3, %cst_28 {dimension_numbers = #tpu.dot_dimension_numbers<[1], [0], [0], [1], [0, 0, 1, 1], [], []>} : vector<8x32xf32>, vector<32x128xf32>, vector<8x128xf32> -> vector<8x128xf32>
    %86 = arith.addf %84, %85 : vector<8x128xf32>
    %87 = arith.negf %83 : vector<8x128xf32>
    %88 = math.exp %87 : vector<8x128xf32>
    %cst_29 = arith.constant 1.000000e+00 : f32
    %89 = vector.broadcast %cst_29 : f32 to vector<8x128xf32>
    %90 = arith.addf %89, %88 : vector<8x128xf32>
    %91 = arith.divf %89, %90 : vector<8x128xf32>
    %92 = math.tanh %83 : vector<8x128xf32>
    %93 = arith.negf %86 : vector<8x128xf32>
    %94 = math.exp %93 : vector<8x128xf32>
    %cst_30 = arith.constant 1.000000e+00 : f32
    %95 = vector.broadcast %cst_30 : f32 to vector<8x128xf32>
    %96 = arith.addf %95, %94 : vector<8x128xf32>
    %97 = arith.divf %95, %96 : vector<8x128xf32>
    %98 = math.tanh %86 : vector<8x128xf32>
    %99 = vector.extract_strided_slice %91 {offsets = [0, 32], sizes = [8, 32], strides = [1, 1]} : vector<8x128xf32> to vector<8x32xf32>
    %100 = arith.mulf %99, %66 : vector<8x32xf32>
    %101 = vector.extract_strided_slice %91 {offsets = [0, 0], sizes = [8, 32], strides = [1, 1]} : vector<8x128xf32> to vector<8x32xf32>
    %102 = vector.extract_strided_slice %92 {offsets = [0, 64], sizes = [8, 32], strides = [1, 1]} : vector<8x128xf32> to vector<8x32xf32>
    %103 = arith.mulf %101, %102 : vector<8x32xf32>
    %104 = arith.addf %100, %103 : vector<8x32xf32>
    %105 = vector.extract_strided_slice %91 {offsets = [0, 96], sizes = [8, 32], strides = [1, 1]} : vector<8x128xf32> to vector<8x32xf32>
    %106 = math.tanh %104 : vector<8x32xf32>
    %107 = arith.mulf %105, %106 : vector<8x32xf32>
    %108 = vector.extract_strided_slice %97 {offsets = [0, 32], sizes = [8, 32], strides = [1, 1]} : vector<8x128xf32> to vector<8x32xf32>
    %109 = arith.mulf %108, %75 : vector<8x32xf32>
    %110 = vector.extract_strided_slice %97 {offsets = [0, 0], sizes = [8, 32], strides = [1, 1]} : vector<8x128xf32> to vector<8x32xf32>
    %111 = vector.extract_strided_slice %98 {offsets = [0, 64], sizes = [8, 32], strides = [1, 1]} : vector<8x128xf32> to vector<8x32xf32>
    %112 = arith.mulf %110, %111 : vector<8x32xf32>
    %113 = arith.addf %109, %112 : vector<8x32xf32>
    %114 = vector.extract_strided_slice %97 {offsets = [0, 96], sizes = [8, 32], strides = [1, 1]} : vector<8x128xf32> to vector<8x32xf32>
    %115 = math.tanh %113 : vector<8x32xf32>
    %116 = arith.mulf %114, %115 : vector<8x32xf32>
    %c16_31 = arith.constant 16 : index
    %c0_32 = arith.constant 0 : index
    %117 = vector.load %arg10[%c16_31, %c0_32] : memref<72x32xf32, #tpu.memory_space<vmem>>, vector<8x32xf32>
    tpu.vector_store %arg10[%c16_31, %c0_32], %107 {strides = array<i32>} : memref<72x32xf32, #tpu.memory_space<vmem>>, vector<8x32xf32>,
    %c48_33 = arith.constant 48 : index
    %c0_34 = arith.constant 0 : index
    %118 = vector.load %arg11[%c48_33, %c0_34] : memref<72x32xf32, #tpu.memory_space<vmem>>, vector<8x32xf32>
    tpu.vector_store %arg11[%c48_33, %c0_34], %116 {strides = array<i32>} : memref<72x32xf32, #tpu.memory_space<vmem>>, vector<8x32xf32>,
    %c24 = arith.constant 24 : index
    %c0_35 = arith.constant 0 : index
    %119 = vector.load %arg1[%c24, %c0_35] : memref<72x128xf32, #tpu.memory_space<vmem>>, vector<8x128xf32>
    %cst_36 = arith.constant dense<0.000000e+00> : vector<8x128xf32>
    %120 = tpu.matmul %107, %1, %cst_36 {dimension_numbers = #tpu.dot_dimension_numbers<[1], [0], [0], [1], [0, 0, 1, 1], [], []>} : vector<8x32xf32>, vector<32x128xf32>, vector<8x128xf32> -> vector<8x128xf32>
    %121 = arith.addf %119, %120 : vector<8x128xf32>
    %c40 = arith.constant 40 : index
    %c0_37 = arith.constant 0 : index
    %122 = vector.load %arg2[%c40, %c0_37] : memref<72x128xf32, #tpu.memory_space<vmem>>, vector<8x128xf32>
    %cst_38 = arith.constant dense<0.000000e+00> : vector<8x128xf32>
    %123 = tpu.matmul %116, %3, %cst_38 {dimension_numbers = #tpu.dot_dimension_numbers<[1], [0], [0], [1], [0, 0, 1, 1], [], []>} : vector<8x32xf32>, vector<32x128xf32>, vector<8x128xf32> -> vector<8x128xf32>
    %124 = arith.addf %122, %123 : vector<8x128xf32>
    %125 = arith.negf %121 : vector<8x128xf32>
    %126 = math.exp %125 : vector<8x128xf32>
    %cst_39 = arith.constant 1.000000e+00 : f32
    %127 = vector.broadcast %cst_39 : f32 to vector<8x128xf32>
    %128 = arith.addf %127, %126 : vector<8x128xf32>
    %129 = arith.divf %127, %128 : vector<8x128xf32>
    %130 = math.tanh %121 : vector<8x128xf32>
    %131 = arith.negf %124 : vector<8x128xf32>
    %132 = math.exp %131 : vector<8x128xf32>
    %cst_40 = arith.constant 1.000000e+00 : f32
    %133 = vector.broadcast %cst_40 : f32 to vector<8x128xf32>
    %134 = arith.addf %133, %132 : vector<8x128xf32>
    %135 = arith.divf %133, %134 : vector<8x128xf32>
    %136 = math.tanh %124 : vector<8x128xf32>
    %137 = vector.extract_strided_slice %129 {offsets = [0, 32], sizes = [8, 32], strides = [1, 1]} : vector<8x128xf32> to vector<8x32xf32>
    %138 = arith.mulf %137, %104 : vector<8x32xf32>
    %139 = vector.extract_strided_slice %129 {offsets = [0, 0], sizes = [8, 32], strides = [1, 1]} : vector<8x128xf32> to vector<8x32xf32>
    %140 = vector.extract_strided_slice %130 {offsets = [0, 64], sizes = [8, 32], strides = [1, 1]} : vector<8x128xf32> to vector<8x32xf32>
    %141 = arith.mulf %139, %140 : vector<8x32xf32>
    %142 = arith.addf %138, %141 : vector<8x32xf32>
    %143 = vector.extract_strided_slice %129 {offsets = [0, 96], sizes = [8, 32], strides = [1, 1]} : vector<8x128xf32> to vector<8x32xf32>
    %144 = math.tanh %142 : vector<8x32xf32>
    %145 = arith.mulf %143, %144 : vector<8x32xf32>
    %146 = vector.extract_strided_slice %135 {offsets = [0, 32], sizes = [8, 32], strides = [1, 1]} : vector<8x128xf32> to vector<8x32xf32>
    %147 = arith.mulf %146, %113 : vector<8x32xf32>
    %148 = vector.extract_strided_slice %135 {offsets = [0, 0], sizes = [8, 32], strides = [1, 1]} : vector<8x128xf32> to vector<8x32xf32>
    %149 = vector.extract_strided_slice %136 {offsets = [0, 64], sizes = [8, 32], strides = [1, 1]} : vector<8x128xf32> to vector<8x32xf32>
    %150 = arith.mulf %148, %149 : vector<8x32xf32>
    %151 = arith.addf %147, %150 : vector<8x32xf32>
    %152 = vector.extract_strided_slice %135 {offsets = [0, 96], sizes = [8, 32], strides = [1, 1]} : vector<8x128xf32> to vector<8x32xf32>
    %153 = math.tanh %151 : vector<8x32xf32>
    %154 = arith.mulf %152, %153 : vector<8x32xf32>
    %c24_41 = arith.constant 24 : index
    %c0_42 = arith.constant 0 : index
    %155 = vector.load %arg10[%c24_41, %c0_42] : memref<72x32xf32, #tpu.memory_space<vmem>>, vector<8x32xf32>
    tpu.vector_store %arg10[%c24_41, %c0_42], %145 {strides = array<i32>} : memref<72x32xf32, #tpu.memory_space<vmem>>, vector<8x32xf32>,
    %c40_43 = arith.constant 40 : index
    %c0_44 = arith.constant 0 : index
    %156 = vector.load %arg11[%c40_43, %c0_44] : memref<72x32xf32, #tpu.memory_space<vmem>>, vector<8x32xf32>
    tpu.vector_store %arg11[%c40_43, %c0_44], %154 {strides = array<i32>} : memref<72x32xf32, #tpu.memory_space<vmem>>, vector<8x32xf32>,
    %c32 = arith.constant 32 : index
    %c0_45 = arith.constant 0 : index
    %157 = vector.load %arg1[%c32, %c0_45] : memref<72x128xf32, #tpu.memory_space<vmem>>, vector<8x128xf32>
    %cst_46 = arith.constant dense<0.000000e+00> : vector<8x128xf32>
    %158 = tpu.matmul %145, %1, %cst_46 {dimension_numbers = #tpu.dot_dimension_numbers<[1], [0], [0], [1], [0, 0, 1, 1], [], []>} : vector<8x32xf32>, vector<32x128xf32>, vector<8x128xf32> -> vector<8x128xf32>
    %159 = arith.addf %157, %158 : vector<8x128xf32>
    %c32_47 = arith.constant 32 : index
    %c0_48 = arith.constant 0 : index
    %160 = vector.load %arg2[%c32_47, %c0_48] : memref<72x128xf32, #tpu.memory_space<vmem>>, vector<8x128xf32>
    %cst_49 = arith.constant dense<0.000000e+00> : vector<8x128xf32>
    %161 = tpu.matmul %154, %3, %cst_49 {dimension_numbers = #tpu.dot_dimension_numbers<[1], [0], [0], [1], [0, 0, 1, 1], [], []>} : vector<8x32xf32>, vector<32x128xf32>, vector<8x128xf32> -> vector<8x128xf32>
    %162 = arith.addf %160, %161 : vector<8x128xf32>
    %163 = arith.negf %159 : vector<8x128xf32>
    %164 = math.exp %163 : vector<8x128xf32>
    %cst_50 = arith.constant 1.000000e+00 : f32
    %165 = vector.broadcast %cst_50 : f32 to vector<8x128xf32>
    %166 = arith.addf %165, %164 : vector<8x128xf32>
    %167 = arith.divf %165, %166 : vector<8x128xf32>
    %168 = math.tanh %159 : vector<8x128xf32>
    %169 = arith.negf %162 : vector<8x128xf32>
    %170 = math.exp %169 : vector<8x128xf32>
    %cst_51 = arith.constant 1.000000e+00 : f32
    %171 = vector.broadcast %cst_51 : f32 to vector<8x128xf32>
    %172 = arith.addf %171, %170 : vector<8x128xf32>
    %173 = arith.divf %171, %172 : vector<8x128xf32>
    %174 = math.tanh %162 : vector<8x128xf32>
    %175 = vector.extract_strided_slice %167 {offsets = [0, 32], sizes = [8, 32], strides = [1, 1]} : vector<8x128xf32> to vector<8x32xf32>
    %176 = arith.mulf %175, %142 : vector<8x32xf32>
    %177 = vector.extract_strided_slice %167 {offsets = [0, 0], sizes = [8, 32], strides = [1, 1]} : vector<8x128xf32> to vector<8x32xf32>
    %178 = vector.extract_strided_slice %168 {offsets = [0, 64], sizes = [8, 32], strides = [1, 1]} : vector<8x128xf32> to vector<8x32xf32>
    %179 = arith.mulf %177, %178 : vector<8x32xf32>
    %180 = arith.addf %176, %179 : vector<8x32xf32>
    %181 = vector.extract_strided_slice %167 {offsets = [0, 96], sizes = [8, 32], strides = [1, 1]} : vector<8x128xf32> to vector<8x32xf32>
    %182 = math.tanh %180 : vector<8x32xf32>
    %183 = arith.mulf %181, %182 : vector<8x32xf32>
    %184 = vector.extract_strided_slice %173 {offsets = [0, 32], sizes = [8, 32], strides = [1, 1]} : vector<8x128xf32> to vector<8x32xf32>
    %185 = arith.mulf %184, %151 : vector<8x32xf32>
    %186 = vector.extract_strided_slice %173 {offsets = [0, 0], sizes = [8, 32], strides = [1, 1]} : vector<8x128xf32> to vector<8x32xf32>
    %187 = vector.extract_strided_slice %174 {offsets = [0, 64], sizes = [8, 32], strides = [1, 1]} : vector<8x128xf32> to vector<8x32xf32>
    %188 = arith.mulf %186, %187 : vector<8x32xf32>
    %189 = arith.addf %185, %188 : vector<8x32xf32>
    %190 = vector.extract_strided_slice %173 {offsets = [0, 96], sizes = [8, 32], strides = [1, 1]} : vector<8x128xf32> to vector<8x32xf32>
    %191 = math.tanh %189 : vector<8x32xf32>
    %192 = arith.mulf %190, %191 : vector<8x32xf32>
    %c32_52 = arith.constant 32 : index
    %c0_53 = arith.constant 0 : index
    %193 = vector.load %arg10[%c32_52, %c0_53] : memref<72x32xf32, #tpu.memory_space<vmem>>, vector<8x32xf32>
    tpu.vector_store %arg10[%c32_52, %c0_53], %183 {strides = array<i32>} : memref<72x32xf32, #tpu.memory_space<vmem>>, vector<8x32xf32>,
    %c32_54 = arith.constant 32 : index
    %c0_55 = arith.constant 0 : index
    %194 = vector.load %arg11[%c32_54, %c0_55] : memref<72x32xf32, #tpu.memory_space<vmem>>, vector<8x32xf32>
    tpu.vector_store %arg11[%c32_54, %c0_55], %192 {strides = array<i32>} : memref<72x32xf32, #tpu.memory_space<vmem>>, vector<8x32xf32>,
    %c40_56 = arith.constant 40 : index
    %c0_57 = arith.constant 0 : index
    %195 = vector.load %arg1[%c40_56, %c0_57] : memref<72x128xf32, #tpu.memory_space<vmem>>, vector<8x128xf32>
    %cst_58 = arith.constant dense<0.000000e+00> : vector<8x128xf32>
    %196 = tpu.matmul %183, %1, %cst_58 {dimension_numbers = #tpu.dot_dimension_numbers<[1], [0], [0], [1], [0, 0, 1, 1], [], []>} : vector<8x32xf32>, vector<32x128xf32>, vector<8x128xf32> -> vector<8x128xf32>
    %197 = arith.addf %195, %196 : vector<8x128xf32>
    %c24_59 = arith.constant 24 : index
    %c0_60 = arith.constant 0 : index
    %198 = vector.load %arg2[%c24_59, %c0_60] : memref<72x128xf32, #tpu.memory_space<vmem>>, vector<8x128xf32>
    %cst_61 = arith.constant dense<0.000000e+00> : vector<8x128xf32>
    %199 = tpu.matmul %192, %3, %cst_61 {dimension_numbers = #tpu.dot_dimension_numbers<[1], [0], [0], [1], [0, 0, 1, 1], [], []>} : vector<8x32xf32>, vector<32x128xf32>, vector<8x128xf32> -> vector<8x128xf32>
    %200 = arith.addf %198, %199 : vector<8x128xf32>
    %201 = arith.negf %197 : vector<8x128xf32>
    %202 = math.exp %201 : vector<8x128xf32>
    %cst_62 = arith.constant 1.000000e+00 : f32
    %203 = vector.broadcast %cst_62 : f32 to vector<8x128xf32>
    %204 = arith.addf %203, %202 : vector<8x128xf32>
    %205 = arith.divf %203, %204 : vector<8x128xf32>
    %206 = math.tanh %197 : vector<8x128xf32>
    %207 = arith.negf %200 : vector<8x128xf32>
    %208 = math.exp %207 : vector<8x128xf32>
    %cst_63 = arith.constant 1.000000e+00 : f32
    %209 = vector.broadcast %cst_63 : f32 to vector<8x128xf32>
    %210 = arith.addf %209, %208 : vector<8x128xf32>
    %211 = arith.divf %209, %210 : vector<8x128xf32>
    %212 = math.tanh %200 : vector<8x128xf32>
    %213 = vector.extract_strided_slice %205 {offsets = [0, 32], sizes = [8, 32], strides = [1, 1]} : vector<8x128xf32> to vector<8x32xf32>
    %214 = arith.mulf %213, %180 : vector<8x32xf32>
    %215 = vector.extract_strided_slice %205 {offsets = [0, 0], sizes = [8, 32], strides = [1, 1]} : vector<8x128xf32> to vector<8x32xf32>
    %216 = vector.extract_strided_slice %206 {offsets = [0, 64], sizes = [8, 32], strides = [1, 1]} : vector<8x128xf32> to vector<8x32xf32>
    %217 = arith.mulf %215, %216 : vector<8x32xf32>
    %218 = arith.addf %214, %217 : vector<8x32xf32>
    %219 = vector.extract_strided_slice %205 {offsets = [0, 96], sizes = [8, 32], strides = [1, 1]} : vector<8x128xf32> to vector<8x32xf32>
    %220 = math.tanh %218 : vector<8x32xf32>
    %221 = arith.mulf %219, %220 : vector<8x32xf32>
    %222 = vector.extract_strided_slice %211 {offsets = [0, 32], sizes = [8, 32], strides = [1, 1]} : vector<8x128xf32> to vector<8x32xf32>
    %223 = arith.mulf %222, %189 : vector<8x32xf32>
    %224 = vector.extract_strided_slice %211 {offsets = [0, 0], sizes = [8, 32], strides = [1, 1]} : vector<8x128xf32> to vector<8x32xf32>
    %225 = vector.extract_strided_slice %212 {offsets = [0, 64], sizes = [8, 32], strides = [1, 1]} : vector<8x128xf32> to vector<8x32xf32>
    %226 = arith.mulf %224, %225 : vector<8x32xf32>
    %227 = arith.addf %223, %226 : vector<8x32xf32>
    %228 = vector.extract_strided_slice %211 {offsets = [0, 96], sizes = [8, 32], strides = [1, 1]} : vector<8x128xf32> to vector<8x32xf32>
    %229 = math.tanh %227 : vector<8x32xf32>
    %230 = arith.mulf %228, %229 : vector<8x32xf32>
    %c40_64 = arith.constant 40 : index
    %c0_65 = arith.constant 0 : index
    %231 = vector.load %arg10[%c40_64, %c0_65] : memref<72x32xf32, #tpu.memory_space<vmem>>, vector<8x32xf32>
    tpu.vector_store %arg10[%c40_64, %c0_65], %221 {strides = array<i32>} : memref<72x32xf32, #tpu.memory_space<vmem>>, vector<8x32xf32>,
    %c24_66 = arith.constant 24 : index
    %c0_67 = arith.constant 0 : index
    %232 = vector.load %arg11[%c24_66, %c0_67] : memref<72x32xf32, #tpu.memory_space<vmem>>, vector<8x32xf32>
    tpu.vector_store %arg11[%c24_66, %c0_67], %230 {strides = array<i32>} : memref<72x32xf32, #tpu.memory_space<vmem>>, vector<8x32xf32>,
    %c48_68 = arith.constant 48 : index
    %c0_69 = arith.constant 0 : index
    %233 = vector.load %arg1[%c48_68, %c0_69] : memref<72x128xf32, #tpu.memory_space<vmem>>, vector<8x128xf32>
    %cst_70 = arith.constant dense<0.000000e+00> : vector<8x128xf32>
    %234 = tpu.matmul %221, %1, %cst_70 {dimension_numbers = #tpu.dot_dimension_numbers<[1], [0], [0], [1], [0, 0, 1, 1], [], []>} : vector<8x32xf32>, vector<32x128xf32>, vector<8x128xf32> -> vector<8x128xf32>
    %235 = arith.addf %233, %234 : vector<8x128xf32>
    %c16_71 = arith.constant 16 : index
    %c0_72 = arith.constant 0 : index
    %236 = vector.load %arg2[%c16_71, %c0_72] : memref<72x128xf32, #tpu.memory_space<vmem>>, vector<8x128xf32>
    %cst_73 = arith.constant dense<0.000000e+00> : vector<8x128xf32>
    %237 = tpu.matmul %230, %3, %cst_73 {dimension_numbers = #tpu.dot_dimension_numbers<[1], [0], [0], [1], [0, 0, 1, 1], [], []>} : vector<8x32xf32>, vector<32x128xf32>, vector<8x128xf32> -> vector<8x128xf32>
    %238 = arith.addf %236, %237 : vector<8x128xf32>
    %239 = arith.negf %235 : vector<8x128xf32>
    %240 = math.exp %239 : vector<8x128xf32>
    %cst_74 = arith.constant 1.000000e+00 : f32
    %241 = vector.broadcast %cst_74 : f32 to vector<8x128xf32>
    %242 = arith.addf %241, %240 : vector<8x128xf32>
    %243 = arith.divf %241, %242 : vector<8x128xf32>
    %244 = math.tanh %235 : vector<8x128xf32>
    %245 = arith.negf %238 : vector<8x128xf32>
    %246 = math.exp %245 : vector<8x128xf32>
    %cst_75 = arith.constant 1.000000e+00 : f32
    %247 = vector.broadcast %cst_75 : f32 to vector<8x128xf32>
    %248 = arith.addf %247, %246 : vector<8x128xf32>
    %249 = arith.divf %247, %248 : vector<8x128xf32>
    %250 = math.tanh %238 : vector<8x128xf32>
    %251 = vector.extract_strided_slice %243 {offsets = [0, 32], sizes = [8, 32], strides = [1, 1]} : vector<8x128xf32> to vector<8x32xf32>
    %252 = arith.mulf %251, %218 : vector<8x32xf32>
    %253 = vector.extract_strided_slice %243 {offsets = [0, 0], sizes = [8, 32], strides = [1, 1]} : vector<8x128xf32> to vector<8x32xf32>
    %254 = vector.extract_strided_slice %244 {offsets = [0, 64], sizes = [8, 32], strides = [1, 1]} : vector<8x128xf32> to vector<8x32xf32>
    %255 = arith.mulf %253, %254 : vector<8x32xf32>
    %256 = arith.addf %252, %255 : vector<8x32xf32>
    %257 = vector.extract_strided_slice %243 {offsets = [0, 96], sizes = [8, 32], strides = [1, 1]} : vector<8x128xf32> to vector<8x32xf32>
    %258 = math.tanh %256 : vector<8x32xf32>
    %259 = arith.mulf %257, %258 : vector<8x32xf32>
    %260 = vector.extract_strided_slice %249 {offsets = [0, 32], sizes = [8, 32], strides = [1, 1]} : vector<8x128xf32> to vector<8x32xf32>
    %261 = arith.mulf %260, %227 : vector<8x32xf32>
    %262 = vector.extract_strided_slice %249 {offsets = [0, 0], sizes = [8, 32], strides = [1, 1]} : vector<8x128xf32> to vector<8x32xf32>
    %263 = vector.extract_strided_slice %250 {offsets = [0, 64], sizes = [8, 32], strides = [1, 1]} : vector<8x128xf32> to vector<8x32xf32>
    %264 = arith.mulf %262, %263 : vector<8x32xf32>
    %265 = arith.addf %261, %264 : vector<8x32xf32>
    %266 = vector.extract_strided_slice %249 {offsets = [0, 96], sizes = [8, 32], strides = [1, 1]} : vector<8x128xf32> to vector<8x32xf32>
    %267 = math.tanh %265 : vector<8x32xf32>
    %268 = arith.mulf %266, %267 : vector<8x32xf32>
    %c48_76 = arith.constant 48 : index
    %c0_77 = arith.constant 0 : index
    %269 = vector.load %arg10[%c48_76, %c0_77] : memref<72x32xf32, #tpu.memory_space<vmem>>, vector<8x32xf32>
    tpu.vector_store %arg10[%c48_76, %c0_77], %259 {strides = array<i32>} : memref<72x32xf32, #tpu.memory_space<vmem>>, vector<8x32xf32>,
    %c16_78 = arith.constant 16 : index
    %c0_79 = arith.constant 0 : index
    %270 = vector.load %arg11[%c16_78, %c0_79] : memref<72x32xf32, #tpu.memory_space<vmem>>, vector<8x32xf32>
    tpu.vector_store %arg11[%c16_78, %c0_79], %268 {strides = array<i32>} : memref<72x32xf32, #tpu.memory_space<vmem>>, vector<8x32xf32>,
    %c56_80 = arith.constant 56 : index
    %c0_81 = arith.constant 0 : index
    %271 = vector.load %arg1[%c56_80, %c0_81] : memref<72x128xf32, #tpu.memory_space<vmem>>, vector<8x128xf32>
    %cst_82 = arith.constant dense<0.000000e+00> : vector<8x128xf32>
    %272 = tpu.matmul %259, %1, %cst_82 {dimension_numbers = #tpu.dot_dimension_numbers<[1], [0], [0], [1], [0, 0, 1, 1], [], []>} : vector<8x32xf32>, vector<32x128xf32>, vector<8x128xf32> -> vector<8x128xf32>
    %273 = arith.addf %271, %272 : vector<8x128xf32>
    %c8_83 = arith.constant 8 : index
    %c0_84 = arith.constant 0 : index
    %274 = vector.load %arg2[%c8_83, %c0_84] : memref<72x128xf32, #tpu.memory_space<vmem>>, vector<8x128xf32>
    %cst_85 = arith.constant dense<0.000000e+00> : vector<8x128xf32>
    %275 = tpu.matmul %268, %3, %cst_85 {dimension_numbers = #tpu.dot_dimension_numbers<[1], [0], [0], [1], [0, 0, 1, 1], [], []>} : vector<8x32xf32>, vector<32x128xf32>, vector<8x128xf32> -> vector<8x128xf32>
    %276 = arith.addf %274, %275 : vector<8x128xf32>
    %277 = arith.negf %273 : vector<8x128xf32>
    %278 = math.exp %277 : vector<8x128xf32>
    %cst_86 = arith.constant 1.000000e+00 : f32
    %279 = vector.broadcast %cst_86 : f32 to vector<8x128xf32>
    %280 = arith.addf %279, %278 : vector<8x128xf32>
    %281 = arith.divf %279, %280 : vector<8x128xf32>
    %282 = math.tanh %273 : vector<8x128xf32>
    %283 = arith.negf %276 : vector<8x128xf32>
    %284 = math.exp %283 : vector<8x128xf32>
    %cst_87 = arith.constant 1.000000e+00 : f32
    %285 = vector.broadcast %cst_87 : f32 to vector<8x128xf32>
    %286 = arith.addf %285, %284 : vector<8x128xf32>
    %287 = arith.divf %285, %286 : vector<8x128xf32>
    %288 = math.tanh %276 : vector<8x128xf32>
    %289 = vector.extract_strided_slice %281 {offsets = [0, 32], sizes = [8, 32], strides = [1, 1]} : vector<8x128xf32> to vector<8x32xf32>
    %290 = arith.mulf %289, %256 : vector<8x32xf32>
    %291 = vector.extract_strided_slice %281 {offsets = [0, 0], sizes = [8, 32], strides = [1, 1]} : vector<8x128xf32> to vector<8x32xf32>
    %292 = vector.extract_strided_slice %282 {offsets = [0, 64], sizes = [8, 32], strides = [1, 1]} : vector<8x128xf32> to vector<8x32xf32>
    %293 = arith.mulf %291, %292 : vector<8x32xf32>
    %294 = arith.addf %290, %293 : vector<8x32xf32>
    %295 = vector.extract_strided_slice %281 {offsets = [0, 96], sizes = [8, 32], strides = [1, 1]} : vector<8x128xf32> to vector<8x32xf32>
    %296 = math.tanh %294 : vector<8x32xf32>
    %297 = arith.mulf %295, %296 : vector<8x32xf32>
    %298 = vector.extract_strided_slice %287 {offsets = [0, 32], sizes = [8, 32], strides = [1, 1]} : vector<8x128xf32> to vector<8x32xf32>
    %299 = arith.mulf %298, %265 : vector<8x32xf32>
    %300 = vector.extract_strided_slice %287 {offsets = [0, 0], sizes = [8, 32], strides = [1, 1]} : vector<8x128xf32> to vector<8x32xf32>
    %301 = vector.extract_strided_slice %288 {offsets = [0, 64], sizes = [8, 32], strides = [1, 1]} : vector<8x128xf32> to vector<8x32xf32>
    %302 = arith.mulf %300, %301 : vector<8x32xf32>
    %303 = arith.addf %299, %302 : vector<8x32xf32>
    %304 = vector.extract_strided_slice %287 {offsets = [0, 96], sizes = [8, 32], strides = [1, 1]} : vector<8x128xf32> to vector<8x32xf32>
    %305 = math.tanh %303 : vector<8x32xf32>
    %306 = arith.mulf %304, %305 : vector<8x32xf32>
    %c56_88 = arith.constant 56 : index
    %c0_89 = arith.constant 0 : index
    %307 = vector.load %arg10[%c56_88, %c0_89] : memref<72x32xf32, #tpu.memory_space<vmem>>, vector<8x32xf32>
    tpu.vector_store %arg10[%c56_88, %c0_89], %297 {strides = array<i32>} : memref<72x32xf32, #tpu.memory_space<vmem>>, vector<8x32xf32>,
    %c8_90 = arith.constant 8 : index
    %c0_91 = arith.constant 0 : index
    %308 = vector.load %arg11[%c8_90, %c0_91] : memref<72x32xf32, #tpu.memory_space<vmem>>, vector<8x32xf32>
    tpu.vector_store %arg11[%c8_90, %c0_91], %306 {strides = array<i32>} : memref<72x32xf32, #tpu.memory_space<vmem>>, vector<8x32xf32>,
    %c64_92 = arith.constant 64 : index
    %c0_93 = arith.constant 0 : index
    %309 = vector.load %arg1[%c64_92, %c0_93] : memref<72x128xf32, #tpu.memory_space<vmem>>, vector<8x128xf32>
    %cst_94 = arith.constant dense<0.000000e+00> : vector<8x128xf32>
    %310 = tpu.matmul %297, %1, %cst_94 {dimension_numbers = #tpu.dot_dimension_numbers<[1], [0], [0], [1], [0, 0, 1, 1], [], []>} : vector<8x32xf32>, vector<32x128xf32>, vector<8x128xf32> -> vector<8x128xf32>
    %311 = arith.addf %309, %310 : vector<8x128xf32>
    %c0_95 = arith.constant 0 : index
    %c0_96 = arith.constant 0 : index
    %312 = vector.load %arg2[%c0_95, %c0_96] : memref<72x128xf32, #tpu.memory_space<vmem>>, vector<8x128xf32>
    %cst_97 = arith.constant dense<0.000000e+00> : vector<8x128xf32>
    %313 = tpu.matmul %306, %3, %cst_97 {dimension_numbers = #tpu.dot_dimension_numbers<[1], [0], [0], [1], [0, 0, 1, 1], [], []>} : vector<8x32xf32>, vector<32x128xf32>, vector<8x128xf32> -> vector<8x128xf32>
    %314 = arith.addf %312, %313 : vector<8x128xf32>
    %315 = arith.negf %311 : vector<8x128xf32>
    %316 = math.exp %315 : vector<8x128xf32>
    %cst_98 = arith.constant 1.000000e+00 : f32
    %317 = vector.broadcast %cst_98 : f32 to vector<8x128xf32>
    %318 = arith.addf %317, %316 : vector<8x128xf32>
    %319 = arith.divf %317, %318 : vector<8x128xf32>
    %320 = math.tanh %311 : vector<8x128xf32>
    %321 = arith.negf %314 : vector<8x128xf32>
    %322 = math.exp %321 : vector<8x128xf32>
    %cst_99 = arith.constant 1.000000e+00 : f32
    %323 = vector.broadcast %cst_99 : f32 to vector<8x128xf32>
    %324 = arith.addf %323, %322 : vector<8x128xf32>
    %325 = arith.divf %323, %324 : vector<8x128xf32>
    %326 = math.tanh %314 : vector<8x128xf32>
    %327 = vector.extract_strided_slice %319 {offsets = [0, 32], sizes = [8, 32], strides = [1, 1]} : vector<8x128xf32> to vector<8x32xf32>
    %328 = arith.mulf %327, %294 : vector<8x32xf32>
    %329 = vector.extract_strided_slice %319 {offsets = [0, 0], sizes = [8, 32], strides = [1, 1]} : vector<8x128xf32> to vector<8x32xf32>
    %330 = vector.extract_strided_slice %320 {offsets = [0, 64], sizes = [8, 32], strides = [1, 1]} : vector<8x128xf32> to vector<8x32xf32>
    %331 = arith.mulf %329, %330 : vector<8x32xf32>
    %332 = arith.addf %328, %331 : vector<8x32xf32>
    %333 = vector.extract_strided_slice %319 {offsets = [0, 96], sizes = [8, 32], strides = [1, 1]} : vector<8x128xf32> to vector<8x32xf32>
    %334 = math.tanh %332 : vector<8x32xf32>
    %335 = arith.mulf %333, %334 : vector<8x32xf32>
    %336 = vector.extract_strided_slice %325 {offsets = [0, 32], sizes = [8, 32], strides = [1, 1]} : vector<8x128xf32> to vector<8x32xf32>
    %337 = arith.mulf %336, %303 : vector<8x32xf32>
    %338 = vector.extract_strided_slice %325 {offsets = [0, 0], sizes = [8, 32], strides = [1, 1]} : vector<8x128xf32> to vector<8x32xf32>
    %339 = vector.extract_strided_slice %326 {offsets = [0, 64], sizes = [8, 32], strides = [1, 1]} : vector<8x128xf32> to vector<8x32xf32>
    %340 = arith.mulf %338, %339 : vector<8x32xf32>
    %341 = arith.addf %337, %340 : vector<8x32xf32>
    %342 = vector.extract_strided_slice %325 {offsets = [0, 96], sizes = [8, 32], strides = [1, 1]} : vector<8x128xf32> to vector<8x32xf32>
    %343 = math.tanh %341 : vector<8x32xf32>
    %344 = arith.mulf %342, %343 : vector<8x32xf32>
    %c64_100 = arith.constant 64 : index
    %c0_101 = arith.constant 0 : index
    %345 = vector.load %arg10[%c64_100, %c0_101] : memref<72x32xf32, #tpu.memory_space<vmem>>, vector<8x32xf32>
    tpu.vector_store %arg10[%c64_100, %c0_101], %335 {strides = array<i32>} : memref<72x32xf32, #tpu.memory_space<vmem>>, vector<8x32xf32>,
    %c0_102 = arith.constant 0 : index
    %c0_103 = arith.constant 0 : index
    %346 = vector.load %arg11[%c0_102, %c0_103] : memref<72x32xf32, #tpu.memory_space<vmem>>, vector<8x32xf32>
    tpu.vector_store %arg11[%c0_102, %c0_103], %344 {strides = array<i32>} : memref<72x32xf32, #tpu.memory_space<vmem>>, vector<8x32xf32>,
    %c0_104 = arith.constant 0 : index
    %c0_105 = arith.constant 0 : index
    %347 = vector.load %arg10[%c0_104, %c0_105] : memref<72x32xf32, #tpu.memory_space<vmem>>, vector<72x32xf32>
    %c0_106 = arith.constant 0 : index
    %c0_107 = arith.constant 0 : index
    %348 = vector.load %arg11[%c0_106, %c0_107] : memref<72x32xf32, #tpu.memory_space<vmem>>, vector<72x32xf32>
    %c0_108 = arith.constant 0 : index
    %c0_109 = arith.constant 0 : index
    %c0_110 = arith.constant 0 : index
    %349 = vector.load %arg4[%c0_108, %c0_109, %c0_110] : memref<8x32x128xf32, #tpu.memory_space<vmem>>, vector<1x32x128xf32>
    %350 = vector.shape_cast %349 : vector<1x32x128xf32> to vector<32x128xf32>
    %cst_111 = arith.constant dense<0.000000e+00> : vector<72x128xf32>
    %351 = tpu.matmul %347, %350, %cst_111 {dimension_numbers = #tpu.dot_dimension_numbers<[1], [0], [0], [1], [0, 0, 1, 1], [], []>} : vector<72x32xf32>, vector<32x128xf32>, vector<72x128xf32> -> vector<72x128xf32>
    %c1_112 = arith.constant 1 : index
    %c0_113 = arith.constant 0 : index
    %c0_114 = arith.constant 0 : index
    %352 = vector.load %arg4[%c1_112, %c0_113, %c0_114] : memref<8x32x128xf32, #tpu.memory_space<vmem>>, vector<1x32x128xf32>
    %353 = vector.shape_cast %352 : vector<1x32x128xf32> to vector<32x128xf32>
    %cst_115 = arith.constant dense<0.000000e+00> : vector<72x128xf32>
    %354 = tpu.matmul %348, %353, %cst_115 {dimension_numbers = #tpu.dot_dimension_numbers<[1], [0], [0], [1], [0, 0, 1, 1], [], []>} : vector<72x32xf32>, vector<32x128xf32>, vector<72x128xf32> -> vector<72x128xf32>
    %355 = arith.addf %351, %354 : vector<72x128xf32>
    %c0_116 = arith.constant 0 : index
    %c0_117 = arith.constant 0 : index
    %c0_118 = arith.constant 0 : index
    %356 = vector.load %arg5[%c0_116, %c0_117, %c0_118] : memref<4x1x128xf32, #tpu.memory_space<vmem>>, vector<1x1x128xf32>
    %357 = vector.shape_cast %356 : vector<1x1x128xf32> to vector<1x128xf32>
    %358 = vector.broadcast %357 : vector<1x128xf32> to vector<72x128xf32>
    %359 = arith.addf %355, %358 : vector<72x128xf32>
    %c0_119 = arith.constant 0 : index
    %c0_120 = arith.constant 0 : index
    %360 = vector.load %arg8[%c0_119, %c0_120] : memref<72x128xf32, #tpu.memory_space<vmem>>, vector<72x128xf32>
    tpu.vector_store %arg8[%c0_119, %c0_120], %359 {strides = array<i32>} : memref<72x128xf32, #tpu.memory_space<vmem>>, vector<72x128xf32>,
    %c2 = arith.constant 2 : index
    %c0_121 = arith.constant 0 : index
    %c0_122 = arith.constant 0 : index
    %361 = vector.load %arg4[%c2, %c0_121, %c0_122] : memref<8x32x128xf32, #tpu.memory_space<vmem>>, vector<1x32x128xf32>
    %362 = vector.shape_cast %361 : vector<1x32x128xf32> to vector<32x128xf32>
    %cst_123 = arith.constant dense<0.000000e+00> : vector<72x128xf32>
    %363 = tpu.matmul %347, %362, %cst_123 {dimension_numbers = #tpu.dot_dimension_numbers<[1], [0], [0], [1], [0, 0, 1, 1], [], []>} : vector<72x32xf32>, vector<32x128xf32>, vector<72x128xf32> -> vector<72x128xf32>
    %c3 = arith.constant 3 : index
    %c0_124 = arith.constant 0 : index
    %c0_125 = arith.constant 0 : index
    %364 = vector.load %arg4[%c3, %c0_124, %c0_125] : memref<8x32x128xf32, #tpu.memory_space<vmem>>, vector<1x32x128xf32>
    %365 = vector.shape_cast %364 : vector<1x32x128xf32> to vector<32x128xf32>
    %cst_126 = arith.constant dense<0.000000e+00> : vector<72x128xf32>
    %366 = tpu.matmul %348, %365, %cst_126 {dimension_numbers = #tpu.dot_dimension_numbers<[1], [0], [0], [1], [0, 0, 1, 1], [], []>} : vector<72x32xf32>, vector<32x128xf32>, vector<72x128xf32> -> vector<72x128xf32>
    %367 = arith.addf %363, %366 : vector<72x128xf32>
    %c1_127 = arith.constant 1 : index
    %c0_128 = arith.constant 0 : index
    %c0_129 = arith.constant 0 : index
    %368 = vector.load %arg5[%c1_127, %c0_128, %c0_129] : memref<4x1x128xf32, #tpu.memory_space<vmem>>, vector<1x1x128xf32>
    %369 = vector.shape_cast %368 : vector<1x1x128xf32> to vector<1x128xf32>
    %370 = vector.broadcast %369 : vector<1x128xf32> to vector<72x128xf32>
    %371 = arith.addf %367, %370 : vector<72x128xf32>
    %c0_130 = arith.constant 0 : index
    %c0_131 = arith.constant 0 : index
    %372 = vector.load %arg9[%c0_130, %c0_131] : memref<72x128xf32, #tpu.memory_space<vmem>>, vector<72x128xf32>
    tpu.vector_store %arg9[%c0_130, %c0_131], %371 {strides = array<i32>} : memref<72x128xf32, #tpu.memory_space<vmem>>, vector<72x128xf32>,
    %c2_132 = arith.constant 2 : index
    %c0_133 = arith.constant 0 : index
    %c0_134 = arith.constant 0 : index
    %373 = vector.load %arg3[%c2_132, %c0_133, %c0_134] : memref<6x32x128xf32, #tpu.memory_space<vmem>>, vector<1x32x128xf32>
    %374 = vector.shape_cast %373 : vector<1x32x128xf32> to vector<32x128xf32>
    %c3_135 = arith.constant 3 : index
    %c0_136 = arith.constant 0 : index
    %c0_137 = arith.constant 0 : index
    %375 = vector.load %arg3[%c3_135, %c0_136, %c0_137] : memref<6x32x128xf32, #tpu.memory_space<vmem>>, vector<1x32x128xf32>
    %376 = vector.shape_cast %375 : vector<1x32x128xf32> to vector<32x128xf32>
    %cst_138 = arith.constant 0.000000e+00 : f32
    %377 = vector.broadcast %cst_138 : f32 to vector<8x32xf32>
    %c0_139 = arith.constant 0 : index
    %c0_140 = arith.constant 0 : index
    %378 = vector.load %arg8[%c0_139, %c0_140] : memref<72x128xf32, #tpu.memory_space<vmem>>, vector<8x128xf32>
    %cst_141 = arith.constant dense<0.000000e+00> : vector<8x128xf32>
    %379 = tpu.matmul %377, %374, %cst_141 {dimension_numbers = #tpu.dot_dimension_numbers<[1], [0], [0], [1], [0, 0, 1, 1], [], []>} : vector<8x32xf32>, vector<32x128xf32>, vector<8x128xf32> -> vector<8x128xf32>
    %380 = arith.addf %378, %379 : vector<8x128xf32>
    %c64_142 = arith.constant 64 : index
    %c0_143 = arith.constant 0 : index
    %381 = vector.load %arg9[%c64_142, %c0_143] : memref<72x128xf32, #tpu.memory_space<vmem>>, vector<8x128xf32>
    %cst_144 = arith.constant dense<0.000000e+00> : vector<8x128xf32>
    %382 = tpu.matmul %377, %376, %cst_144 {dimension_numbers = #tpu.dot_dimension_numbers<[1], [0], [0], [1], [0, 0, 1, 1], [], []>} : vector<8x32xf32>, vector<32x128xf32>, vector<8x128xf32> -> vector<8x128xf32>
    %383 = arith.addf %381, %382 : vector<8x128xf32>
    %384 = arith.negf %380 : vector<8x128xf32>
    %385 = math.exp %384 : vector<8x128xf32>
    %cst_145 = arith.constant 1.000000e+00 : f32
    %386 = vector.broadcast %cst_145 : f32 to vector<8x128xf32>
    %387 = arith.addf %386, %385 : vector<8x128xf32>
    %388 = arith.divf %386, %387 : vector<8x128xf32>
    %389 = math.tanh %380 : vector<8x128xf32>
    %390 = arith.negf %383 : vector<8x128xf32>
    %391 = math.exp %390 : vector<8x128xf32>
    %cst_146 = arith.constant 1.000000e+00 : f32
    %392 = vector.broadcast %cst_146 : f32 to vector<8x128xf32>
    %393 = arith.addf %392, %391 : vector<8x128xf32>
    %394 = arith.divf %392, %393 : vector<8x128xf32>
    %395 = math.tanh %383 : vector<8x128xf32>
    %396 = vector.extract_strided_slice %388 {offsets = [0, 32], sizes = [8, 32], strides = [1, 1]} : vector<8x128xf32> to vector<8x32xf32>
    %397 = arith.mulf %396, %377 : vector<8x32xf32>
    %398 = vector.extract_strided_slice %388 {offsets = [0, 0], sizes = [8, 32], strides = [1, 1]} : vector<8x128xf32> to vector<8x32xf32>
    %399 = vector.extract_strided_slice %389 {offsets = [0, 64], sizes = [8, 32], strides = [1, 1]} : vector<8x128xf32> to vector<8x32xf32>
    %400 = arith.mulf %398, %399 : vector<8x32xf32>
    %401 = arith.addf %397, %400 : vector<8x32xf32>
    %402 = vector.extract_strided_slice %388 {offsets = [0, 96], sizes = [8, 32], strides = [1, 1]} : vector<8x128xf32> to vector<8x32xf32>
    %403 = math.tanh %401 : vector<8x32xf32>
    %404 = arith.mulf %402, %403 : vector<8x32xf32>
    %405 = vector.extract_strided_slice %394 {offsets = [0, 32], sizes = [8, 32], strides = [1, 1]} : vector<8x128xf32> to vector<8x32xf32>
    %406 = arith.mulf %405, %377 : vector<8x32xf32>
    %407 = vector.extract_strided_slice %394 {offsets = [0, 0], sizes = [8, 32], strides = [1, 1]} : vector<8x128xf32> to vector<8x32xf32>
    %408 = vector.extract_strided_slice %395 {offsets = [0, 64], sizes = [8, 32], strides = [1, 1]} : vector<8x128xf32> to vector<8x32xf32>
    %409 = arith.mulf %407, %408 : vector<8x32xf32>
    %410 = arith.addf %406, %409 : vector<8x32xf32>
    %411 = vector.extract_strided_slice %394 {offsets = [0, 96], sizes = [8, 32], strides = [1, 1]} : vector<8x128xf32> to vector<8x32xf32>
    %412 = math.tanh %410 : vector<8x32xf32>
    %413 = arith.mulf %411, %412 : vector<8x32xf32>
    %c0_147 = arith.constant 0 : index
    %c0_148 = arith.constant 0 : index
    %414 = vector.load %arg10[%c0_147, %c0_148] : memref<72x32xf32, #tpu.memory_space<vmem>>, vector<8x32xf32>
    tpu.vector_store %arg10[%c0_147, %c0_148], %404 {strides = array<i32>} : memref<72x32xf32, #tpu.memory_space<vmem>>, vector<8x32xf32>,
    %c64_149 = arith.constant 64 : index
    %c0_150 = arith.constant 0 : index
    %415 = vector.load %arg11[%c64_149, %c0_150] : memref<72x32xf32, #tpu.memory_space<vmem>>, vector<8x32xf32>
    tpu.vector_store %arg11[%c64_149, %c0_150], %413 {strides = array<i32>} : memref<72x32xf32, #tpu.memory_space<vmem>>, vector<8x32xf32>,
    %c8_151 = arith.constant 8 : index
    %c0_152 = arith.constant 0 : index
    %416 = vector.load %arg8[%c8_151, %c0_152] : memref<72x128xf32, #tpu.memory_space<vmem>>, vector<8x128xf32>
    %cst_153 = arith.constant dense<0.000000e+00> : vector<8x128xf32>
    %417 = tpu.matmul %404, %374, %cst_153 {dimension_numbers = #tpu.dot_dimension_numbers<[1], [0], [0], [1], [0, 0, 1, 1], [], []>} : vector<8x32xf32>, vector<32x128xf32>, vector<8x128xf32> -> vector<8x128xf32>
    %418 = arith.addf %416, %417 : vector<8x128xf32>
    %c56_154 = arith.constant 56 : index
    %c0_155 = arith.constant 0 : index
    %419 = vector.load %arg9[%c56_154, %c0_155] : memref<72x128xf32, #tpu.memory_space<vmem>>, vector<8x128xf32>
    %cst_156 = arith.constant dense<0.000000e+00> : vector<8x128xf32>
    %420 = tpu.matmul %413, %376, %cst_156 {dimension_numbers = #tpu.dot_dimension_numbers<[1], [0], [0], [1], [0, 0, 1, 1], [], []>} : vector<8x32xf32>, vector<32x128xf32>, vector<8x128xf32> -> vector<8x128xf32>
    %421 = arith.addf %419, %420 : vector<8x128xf32>
    %422 = arith.negf %418 : vector<8x128xf32>
    %423 = math.exp %422 : vector<8x128xf32>
    %cst_157 = arith.constant 1.000000e+00 : f32
    %424 = vector.broadcast %cst_157 : f32 to vector<8x128xf32>
    %425 = arith.addf %424, %423 : vector<8x128xf32>
    %426 = arith.divf %424, %425 : vector<8x128xf32>
    %427 = math.tanh %418 : vector<8x128xf32>
    %428 = arith.negf %421 : vector<8x128xf32>
    %429 = math.exp %428 : vector<8x128xf32>
    %cst_158 = arith.constant 1.000000e+00 : f32
    %430 = vector.broadcast %cst_158 : f32 to vector<8x128xf32>
    %431 = arith.addf %430, %429 : vector<8x128xf32>
    %432 = arith.divf %430, %431 : vector<8x128xf32>
    %433 = math.tanh %421 : vector<8x128xf32>
    %434 = vector.extract_strided_slice %426 {offsets = [0, 32], sizes = [8, 32], strides = [1, 1]} : vector<8x128xf32> to vector<8x32xf32>
    %435 = arith.mulf %434, %401 : vector<8x32xf32>
    %436 = vector.extract_strided_slice %426 {offsets = [0, 0], sizes = [8, 32], strides = [1, 1]} : vector<8x128xf32> to vector<8x32xf32>
    %437 = vector.extract_strided_slice %427 {offsets = [0, 64], sizes = [8, 32], strides = [1, 1]} : vector<8x128xf32> to vector<8x32xf32>
    %438 = arith.mulf %436, %437 : vector<8x32xf32>
    %439 = arith.addf %435, %438 : vector<8x32xf32>
    %440 = vector.extract_strided_slice %426 {offsets = [0, 96], sizes = [8, 32], strides = [1, 1]} : vector<8x128xf32> to vector<8x32xf32>
    %441 = math.tanh %439 : vector<8x32xf32>
    %442 = arith.mulf %440, %441 : vector<8x32xf32>
    %443 = vector.extract_strided_slice %432 {offsets = [0, 32], sizes = [8, 32], strides = [1, 1]} : vector<8x128xf32> to vector<8x32xf32>
    %444 = arith.mulf %443, %410 : vector<8x32xf32>
    %445 = vector.extract_strided_slice %432 {offsets = [0, 0], sizes = [8, 32], strides = [1, 1]} : vector<8x128xf32> to vector<8x32xf32>
    %446 = vector.extract_strided_slice %433 {offsets = [0, 64], sizes = [8, 32], strides = [1, 1]} : vector<8x128xf32> to vector<8x32xf32>
    %447 = arith.mulf %445, %446 : vector<8x32xf32>
    %448 = arith.addf %444, %447 : vector<8x32xf32>
    %449 = vector.extract_strided_slice %432 {offsets = [0, 96], sizes = [8, 32], strides = [1, 1]} : vector<8x128xf32> to vector<8x32xf32>
    %450 = math.tanh %448 : vector<8x32xf32>
    %451 = arith.mulf %449, %450 : vector<8x32xf32>
    %c8_159 = arith.constant 8 : index
    %c0_160 = arith.constant 0 : index
    %452 = vector.load %arg10[%c8_159, %c0_160] : memref<72x32xf32, #tpu.memory_space<vmem>>, vector<8x32xf32>
    tpu.vector_store %arg10[%c8_159, %c0_160], %442 {strides = array<i32>} : memref<72x32xf32, #tpu.memory_space<vmem>>, vector<8x32xf32>,
    %c56_161 = arith.constant 56 : index
    %c0_162 = arith.constant 0 : index
    %453 = vector.load %arg11[%c56_161, %c0_162] : memref<72x32xf32, #tpu.memory_space<vmem>>, vector<8x32xf32>
    tpu.vector_store %arg11[%c56_161, %c0_162], %451 {strides = array<i32>} : memref<72x32xf32, #tpu.memory_space<vmem>>, vector<8x32xf32>,
    %c16_163 = arith.constant 16 : index
    %c0_164 = arith.constant 0 : index
    %454 = vector.load %arg8[%c16_163, %c0_164] : memref<72x128xf32, #tpu.memory_space<vmem>>, vector<8x128xf32>
    %cst_165 = arith.constant dense<0.000000e+00> : vector<8x128xf32>
    %455 = tpu.matmul %442, %374, %cst_165 {dimension_numbers = #tpu.dot_dimension_numbers<[1], [0], [0], [1], [0, 0, 1, 1], [], []>} : vector<8x32xf32>, vector<32x128xf32>, vector<8x128xf32> -> vector<8x128xf32>
    %456 = arith.addf %454, %455 : vector<8x128xf32>
    %c48_166 = arith.constant 48 : index
    %c0_167 = arith.constant 0 : index
    %457 = vector.load %arg9[%c48_166, %c0_167] : memref<72x128xf32, #tpu.memory_space<vmem>>, vector<8x128xf32>
    %cst_168 = arith.constant dense<0.000000e+00> : vector<8x128xf32>
    %458 = tpu.matmul %451, %376, %cst_168 {dimension_numbers = #tpu.dot_dimension_numbers<[1], [0], [0], [1], [0, 0, 1, 1], [], []>} : vector<8x32xf32>, vector<32x128xf32>, vector<8x128xf32> -> vector<8x128xf32>
    %459 = arith.addf %457, %458 : vector<8x128xf32>
    %460 = arith.negf %456 : vector<8x128xf32>
    %461 = math.exp %460 : vector<8x128xf32>
    %cst_169 = arith.constant 1.000000e+00 : f32
    %462 = vector.broadcast %cst_169 : f32 to vector<8x128xf32>
    %463 = arith.addf %462, %461 : vector<8x128xf32>
    %464 = arith.divf %462, %463 : vector<8x128xf32>
    %465 = math.tanh %456 : vector<8x128xf32>
    %466 = arith.negf %459 : vector<8x128xf32>
    %467 = math.exp %466 : vector<8x128xf32>
    %cst_170 = arith.constant 1.000000e+00 : f32
    %468 = vector.broadcast %cst_170 : f32 to vector<8x128xf32>
    %469 = arith.addf %468, %467 : vector<8x128xf32>
    %470 = arith.divf %468, %469 : vector<8x128xf32>
    %471 = math.tanh %459 : vector<8x128xf32>
    %472 = vector.extract_strided_slice %464 {offsets = [0, 32], sizes = [8, 32], strides = [1, 1]} : vector<8x128xf32> to vector<8x32xf32>
    %473 = arith.mulf %472, %439 : vector<8x32xf32>
    %474 = vector.extract_strided_slice %464 {offsets = [0, 0], sizes = [8, 32], strides = [1, 1]} : vector<8x128xf32> to vector<8x32xf32>
    %475 = vector.extract_strided_slice %465 {offsets = [0, 64], sizes = [8, 32], strides = [1, 1]} : vector<8x128xf32> to vector<8x32xf32>
    %476 = arith.mulf %474, %475 : vector<8x32xf32>
    %477 = arith.addf %473, %476 : vector<8x32xf32>
    %478 = vector.extract_strided_slice %464 {offsets = [0, 96], sizes = [8, 32], strides = [1, 1]} : vector<8x128xf32> to vector<8x32xf32>
    %479 = math.tanh %477 : vector<8x32xf32>
    %480 = arith.mulf %478, %479 : vector<8x32xf32>
    %481 = vector.extract_strided_slice %470 {offsets = [0, 32], sizes = [8, 32], strides = [1, 1]} : vector<8x128xf32> to vector<8x32xf32>
    %482 = arith.mulf %481, %448 : vector<8x32xf32>
    %483 = vector.extract_strided_slice %470 {offsets = [0, 0], sizes = [8, 32], strides = [1, 1]} : vector<8x128xf32> to vector<8x32xf32>
    %484 = vector.extract_strided_slice %471 {offsets = [0, 64], sizes = [8, 32], strides = [1, 1]} : vector<8x128xf32> to vector<8x32xf32>
    %485 = arith.mulf %483, %484 : vector<8x32xf32>
    %486 = arith.addf %482, %485 : vector<8x32xf32>
    %487 = vector.extract_strided_slice %470 {offsets = [0, 96], sizes = [8, 32], strides = [1, 1]} : vector<8x128xf32> to vector<8x32xf32>
    %488 = math.tanh %486 : vector<8x32xf32>
    %489 = arith.mulf %487, %488 : vector<8x32xf32>
    %c16_171 = arith.constant 16 : index
    %c0_172 = arith.constant 0 : index
    %490 = vector.load %arg10[%c16_171, %c0_172] : memref<72x32xf32, #tpu.memory_space<vmem>>, vector<8x32xf32>
    tpu.vector_store %arg10[%c16_171, %c0_172], %480 {strides = array<i32>} : memref<72x32xf32, #tpu.memory_space<vmem>>, vector<8x32xf32>,
    %c48_173 = arith.constant 48 : index
    %c0_174 = arith.constant 0 : index
    %491 = vector.load %arg11[%c48_173, %c0_174] : memref<72x32xf32, #tpu.memory_space<vmem>>, vector<8x32xf32>
    tpu.vector_store %arg11[%c48_173, %c0_174], %489 {strides = array<i32>} : memref<72x32xf32, #tpu.memory_space<vmem>>, vector<8x32xf32>,
    %c24_175 = arith.constant 24 : index
    %c0_176 = arith.constant 0 : index
    %492 = vector.load %arg8[%c24_175, %c0_176] : memref<72x128xf32, #tpu.memory_space<vmem>>, vector<8x128xf32>
    %cst_177 = arith.constant dense<0.000000e+00> : vector<8x128xf32>
    %493 = tpu.matmul %480, %374, %cst_177 {dimension_numbers = #tpu.dot_dimension_numbers<[1], [0], [0], [1], [0, 0, 1, 1], [], []>} : vector<8x32xf32>, vector<32x128xf32>, vector<8x128xf32> -> vector<8x128xf32>
    %494 = arith.addf %492, %493 : vector<8x128xf32>
    %c40_178 = arith.constant 40 : index
    %c0_179 = arith.constant 0 : index
    %495 = vector.load %arg9[%c40_178, %c0_179] : memref<72x128xf32, #tpu.memory_space<vmem>>, vector<8x128xf32>
    %cst_180 = arith.constant dense<0.000000e+00> : vector<8x128xf32>
    %496 = tpu.matmul %489, %376, %cst_180 {dimension_numbers = #tpu.dot_dimension_numbers<[1], [0], [0], [1], [0, 0, 1, 1], [], []>} : vector<8x32xf32>, vector<32x128xf32>, vector<8x128xf32> -> vector<8x128xf32>
    %497 = arith.addf %495, %496 : vector<8x128xf32>
    %498 = arith.negf %494 : vector<8x128xf32>
    %499 = math.exp %498 : vector<8x128xf32>
    %cst_181 = arith.constant 1.000000e+00 : f32
    %500 = vector.broadcast %cst_181 : f32 to vector<8x128xf32>
    %501 = arith.addf %500, %499 : vector<8x128xf32>
    %502 = arith.divf %500, %501 : vector<8x128xf32>
    %503 = math.tanh %494 : vector<8x128xf32>
    %504 = arith.negf %497 : vector<8x128xf32>
    %505 = math.exp %504 : vector<8x128xf32>
    %cst_182 = arith.constant 1.000000e+00 : f32
    %506 = vector.broadcast %cst_182 : f32 to vector<8x128xf32>
    %507 = arith.addf %506, %505 : vector<8x128xf32>
    %508 = arith.divf %506, %507 : vector<8x128xf32>
    %509 = math.tanh %497 : vector<8x128xf32>
    %510 = vector.extract_strided_slice %502 {offsets = [0, 32], sizes = [8, 32], strides = [1, 1]} : vector<8x128xf32> to vector<8x32xf32>
    %511 = arith.mulf %510, %477 : vector<8x32xf32>
    %512 = vector.extract_strided_slice %502 {offsets = [0, 0], sizes = [8, 32], strides = [1, 1]} : vector<8x128xf32> to vector<8x32xf32>
    %513 = vector.extract_strided_slice %503 {offsets = [0, 64], sizes = [8, 32], strides = [1, 1]} : vector<8x128xf32> to vector<8x32xf32>
    %514 = arith.mulf %512, %513 : vector<8x32xf32>
    %515 = arith.addf %511, %514 : vector<8x32xf32>
    %516 = vector.extract_strided_slice %502 {offsets = [0, 96], sizes = [8, 32], strides = [1, 1]} : vector<8x128xf32> to vector<8x32xf32>
    %517 = math.tanh %515 : vector<8x32xf32>
    %518 = arith.mulf %516, %517 : vector<8x32xf32>
    %519 = vector.extract_strided_slice %508 {offsets = [0, 32], sizes = [8, 32], strides = [1, 1]} : vector<8x128xf32> to vector<8x32xf32>
    %520 = arith.mulf %519, %486 : vector<8x32xf32>
    %521 = vector.extract_strided_slice %508 {offsets = [0, 0], sizes = [8, 32], strides = [1, 1]} : vector<8x128xf32> to vector<8x32xf32>
    %522 = vector.extract_strided_slice %509 {offsets = [0, 64], sizes = [8, 32], strides = [1, 1]} : vector<8x128xf32> to vector<8x32xf32>
    %523 = arith.mulf %521, %522 : vector<8x32xf32>
    %524 = arith.addf %520, %523 : vector<8x32xf32>
    %525 = vector.extract_strided_slice %508 {offsets = [0, 96], sizes = [8, 32], strides = [1, 1]} : vector<8x128xf32> to vector<8x32xf32>
    %526 = math.tanh %524 : vector<8x32xf32>
    %527 = arith.mulf %525, %526 : vector<8x32xf32>
    %c24_183 = arith.constant 24 : index
    %c0_184 = arith.constant 0 : index
    %528 = vector.load %arg10[%c24_183, %c0_184] : memref<72x32xf32, #tpu.memory_space<vmem>>, vector<8x32xf32>
    tpu.vector_store %arg10[%c24_183, %c0_184], %518 {strides = array<i32>} : memref<72x32xf32, #tpu.memory_space<vmem>>, vector<8x32xf32>,
    %c40_185 = arith.constant 40 : index
    %c0_186 = arith.constant 0 : index
    %529 = vector.load %arg11[%c40_185, %c0_186] : memref<72x32xf32, #tpu.memory_space<vmem>>, vector<8x32xf32>
    tpu.vector_store %arg11[%c40_185, %c0_186], %527 {strides = array<i32>} : memref<72x32xf32, #tpu.memory_space<vmem>>, vector<8x32xf32>,
    %c32_187 = arith.constant 32 : index
    %c0_188 = arith.constant 0 : index
    %530 = vector.load %arg8[%c32_187, %c0_188] : memref<72x128xf32, #tpu.memory_space<vmem>>, vector<8x128xf32>
    %cst_189 = arith.constant dense<0.000000e+00> : vector<8x128xf32>
    %531 = tpu.matmul %518, %374, %cst_189 {dimension_numbers = #tpu.dot_dimension_numbers<[1], [0], [0], [1], [0, 0, 1, 1], [], []>} : vector<8x32xf32>, vector<32x128xf32>, vector<8x128xf32> -> vector<8x128xf32>
    %532 = arith.addf %530, %531 : vector<8x128xf32>
    %c32_190 = arith.constant 32 : index
    %c0_191 = arith.constant 0 : index
    %533 = vector.load %arg9[%c32_190, %c0_191] : memref<72x128xf32, #tpu.memory_space<vmem>>, vector<8x128xf32>
    %cst_192 = arith.constant dense<0.000000e+00> : vector<8x128xf32>
    %534 = tpu.matmul %527, %376, %cst_192 {dimension_numbers = #tpu.dot_dimension_numbers<[1], [0], [0], [1], [0, 0, 1, 1], [], []>} : vector<8x32xf32>, vector<32x128xf32>, vector<8x128xf32> -> vector<8x128xf32>
    %535 = arith.addf %533, %534 : vector<8x128xf32>
    %536 = arith.negf %532 : vector<8x128xf32>
    %537 = math.exp %536 : vector<8x128xf32>
    %cst_193 = arith.constant 1.000000e+00 : f32
    %538 = vector.broadcast %cst_193 : f32 to vector<8x128xf32>
    %539 = arith.addf %538, %537 : vector<8x128xf32>
    %540 = arith.divf %538, %539 : vector<8x128xf32>
    %541 = math.tanh %532 : vector<8x128xf32>
    %542 = arith.negf %535 : vector<8x128xf32>
    %543 = math.exp %542 : vector<8x128xf32>
    %cst_194 = arith.constant 1.000000e+00 : f32
    %544 = vector.broadcast %cst_194 : f32 to vector<8x128xf32>
    %545 = arith.addf %544, %543 : vector<8x128xf32>
    %546 = arith.divf %544, %545 : vector<8x128xf32>
    %547 = math.tanh %535 : vector<8x128xf32>
    %548 = vector.extract_strided_slice %540 {offsets = [0, 32], sizes = [8, 32], strides = [1, 1]} : vector<8x128xf32> to vector<8x32xf32>
    %549 = arith.mulf %548, %515 : vector<8x32xf32>
    %550 = vector.extract_strided_slice %540 {offsets = [0, 0], sizes = [8, 32], strides = [1, 1]} : vector<8x128xf32> to vector<8x32xf32>
    %551 = vector.extract_strided_slice %541 {offsets = [0, 64], sizes = [8, 32], strides = [1, 1]} : vector<8x128xf32> to vector<8x32xf32>
    %552 = arith.mulf %550, %551 : vector<8x32xf32>
    %553 = arith.addf %549, %552 : vector<8x32xf32>
    %554 = vector.extract_strided_slice %540 {offsets = [0, 96], sizes = [8, 32], strides = [1, 1]} : vector<8x128xf32> to vector<8x32xf32>
    %555 = math.tanh %553 : vector<8x32xf32>
    %556 = arith.mulf %554, %555 : vector<8x32xf32>
    %557 = vector.extract_strided_slice %546 {offsets = [0, 32], sizes = [8, 32], strides = [1, 1]} : vector<8x128xf32> to vector<8x32xf32>
    %558 = arith.mulf %557, %524 : vector<8x32xf32>
    %559 = vector.extract_strided_slice %546 {offsets = [0, 0], sizes = [8, 32], strides = [1, 1]} : vector<8x128xf32> to vector<8x32xf32>
    %560 = vector.extract_strided_slice %547 {offsets = [0, 64], sizes = [8, 32], strides = [1, 1]} : vector<8x128xf32> to vector<8x32xf32>
    %561 = arith.mulf %559, %560 : vector<8x32xf32>
    %562 = arith.addf %558, %561 : vector<8x32xf32>
    %563 = vector.extract_strided_slice %546 {offsets = [0, 96], sizes = [8, 32], strides = [1, 1]} : vector<8x128xf32> to vector<8x32xf32>
    %564 = math.tanh %562 : vector<8x32xf32>
    %565 = arith.mulf %563, %564 : vector<8x32xf32>
    %c32_195 = arith.constant 32 : index
    %c0_196 = arith.constant 0 : index
    %566 = vector.load %arg10[%c32_195, %c0_196] : memref<72x32xf32, #tpu.memory_space<vmem>>, vector<8x32xf32>
    tpu.vector_store %arg10[%c32_195, %c0_196], %556 {strides = array<i32>} : memref<72x32xf32, #tpu.memory_space<vmem>>, vector<8x32xf32>,
    %c32_197 = arith.constant 32 : index
    %c0_198 = arith.constant 0 : index
    %567 = vector.load %arg11[%c32_197, %c0_198] : memref<72x32xf32, #tpu.memory_space<vmem>>, vector<8x32xf32>
    tpu.vector_store %arg11[%c32_197, %c0_198], %565 {strides = array<i32>} : memref<72x32xf32, #tpu.memory_space<vmem>>, vector<8x32xf32>,
    %c40_199 = arith.constant 40 : index
    %c0_200 = arith.constant 0 : index
    %568 = vector.load %arg8[%c40_199, %c0_200] : memref<72x128xf32, #tpu.memory_space<vmem>>, vector<8x128xf32>
    %cst_201 = arith.constant dense<0.000000e+00> : vector<8x128xf32>
    %569 = tpu.matmul %556, %374, %cst_201 {dimension_numbers = #tpu.dot_dimension_numbers<[1], [0], [0], [1], [0, 0, 1, 1], [], []>} : vector<8x32xf32>, vector<32x128xf32>, vector<8x128xf32> -> vector<8x128xf32>
    %570 = arith.addf %568, %569 : vector<8x128xf32>
    %c24_202 = arith.constant 24 : index
    %c0_203 = arith.constant 0 : index
    %571 = vector.load %arg9[%c24_202, %c0_203] : memref<72x128xf32, #tpu.memory_space<vmem>>, vector<8x128xf32>
    %cst_204 = arith.constant dense<0.000000e+00> : vector<8x128xf32>
    %572 = tpu.matmul %565, %376, %cst_204 {dimension_numbers = #tpu.dot_dimension_numbers<[1], [0], [0], [1], [0, 0, 1, 1], [], []>} : vector<8x32xf32>, vector<32x128xf32>, vector<8x128xf32> -> vector<8x128xf32>
    %573 = arith.addf %571, %572 : vector<8x128xf32>
    %574 = arith.negf %570 : vector<8x128xf32>
    %575 = math.exp %574 : vector<8x128xf32>
    %cst_205 = arith.constant 1.000000e+00 : f32
    %576 = vector.broadcast %cst_205 : f32 to vector<8x128xf32>
    %577 = arith.addf %576, %575 : vector<8x128xf32>
    %578 = arith.divf %576, %577 : vector<8x128xf32>
    %579 = math.tanh %570 : vector<8x128xf32>
    %580 = arith.negf %573 : vector<8x128xf32>
    %581 = math.exp %580 : vector<8x128xf32>
    %cst_206 = arith.constant 1.000000e+00 : f32
    %582 = vector.broadcast %cst_206 : f32 to vector<8x128xf32>
    %583 = arith.addf %582, %581 : vector<8x128xf32>
    %584 = arith.divf %582, %583 : vector<8x128xf32>
    %585 = math.tanh %573 : vector<8x128xf32>
    %586 = vector.extract_strided_slice %578 {offsets = [0, 32], sizes = [8, 32], strides = [1, 1]} : vector<8x128xf32> to vector<8x32xf32>
    %587 = arith.mulf %586, %553 : vector<8x32xf32>
    %588 = vector.extract_strided_slice %578 {offsets = [0, 0], sizes = [8, 32], strides = [1, 1]} : vector<8x128xf32> to vector<8x32xf32>
    %589 = vector.extract_strided_slice %579 {offsets = [0, 64], sizes = [8, 32], strides = [1, 1]} : vector<8x128xf32> to vector<8x32xf32>
    %590 = arith.mulf %588, %589 : vector<8x32xf32>
    %591 = arith.addf %587, %590 : vector<8x32xf32>
    %592 = vector.extract_strided_slice %578 {offsets = [0, 96], sizes = [8, 32], strides = [1, 1]} : vector<8x128xf32> to vector<8x32xf32>
    %593 = math.tanh %591 : vector<8x32xf32>
    %594 = arith.mulf %592, %593 : vector<8x32xf32>
    %595 = vector.extract_strided_slice %584 {offsets = [0, 32], sizes = [8, 32], strides = [1, 1]} : vector<8x128xf32> to vector<8x32xf32>
    %596 = arith.mulf %595, %562 : vector<8x32xf32>
    %597 = vector.extract_strided_slice %584 {offsets = [0, 0], sizes = [8, 32], strides = [1, 1]} : vector<8x128xf32> to vector<8x32xf32>
    %598 = vector.extract_strided_slice %585 {offsets = [0, 64], sizes = [8, 32], strides = [1, 1]} : vector<8x128xf32> to vector<8x32xf32>
    %599 = arith.mulf %597, %598 : vector<8x32xf32>
    %600 = arith.addf %596, %599 : vector<8x32xf32>
    %601 = vector.extract_strided_slice %584 {offsets = [0, 96], sizes = [8, 32], strides = [1, 1]} : vector<8x128xf32> to vector<8x32xf32>
    %602 = math.tanh %600 : vector<8x32xf32>
    %603 = arith.mulf %601, %602 : vector<8x32xf32>
    %c40_207 = arith.constant 40 : index
    %c0_208 = arith.constant 0 : index
    %604 = vector.load %arg10[%c40_207, %c0_208] : memref<72x32xf32, #tpu.memory_space<vmem>>, vector<8x32xf32>
    tpu.vector_store %arg10[%c40_207, %c0_208], %594 {strides = array<i32>} : memref<72x32xf32, #tpu.memory_space<vmem>>, vector<8x32xf32>,
    %c24_209 = arith.constant 24 : index
    %c0_210 = arith.constant 0 : index
    %605 = vector.load %arg11[%c24_209, %c0_210] : memref<72x32xf32, #tpu.memory_space<vmem>>, vector<8x32xf32>
    tpu.vector_store %arg11[%c24_209, %c0_210], %603 {strides = array<i32>} : memref<72x32xf32, #tpu.memory_space<vmem>>, vector<8x32xf32>,
    %c48_211 = arith.constant 48 : index
    %c0_212 = arith.constant 0 : index
    %606 = vector.load %arg8[%c48_211, %c0_212] : memref<72x128xf32, #tpu.memory_space<vmem>>, vector<8x128xf32>
    %cst_213 = arith.constant dense<0.000000e+00> : vector<8x128xf32>
    %607 = tpu.matmul %594, %374, %cst_213 {dimension_numbers = #tpu.dot_dimension_numbers<[1], [0], [0], [1], [0, 0, 1, 1], [], []>} : vector<8x32xf32>, vector<32x128xf32>, vector<8x128xf32> -> vector<8x128xf32>
    %608 = arith.addf %606, %607 : vector<8x128xf32>
    %c16_214 = arith.constant 16 : index
    %c0_215 = arith.constant 0 : index
    %609 = vector.load %arg9[%c16_214, %c0_215] : memref<72x128xf32, #tpu.memory_space<vmem>>, vector<8x128xf32>
    %cst_216 = arith.constant dense<0.000000e+00> : vector<8x128xf32>
    %610 = tpu.matmul %603, %376, %cst_216 {dimension_numbers = #tpu.dot_dimension_numbers<[1], [0], [0], [1], [0, 0, 1, 1], [], []>} : vector<8x32xf32>, vector<32x128xf32>, vector<8x128xf32> -> vector<8x128xf32>
    %611 = arith.addf %609, %610 : vector<8x128xf32>
    %612 = arith.negf %608 : vector<8x128xf32>
    %613 = math.exp %612 : vector<8x128xf32>
    %cst_217 = arith.constant 1.000000e+00 : f32
    %614 = vector.broadcast %cst_217 : f32 to vector<8x128xf32>
    %615 = arith.addf %614, %613 : vector<8x128xf32>
    %616 = arith.divf %614, %615 : vector<8x128xf32>
    %617 = math.tanh %608 : vector<8x128xf32>
    %618 = arith.negf %611 : vector<8x128xf32>
    %619 = math.exp %618 : vector<8x128xf32>
    %cst_218 = arith.constant 1.000000e+00 : f32
    %620 = vector.broadcast %cst_218 : f32 to vector<8x128xf32>
    %621 = arith.addf %620, %619 : vector<8x128xf32>
    %622 = arith.divf %620, %621 : vector<8x128xf32>
    %623 = math.tanh %611 : vector<8x128xf32>
    %624 = vector.extract_strided_slice %616 {offsets = [0, 32], sizes = [8, 32], strides = [1, 1]} : vector<8x128xf32> to vector<8x32xf32>
    %625 = arith.mulf %624, %591 : vector<8x32xf32>
    %626 = vector.extract_strided_slice %616 {offsets = [0, 0], sizes = [8, 32], strides = [1, 1]} : vector<8x128xf32> to vector<8x32xf32>
    %627 = vector.extract_strided_slice %617 {offsets = [0, 64], sizes = [8, 32], strides = [1, 1]} : vector<8x128xf32> to vector<8x32xf32>
    %628 = arith.mulf %626, %627 : vector<8x32xf32>
    %629 = arith.addf %625, %628 : vector<8x32xf32>
    %630 = vector.extract_strided_slice %616 {offsets = [0, 96], sizes = [8, 32], strides = [1, 1]} : vector<8x128xf32> to vector<8x32xf32>
    %631 = math.tanh %629 : vector<8x32xf32>
    %632 = arith.mulf %630, %631 : vector<8x32xf32>
    %633 = vector.extract_strided_slice %622 {offsets = [0, 32], sizes = [8, 32], strides = [1, 1]} : vector<8x128xf32> to vector<8x32xf32>
    %634 = arith.mulf %633, %600 : vector<8x32xf32>
    %635 = vector.extract_strided_slice %622 {offsets = [0, 0], sizes = [8, 32], strides = [1, 1]} : vector<8x128xf32> to vector<8x32xf32>
    %636 = vector.extract_strided_slice %623 {offsets = [0, 64], sizes = [8, 32], strides = [1, 1]} : vector<8x128xf32> to vector<8x32xf32>
    %637 = arith.mulf %635, %636 : vector<8x32xf32>
    %638 = arith.addf %634, %637 : vector<8x32xf32>
    %639 = vector.extract_strided_slice %622 {offsets = [0, 96], sizes = [8, 32], strides = [1, 1]} : vector<8x128xf32> to vector<8x32xf32>
    %640 = math.tanh %638 : vector<8x32xf32>
    %641 = arith.mulf %639, %640 : vector<8x32xf32>
    %c48_219 = arith.constant 48 : index
    %c0_220 = arith.constant 0 : index
    %642 = vector.load %arg10[%c48_219, %c0_220] : memref<72x32xf32, #tpu.memory_space<vmem>>, vector<8x32xf32>
    tpu.vector_store %arg10[%c48_219, %c0_220], %632 {strides = array<i32>} : memref<72x32xf32, #tpu.memory_space<vmem>>, vector<8x32xf32>,
    %c16_221 = arith.constant 16 : index
    %c0_222 = arith.constant 0 : index
    %643 = vector.load %arg11[%c16_221, %c0_222] : memref<72x32xf32, #tpu.memory_space<vmem>>, vector<8x32xf32>
    tpu.vector_store %arg11[%c16_221, %c0_222], %641 {strides = array<i32>} : memref<72x32xf32, #tpu.memory_space<vmem>>, vector<8x32xf32>,
    %c56_223 = arith.constant 56 : index
    %c0_224 = arith.constant 0 : index
    %644 = vector.load %arg8[%c56_223, %c0_224] : memref<72x128xf32, #tpu.memory_space<vmem>>, vector<8x128xf32>
    %cst_225 = arith.constant dense<0.000000e+00> : vector<8x128xf32>
    %645 = tpu.matmul %632, %374, %cst_225 {dimension_numbers = #tpu.dot_dimension_numbers<[1], [0], [0], [1], [0, 0, 1, 1], [], []>} : vector<8x32xf32>, vector<32x128xf32>, vector<8x128xf32> -> vector<8x128xf32>
    %646 = arith.addf %644, %645 : vector<8x128xf32>
    %c8_226 = arith.constant 8 : index
    %c0_227 = arith.constant 0 : index
    %647 = vector.load %arg9[%c8_226, %c0_227] : memref<72x128xf32, #tpu.memory_space<vmem>>, vector<8x128xf32>
    %cst_228 = arith.constant dense<0.000000e+00> : vector<8x128xf32>
    %648 = tpu.matmul %641, %376, %cst_228 {dimension_numbers = #tpu.dot_dimension_numbers<[1], [0], [0], [1], [0, 0, 1, 1], [], []>} : vector<8x32xf32>, vector<32x128xf32>, vector<8x128xf32> -> vector<8x128xf32>
    %649 = arith.addf %647, %648 : vector<8x128xf32>
    %650 = arith.negf %646 : vector<8x128xf32>
    %651 = math.exp %650 : vector<8x128xf32>
    %cst_229 = arith.constant 1.000000e+00 : f32
    %652 = vector.broadcast %cst_229 : f32 to vector<8x128xf32>
    %653 = arith.addf %652, %651 : vector<8x128xf32>
    %654 = arith.divf %652, %653 : vector<8x128xf32>
    %655 = math.tanh %646 : vector<8x128xf32>
    %656 = arith.negf %649 : vector<8x128xf32>
    %657 = math.exp %656 : vector<8x128xf32>
    %cst_230 = arith.constant 1.000000e+00 : f32
    %658 = vector.broadcast %cst_230 : f32 to vector<8x128xf32>
    %659 = arith.addf %658, %657 : vector<8x128xf32>
    %660 = arith.divf %658, %659 : vector<8x128xf32>
    %661 = math.tanh %649 : vector<8x128xf32>
    %662 = vector.extract_strided_slice %654 {offsets = [0, 32], sizes = [8, 32], strides = [1, 1]} : vector<8x128xf32> to vector<8x32xf32>
    %663 = arith.mulf %662, %629 : vector<8x32xf32>
    %664 = vector.extract_strided_slice %654 {offsets = [0, 0], sizes = [8, 32], strides = [1, 1]} : vector<8x128xf32> to vector<8x32xf32>
    %665 = vector.extract_strided_slice %655 {offsets = [0, 64], sizes = [8, 32], strides = [1, 1]} : vector<8x128xf32> to vector<8x32xf32>
    %666 = arith.mulf %664, %665 : vector<8x32xf32>
    %667 = arith.addf %663, %666 : vector<8x32xf32>
    %668 = vector.extract_strided_slice %654 {offsets = [0, 96], sizes = [8, 32], strides = [1, 1]} : vector<8x128xf32> to vector<8x32xf32>
    %669 = math.tanh %667 : vector<8x32xf32>
    %670 = arith.mulf %668, %669 : vector<8x32xf32>
    %671 = vector.extract_strided_slice %660 {offsets = [0, 32], sizes = [8, 32], strides = [1, 1]} : vector<8x128xf32> to vector<8x32xf32>
    %672 = arith.mulf %671, %638 : vector<8x32xf32>
    %673 = vector.extract_strided_slice %660 {offsets = [0, 0], sizes = [8, 32], strides = [1, 1]} : vector<8x128xf32> to vector<8x32xf32>
    %674 = vector.extract_strided_slice %661 {offsets = [0, 64], sizes = [8, 32], strides = [1, 1]} : vector<8x128xf32> to vector<8x32xf32>
    %675 = arith.mulf %673, %674 : vector<8x32xf32>
    %676 = arith.addf %672, %675 : vector<8x32xf32>
    %677 = vector.extract_strided_slice %660 {offsets = [0, 96], sizes = [8, 32], strides = [1, 1]} : vector<8x128xf32> to vector<8x32xf32>
    %678 = math.tanh %676 : vector<8x32xf32>
    %679 = arith.mulf %677, %678 : vector<8x32xf32>
    %c56_231 = arith.constant 56 : index
    %c0_232 = arith.constant 0 : index
    %680 = vector.load %arg10[%c56_231, %c0_232] : memref<72x32xf32, #tpu.memory_space<vmem>>, vector<8x32xf32>
    tpu.vector_store %arg10[%c56_231, %c0_232], %670 {strides = array<i32>} : memref<72x32xf32, #tpu.memory_space<vmem>>, vector<8x32xf32>,
    %c8_233 = arith.constant 8 : index
    %c0_234 = arith.constant 0 : index
    %681 = vector.load %arg11[%c8_233, %c0_234] : memref<72x32xf32, #tpu.memory_space<vmem>>, vector<8x32xf32>
    tpu.vector_store %arg11[%c8_233, %c0_234], %679 {strides = array<i32>} : memref<72x32xf32, #tpu.memory_space<vmem>>, vector<8x32xf32>,
    %c64_235 = arith.constant 64 : index
    %c0_236 = arith.constant 0 : index
    %682 = vector.load %arg8[%c64_235, %c0_236] : memref<72x128xf32, #tpu.memory_space<vmem>>, vector<8x128xf32>
    %cst_237 = arith.constant dense<0.000000e+00> : vector<8x128xf32>
    %683 = tpu.matmul %670, %374, %cst_237 {dimension_numbers = #tpu.dot_dimension_numbers<[1], [0], [0], [1], [0, 0, 1, 1], [], []>} : vector<8x32xf32>, vector<32x128xf32>, vector<8x128xf32> -> vector<8x128xf32>
    %684 = arith.addf %682, %683 : vector<8x128xf32>
    %c0_238 = arith.constant 0 : index
    %c0_239 = arith.constant 0 : index
    %685 = vector.load %arg9[%c0_238, %c0_239] : memref<72x128xf32, #tpu.memory_space<vmem>>, vector<8x128xf32>
    %cst_240 = arith.constant dense<0.000000e+00> : vector<8x128xf32>
    %686 = tpu.matmul %679, %376, %cst_240 {dimension_numbers = #tpu.dot_dimension_numbers<[1], [0], [0], [1], [0, 0, 1, 1], [], []>} : vector<8x32xf32>, vector<32x128xf32>, vector<8x128xf32> -> vector<8x128xf32>
    %687 = arith.addf %685, %686 : vector<8x128xf32>
    %688 = arith.negf %684 : vector<8x128xf32>
    %689 = math.exp %688 : vector<8x128xf32>
    %cst_241 = arith.constant 1.000000e+00 : f32
    %690 = vector.broadcast %cst_241 : f32 to vector<8x128xf32>
    %691 = arith.addf %690, %689 : vector<8x128xf32>
    %692 = arith.divf %690, %691 : vector<8x128xf32>
    %693 = math.tanh %684 : vector<8x128xf32>
    %694 = arith.negf %687 : vector<8x128xf32>
    %695 = math.exp %694 : vector<8x128xf32>
    %cst_242 = arith.constant 1.000000e+00 : f32
    %696 = vector.broadcast %cst_242 : f32 to vector<8x128xf32>
    %697 = arith.addf %696, %695 : vector<8x128xf32>
    %698 = arith.divf %696, %697 : vector<8x128xf32>
    %699 = math.tanh %687 : vector<8x128xf32>
    %700 = vector.extract_strided_slice %692 {offsets = [0, 32], sizes = [8, 32], strides = [1, 1]} : vector<8x128xf32> to vector<8x32xf32>
    %701 = arith.mulf %700, %667 : vector<8x32xf32>
    %702 = vector.extract_strided_slice %692 {offsets = [0, 0], sizes = [8, 32], strides = [1, 1]} : vector<8x128xf32> to vector<8x32xf32>
    %703 = vector.extract_strided_slice %693 {offsets = [0, 64], sizes = [8, 32], strides = [1, 1]} : vector<8x128xf32> to vector<8x32xf32>
    %704 = arith.mulf %702, %703 : vector<8x32xf32>
    %705 = arith.addf %701, %704 : vector<8x32xf32>
    %706 = vector.extract_strided_slice %692 {offsets = [0, 96], sizes = [8, 32], strides = [1, 1]} : vector<8x128xf32> to vector<8x32xf32>
    %707 = math.tanh %705 : vector<8x32xf32>
    %708 = arith.mulf %706, %707 : vector<8x32xf32>
    %709 = vector.extract_strided_slice %698 {offsets = [0, 32], sizes = [8, 32], strides = [1, 1]} : vector<8x128xf32> to vector<8x32xf32>
    %710 = arith.mulf %709, %676 : vector<8x32xf32>
    %711 = vector.extract_strided_slice %698 {offsets = [0, 0], sizes = [8, 32], strides = [1, 1]} : vector<8x128xf32> to vector<8x32xf32>
    %712 = vector.extract_strided_slice %699 {offsets = [0, 64], sizes = [8, 32], strides = [1, 1]} : vector<8x128xf32> to vector<8x32xf32>
    %713 = arith.mulf %711, %712 : vector<8x32xf32>
    %714 = arith.addf %710, %713 : vector<8x32xf32>
    %715 = vector.extract_strided_slice %698 {offsets = [0, 96], sizes = [8, 32], strides = [1, 1]} : vector<8x128xf32> to vector<8x32xf32>
    %716 = math.tanh %714 : vector<8x32xf32>
    %717 = arith.mulf %715, %716 : vector<8x32xf32>
    %c64_243 = arith.constant 64 : index
    %c0_244 = arith.constant 0 : index
    %718 = vector.load %arg10[%c64_243, %c0_244] : memref<72x32xf32, #tpu.memory_space<vmem>>, vector<8x32xf32>
    tpu.vector_store %arg10[%c64_243, %c0_244], %708 {strides = array<i32>} : memref<72x32xf32, #tpu.memory_space<vmem>>, vector<8x32xf32>,
    %c0_245 = arith.constant 0 : index
    %c0_246 = arith.constant 0 : index
    %719 = vector.load %arg11[%c0_245, %c0_246] : memref<72x32xf32, #tpu.memory_space<vmem>>, vector<8x32xf32>
    tpu.vector_store %arg11[%c0_245, %c0_246], %717 {strides = array<i32>} : memref<72x32xf32, #tpu.memory_space<vmem>>, vector<8x32xf32>,
    %c0_247 = arith.constant 0 : index
    %c0_248 = arith.constant 0 : index
    %720 = vector.load %arg10[%c0_247, %c0_248] : memref<72x32xf32, #tpu.memory_space<vmem>>, vector<72x32xf32>
    %c0_249 = arith.constant 0 : index
    %c0_250 = arith.constant 0 : index
    %721 = vector.load %arg11[%c0_249, %c0_250] : memref<72x32xf32, #tpu.memory_space<vmem>>, vector<72x32xf32>
    %c4 = arith.constant 4 : index
    %c0_251 = arith.constant 0 : index
    %c0_252 = arith.constant 0 : index
    %722 = vector.load %arg4[%c4, %c0_251, %c0_252] : memref<8x32x128xf32, #tpu.memory_space<vmem>>, vector<1x32x128xf32>
    %723 = vector.shape_cast %722 : vector<1x32x128xf32> to vector<32x128xf32>
    %cst_253 = arith.constant dense<0.000000e+00> : vector<72x128xf32>
    %724 = tpu.matmul %720, %723, %cst_253 {dimension_numbers = #tpu.dot_dimension_numbers<[1], [0], [0], [1], [0, 0, 1, 1], [], []>} : vector<72x32xf32>, vector<32x128xf32>, vector<72x128xf32> -> vector<72x128xf32>
    %c5 = arith.constant 5 : index
    %c0_254 = arith.constant 0 : index
    %c0_255 = arith.constant 0 : index
    %725 = vector.load %arg4[%c5, %c0_254, %c0_255] : memref<8x32x128xf32, #tpu.memory_space<vmem>>, vector<1x32x128xf32>
    %726 = vector.shape_cast %725 : vector<1x32x128xf32> to vector<32x128xf32>
    %cst_256 = arith.constant dense<0.000000e+00> : vector<72x128xf32>
    %727 = tpu.matmul %721, %726, %cst_256 {dimension_numbers = #tpu.dot_dimension_numbers<[1], [0], [0], [1], [0, 0, 1, 1], [], []>} : vector<72x32xf32>, vector<32x128xf32>, vector<72x128xf32> -> vector<72x128xf32>
    %728 = arith.addf %724, %727 : vector<72x128xf32>
    %c2_257 = arith.constant 2 : index
    %c0_258 = arith.constant 0 : index
    %c0_259 = arith.constant 0 : index
    %729 = vector.load %arg5[%c2_257, %c0_258, %c0_259] : memref<4x1x128xf32, #tpu.memory_space<vmem>>, vector<1x1x128xf32>
    %730 = vector.shape_cast %729 : vector<1x1x128xf32> to vector<1x128xf32>
    %731 = vector.broadcast %730 : vector<1x128xf32> to vector<72x128xf32>
    %732 = arith.addf %728, %731 : vector<72x128xf32>
    %c0_260 = arith.constant 0 : index
    %c0_261 = arith.constant 0 : index
    %733 = vector.load %arg8[%c0_260, %c0_261] : memref<72x128xf32, #tpu.memory_space<vmem>>, vector<72x128xf32>
    tpu.vector_store %arg8[%c0_260, %c0_261], %732 {strides = array<i32>} : memref<72x128xf32, #tpu.memory_space<vmem>>, vector<72x128xf32>,
    %c6 = arith.constant 6 : index
    %c0_262 = arith.constant 0 : index
    %c0_263 = arith.constant 0 : index
    %734 = vector.load %arg4[%c6, %c0_262, %c0_263] : memref<8x32x128xf32, #tpu.memory_space<vmem>>, vector<1x32x128xf32>
    %735 = vector.shape_cast %734 : vector<1x32x128xf32> to vector<32x128xf32>
    %cst_264 = arith.constant dense<0.000000e+00> : vector<72x128xf32>
    %736 = tpu.matmul %720, %735, %cst_264 {dimension_numbers = #tpu.dot_dimension_numbers<[1], [0], [0], [1], [0, 0, 1, 1], [], []>} : vector<72x32xf32>, vector<32x128xf32>, vector<72x128xf32> -> vector<72x128xf32>
    %c7 = arith.constant 7 : index
    %c0_265 = arith.constant 0 : index
    %c0_266 = arith.constant 0 : index
    %737 = vector.load %arg4[%c7, %c0_265, %c0_266] : memref<8x32x128xf32, #tpu.memory_space<vmem>>, vector<1x32x128xf32>
    %738 = vector.shape_cast %737 : vector<1x32x128xf32> to vector<32x128xf32>
    %cst_267 = arith.constant dense<0.000000e+00> : vector<72x128xf32>
    %739 = tpu.matmul %721, %738, %cst_267 {dimension_numbers = #tpu.dot_dimension_numbers<[1], [0], [0], [1], [0, 0, 1, 1], [], []>} : vector<72x32xf32>, vector<32x128xf32>, vector<72x128xf32> -> vector<72x128xf32>
    %740 = arith.addf %736, %739 : vector<72x128xf32>
    %c3_268 = arith.constant 3 : index
    %c0_269 = arith.constant 0 : index
    %c0_270 = arith.constant 0 : index
    %741 = vector.load %arg5[%c3_268, %c0_269, %c0_270] : memref<4x1x128xf32, #tpu.memory_space<vmem>>, vector<1x1x128xf32>
    %742 = vector.shape_cast %741 : vector<1x1x128xf32> to vector<1x128xf32>
    %743 = vector.broadcast %742 : vector<1x128xf32> to vector<72x128xf32>
    %744 = arith.addf %740, %743 : vector<72x128xf32>
    %c0_271 = arith.constant 0 : index
    %c0_272 = arith.constant 0 : index
    %745 = vector.load %arg9[%c0_271, %c0_272] : memref<72x128xf32, #tpu.memory_space<vmem>>, vector<72x128xf32>
    tpu.vector_store %arg9[%c0_271, %c0_272], %744 {strides = array<i32>} : memref<72x128xf32, #tpu.memory_space<vmem>>, vector<72x128xf32>,
    %c4_273 = arith.constant 4 : index
    %c0_274 = arith.constant 0 : index
    %c0_275 = arith.constant 0 : index
    %746 = vector.load %arg3[%c4_273, %c0_274, %c0_275] : memref<6x32x128xf32, #tpu.memory_space<vmem>>, vector<1x32x128xf32>
    %747 = vector.shape_cast %746 : vector<1x32x128xf32> to vector<32x128xf32>
    %c5_276 = arith.constant 5 : index
    %c0_277 = arith.constant 0 : index
    %c0_278 = arith.constant 0 : index
    %748 = vector.load %arg3[%c5_276, %c0_277, %c0_278] : memref<6x32x128xf32, #tpu.memory_space<vmem>>, vector<1x32x128xf32>
    %749 = vector.shape_cast %748 : vector<1x32x128xf32> to vector<32x128xf32>
    %cst_279 = arith.constant 0.000000e+00 : f32
    %750 = vector.broadcast %cst_279 : f32 to vector<8x32xf32>
    %c0_280 = arith.constant 0 : index
    %c0_281 = arith.constant 0 : index
    %751 = vector.load %arg8[%c0_280, %c0_281] : memref<72x128xf32, #tpu.memory_space<vmem>>, vector<8x128xf32>
    %cst_282 = arith.constant dense<0.000000e+00> : vector<8x128xf32>
    %752 = tpu.matmul %750, %747, %cst_282 {dimension_numbers = #tpu.dot_dimension_numbers<[1], [0], [0], [1], [0, 0, 1, 1], [], []>} : vector<8x32xf32>, vector<32x128xf32>, vector<8x128xf32> -> vector<8x128xf32>
    %753 = arith.addf %751, %752 : vector<8x128xf32>
    %c64_283 = arith.constant 64 : index
    %c0_284 = arith.constant 0 : index
    %754 = vector.load %arg9[%c64_283, %c0_284] : memref<72x128xf32, #tpu.memory_space<vmem>>, vector<8x128xf32>
    %cst_285 = arith.constant dense<0.000000e+00> : vector<8x128xf32>
    %755 = tpu.matmul %750, %749, %cst_285 {dimension_numbers = #tpu.dot_dimension_numbers<[1], [0], [0], [1], [0, 0, 1, 1], [], []>} : vector<8x32xf32>, vector<32x128xf32>, vector<8x128xf32> -> vector<8x128xf32>
    %756 = arith.addf %754, %755 : vector<8x128xf32>
    %757 = arith.negf %753 : vector<8x128xf32>
    %758 = math.exp %757 : vector<8x128xf32>
    %cst_286 = arith.constant 1.000000e+00 : f32
    %759 = vector.broadcast %cst_286 : f32 to vector<8x128xf32>
    %760 = arith.addf %759, %758 : vector<8x128xf32>
    %761 = arith.divf %759, %760 : vector<8x128xf32>
    %762 = math.tanh %753 : vector<8x128xf32>
    %763 = arith.negf %756 : vector<8x128xf32>
    %764 = math.exp %763 : vector<8x128xf32>
    %cst_287 = arith.constant 1.000000e+00 : f32
    %765 = vector.broadcast %cst_287 : f32 to vector<8x128xf32>
    %766 = arith.addf %765, %764 : vector<8x128xf32>
    %767 = arith.divf %765, %766 : vector<8x128xf32>
    %768 = math.tanh %756 : vector<8x128xf32>
    %769 = vector.extract_strided_slice %761 {offsets = [0, 32], sizes = [8, 32], strides = [1, 1]} : vector<8x128xf32> to vector<8x32xf32>
    %770 = arith.mulf %769, %750 : vector<8x32xf32>
    %771 = vector.extract_strided_slice %761 {offsets = [0, 0], sizes = [8, 32], strides = [1, 1]} : vector<8x128xf32> to vector<8x32xf32>
    %772 = vector.extract_strided_slice %762 {offsets = [0, 64], sizes = [8, 32], strides = [1, 1]} : vector<8x128xf32> to vector<8x32xf32>
    %773 = arith.mulf %771, %772 : vector<8x32xf32>
    %774 = arith.addf %770, %773 : vector<8x32xf32>
    %775 = vector.extract_strided_slice %761 {offsets = [0, 96], sizes = [8, 32], strides = [1, 1]} : vector<8x128xf32> to vector<8x32xf32>
    %776 = math.tanh %774 : vector<8x32xf32>
    %777 = arith.mulf %775, %776 : vector<8x32xf32>
    %778 = vector.extract_strided_slice %767 {offsets = [0, 32], sizes = [8, 32], strides = [1, 1]} : vector<8x128xf32> to vector<8x32xf32>
    %779 = arith.mulf %778, %750 : vector<8x32xf32>
    %780 = vector.extract_strided_slice %767 {offsets = [0, 0], sizes = [8, 32], strides = [1, 1]} : vector<8x128xf32> to vector<8x32xf32>
    %781 = vector.extract_strided_slice %768 {offsets = [0, 64], sizes = [8, 32], strides = [1, 1]} : vector<8x128xf32> to vector<8x32xf32>
    %782 = arith.mulf %780, %781 : vector<8x32xf32>
    %783 = arith.addf %779, %782 : vector<8x32xf32>
    %784 = vector.extract_strided_slice %767 {offsets = [0, 96], sizes = [8, 32], strides = [1, 1]} : vector<8x128xf32> to vector<8x32xf32>
    %785 = math.tanh %783 : vector<8x32xf32>
    %786 = arith.mulf %784, %785 : vector<8x32xf32>
    %c0_288 = arith.constant 0 : index
    %c0_289 = arith.constant 0 : index
    %787 = vector.load %arg6[%c0_288, %c0_289] : memref<72x32xf32, #tpu.memory_space<vmem>>, vector<8x32xf32>
    tpu.vector_store %arg6[%c0_288, %c0_289], %777 {strides = array<i32>} : memref<72x32xf32, #tpu.memory_space<vmem>>, vector<8x32xf32>,
    %c64_290 = arith.constant 64 : index
    %c0_291 = arith.constant 0 : index
    %788 = vector.load %arg7[%c64_290, %c0_291] : memref<72x32xf32, #tpu.memory_space<vmem>>, vector<8x32xf32>
    tpu.vector_store %arg7[%c64_290, %c0_291], %786 {strides = array<i32>} : memref<72x32xf32, #tpu.memory_space<vmem>>, vector<8x32xf32>,
    %c8_292 = arith.constant 8 : index
    %c0_293 = arith.constant 0 : index
    %789 = vector.load %arg8[%c8_292, %c0_293] : memref<72x128xf32, #tpu.memory_space<vmem>>, vector<8x128xf32>
    %cst_294 = arith.constant dense<0.000000e+00> : vector<8x128xf32>
    %790 = tpu.matmul %777, %747, %cst_294 {dimension_numbers = #tpu.dot_dimension_numbers<[1], [0], [0], [1], [0, 0, 1, 1], [], []>} : vector<8x32xf32>, vector<32x128xf32>, vector<8x128xf32> -> vector<8x128xf32>
    %791 = arith.addf %789, %790 : vector<8x128xf32>
    %c56_295 = arith.constant 56 : index
    %c0_296 = arith.constant 0 : index
    %792 = vector.load %arg9[%c56_295, %c0_296] : memref<72x128xf32, #tpu.memory_space<vmem>>, vector<8x128xf32>
    %cst_297 = arith.constant dense<0.000000e+00> : vector<8x128xf32>
    %793 = tpu.matmul %786, %749, %cst_297 {dimension_numbers = #tpu.dot_dimension_numbers<[1], [0], [0], [1], [0, 0, 1, 1], [], []>} : vector<8x32xf32>, vector<32x128xf32>, vector<8x128xf32> -> vector<8x128xf32>
    %794 = arith.addf %792, %793 : vector<8x128xf32>
    %795 = arith.negf %791 : vector<8x128xf32>
    %796 = math.exp %795 : vector<8x128xf32>
    %cst_298 = arith.constant 1.000000e+00 : f32
    %797 = vector.broadcast %cst_298 : f32 to vector<8x128xf32>
    %798 = arith.addf %797, %796 : vector<8x128xf32>
    %799 = arith.divf %797, %798 : vector<8x128xf32>
    %800 = math.tanh %791 : vector<8x128xf32>
    %801 = arith.negf %794 : vector<8x128xf32>
    %802 = math.exp %801 : vector<8x128xf32>
    %cst_299 = arith.constant 1.000000e+00 : f32
    %803 = vector.broadcast %cst_299 : f32 to vector<8x128xf32>
    %804 = arith.addf %803, %802 : vector<8x128xf32>
    %805 = arith.divf %803, %804 : vector<8x128xf32>
    %806 = math.tanh %794 : vector<8x128xf32>
    %807 = vector.extract_strided_slice %799 {offsets = [0, 32], sizes = [8, 32], strides = [1, 1]} : vector<8x128xf32> to vector<8x32xf32>
    %808 = arith.mulf %807, %774 : vector<8x32xf32>
    %809 = vector.extract_strided_slice %799 {offsets = [0, 0], sizes = [8, 32], strides = [1, 1]} : vector<8x128xf32> to vector<8x32xf32>
    %810 = vector.extract_strided_slice %800 {offsets = [0, 64], sizes = [8, 32], strides = [1, 1]} : vector<8x128xf32> to vector<8x32xf32>
    %811 = arith.mulf %809, %810 : vector<8x32xf32>
    %812 = arith.addf %808, %811 : vector<8x32xf32>
    %813 = vector.extract_strided_slice %799 {offsets = [0, 96], sizes = [8, 32], strides = [1, 1]} : vector<8x128xf32> to vector<8x32xf32>
    %814 = math.tanh %812 : vector<8x32xf32>
    %815 = arith.mulf %813, %814 : vector<8x32xf32>
    %816 = vector.extract_strided_slice %805 {offsets = [0, 32], sizes = [8, 32], strides = [1, 1]} : vector<8x128xf32> to vector<8x32xf32>
    %817 = arith.mulf %816, %783 : vector<8x32xf32>
    %818 = vector.extract_strided_slice %805 {offsets = [0, 0], sizes = [8, 32], strides = [1, 1]} : vector<8x128xf32> to vector<8x32xf32>
    %819 = vector.extract_strided_slice %806 {offsets = [0, 64], sizes = [8, 32], strides = [1, 1]} : vector<8x128xf32> to vector<8x32xf32>
    %820 = arith.mulf %818, %819 : vector<8x32xf32>
    %821 = arith.addf %817, %820 : vector<8x32xf32>
    %822 = vector.extract_strided_slice %805 {offsets = [0, 96], sizes = [8, 32], strides = [1, 1]} : vector<8x128xf32> to vector<8x32xf32>
    %823 = math.tanh %821 : vector<8x32xf32>
    %824 = arith.mulf %822, %823 : vector<8x32xf32>
    %c8_300 = arith.constant 8 : index
    %c0_301 = arith.constant 0 : index
    %825 = vector.load %arg6[%c8_300, %c0_301] : memref<72x32xf32, #tpu.memory_space<vmem>>, vector<8x32xf32>
    tpu.vector_store %arg6[%c8_300, %c0_301], %815 {strides = array<i32>} : memref<72x32xf32, #tpu.memory_space<vmem>>, vector<8x32xf32>,
    %c56_302 = arith.constant 56 : index
    %c0_303 = arith.constant 0 : index
    %826 = vector.load %arg7[%c56_302, %c0_303] : memref<72x32xf32, #tpu.memory_space<vmem>>, vector<8x32xf32>
    tpu.vector_store %arg7[%c56_302, %c0_303], %824 {strides = array<i32>} : memref<72x32xf32, #tpu.memory_space<vmem>>, vector<8x32xf32>,
    %c16_304 = arith.constant 16 : index
    %c0_305 = arith.constant 0 : index
    %827 = vector.load %arg8[%c16_304, %c0_305] : memref<72x128xf32, #tpu.memory_space<vmem>>, vector<8x128xf32>
    %cst_306 = arith.constant dense<0.000000e+00> : vector<8x128xf32>
    %828 = tpu.matmul %815, %747, %cst_306 {dimension_numbers = #tpu.dot_dimension_numbers<[1], [0], [0], [1], [0, 0, 1, 1], [], []>} : vector<8x32xf32>, vector<32x128xf32>, vector<8x128xf32> -> vector<8x128xf32>
    %829 = arith.addf %827, %828 : vector<8x128xf32>
    %c48_307 = arith.constant 48 : index
    %c0_308 = arith.constant 0 : index
    %830 = vector.load %arg9[%c48_307, %c0_308] : memref<72x128xf32, #tpu.memory_space<vmem>>, vector<8x128xf32>
    %cst_309 = arith.constant dense<0.000000e+00> : vector<8x128xf32>
    %831 = tpu.matmul %824, %749, %cst_309 {dimension_numbers = #tpu.dot_dimension_numbers<[1], [0], [0], [1], [0, 0, 1, 1], [], []>} : vector<8x32xf32>, vector<32x128xf32>, vector<8x128xf32> -> vector<8x128xf32>
    %832 = arith.addf %830, %831 : vector<8x128xf32>
    %833 = arith.negf %829 : vector<8x128xf32>
    %834 = math.exp %833 : vector<8x128xf32>
    %cst_310 = arith.constant 1.000000e+00 : f32
    %835 = vector.broadcast %cst_310 : f32 to vector<8x128xf32>
    %836 = arith.addf %835, %834 : vector<8x128xf32>
    %837 = arith.divf %835, %836 : vector<8x128xf32>
    %838 = math.tanh %829 : vector<8x128xf32>
    %839 = arith.negf %832 : vector<8x128xf32>
    %840 = math.exp %839 : vector<8x128xf32>
    %cst_311 = arith.constant 1.000000e+00 : f32
    %841 = vector.broadcast %cst_311 : f32 to vector<8x128xf32>
    %842 = arith.addf %841, %840 : vector<8x128xf32>
    %843 = arith.divf %841, %842 : vector<8x128xf32>
    %844 = math.tanh %832 : vector<8x128xf32>
    %845 = vector.extract_strided_slice %837 {offsets = [0, 32], sizes = [8, 32], strides = [1, 1]} : vector<8x128xf32> to vector<8x32xf32>
    %846 = arith.mulf %845, %812 : vector<8x32xf32>
    %847 = vector.extract_strided_slice %837 {offsets = [0, 0], sizes = [8, 32], strides = [1, 1]} : vector<8x128xf32> to vector<8x32xf32>
    %848 = vector.extract_strided_slice %838 {offsets = [0, 64], sizes = [8, 32], strides = [1, 1]} : vector<8x128xf32> to vector<8x32xf32>
    %849 = arith.mulf %847, %848 : vector<8x32xf32>
    %850 = arith.addf %846, %849 : vector<8x32xf32>
    %851 = vector.extract_strided_slice %837 {offsets = [0, 96], sizes = [8, 32], strides = [1, 1]} : vector<8x128xf32> to vector<8x32xf32>
    %852 = math.tanh %850 : vector<8x32xf32>
    %853 = arith.mulf %851, %852 : vector<8x32xf32>
    %854 = vector.extract_strided_slice %843 {offsets = [0, 32], sizes = [8, 32], strides = [1, 1]} : vector<8x128xf32> to vector<8x32xf32>
    %855 = arith.mulf %854, %821 : vector<8x32xf32>
    %856 = vector.extract_strided_slice %843 {offsets = [0, 0], sizes = [8, 32], strides = [1, 1]} : vector<8x128xf32> to vector<8x32xf32>
    %857 = vector.extract_strided_slice %844 {offsets = [0, 64], sizes = [8, 32], strides = [1, 1]} : vector<8x128xf32> to vector<8x32xf32>
    %858 = arith.mulf %856, %857 : vector<8x32xf32>
    %859 = arith.addf %855, %858 : vector<8x32xf32>
    %860 = vector.extract_strided_slice %843 {offsets = [0, 96], sizes = [8, 32], strides = [1, 1]} : vector<8x128xf32> to vector<8x32xf32>
    %861 = math.tanh %859 : vector<8x32xf32>
    %862 = arith.mulf %860, %861 : vector<8x32xf32>
    %c16_312 = arith.constant 16 : index
    %c0_313 = arith.constant 0 : index
    %863 = vector.load %arg6[%c16_312, %c0_313] : memref<72x32xf32, #tpu.memory_space<vmem>>, vector<8x32xf32>
    tpu.vector_store %arg6[%c16_312, %c0_313], %853 {strides = array<i32>} : memref<72x32xf32, #tpu.memory_space<vmem>>, vector<8x32xf32>,
    %c48_314 = arith.constant 48 : index
    %c0_315 = arith.constant 0 : index
    %864 = vector.load %arg7[%c48_314, %c0_315] : memref<72x32xf32, #tpu.memory_space<vmem>>, vector<8x32xf32>
    tpu.vector_store %arg7[%c48_314, %c0_315], %862 {strides = array<i32>} : memref<72x32xf32, #tpu.memory_space<vmem>>, vector<8x32xf32>,
    %c24_316 = arith.constant 24 : index
    %c0_317 = arith.constant 0 : index
    %865 = vector.load %arg8[%c24_316, %c0_317] : memref<72x128xf32, #tpu.memory_space<vmem>>, vector<8x128xf32>
    %cst_318 = arith.constant dense<0.000000e+00> : vector<8x128xf32>
    %866 = tpu.matmul %853, %747, %cst_318 {dimension_numbers = #tpu.dot_dimension_numbers<[1], [0], [0], [1], [0, 0, 1, 1], [], []>} : vector<8x32xf32>, vector<32x128xf32>, vector<8x128xf32> -> vector<8x128xf32>
    %867 = arith.addf %865, %866 : vector<8x128xf32>
    %c40_319 = arith.constant 40 : index
    %c0_320 = arith.constant 0 : index
    %868 = vector.load %arg9[%c40_319, %c0_320] : memref<72x128xf32, #tpu.memory_space<vmem>>, vector<8x128xf32>
    %cst_321 = arith.constant dense<0.000000e+00> : vector<8x128xf32>
    %869 = tpu.matmul %862, %749, %cst_321 {dimension_numbers = #tpu.dot_dimension_numbers<[1], [0], [0], [1], [0, 0, 1, 1], [], []>} : vector<8x32xf32>, vector<32x128xf32>, vector<8x128xf32> -> vector<8x128xf32>
    %870 = arith.addf %868, %869 : vector<8x128xf32>
    %871 = arith.negf %867 : vector<8x128xf32>
    %872 = math.exp %871 : vector<8x128xf32>
    %cst_322 = arith.constant 1.000000e+00 : f32
    %873 = vector.broadcast %cst_322 : f32 to vector<8x128xf32>
    %874 = arith.addf %873, %872 : vector<8x128xf32>
    %875 = arith.divf %873, %874 : vector<8x128xf32>
    %876 = math.tanh %867 : vector<8x128xf32>
    %877 = arith.negf %870 : vector<8x128xf32>
    %878 = math.exp %877 : vector<8x128xf32>
    %cst_323 = arith.constant 1.000000e+00 : f32
    %879 = vector.broadcast %cst_323 : f32 to vector<8x128xf32>
    %880 = arith.addf %879, %878 : vector<8x128xf32>
    %881 = arith.divf %879, %880 : vector<8x128xf32>
    %882 = math.tanh %870 : vector<8x128xf32>
    %883 = vector.extract_strided_slice %875 {offsets = [0, 32], sizes = [8, 32], strides = [1, 1]} : vector<8x128xf32> to vector<8x32xf32>
    %884 = arith.mulf %883, %850 : vector<8x32xf32>
    %885 = vector.extract_strided_slice %875 {offsets = [0, 0], sizes = [8, 32], strides = [1, 1]} : vector<8x128xf32> to vector<8x32xf32>
    %886 = vector.extract_strided_slice %876 {offsets = [0, 64], sizes = [8, 32], strides = [1, 1]} : vector<8x128xf32> to vector<8x32xf32>
    %887 = arith.mulf %885, %886 : vector<8x32xf32>
    %888 = arith.addf %884, %887 : vector<8x32xf32>
    %889 = vector.extract_strided_slice %875 {offsets = [0, 96], sizes = [8, 32], strides = [1, 1]} : vector<8x128xf32> to vector<8x32xf32>
    %890 = math.tanh %888 : vector<8x32xf32>
    %891 = arith.mulf %889, %890 : vector<8x32xf32>
    %892 = vector.extract_strided_slice %881 {offsets = [0, 32], sizes = [8, 32], strides = [1, 1]} : vector<8x128xf32> to vector<8x32xf32>
    %893 = arith.mulf %892, %859 : vector<8x32xf32>
    %894 = vector.extract_strided_slice %881 {offsets = [0, 0], sizes = [8, 32], strides = [1, 1]} : vector<8x128xf32> to vector<8x32xf32>
    %895 = vector.extract_strided_slice %882 {offsets = [0, 64], sizes = [8, 32], strides = [1, 1]} : vector<8x128xf32> to vector<8x32xf32>
    %896 = arith.mulf %894, %895 : vector<8x32xf32>
    %897 = arith.addf %893, %896 : vector<8x32xf32>
    %898 = vector.extract_strided_slice %881 {offsets = [0, 96], sizes = [8, 32], strides = [1, 1]} : vector<8x128xf32> to vector<8x32xf32>
    %899 = math.tanh %897 : vector<8x32xf32>
    %900 = arith.mulf %898, %899 : vector<8x32xf32>
    %c24_324 = arith.constant 24 : index
    %c0_325 = arith.constant 0 : index
    %901 = vector.load %arg6[%c24_324, %c0_325] : memref<72x32xf32, #tpu.memory_space<vmem>>, vector<8x32xf32>
    tpu.vector_store %arg6[%c24_324, %c0_325], %891 {strides = array<i32>} : memref<72x32xf32, #tpu.memory_space<vmem>>, vector<8x32xf32>,
    %c40_326 = arith.constant 40 : index
    %c0_327 = arith.constant 0 : index
    %902 = vector.load %arg7[%c40_326, %c0_327] : memref<72x32xf32, #tpu.memory_space<vmem>>, vector<8x32xf32>
    tpu.vector_store %arg7[%c40_326, %c0_327], %900 {strides = array<i32>} : memref<72x32xf32, #tpu.memory_space<vmem>>, vector<8x32xf32>,
    %c32_328 = arith.constant 32 : index
    %c0_329 = arith.constant 0 : index
    %903 = vector.load %arg8[%c32_328, %c0_329] : memref<72x128xf32, #tpu.memory_space<vmem>>, vector<8x128xf32>
    %cst_330 = arith.constant dense<0.000000e+00> : vector<8x128xf32>
    %904 = tpu.matmul %891, %747, %cst_330 {dimension_numbers = #tpu.dot_dimension_numbers<[1], [0], [0], [1], [0, 0, 1, 1], [], []>} : vector<8x32xf32>, vector<32x128xf32>, vector<8x128xf32> -> vector<8x128xf32>
    %905 = arith.addf %903, %904 : vector<8x128xf32>
    %c32_331 = arith.constant 32 : index
    %c0_332 = arith.constant 0 : index
    %906 = vector.load %arg9[%c32_331, %c0_332] : memref<72x128xf32, #tpu.memory_space<vmem>>, vector<8x128xf32>
    %cst_333 = arith.constant dense<0.000000e+00> : vector<8x128xf32>
    %907 = tpu.matmul %900, %749, %cst_333 {dimension_numbers = #tpu.dot_dimension_numbers<[1], [0], [0], [1], [0, 0, 1, 1], [], []>} : vector<8x32xf32>, vector<32x128xf32>, vector<8x128xf32> -> vector<8x128xf32>
    %908 = arith.addf %906, %907 : vector<8x128xf32>
    %909 = arith.negf %905 : vector<8x128xf32>
    %910 = math.exp %909 : vector<8x128xf32>
    %cst_334 = arith.constant 1.000000e+00 : f32
    %911 = vector.broadcast %cst_334 : f32 to vector<8x128xf32>
    %912 = arith.addf %911, %910 : vector<8x128xf32>
    %913 = arith.divf %911, %912 : vector<8x128xf32>
    %914 = math.tanh %905 : vector<8x128xf32>
    %915 = arith.negf %908 : vector<8x128xf32>
    %916 = math.exp %915 : vector<8x128xf32>
    %cst_335 = arith.constant 1.000000e+00 : f32
    %917 = vector.broadcast %cst_335 : f32 to vector<8x128xf32>
    %918 = arith.addf %917, %916 : vector<8x128xf32>
    %919 = arith.divf %917, %918 : vector<8x128xf32>
    %920 = math.tanh %908 : vector<8x128xf32>
    %921 = vector.extract_strided_slice %913 {offsets = [0, 32], sizes = [8, 32], strides = [1, 1]} : vector<8x128xf32> to vector<8x32xf32>
    %922 = arith.mulf %921, %888 : vector<8x32xf32>
    %923 = vector.extract_strided_slice %913 {offsets = [0, 0], sizes = [8, 32], strides = [1, 1]} : vector<8x128xf32> to vector<8x32xf32>
    %924 = vector.extract_strided_slice %914 {offsets = [0, 64], sizes = [8, 32], strides = [1, 1]} : vector<8x128xf32> to vector<8x32xf32>
    %925 = arith.mulf %923, %924 : vector<8x32xf32>
    %926 = arith.addf %922, %925 : vector<8x32xf32>
    %927 = vector.extract_strided_slice %913 {offsets = [0, 96], sizes = [8, 32], strides = [1, 1]} : vector<8x128xf32> to vector<8x32xf32>
    %928 = math.tanh %926 : vector<8x32xf32>
    %929 = arith.mulf %927, %928 : vector<8x32xf32>
    %930 = vector.extract_strided_slice %919 {offsets = [0, 32], sizes = [8, 32], strides = [1, 1]} : vector<8x128xf32> to vector<8x32xf32>
    %931 = arith.mulf %930, %897 : vector<8x32xf32>
    %932 = vector.extract_strided_slice %919 {offsets = [0, 0], sizes = [8, 32], strides = [1, 1]} : vector<8x128xf32> to vector<8x32xf32>
    %933 = vector.extract_strided_slice %920 {offsets = [0, 64], sizes = [8, 32], strides = [1, 1]} : vector<8x128xf32> to vector<8x32xf32>
    %934 = arith.mulf %932, %933 : vector<8x32xf32>
    %935 = arith.addf %931, %934 : vector<8x32xf32>
    %936 = vector.extract_strided_slice %919 {offsets = [0, 96], sizes = [8, 32], strides = [1, 1]} : vector<8x128xf32> to vector<8x32xf32>
    %937 = math.tanh %935 : vector<8x32xf32>
    %938 = arith.mulf %936, %937 : vector<8x32xf32>
    %c32_336 = arith.constant 32 : index
    %c0_337 = arith.constant 0 : index
    %939 = vector.load %arg6[%c32_336, %c0_337] : memref<72x32xf32, #tpu.memory_space<vmem>>, vector<8x32xf32>
    tpu.vector_store %arg6[%c32_336, %c0_337], %929 {strides = array<i32>} : memref<72x32xf32, #tpu.memory_space<vmem>>, vector<8x32xf32>,
    %c32_338 = arith.constant 32 : index
    %c0_339 = arith.constant 0 : index
    %940 = vector.load %arg7[%c32_338, %c0_339] : memref<72x32xf32, #tpu.memory_space<vmem>>, vector<8x32xf32>
    tpu.vector_store %arg7[%c32_338, %c0_339], %938 {strides = array<i32>} : memref<72x32xf32, #tpu.memory_space<vmem>>, vector<8x32xf32>,
    %c40_340 = arith.constant 40 : index
    %c0_341 = arith.constant 0 : index
    %941 = vector.load %arg8[%c40_340, %c0_341] : memref<72x128xf32, #tpu.memory_space<vmem>>, vector<8x128xf32>
    %cst_342 = arith.constant dense<0.000000e+00> : vector<8x128xf32>
    %942 = tpu.matmul %929, %747, %cst_342 {dimension_numbers = #tpu.dot_dimension_numbers<[1], [0], [0], [1], [0, 0, 1, 1], [], []>} : vector<8x32xf32>, vector<32x128xf32>, vector<8x128xf32> -> vector<8x128xf32>
    %943 = arith.addf %941, %942 : vector<8x128xf32>
    %c24_343 = arith.constant 24 : index
    %c0_344 = arith.constant 0 : index
    %944 = vector.load %arg9[%c24_343, %c0_344] : memref<72x128xf32, #tpu.memory_space<vmem>>, vector<8x128xf32>
    %cst_345 = arith.constant dense<0.000000e+00> : vector<8x128xf32>
    %945 = tpu.matmul %938, %749, %cst_345 {dimension_numbers = #tpu.dot_dimension_numbers<[1], [0], [0], [1], [0, 0, 1, 1], [], []>} : vector<8x32xf32>, vector<32x128xf32>, vector<8x128xf32> -> vector<8x128xf32>
    %946 = arith.addf %944, %945 : vector<8x128xf32>
    %947 = arith.negf %943 : vector<8x128xf32>
    %948 = math.exp %947 : vector<8x128xf32>
    %cst_346 = arith.constant 1.000000e+00 : f32
    %949 = vector.broadcast %cst_346 : f32 to vector<8x128xf32>
    %950 = arith.addf %949, %948 : vector<8x128xf32>
    %951 = arith.divf %949, %950 : vector<8x128xf32>
    %952 = math.tanh %943 : vector<8x128xf32>
    %953 = arith.negf %946 : vector<8x128xf32>
    %954 = math.exp %953 : vector<8x128xf32>
    %cst_347 = arith.constant 1.000000e+00 : f32
    %955 = vector.broadcast %cst_347 : f32 to vector<8x128xf32>
    %956 = arith.addf %955, %954 : vector<8x128xf32>
    %957 = arith.divf %955, %956 : vector<8x128xf32>
    %958 = math.tanh %946 : vector<8x128xf32>
    %959 = vector.extract_strided_slice %951 {offsets = [0, 32], sizes = [8, 32], strides = [1, 1]} : vector<8x128xf32> to vector<8x32xf32>
    %960 = arith.mulf %959, %926 : vector<8x32xf32>
    %961 = vector.extract_strided_slice %951 {offsets = [0, 0], sizes = [8, 32], strides = [1, 1]} : vector<8x128xf32> to vector<8x32xf32>
    %962 = vector.extract_strided_slice %952 {offsets = [0, 64], sizes = [8, 32], strides = [1, 1]} : vector<8x128xf32> to vector<8x32xf32>
    %963 = arith.mulf %961, %962 : vector<8x32xf32>
    %964 = arith.addf %960, %963 : vector<8x32xf32>
    %965 = vector.extract_strided_slice %951 {offsets = [0, 96], sizes = [8, 32], strides = [1, 1]} : vector<8x128xf32> to vector<8x32xf32>
    %966 = math.tanh %964 : vector<8x32xf32>
    %967 = arith.mulf %965, %966 : vector<8x32xf32>
    %968 = vector.extract_strided_slice %957 {offsets = [0, 32], sizes = [8, 32], strides = [1, 1]} : vector<8x128xf32> to vector<8x32xf32>
    %969 = arith.mulf %968, %935 : vector<8x32xf32>
    %970 = vector.extract_strided_slice %957 {offsets = [0, 0], sizes = [8, 32], strides = [1, 1]} : vector<8x128xf32> to vector<8x32xf32>
    %971 = vector.extract_strided_slice %958 {offsets = [0, 64], sizes = [8, 32], strides = [1, 1]} : vector<8x128xf32> to vector<8x32xf32>
    %972 = arith.mulf %970, %971 : vector<8x32xf32>
    %973 = arith.addf %969, %972 : vector<8x32xf32>
    %974 = vector.extract_strided_slice %957 {offsets = [0, 96], sizes = [8, 32], strides = [1, 1]} : vector<8x128xf32> to vector<8x32xf32>
    %975 = math.tanh %973 : vector<8x32xf32>
    %976 = arith.mulf %974, %975 : vector<8x32xf32>
    %c40_348 = arith.constant 40 : index
    %c0_349 = arith.constant 0 : index
    %977 = vector.load %arg6[%c40_348, %c0_349] : memref<72x32xf32, #tpu.memory_space<vmem>>, vector<8x32xf32>
    tpu.vector_store %arg6[%c40_348, %c0_349], %967 {strides = array<i32>} : memref<72x32xf32, #tpu.memory_space<vmem>>, vector<8x32xf32>,
    %c24_350 = arith.constant 24 : index
    %c0_351 = arith.constant 0 : index
    %978 = vector.load %arg7[%c24_350, %c0_351] : memref<72x32xf32, #tpu.memory_space<vmem>>, vector<8x32xf32>
    tpu.vector_store %arg7[%c24_350, %c0_351], %976 {strides = array<i32>} : memref<72x32xf32, #tpu.memory_space<vmem>>, vector<8x32xf32>,
    %c48_352 = arith.constant 48 : index
    %c0_353 = arith.constant 0 : index
    %979 = vector.load %arg8[%c48_352, %c0_353] : memref<72x128xf32, #tpu.memory_space<vmem>>, vector<8x128xf32>
    %cst_354 = arith.constant dense<0.000000e+00> : vector<8x128xf32>
    %980 = tpu.matmul %967, %747, %cst_354 {dimension_numbers = #tpu.dot_dimension_numbers<[1], [0], [0], [1], [0, 0, 1, 1], [], []>} : vector<8x32xf32>, vector<32x128xf32>, vector<8x128xf32> -> vector<8x128xf32>
    %981 = arith.addf %979, %980 : vector<8x128xf32>
    %c16_355 = arith.constant 16 : index
    %c0_356 = arith.constant 0 : index
    %982 = vector.load %arg9[%c16_355, %c0_356] : memref<72x128xf32, #tpu.memory_space<vmem>>, vector<8x128xf32>
    %cst_357 = arith.constant dense<0.000000e+00> : vector<8x128xf32>
    %983 = tpu.matmul %976, %749, %cst_357 {dimension_numbers = #tpu.dot_dimension_numbers<[1], [0], [0], [1], [0, 0, 1, 1], [], []>} : vector<8x32xf32>, vector<32x128xf32>, vector<8x128xf32> -> vector<8x128xf32>
    %984 = arith.addf %982, %983 : vector<8x128xf32>
    %985 = arith.negf %981 : vector<8x128xf32>
    %986 = math.exp %985 : vector<8x128xf32>
    %cst_358 = arith.constant 1.000000e+00 : f32
    %987 = vector.broadcast %cst_358 : f32 to vector<8x128xf32>
    %988 = arith.addf %987, %986 : vector<8x128xf32>
    %989 = arith.divf %987, %988 : vector<8x128xf32>
    %990 = math.tanh %981 : vector<8x128xf32>
    %991 = arith.negf %984 : vector<8x128xf32>
    %992 = math.exp %991 : vector<8x128xf32>
    %cst_359 = arith.constant 1.000000e+00 : f32
    %993 = vector.broadcast %cst_359 : f32 to vector<8x128xf32>
    %994 = arith.addf %993, %992 : vector<8x128xf32>
    %995 = arith.divf %993, %994 : vector<8x128xf32>
    %996 = math.tanh %984 : vector<8x128xf32>
    %997 = vector.extract_strided_slice %989 {offsets = [0, 32], sizes = [8, 32], strides = [1, 1]} : vector<8x128xf32> to vector<8x32xf32>
    %998 = arith.mulf %997, %964 : vector<8x32xf32>
    %999 = vector.extract_strided_slice %989 {offsets = [0, 0], sizes = [8, 32], strides = [1, 1]} : vector<8x128xf32> to vector<8x32xf32>
    %1000 = vector.extract_strided_slice %990 {offsets = [0, 64], sizes = [8, 32], strides = [1, 1]} : vector<8x128xf32> to vector<8x32xf32>
    %1001 = arith.mulf %999, %1000 : vector<8x32xf32>
    %1002 = arith.addf %998, %1001 : vector<8x32xf32>
    %1003 = vector.extract_strided_slice %989 {offsets = [0, 96], sizes = [8, 32], strides = [1, 1]} : vector<8x128xf32> to vector<8x32xf32>
    %1004 = math.tanh %1002 : vector<8x32xf32>
    %1005 = arith.mulf %1003, %1004 : vector<8x32xf32>
    %1006 = vector.extract_strided_slice %995 {offsets = [0, 32], sizes = [8, 32], strides = [1, 1]} : vector<8x128xf32> to vector<8x32xf32>
    %1007 = arith.mulf %1006, %973 : vector<8x32xf32>
    %1008 = vector.extract_strided_slice %995 {offsets = [0, 0], sizes = [8, 32], strides = [1, 1]} : vector<8x128xf32> to vector<8x32xf32>
    %1009 = vector.extract_strided_slice %996 {offsets = [0, 64], sizes = [8, 32], strides = [1, 1]} : vector<8x128xf32> to vector<8x32xf32>
    %1010 = arith.mulf %1008, %1009 : vector<8x32xf32>
    %1011 = arith.addf %1007, %1010 : vector<8x32xf32>
    %1012 = vector.extract_strided_slice %995 {offsets = [0, 96], sizes = [8, 32], strides = [1, 1]} : vector<8x128xf32> to vector<8x32xf32>
    %1013 = math.tanh %1011 : vector<8x32xf32>
    %1014 = arith.mulf %1012, %1013 : vector<8x32xf32>
    %c48_360 = arith.constant 48 : index
    %c0_361 = arith.constant 0 : index
    %1015 = vector.load %arg6[%c48_360, %c0_361] : memref<72x32xf32, #tpu.memory_space<vmem>>, vector<8x32xf32>
    tpu.vector_store %arg6[%c48_360, %c0_361], %1005 {strides = array<i32>} : memref<72x32xf32, #tpu.memory_space<vmem>>, vector<8x32xf32>,
    %c16_362 = arith.constant 16 : index
    %c0_363 = arith.constant 0 : index
    %1016 = vector.load %arg7[%c16_362, %c0_363] : memref<72x32xf32, #tpu.memory_space<vmem>>, vector<8x32xf32>
    tpu.vector_store %arg7[%c16_362, %c0_363], %1014 {strides = array<i32>} : memref<72x32xf32, #tpu.memory_space<vmem>>, vector<8x32xf32>,
    %c56_364 = arith.constant 56 : index
    %c0_365 = arith.constant 0 : index
    %1017 = vector.load %arg8[%c56_364, %c0_365] : memref<72x128xf32, #tpu.memory_space<vmem>>, vector<8x128xf32>
    %cst_366 = arith.constant dense<0.000000e+00> : vector<8x128xf32>
    %1018 = tpu.matmul %1005, %747, %cst_366 {dimension_numbers = #tpu.dot_dimension_numbers<[1], [0], [0], [1], [0, 0, 1, 1], [], []>} : vector<8x32xf32>, vector<32x128xf32>, vector<8x128xf32> -> vector<8x128xf32>
    %1019 = arith.addf %1017, %1018 : vector<8x128xf32>
    %c8_367 = arith.constant 8 : index
    %c0_368 = arith.constant 0 : index
    %1020 = vector.load %arg9[%c8_367, %c0_368] : memref<72x128xf32, #tpu.memory_space<vmem>>, vector<8x128xf32>
    %cst_369 = arith.constant dense<0.000000e+00> : vector<8x128xf32>
    %1021 = tpu.matmul %1014, %749, %cst_369 {dimension_numbers = #tpu.dot_dimension_numbers<[1], [0], [0], [1], [0, 0, 1, 1], [], []>} : vector<8x32xf32>, vector<32x128xf32>, vector<8x128xf32> -> vector<8x128xf32>
    %1022 = arith.addf %1020, %1021 : vector<8x128xf32>
    %1023 = arith.negf %1019 : vector<8x128xf32>
    %1024 = math.exp %1023 : vector<8x128xf32>
    %cst_370 = arith.constant 1.000000e+00 : f32
    %1025 = vector.broadcast %cst_370 : f32 to vector<8x128xf32>
    %1026 = arith.addf %1025, %1024 : vector<8x128xf32>
    %1027 = arith.divf %1025, %1026 : vector<8x128xf32>
    %1028 = math.tanh %1019 : vector<8x128xf32>
    %1029 = arith.negf %1022 : vector<8x128xf32>
    %1030 = math.exp %1029 : vector<8x128xf32>
    %cst_371 = arith.constant 1.000000e+00 : f32
    %1031 = vector.broadcast %cst_371 : f32 to vector<8x128xf32>
    %1032 = arith.addf %1031, %1030 : vector<8x128xf32>
    %1033 = arith.divf %1031, %1032 : vector<8x128xf32>
    %1034 = math.tanh %1022 : vector<8x128xf32>
    %1035 = vector.extract_strided_slice %1027 {offsets = [0, 32], sizes = [8, 32], strides = [1, 1]} : vector<8x128xf32> to vector<8x32xf32>
    %1036 = arith.mulf %1035, %1002 : vector<8x32xf32>
    %1037 = vector.extract_strided_slice %1027 {offsets = [0, 0], sizes = [8, 32], strides = [1, 1]} : vector<8x128xf32> to vector<8x32xf32>
    %1038 = vector.extract_strided_slice %1028 {offsets = [0, 64], sizes = [8, 32], strides = [1, 1]} : vector<8x128xf32> to vector<8x32xf32>
    %1039 = arith.mulf %1037, %1038 : vector<8x32xf32>
    %1040 = arith.addf %1036, %1039 : vector<8x32xf32>
    %1041 = vector.extract_strided_slice %1027 {offsets = [0, 96], sizes = [8, 32], strides = [1, 1]} : vector<8x128xf32> to vector<8x32xf32>
    %1042 = math.tanh %1040 : vector<8x32xf32>
    %1043 = arith.mulf %1041, %1042 : vector<8x32xf32>
    %1044 = vector.extract_strided_slice %1033 {offsets = [0, 32], sizes = [8, 32], strides = [1, 1]} : vector<8x128xf32> to vector<8x32xf32>
    %1045 = arith.mulf %1044, %1011 : vector<8x32xf32>
    %1046 = vector.extract_strided_slice %1033 {offsets = [0, 0], sizes = [8, 32], strides = [1, 1]} : vector<8x128xf32> to vector<8x32xf32>
    %1047 = vector.extract_strided_slice %1034 {offsets = [0, 64], sizes = [8, 32], strides = [1, 1]} : vector<8x128xf32> to vector<8x32xf32>
    %1048 = arith.mulf %1046, %1047 : vector<8x32xf32>
    %1049 = arith.addf %1045, %1048 : vector<8x32xf32>
    %1050 = vector.extract_strided_slice %1033 {offsets = [0, 96], sizes = [8, 32], strides = [1, 1]} : vector<8x128xf32> to vector<8x32xf32>
    %1051 = math.tanh %1049 : vector<8x32xf32>
    %1052 = arith.mulf %1050, %1051 : vector<8x32xf32>
    %c56_372 = arith.constant 56 : index
    %c0_373 = arith.constant 0 : index
    %1053 = vector.load %arg6[%c56_372, %c0_373] : memref<72x32xf32, #tpu.memory_space<vmem>>, vector<8x32xf32>
    tpu.vector_store %arg6[%c56_372, %c0_373], %1043 {strides = array<i32>} : memref<72x32xf32, #tpu.memory_space<vmem>>, vector<8x32xf32>,
    %c8_374 = arith.constant 8 : index
    %c0_375 = arith.constant 0 : index
    %1054 = vector.load %arg7[%c8_374, %c0_375] : memref<72x32xf32, #tpu.memory_space<vmem>>, vector<8x32xf32>
    tpu.vector_store %arg7[%c8_374, %c0_375], %1052 {strides = array<i32>} : memref<72x32xf32, #tpu.memory_space<vmem>>, vector<8x32xf32>,
    %c64_376 = arith.constant 64 : index
    %c0_377 = arith.constant 0 : index
    %1055 = vector.load %arg8[%c64_376, %c0_377] : memref<72x128xf32, #tpu.memory_space<vmem>>, vector<8x128xf32>
    %cst_378 = arith.constant dense<0.000000e+00> : vector<8x128xf32>
    %1056 = tpu.matmul %1043, %747, %cst_378 {dimension_numbers = #tpu.dot_dimension_numbers<[1], [0], [0], [1], [0, 0, 1, 1], [], []>} : vector<8x32xf32>, vector<32x128xf32>, vector<8x128xf32> -> vector<8x128xf32>
    %1057 = arith.addf %1055, %1056 : vector<8x128xf32>
    %c0_379 = arith.constant 0 : index
    %c0_380 = arith.constant 0 : index
    %1058 = vector.load %arg9[%c0_379, %c0_380] : memref<72x128xf32, #tpu.memory_space<vmem>>, vector<8x128xf32>
    %cst_381 = arith.constant dense<0.000000e+00> : vector<8x128xf32>
    %1059 = tpu.matmul %1052, %749, %cst_381 {dimension_numbers = #tpu.dot_dimension_numbers<[1], [0], [0], [1], [0, 0, 1, 1], [], []>} : vector<8x32xf32>, vector<32x128xf32>, vector<8x128xf32> -> vector<8x128xf32>
    %1060 = arith.addf %1058, %1059 : vector<8x128xf32>
    %1061 = arith.negf %1057 : vector<8x128xf32>
    %1062 = math.exp %1061 : vector<8x128xf32>
    %cst_382 = arith.constant 1.000000e+00 : f32
    %1063 = vector.broadcast %cst_382 : f32 to vector<8x128xf32>
    %1064 = arith.addf %1063, %1062 : vector<8x128xf32>
    %1065 = arith.divf %1063, %1064 : vector<8x128xf32>
    %1066 = math.tanh %1057 : vector<8x128xf32>
    %1067 = arith.negf %1060 : vector<8x128xf32>
    %1068 = math.exp %1067 : vector<8x128xf32>
    %cst_383 = arith.constant 1.000000e+00 : f32
    %1069 = vector.broadcast %cst_383 : f32 to vector<8x128xf32>
    %1070 = arith.addf %1069, %1068 : vector<8x128xf32>
    %1071 = arith.divf %1069, %1070 : vector<8x128xf32>
    %1072 = math.tanh %1060 : vector<8x128xf32>
    %1073 = vector.extract_strided_slice %1065 {offsets = [0, 32], sizes = [8, 32], strides = [1, 1]} : vector<8x128xf32> to vector<8x32xf32>
    %1074 = arith.mulf %1073, %1040 : vector<8x32xf32>
    %1075 = vector.extract_strided_slice %1065 {offsets = [0, 0], sizes = [8, 32], strides = [1, 1]} : vector<8x128xf32> to vector<8x32xf32>
    %1076 = vector.extract_strided_slice %1066 {offsets = [0, 64], sizes = [8, 32], strides = [1, 1]} : vector<8x128xf32> to vector<8x32xf32>
    %1077 = arith.mulf %1075, %1076 : vector<8x32xf32>
    %1078 = arith.addf %1074, %1077 : vector<8x32xf32>
    %1079 = vector.extract_strided_slice %1065 {offsets = [0, 96], sizes = [8, 32], strides = [1, 1]} : vector<8x128xf32> to vector<8x32xf32>
    %1080 = math.tanh %1078 : vector<8x32xf32>
    %1081 = arith.mulf %1079, %1080 : vector<8x32xf32>
    %1082 = vector.extract_strided_slice %1071 {offsets = [0, 32], sizes = [8, 32], strides = [1, 1]} : vector<8x128xf32> to vector<8x32xf32>
    %1083 = arith.mulf %1082, %1049 : vector<8x32xf32>
    %1084 = vector.extract_strided_slice %1071 {offsets = [0, 0], sizes = [8, 32], strides = [1, 1]} : vector<8x128xf32> to vector<8x32xf32>
    %1085 = vector.extract_strided_slice %1072 {offsets = [0, 64], sizes = [8, 32], strides = [1, 1]} : vector<8x128xf32> to vector<8x32xf32>
    %1086 = arith.mulf %1084, %1085 : vector<8x32xf32>
    %1087 = arith.addf %1083, %1086 : vector<8x32xf32>
    %1088 = vector.extract_strided_slice %1071 {offsets = [0, 96], sizes = [8, 32], strides = [1, 1]} : vector<8x128xf32> to vector<8x32xf32>
    %1089 = math.tanh %1087 : vector<8x32xf32>
    %1090 = arith.mulf %1088, %1089 : vector<8x32xf32>
    %c64_384 = arith.constant 64 : index
    %c0_385 = arith.constant 0 : index
    %1091 = vector.load %arg6[%c64_384, %c0_385] : memref<72x32xf32, #tpu.memory_space<vmem>>, vector<8x32xf32>
    tpu.vector_store %arg6[%c64_384, %c0_385], %1081 {strides = array<i32>} : memref<72x32xf32, #tpu.memory_space<vmem>>, vector<8x32xf32>,
    %c0_386 = arith.constant 0 : index
    %c0_387 = arith.constant 0 : index
    %1092 = vector.load %arg7[%c0_386, %c0_387] : memref<72x32xf32, #tpu.memory_space<vmem>>, vector<8x32xf32>
    tpu.vector_store %arg7[%c0_386, %c0_387], %1090 {strides = array<i32>} : memref<72x32xf32, #tpu.memory_space<vmem>>, vector<8x32xf32>,
    return
  }
  func.func @transform_0(%arg0: i32) -> (i32, i32) {
    %c0_i32 = arith.constant 0 : i32
    %c0_i32_0 = arith.constant 0 : i32
    %c0_i32_1 = arith.constant 0 : i32
    return %c0_i32, %c0_i32_0 : i32, i32
  }
  func.func @transform_1(%arg0: i32) -> (i32, i32) {
    %c0_i32 = arith.constant 0 : i32
    %c0_i32_0 = arith.constant 0 : i32
    %c0_i32_1 = arith.constant 0 : i32
    return %c0_i32, %c0_i32_0 : i32, i32
  }
  func.func @transform_2(%arg0: i32) -> (i32, i32, i32) {
    %c0_i32 = arith.constant 0 : i32
    %c0_i32_0 = arith.constant 0 : i32
    %c0_i32_1 = arith.constant 0 : i32
    %c0_i32_2 = arith.constant 0 : i32
    return %c0_i32, %c0_i32_0, %c0_i32_1 : i32, i32, i32
  }
  func.func @transform_3(%arg0: i32) -> (i32, i32, i32) {
    %c0_i32 = arith.constant 0 : i32
    %c0_i32_0 = arith.constant 0 : i32
    %c0_i32_1 = arith.constant 0 : i32
    %c0_i32_2 = arith.constant 0 : i32
    return %c0_i32, %c0_i32_0, %c0_i32_1 : i32, i32, i32
  }
  func.func @transform_4(%arg0: i32) -> (i32, i32, i32) {
    %c0_i32 = arith.constant 0 : i32
    %c0_i32_0 = arith.constant 0 : i32
    %c0_i32_1 = arith.constant 0 : i32
    %c0_i32_2 = arith.constant 0 : i32
    return %c0_i32, %c0_i32_0, %c0_i32_1 : i32, i32, i32
  }
  func.func @transform_5(%arg0: i32) -> (i32, i32) {
    %c0_i32 = arith.constant 0 : i32
    %c0_i32_0 = arith.constant 0 : i32
    %c0_i32_1 = arith.constant 0 : i32
    return %c0_i32, %c0_i32_0 : i32, i32
  }
  func.func @transform_6(%arg0: i32) -> (i32, i32) {
    %c0_i32 = arith.constant 0 : i32
    %c0_i32_0 = arith.constant 0 : i32
    %c0_i32_1 = arith.constant 0 : i32
    return %c0_i32, %c0_i32_0 : i32, i32
  }
}

</mosaic_0001>

<bundles_post_ra>
// kernel: forward.3
= control target key start
LH: loop header
LB: loop body
LE: loop exit
PB: predicated region body
PF: predicated region fallthrough
CT: control target
= control target key end

     0   :  { %s1847_s17 = smov 0   ;;  %s2615_s0 = inlined_call_operand.vmem [shape: f32[2,9,64], index: 0, kind: input, shape index: {}]   ;;  %s2616_s1 = inlined_call_operand.vmem [shape: f32[2,1,64], index: 1, kind: input, shape index: {}]   ;;  %s2617_s2 = inlined_call_operand.vmem [shape: f32[64,32], index: 2, kind: input, shape index: {}]   ;;  %s2618_s3 = inlined_call_operand.vmem [shape: f32[1,32], index: 3, kind: input, shape index: {}]   ;;  %s2619_s4 = inlined_call_operand.vmem [shape: f32[64,32], index: 4, kind: input, shape index: {}]   ;;  %s2620_s5 = inlined_call_operand.vmem [shape: f32[1,32], index: 5, kind: input, shape index: {}]   ;;  %s2621_s6 = inlined_call_operand.vmem [shape: f32[32,4096], index: 6, kind: input, shape index: {}]   ;;  %s2622_s7 = inlined_call_operand.vmem [shape: f32[1,4096], index: 7, kind: input, shape index: {}]   ;;  %s2623_s8 = inlined_call_operand.vmem [shape: f32[32,128], index: 8, kind: input, shape index: {}]   ;;  %s2624_s9 = inlined_call_operand.vmem [shape: f32[1,128], index: 9, kind: input, shape index: {}]   ;;  %s2625_s10 = inlined_call_operand.vmem [shape: s32[2,9,1], index: 10, kind: input, shape index: {}]   ;;  %s2626_s11 = inlined_call_operand.vmem [shape: f32[2,9,128], index: 11, kind: output, shape index: {}]  }
   0x1 LB: > { %s1689_s18 = sadd.s32 4294967295, %s1783_s17   ;;  %p1693_p0 = scmp.ge.s32.totalorder %s1783_s17, 1  ;;  %s1783_s17 = sphi %s1847_s17, %s21_s17  }
   0x2   : > { %p355_p1 = scmp.lt.s32.totalorder %s1783_s17, 3 }
   0x4   : > { %p356_p2 = pnand %p1693_p0, %p355_p1 }
   0x5   : > { %p403_p3 = scmp.lt.s32.totalorder (!%p356_p2), %s1689_s18, 1 }
   0x6   : > { %359 = sbr.rel (%p356_p2) target bundleno = 909 (0x38d), region = 64 }
   0xb   : > { %v475_v0 = vld [vmem:[%s2619_s4 + $0x38] sm:$0xff]  ;;  %v474_v1 = vld [vmem:[%s2619_s4 + $0x30] sm:$0xff]  ;;  %v473_v2 = vld [vmem:[%s2619_s4 + $0x28] sm:$0xff]  ;;  %s2633_s18 = smov (!%p403_p3, %s1689_s18), 1  ;;  %vm435_vm0 = vcmask 523264   ;;  %vm701_vm1 = vcmask 261120  }
   0xc   : > { %488 = vmatpush.msra.mxu1 %v475_v0  ;;  %v430_v3 = vld [vmem:[%s2617_s2 + $0x38] sm:$0xff]  ;;  %v429_v4 = vld [vmem:[%s2617_s2 + $0x30] sm:$0xff]  ;;  %v472_v5 = vld [vmem:[%s2619_s4 + $0x20] sm:$0xff]  ;;  %s1894_s28 = sshll.u32 %s2633_s18, 4  ;;  %s410_s14 = scalar_lea.vmem %s2616_s1, %s2633_s18  ;;  %vm1405_vm2 = vcmask 1040384   ;;  %vm1407_vm3 = vcmask 1042434  }
   0xd   : > { %450 = vmatpush.msra.mxu0 %v430_v3  ;;  %v428_v6 = vld [vmem:[%s2617_s2 + $0x28] sm:$0xff]  ;;  %v597_v7 = vld [vmem:[%s2621_s6 + $0x300] sm:$0xff]  ;;  %v471_v8 = vld [vmem:[%s2619_s4 + $0x18] sm:$0xff]  ;;  %s407_s25 = scalar_lea.vmem %s2615_s0, %s1894_s28  ;;  %s2474_s27 = scalar_lea.vmem %s2625_s10, %s1894_s28  ;;  %vm1413_vm4 = vcmask 1046534   ;;  %vm1411_vm5 = vcmask 1044484   ;;  %vm1409_vm6 = vcmask 1041408  }
   0xe   : > { %489 = vmatpush.msra.mxu1 %v474_v1  ;;  %v427_v9 = vld [vmem:[%s2617_s2 + $0x20] sm:$0xff]  ;;  %717 = vmatpush.msra.mxu3 %v597_v7  ;;  %v599_v10 = vld [vmem:[%s2621_s6 + $0x310] sm:$0xff]  ;;  %v426_v12 = vld [vmem:[%s2617_s2 + $0x18] sm:$0xff]  ;;  %vm1415_vm7 = vcmask 1045508   ;;  %vm1417_vm8 = vcmask 1043456   ;;  %s420_s16 = scalar_lea.vmem %s2626_s11, %s1894_s28 }
   0xf   : > { %451 = vmatpush.msra.mxu0 %v429_v4  ;;  %v470_v11 = vld [vmem:[%s2619_s4 + $0x10] sm:$0xff]  ;;  %757 = vmatpush.msra.mxu2 %v599_v10  ;;  %v469_v13 = vld [vmem:[%s2619_s4 + $0x8] sm:$0xff]  ;;  %v468_v15 = vld [vmem:[%s2619_s4] sm:$0xff] }
  0x10   : > { %490 = vmatpush.msra.mxu1 %v473_v2  ;;  %v425_v14 = vld [vmem:[%s2617_s2 + $0x10] sm:$0xff]  ;;  %v424_v16 = vld [vmem:[%s2617_s2 + $0x8] sm:$0xff]  ;;  %v467_v17 = vld [vmem:[%s410_s14] sm:$0x1] }
  0x11   : > { %452 = vmatpush.msra.mxu0 %v428_v6  ;;  %v423_v18 = vld [vmem:[%s2617_s2] sm:$0xff]  ;;  %v604_v21 = vld [vmem:[%s2621_s6 + $0x338] sm:$0xff]  ;;  %v422_v22 = vld [vmem:[%s407_s25 + $0x8] sm:$0x1] }
  0x12   : > { %491 = vmatpush.msra.mxu1 %v472_v5  ;;  %v601_v19 = vld [vmem:[%s2621_s6 + $0x320] sm:$0xff]  ;;  %v567_v24 = vld [vmem:[%s2621_s6 + $0x210] sm:$0xff]  ;;  %v572_v26 = vld [vmem:[%s2621_s6 + $0x238] sm:$0xff] }
  0x13   : > { %453 = vmatpush.msra.mxu0 %v427_v9  ;;  %v421_v20 = vld [vmem:[%s407_s25] sm:$0xff]  ;;  %758 = vmatpush.msra.mxu2 %v567_v24  ;;  %v535_v28 = vld [vmem:[%s2621_s6 + $0x110] sm:$0xff]  ;;  %v540_v30 = vld [vmem:[%s2621_s6 + $0x138] sm:$0xff] }
  0x14   : > { %492 = vmatpush.msra.mxu1 %v471_v8  ;;  %v565_v23 = vld [vmem:[%s2621_s6 + $0x200] sm:$0xff]  ;;  %v503_v32 = vld [vmem:[%s2621_s6 + $0x10] sm:$0xff]  ;;  %v508_v34 = vld [vmem:[%s2621_s6 + $0x38] sm:$0xff] }
  0x15   : > { %454 = vmatpush.msra.mxu0 %v426_v12  ;;  %v569_v25 = vld [vmem:[%s2621_s6 + $0x220] sm:$0xff]  ;;  %718 = vmatpush.msra.mxu3 %v565_v23  ;;  %v598_v35 = vld [vmem:[%s2621_s6 + $0x308] sm:$0xff]  ;;  %v608_v38 = vld [vmem:[%s2621_s6 + $0x358] sm:$0xff] }
  0x16   : > { %493 = vmatpush.msra.mxu1 %v470_v11  ;;  %v533_v27 = vld [vmem:[%s2621_s6 + $0x100] sm:$0xff]  ;;  %759 = vmatpush.msra.mxu2 %v535_v28  ;;  %v602_v36 = vld [vmem:[%s2621_s6 + $0x328] sm:$0xff]  ;;  %v576_v42 = vld [vmem:[%s2621_s6 + $0x258] sm:$0xff] }
  0x17   : > { %455 = vmatpush.msra.mxu0 %v425_v14  ;;  %v537_v29 = vld [vmem:[%s2621_s6 + $0x120] sm:$0xff]  ;;  %719 = vmatpush.msra.mxu3 %v533_v27  ;;  %v566_v39 = vld [vmem:[%s2621_s6 + $0x208] sm:$0xff]  ;;  %v544_v46 = vld [vmem:[%s2621_s6 + $0x158] sm:$0xff] }
  0x18   : > { %494 = vmatpush.msra.mxu1 %v469_v13  ;;  %v501_v31 = vld [vmem:[%s2621_s6] sm:$0xff]  ;;  %760 = vmatpush.msra.mxu2 %v503_v32  ;;  %v570_v40 = vld [vmem:[%s2621_s6 + $0x228] sm:$0xff]  ;;  %v512_v50 = vld [vmem:[%s2621_s6 + $0x58] sm:$0xff] }
  0x19   : > { %456 = vmatpush.msra.mxu0 %v424_v16  ;;  %v505_v33 = vld [vmem:[%s2621_s6 + $0x20] sm:$0xff]  ;;  %720 = vmatpush.msra.mxu3 %v501_v31  ;;  %v534_v43 = vld [vmem:[%s2621_s6 + $0x108] sm:$0xff]  ;;  %v600_v55 = vld [vmem:[%s2621_s6 + $0x318] sm:$0xff] }
  0x1a   : > { %495 = vmatpush.msra.mxu1 %v468_v15  ;;  %v605_v37 = vld [vmem:[%s2621_s6 + $0x340] sm:$0xff]  ;;  %817 = vmatpush.msrb.mxu2 %v602_v36  ;;  %v538_v44 = vld [vmem:[%s2621_s6 + $0x128] sm:$0xff]  ;;  %v612_v58 = vld [vmem:[%s2621_s6 + $0x378] sm:$0xff] }
  0x1b   : > { %1702 = vmatmul.msk.f32.vlgmr.msra.gmra.mxu1 %vm435_vm0, %v467_v17  ;;  %457 = vmatpush.msra.mxu0 %v423_v18  ;;  %v573_v41 = vld [vmem:[%s2621_s6 + $0x240] sm:$0xff]  ;;  %v502_v47 = vld [vmem:[%s2621_s6 + $0x8] sm:$0xff]  ;;  %v568_v59 = vld [vmem:[%s2621_s6 + $0x218] sm:$0xff] }
  0x1c   : > { %797 = vmatpush.msrb.mxu1 %v601_v19  ;;  %1700 = vmatmul.msk.f32.vlgmr.msra.gmra.mxu0 %vm435_vm0, %v421_v20  ;;  %v541_v45 = vld [vmem:[%s2621_s6 + $0x140] sm:$0xff]  ;;  %v506_v48 = vld [vmem:[%s2621_s6 + $0x28] sm:$0xff]  ;;  %v580_v62 = vld [vmem:[%s2621_s6 + $0x278] sm:$0xff] }
  0x1d   : > { %857 = vmatpush.msrb.mxu0 %v604_v21  ;;  %737 = vmatpush.msrb.mxu3 %v598_v35  ;;  %v509_v49 = vld [vmem:[%s2621_s6 + $0x40] sm:$0xff]  ;;  %v606_v56 = vld [vmem:[%s2621_s6 + $0x348] sm:$0xff]  ;;  %v536_v63 = vld [vmem:[%s2621_s6 + $0x118] sm:$0xff] }
  0x1e   : > { %798 = vmatpush.msrb.mxu1 %v569_v25  ;;  %818 = vmatpush.msrb.mxu2 %v570_v40  ;;  %v476_v51 = vld [vmem:[%s2620_s5] sm:$0x1]  ;;  %v574_v60 = vld [vmem:[%s2621_s6 + $0x248] sm:$0xff]  ;;  %v548_v2 = vld [vmem:[%s2621_s6 + $0x178] sm:$0xff] }
  0x1f   : > { %858 = vmatpush.msrb.mxu0 %v572_v26  ;;  %738 = vmatpush.msrb.mxu3 %v566_v39  ;;  %v609_v57 = vld [vmem:[%s2621_s6 + $0x360] sm:$0xff]  ;;  %v542_v0 = vld [vmem:[%s2621_s6 + $0x148] sm:$0xff]  ;;  %v504_v3 = vld [vmem:[%s2621_s6 + $0x18] sm:$0xff] }
  0x20   : > { %799 = vmatpush.msrb.mxu1 %v537_v29  ;;  %819 = vmatpush.msrb.mxu2 %v538_v44  ;;  %v577_v61 = vld [vmem:[%s2621_s6 + $0x260] sm:$0xff]  ;;  %v510_v4 = vld [vmem:[%s2621_s6 + $0x48] sm:$0xff]  ;;  %v516_v6 = vld [vmem:[%s2621_s6 + $0x78] sm:$0xff] }
  0x21   : > { %859 = vmatpush.msrb.mxu0 %v540_v30  ;;  %739 = vmatpush.msrb.mxu3 %v534_v43  ;;  %v545_v1 = vld [vmem:[%s2621_s6 + $0x160] sm:$0xff]  ;;  %v603_v7 = vld [vmem:[%s2621_s6 + $0x330] sm:$0xff]  ;;  %v610_v8 = vld [vmem:[%s2621_s6 + $0x368] sm:$0xff] }
  0x22   : > { %800 = vmatpush.msrb.mxu1 %v505_v33  ;;  %820 = vmatpush.msrb.mxu2 %v506_v48  ;;  %v513_v5 = vld [vmem:[%s2621_s6 + $0x60] sm:$0xff]  ;;  %v616_v10 = vld [vmem:[%s2621_s6 + $0x398] sm:$0xff]  ;;  %v571_v11 = vld [vmem:[%s2621_s6 + $0x230] sm:$0xff] }
  0x23   : > { %860 = vmatpush.msrb.mxu0 %v508_v34  ;;  %740 = vmatpush.msrb.mxu3 %v502_v47  ;;  %v613_v9 = vld [vmem:[%s2621_s6 + $0x380] sm:$0xff]  ;;  %v578_v12 = vld [vmem:[%s2621_s6 + $0x268] sm:$0xff]  ;;  %v584_v14 = vld [vmem:[%s2621_s6 + $0x298] sm:$0xff] }
  0x24   : > { %1701 = vmatmul.msk.f32.gmra.mxu0 %vm435_vm0, %v422_v22  ;;  %877 = vmatpush.msra.mxu1 %v605_v37  ;;  %v581_v13 = vld [vmem:[%s2621_s6 + $0x280] sm:$0xff]  ;;  %v539_v15 = vld [vmem:[%s2621_s6 + $0x130] sm:$0xff]  ;;  %v546_v16 = vld [vmem:[%s2621_s6 + $0x168] sm:$0xff] }
  0x25   : > { %937 = vmatpush.msra.mxu0 %v608_v38  ;;  %v549_v17 = vld [vmem:[%s2621_s6 + $0x180] sm:$0xff]  ;;  %v552_v18 = vld [vmem:[%s2621_s6 + $0x198] sm:$0xff]  ;;  %v507_v19 = vld [vmem:[%s2621_s6 + $0x30] sm:$0xff] }
  0x26   : > { %878 = vmatpush.msra.mxu1 %v573_v41  ;;  %v514_v20 = vld [vmem:[%s2621_s6 + $0x68] sm:$0xff]  ;;  %v517_v21 = vld [vmem:[%s2621_s6 + $0x80] sm:$0xff]  ;;  %v520_v22 = vld [vmem:[%s2621_s6 + $0x98] sm:$0xff] }
  0x27   : > { %938 = vmatpush.msra.mxu0 %v576_v42  ;;  %v607_v23 = vld [vmem:[%s2621_s6 + $0x350] sm:$0xff]  ;;  %v614_v24 = vld [vmem:[%s2621_s6 + $0x388] sm:$0xff]  ;;  %v617_v25 = vld [vmem:[%s2621_s6 + $0x3a0] sm:$0xff] }
  0x28   : > { %879 = vmatpush.msra.mxu1 %v541_v45  ;;  %v620_v26 = vld [vmem:[%s2621_s6 + $0x3b8] sm:$0xff]  ;;  %v575_v27 = vld [vmem:[%s2621_s6 + $0x250] sm:$0xff]  ;;  %v582_v28 = vld [vmem:[%s2621_s6 + $0x288] sm:$0xff] }
  0x29   : > { %939 = vmatpush.msra.mxu0 %v544_v46  ;;  %v585_v29 = vld [vmem:[%s2621_s6 + $0x2a0] sm:$0xff]  ;;  %v588_v30 = vld [vmem:[%s2621_s6 + $0x2b8] sm:$0xff]  ;;  %v543_v31 = vld [vmem:[%s2621_s6 + $0x150] sm:$0xff] }
  0x2a   : > { %880 = vmatpush.msra.mxu1 %v509_v49  ;;  %v550_v32 = vld [vmem:[%s2621_s6 + $0x188] sm:$0xff]  ;;  %v553_v33 = vld [vmem:[%s2621_s6 + $0x1a0] sm:$0xff]  ;;  %v556_v34 = vld [vmem:[%s2621_s6 + $0x1b8] sm:$0xff] }
  0x2b   : > { %940 = vmatpush.msra.mxu0 %v512_v50  ;;  %v511_v35 = vld [vmem:[%s2621_s6 + $0x50] sm:$0xff]  ;;  %v518_v36 = vld [vmem:[%s2621_s6 + $0x88] sm:$0xff]  ;;  %v521_v37 = vld [vmem:[%s2621_s6 + $0xa0] sm:$0xff] }
  0x2c   : > { %v524_v38 = vld [vmem:[%s2621_s6 + $0xb8] sm:$0xff]  ;;  %v611_v39 = vld [vmem:[%s2621_s6 + $0x370] sm:$0xff]  ;;  %v618_v40 = vld [vmem:[%s2621_s6 + $0x3a8] sm:$0xff] }
  0x2d   : > { %v621_v41 = vld [vmem:[%s2621_s6 + $0x3c0] sm:$0xff]  ;;  %v624_v42 = vld [vmem:[%s2621_s6 + $0x3d8] sm:$0xff]  ;;  %v579_v43 = vld [vmem:[%s2621_s6 + $0x270] sm:$0xff] }
  0x2e   : > { %v586_v44 = vld [vmem:[%s2621_s6 + $0x2a8] sm:$0xff]  ;;  %v589_v45 = vld [vmem:[%s2621_s6 + $0x2c0] sm:$0xff]  ;;  %v592_v46 = vld [vmem:[%s2621_s6 + $0x2d8] sm:$0xff] }
  0x2f   : > { %v547_v47 = vld [vmem:[%s2621_s6 + $0x170] sm:$0xff]  ;;  %v554_v48 = vld [vmem:[%s2621_s6 + $0x1a8] sm:$0xff]  ;;  %v557_v49 = vld [vmem:[%s2621_s6 + $0x1c0] sm:$0xff] }
  0x30   : > { %v560_v50 = vld [vmem:[%s2621_s6 + $0x1d8] sm:$0xff] }
  0x98   : > { %v497_v52 = vpop.f32.mrf.mxu1 }
  0x99   : > { %v498_v53 = vadd.f32 %v497_v52, %v476_v51  ;;  %v515_v51 = vld [vmem:[%s2621_s6 + $0x70] sm:$0xff]  ;;  %v522_v52 = vld [vmem:[%s2621_s6 + $0xa8] sm:$0xff] }
  0x9b   : > { %v2011_v54 = vmax.f32 %v498_v53, 0.0  ;;  %v525_v53 = vld [vmem:[%s2621_s6 + $0xc0] sm:$0xff] }
  0x9d   : > { %1703 = vmatmul.msk.f32.vlgmr.msra.gmra.mxu3 %vm701_vm1, %v2011_v54  ;;  %1705 = vmatmul.msk.f32.vlgmr.msra.gmra.mxu2 %vm701_vm1, %v2011_v54 }
  0x9e   : > { %1707 = vmatmul.msk.f32.vlgmr.msrb.gmra.mxu1 %vm701_vm1, %v2011_v54  ;;  %1710 = vmatmul.msk.f32.vlgmr.msrb.gmra.mxu0 %vm701_vm1, %v2011_v54 }
  0x9f   : > { %777 = vmatpush.msra.mxu3 %v600_v55  ;;  %897 = vmatpush.msra.mxu2 %v606_v56  ;;  %v528_v55 = vld [vmem:[%s2621_s6 + $0xd8] sm:$0xff]  ;;  %v615_v56 = vld [vmem:[%s2621_s6 + $0x390] sm:$0xff] }
  0xa0   : > { %957 = vmatpush.msrb.mxu1 %v609_v57  ;;  %1017 = vmatpush.msrb.mxu0 %v612_v58  ;;  %v622_v57 = vld [vmem:[%s2621_s6 + $0x3c8] sm:$0xff]  ;;  %v625_v58 = vld [vmem:[%s2621_s6 + $0x3e0] sm:$0xff] }
  0xa1   : > { %778 = vmatpush.msra.mxu3 %v568_v59  ;;  %898 = vmatpush.msra.mxu2 %v574_v60  ;;  %v628_v59 = vld [vmem:[%s2621_s6 + $0x3f8] sm:$0xff]  ;;  %v583_v60 = vld [vmem:[%s2621_s6 + $0x290] sm:$0xff] }
  0xa2   : > { %958 = vmatpush.msrb.mxu1 %v577_v61  ;;  %1018 = vmatpush.msrb.mxu0 %v580_v62  ;;  %v590_v61 = vld [vmem:[%s2621_s6 + $0x2c8] sm:$0xff]  ;;  %v593_v62 = vld [vmem:[%s2621_s6 + $0x2e0] sm:$0xff] }
  0xa3   : > { %779 = vmatpush.msra.mxu3 %v536_v63  ;;  %899 = vmatpush.msra.mxu2 %v542_v0  ;;  %v596_v63 = vld [vmem:[%s2621_s6 + $0x2f8] sm:$0xff]  ;;  %v551_v0 = vld [vmem:[%s2621_s6 + $0x190] sm:$0xff] }
  0xa4   : > { %959 = vmatpush.msrb.mxu1 %v545_v1  ;;  %1019 = vmatpush.msrb.mxu0 %v548_v2  ;;  %v558_v1 = vld [vmem:[%s2621_s6 + $0x1c8] sm:$0xff]  ;;  %v561_v2 = vld [vmem:[%s2621_s6 + $0x1e0] sm:$0xff] }
  0xa5   : > { %1704 = vmatmul.msk.f32.vlgmr.msrb.gmra.mxu3 %vm701_vm1, %v2011_v54  ;;  %1708 = vmatmul.msk.f32.vlgmr.msrb.gmra.mxu2 %vm701_vm1, %v2011_v54 }
  0xa6   : > { %1711 = vmatmul.msk.f32.vlgmr.msra.gmra.mxu1 %vm701_vm1, %v2011_v54  ;;  %1714 = vmatmul.msk.f32.vlgmr.msra.gmra.mxu0 %vm701_vm1, %v2011_v54 }
  0xa7   : > { %780 = vmatpush.msra.mxu3 %v504_v3  ;;  %900 = vmatpush.msra.mxu2 %v510_v4  ;;  %v564_v3 = vld [vmem:[%s2621_s6 + $0x1f8] sm:$0xff]  ;;  %v519_v4 = vld [vmem:[%s2621_s6 + $0x90] sm:$0xff] }
  0xa8   : > { %960 = vmatpush.msrb.mxu1 %v513_v5  ;;  %1020 = vmatpush.msrb.mxu0 %v516_v6  ;;  %v526_v5 = vld [vmem:[%s2621_s6 + $0xc8] sm:$0xff]  ;;  %v529_v6 = vld [vmem:[%s2621_s6 + $0xe0] sm:$0xff] }
  0xa9   : > { %837 = vmatpush.msrb.mxu3 %v603_v7  ;;  %977 = vmatpush.msrb.mxu2 %v610_v8  ;;  %v532_v7 = vld [vmem:[%s2621_s6 + $0xf8] sm:$0xff]  ;;  %v619_v8 = vld [vmem:[%s2621_s6 + $0x3b0] sm:$0xff] }
  0xaa   : > { %1037 = vmatpush.msra.mxu1 %v613_v9  ;;  %1097 = vmatpush.msra.mxu0 %v616_v10  ;;  %v626_v9 = vld [vmem:[%s2621_s6 + $0x3e8] sm:$0xff]  ;;  %v1447_v10 = vld [vmem:[%s2623_s8 + $0x18] sm:$0xff] }
  0xab   : > { %838 = vmatpush.msrb.mxu3 %v571_v11  ;;  %978 = vmatpush.msrb.mxu2 %v578_v12  ;;  %v587_v11 = vld [vmem:[%s2621_s6 + $0x2b0] sm:$0xff]  ;;  %v594_v12 = vld [vmem:[%s2621_s6 + $0x2e8] sm:$0xff] }
  0xac   : > { %1038 = vmatpush.msra.mxu1 %v581_v13  ;;  %1098 = vmatpush.msra.mxu0 %v584_v14  ;;  %v1446_v13 = vld [vmem:[%s2623_s8 + $0x10] sm:$0xff] }
  0xad   : > { %1706 = vmatmul.msk.f32.vlgmr.msra.gmra.mxu3 %vm701_vm1, %v2011_v54  ;;  %1712 = vmatmul.msk.f32.vlgmr.msra.gmra.mxu2 %vm701_vm1, %v2011_v54  ;;  %v555_v14 = vld [vmem:[%s2621_s6 + $0x1b0] sm:$0xff] }
  0xae   : > { %1715 = vmatmul.msk.f32.vlgmr.msrb.gmra.mxu1 %vm701_vm1, %v2011_v54  ;;  %1718 = vmatmul.msk.f32.vlgmr.msrb.gmra.mxu0 %vm701_vm1, %v2011_v54 }
  0xaf   : > { %839 = vmatpush.msrb.mxu3 %v539_v15  ;;  %979 = vmatpush.msrb.mxu2 %v546_v16  ;;  %v562_v15 = vld [vmem:[%s2621_s6 + $0x1e8] sm:$0xff] }
  0xb0   : > { %1039 = vmatpush.msra.mxu1 %v549_v17  ;;  %1099 = vmatpush.msra.mxu0 %v552_v18  ;;  %v1445_v16 = vld [vmem:[%s2623_s8 + $0x8] sm:$0xff]  ;;  %v523_v17 = vld [vmem:[%s2621_s6 + $0xb0] sm:$0xff] }
  0xb1   : > { %840 = vmatpush.msrb.mxu3 %v507_v19  ;;  %980 = vmatpush.msrb.mxu2 %v514_v20  ;;  %v530_v18 = vld [vmem:[%s2621_s6 + $0xe8] sm:$0xff]  ;;  %v1444_v19 = vld [vmem:[%s2623_s8] sm:$0xff]  ;;  %v623_v20 = vld [vmem:[%s2621_s6 + $0x3d0] sm:$0xff] }
  0xb2   : > { %1040 = vmatpush.msra.mxu1 %v517_v21  ;;  %1100 = vmatpush.msra.mxu0 %v520_v22  ;;  %v591_v21 = vld [vmem:[%s2621_s6 + $0x2d0] sm:$0xff] }
  0xb3   : > { %917 = vmatpush.msra.mxu3 %v607_v23  ;;  %1057 = vmatpush.msra.mxu2 %v614_v24  ;;  %v559_v22 = vld [vmem:[%s2621_s6 + $0x1d0] sm:$0xff] }
  0xb4   : > { %1117 = vmatpush.msrb.mxu1 %v617_v25  ;;  %1177 = vmatpush.msrb.mxu0 %v620_v26  ;;  %v527_v23 = vld [vmem:[%s2621_s6 + $0xd0] sm:$0xff] }
  0xb5   : > { %1709 = vmatmul.msk.f32.vlgmr.msrb.gmra.mxu3 %vm701_vm1, %v2011_v54  ;;  %1716 = vmatmul.msk.f32.vlgmr.msrb.gmra.mxu2 %vm701_vm1, %v2011_v54  ;;  %v627_v24 = vld [vmem:[%s2621_s6 + $0x3f0] sm:$0xff] }
  0xb6   : > { %1719 = vmatmul.msk.f32.vlgmr.msra.gmra.mxu1 %vm701_vm1, %v2011_v54  ;;  %1722 = vmatmul.msk.f32.vlgmr.msra.gmra.mxu0 %vm701_vm1, %v2011_v54  ;;  %v595_v25 = vld [vmem:[%s2621_s6 + $0x2f0] sm:$0xff] }
  0xb7   : > { %918 = vmatpush.msra.mxu3 %v575_v27  ;;  %1058 = vmatpush.msra.mxu2 %v582_v28  ;;  %v563_v26 = vld [vmem:[%s2621_s6 + $0x1f0] sm:$0xff]  ;;  %v2379_v28 = vpop.f32.mrf.mxu0 }
  0xb8   : > { %1118 = vmatpush.msrb.mxu1 %v585_v29  ;;  %1178 = vmatpush.msrb.mxu0 %v588_v30  ;;  %v531_v27 = vld [vmem:[%s2621_s6 + $0xf0] sm:$0xff] }
  0xb9   : > { %919 = vmatpush.msra.mxu3 %v543_v31  ;;  %1059 = vmatpush.msra.mxu2 %v550_v32  ;;  %v2386_v32 = vld [vmem:[%s2622_s7] sm:$0xff] }
  0xba   : > { %1119 = vmatpush.msrb.mxu1 %v553_v33  ;;  %1179 = vmatpush.msrb.mxu0 %v556_v34  ;;  %v638_v33 = vperm.slane %v2386_v32, 1  ;;  %v637_v34 = vperm.slane %v2386_v32, 0 }
  0xbb   : > { %920 = vmatpush.msra.mxu3 %v511_v35  ;;  %1060 = vmatpush.msra.mxu2 %v518_v36 }
  0xbc   : > { %1120 = vmatpush.msrb.mxu1 %v521_v37  ;;  %1180 = vmatpush.msrb.mxu0 %v524_v38 }
  0xbd   : > { %1713 = vmatmul.msk.f32.vlgmr.msra.gmra.mxu3 %vm701_vm1, %v2011_v54  ;;  %1720 = vmatmul.msk.f32.vlgmr.msra.gmra.mxu2 %vm701_vm1, %v2011_v54 }
  0xbe   : > { %1723 = vmatmul.msk.f32.vlgmr.msrb.gmra.mxu1 %vm701_vm1, %v2011_v54  ;;  %1726 = vmatmul.msk.f32.vlgmr.msrb.gmra.mxu0 %vm701_vm1, %v2011_v54 }
  0xbf   : > { %997 = vmatpush.msrb.mxu3 %v611_v39  ;;  %1137 = vmatpush.msrb.mxu2 %v618_v40  ;;  %v2381_v31 = vpop.f32.mrf.mxu0 }
  0xc0   : > { %1197 = vmatpush.msra.mxu1 %v621_v41  ;;  %1257 = vmatpush.msra.mxu0 %v624_v42 }
  0xc1   : > { %998 = vmatpush.msrb.mxu3 %v579_v43  ;;  %1138 = vmatpush.msrb.mxu2 %v586_v44 }
  0xc2   : > { %1198 = vmatpush.msra.mxu1 %v589_v45  ;;  %1258 = vmatpush.msra.mxu0 %v592_v46 }
  0xc3   : > { %999 = vmatpush.msrb.mxu3 %v547_v47  ;;  %1139 = vmatpush.msrb.mxu2 %v554_v48 }
  0xc4   : > { %1199 = vmatpush.msra.mxu1 %v557_v49  ;;  %1259 = vmatpush.msra.mxu0 %v560_v50 }
  0xc5   : > { %1000 = vmatpush.msrb.mxu3 %v515_v51  ;;  %1140 = vmatpush.msrb.mxu2 %v522_v52 }
  0xc6   : > { %1200 = vmatpush.msra.mxu1 %v525_v53  ;;  %1260 = vmatpush.msra.mxu0 %v528_v55 }
  0xc7   : > { %1717 = vmatmul.msk.f32.vlgmr.msrb.gmra.mxu3 %vm701_vm1, %v2011_v54  ;;  %1724 = vmatmul.msk.f32.vlgmr.msrb.gmra.mxu2 %vm701_vm1, %v2011_v54 }
  0xc8   : > { %1727 = vmatmul.msk.f32.vlgmr.msra.gmra.mxu1 %vm701_vm1, %v2011_v54  ;;  %1730 = vmatmul.msk.f32.vlgmr.msra.gmra.mxu0 %vm701_vm1, %v2011_v54 }
  0xc9   : > { %1077 = vmatpush.msra.mxu3 %v615_v56  ;;  %1217 = vmatpush.msra.mxu2 %v622_v57 }
  0xca   : > { %1277 = vmatpush.msrb.mxu1 %v625_v58  ;;  %1337 = vmatpush.msrb.mxu0 %v628_v59 }
  0xcb   : > { %1078 = vmatpush.msra.mxu3 %v583_v60  ;;  %1218 = vmatpush.msra.mxu2 %v590_v61  ;;  %v2416_v60 = vld [vmem:[%s2622_s7 + $0x8] sm:$0xff]  ;;  %v641_v61 = vperm.slane %v2386_v32, 4 }
  0xcc   : > { %1278 = vmatpush.msrb.mxu1 %v593_v62  ;;  %1338 = vmatpush.msrb.mxu0 %v596_v63  ;;  %v644_v62 = vperm.slane %v2386_v32, 7  ;;  %v639_v63 = vperm.slane %v2386_v32, 2 }
  0xcd   : > { %1079 = vmatpush.msra.mxu3 %v551_v0  ;;  %1219 = vmatpush.msra.mxu2 %v558_v1  ;;  %v648_v0 = vperm.slane %v2416_v60, 3  ;;  %v642_v1 = vperm.slane %v2386_v32, 5 }
  0xce   : > { %1279 = vmatpush.msrb.mxu1 %v561_v2  ;;  %1339 = vmatpush.msrb.mxu0 %v564_v3  ;;  %v2426_v2 = vld [vmem:[%s2622_s7 + $0x10] sm:$0xff] }
  0xcf   : > { %1080 = vmatpush.msra.mxu3 %v519_v4  ;;  %1220 = vmatpush.msra.mxu2 %v526_v5  ;;  %v645_v5 = vperm.slane %v2416_v60, 0 }
  0xd0   : > { %1280 = vmatpush.msrb.mxu1 %v529_v6  ;;  %1340 = vmatpush.msrb.mxu0 %v532_v7 }
  0xd1   : > { %1721 = vmatmul.msk.f32.vlgmr.msra.gmra.mxu3 %vm701_vm1, %v2011_v54  ;;  %1728 = vmatmul.msk.f32.vlgmr.msra.gmra.mxu2 %vm701_vm1, %v2011_v54 }
  0xd2   : > { %1731 = vmatmul.msk.f32.vlgmr.msrb.gmra.mxu1 %vm701_vm1, %v2011_v54  ;;  %1734 = vmatmul.msk.f32.vlgmr.msrb.gmra.mxu0 %vm701_vm1, %v2011_v54 }
  0xd3   : > { %1157 = vmatpush.msrb.mxu3 %v619_v8  ;;  %1297 = vmatpush.msrb.mxu2 %v626_v9  ;;  %v649_v8 = vperm.slane %v2416_v60, 4  ;;  %v652_v9 = vperm.slane %v2416_v60, 7 }
  0xd4   : > { %1460 = vmatpush.msra.mxu1 %v1447_v10  ;;  %v640_v10 = vperm.slane %v2386_v32, 3 }
  0xd5   : > { %1158 = vmatpush.msrb.mxu3 %v587_v11  ;;  %1298 = vmatpush.msrb.mxu2 %v594_v12 }
  0xd6   : > { %1461 = vmatpush.msra.mxu1 %v1446_v13  ;;  %v646_v13 = vperm.slane %v2416_v60, 1 }
  0xd7   : > { %1159 = vmatpush.msrb.mxu3 %v555_v14  ;;  %1299 = vmatpush.msrb.mxu2 %v562_v15  ;;  %v653_v14 = vperm.slane %v2426_v2, 0  ;;  %v656_v15 = vperm.slane %v2426_v2, 3 }
  0xd8   : > { %1462 = vmatpush.msra.mxu1 %v1445_v16 }
  0xd9   : > { %1160 = vmatpush.msrb.mxu3 %v523_v17  ;;  %1300 = vmatpush.msrb.mxu2 %v530_v18  ;;  %v643_v18 = vperm.slane %v2386_v32, 6 }
  0xda   : > { %1463 = vmatpush.msra.mxu1 %v1444_v19  ;;  %1725 = vmatmul.msk.f32.vlgmr.msrb.gmra.mxu3 %vm701_vm1, %v2011_v54  ;;  %v650_v19 = vperm.slane %v2416_v60, 5 }
  0xdb   : > { %1732 = vmatmul.msk.f32.vlgmr.msrb.gmra.mxu2 %vm701_vm1, %v2011_v54  ;;  %1735 = vmatmul.msk.f32.vlgmr.msra.gmra.mxu1 %vm701_vm1, %v2011_v54 }
  0xdc   : > { %1237 = vmatpush.msra.mxu3 %v623_v20  ;;  %v657_v20 = vperm.slane %v2426_v2, 4 }
  0xde   : > { %1238 = vmatpush.msra.mxu3 %v591_v21  ;;  %v2457_v21 = vld [vmem:[%s2622_s7 + $0x18] sm:$0xff] }
  0xe0   : > { %1239 = vmatpush.msra.mxu3 %v559_v22 }
  0xe2   : > { %1240 = vmatpush.msra.mxu3 %v527_v23 }
  0xe3   : > { %1729 = vmatmul.msk.f32.vlgmr.msra.gmra.mxu3 %vm701_vm1, %v2011_v54 }
  0xe4   : > { %1317 = vmatpush.msrb.mxu3 %v627_v24 }
  0xe6   : > { %1318 = vmatpush.msrb.mxu3 %v595_v25  ;;  %v660_v25 = vperm.slane %v2426_v2, 7 }
  0xe8   : > { %1319 = vmatpush.msrb.mxu3 %v563_v26  ;;  %v647_v26 = vperm.slane %v2416_v60, 2 }
  0xea   : > { %1320 = vmatpush.msrb.mxu3 %v531_v27 }
  0xeb   : > { %1733 = vmatmul.msk.f32.vlgmr.msrb.gmra.mxu3 %vm701_vm1, %v2011_v54 }
 0x11b   : > { %v802_v39 = vpop.f32.mrf.mxu1  ;;  %v862_v41 = vpop.f32.mrf.mxu0 }
 0x11c   : > { %v2428_v3 = vadd.f32 %v802_v39, %v641_v61  ;;  %v2430_v4 = vadd.f32 %v862_v41, %v644_v62  ;;  %v651_v39 = vperm.slane %v2416_v60, 6  ;;  %v658_v62 = vperm.slane %v2426_v2, 5 }
 0x11d   : > { %v655_v60 = vperm.slane %v2426_v2, 2 }
 0x11e   : > { %v1383_v24 = vrot.slane %v2430_v4, 1 }
 0x120   : > { %v722_v29 = vpop.f32.mrf.mxu3  ;;  %v762_v30 = vpop.f32.mrf.mxu2 }
 0x121   : > { %v723_v37 = vadd.f32 %v722_v29, %v637_v34  ;;  %v2435_v7 = vadd.f32 %v762_v30, %v639_v63  ;;  %v654_v34 = vperm.slane %v2426_v2, 1  ;;  %v1785_v63 = vmov 0  }
 0x122   : > { %1755 = vset.pattern.permute.xlu1 %v1785_v63  ;;  %1756 = vset.pattern.permute.xlu2 %v1785_v63 }
 0x123   : > { %v882_v44 = vpop.f32.mrf.mxu1  ;;  %v942_v45 = vpop.f32.mrf.mxu0  ;;  %1762 = vset.pattern.permute.xlu0 %v1785_v63 }
 0x124   : > { %v2442_v12 = vadd.f32 %v942_v45, %v648_v0  ;;  %v2464_v29 = vadd.f32 %v882_v44, %v645_v5  ;;  %v659_v44 = vperm.slane %v2426_v2, 6  ;;  %v663_v45 = vperm.slane %v2457_v21, 2 }
 0x125   : > { %v662_v0 = vperm.slane %v2457_v21, 1 }
 0x128   : > { %v742_v35 = vpop.f32.mrf.mxu3  ;;  %v822_v38 = vpop.f32.mrf.mxu2 }
 0x129   : > { %v743_v36 = vadd.f32 %v742_v35, %v638_v33  ;;  %v2449_v17 = vadd.f32 %v822_v38, %v642_v1  ;;  %v661_v35 = vperm.slane %v2457_v21, 0  ;;  %v666_v1 = vperm.slane %v2457_v21, 5 }
 0x12b   : > { %v1377_v54 = vrot.slane %v743_v36, 7  ;;  %v962_v49 = vpop.f32.mrf.mxu1  ;;  %v1022_v50 = vpop.f32.mrf.mxu0  ;;  %v664_v36 = vperm.slane %v2457_v21, 3 }
 0x12c   : > { %v2466_v30 = vadd.f32 %v962_v49, %v649_v8  ;;  %v2468_v32 = vadd.f32 %v1022_v50, %v652_v9  ;;  %v2491_v49 = vld [vmem:[%s2474_s27 + $0x8] sm:$0x1] }
 0x12d   : > { %v2391_v40 = vsel %vm1405_vm2, %v723_v37, %v1377_v54  ;;  %1564 = vperm.xlu1 %1755, %v2491_v49   ;;  %vm1576_vm11 = vcmp.ne.s32.totalorder %v2491_v49, 0 }
 0x12e   : > { %v1387_v50 = vrot.slane %v2466_v30, 4  ;;  %v1390_v61 = vrot.slane %v2468_v32, 1  ;;  %v2629_v30 = vrot.slane %v2428_v3, 4 }
 0x130   : > { %v782_v42 = vpop.f32.mrf.mxu3  ;;  %v2393_v43 = vpop.f32.mrf.mxu2 }
 0x131   : > { %v2481_v54 = vadd.f32 %v782_v42, %v640_v10  ;;  %v665_v42 = vperm.slane %v2457_v21, 4  ;;  %v2504_v8 = vadd.f32 %v2393_v43, %v646_v13 }
 0x133   : > { %v2403_v53 = vpop.f32.mrf.mxu1  ;;  %v1102_v55 = vpop.f32.mrf.mxu0 }
 0x134   : > { %v2483_v38 = vadd.f32 %v1102_v55, %v656_v15 }
 0x136   : > { %v1393_v9 = vrot.slane %v2483_v38, 5 }
 0x138   : > { %v842_v46 = vpop.f32.mrf.mxu3  ;;  %v2395_v47 = vpop.f32.mrf.mxu2 }
 0x139   : > { %v2486_v41 = vadd.f32 %v842_v46, %v643_v18  ;;  %v668_v46 = vperm.slane %v2457_v21, 7  ;;  %v983_v10 = vadd.f32 %v2395_v47, %v650_v19 }
 0x13b   : > { %v2409_v58 = vpop.f32.mrf.mxu1  ;;  %v2411_v59 = vpop.f32.mrf.mxu0  ;;  %v1382_v18 = vrot.slane %v2486_v41, 2 }
 0x13c   : > { %v1123_v27 = vadd.f32 %v2409_v58, %v657_v20  ;;  %v1183_v5 = vadd.f32 %v2411_v59, %v660_v25  ;;  %v667_v58 = vperm.slane %v2457_v21, 6 }
 0x13d   : > { %v1414_v2 = vsel %vm1413_vm4, %v1382_v18, %v1383_v24 }
 0x140   : > { %v2397_v48 = vpop.f32.mrf.mxu3  ;;  %v2399_v51 = vpop.f32.mrf.mxu2 }
 0x141   : > { %v923_v20 = vadd.f32 %v2397_v48, %v647_v26  ;;  %v1063_v59 = vadd.f32 %v2399_v51, %v654_v34 }
 0x143   : > { %v1385_v48 = vrot.slane %v923_v20, 6  ;;  %v1391_v51 = vrot.slane %v1063_v59, 7 }
 0x145   : > { %v2447_v16 = vpop.f32.mrf.mxu1  ;;  %v1262_v22 = vpop.f32.mrf.mxu0 }
 0x146   : > { %v1263_v43 = vadd.f32 %v1262_v22, %v664_v36 }
 0x14a   : > { %v2401_v52 = vpop.f32.mrf.mxu3  ;;  %v2405_v56 = vpop.f32.mrf.mxu2 }
 0x14b   : > { %v1003_v13 = vadd.f32 %v2401_v52, %v651_v39  ;;  %v1143_v38 = vadd.f32 %v2405_v56, %v658_v62  ;;  %v2520_v52 = vld [vmem:[%s2474_s27] sm:$0xff]  ;;  %v1394_v56 = vrot.slane %v1123_v27, 4  ;;  %v1397_v39 = vrot.slane %v1183_v5, 1 }
 0x14c   : > { %1561 = vperm.xlu1 %1755, %v2520_v52   ;;  %v1043_v5 = vadd.f32 %v2403_v53, %v653_v14  ;;  %vm1575_vm12 = vcmp.ne.s32.totalorder %v2520_v52, 0 }
 0x14f   : > { %v1282_v23 = vpop.f32.mrf.mxu1  ;;  %v1342_v33 = vpop.f32.mrf.mxu0 }
 0x150   : > { %v1283_v22 = vadd.f32 %v1282_v23, %v665_v42  ;;  %v1343_v25 = vadd.f32 %v1342_v33, %v668_v46  ;;  %v1203_v23 = vadd.f32 %v2447_v16, %v661_v35  ;;  %v1763_v42 = vld [vmem:[%s2618_s3] ss:$0 sm:$0xff]  ;;  %v1384_v46 = vrot.slane %v2504_v8, 7 }
 0x151   : > { %v2627_v8 = vrot.slane %v2442_v12, 5  ;;  %v460_v24 = vadd.f32 %v1763_v42, %v2379_v28  ;;  %v2630_v12 = vrot.slane %v2481_v54, 5 }
 0x152   : > { %v1401_v26 = vrot.slane %v1283_v22, 4  ;;  %v1404_v27 = vrot.slane %v1343_v25, 1  ;;  %v1419_v28 = vsel %vm1405_vm2, %v2464_v29, %v1384_v46  ;;  %v463_v29 = vadd.f32 %v1763_v42, %v2381_v31 }
 0x153   : > { %v1786_v46 = vmov 0.0  }
 0x154   : > { %v2407_v57 = vpop.f32.mrf.mxu3  ;;  %v2440_v11 = vpop.f32.mrf.mxu2  ;;  %v466_v20 = vmax.f32 %v463_v29, 0.0 }
 0x155   : > { %v1083_v47 = vadd.f32 %v2407_v57, %v655_v60  ;;  %v1223_v19 = vadd.f32 %v2440_v11, %v662_v0  ;;  %v1400_v11 = vrot.slane %v1263_v43, 5  ;;  %v1426_v43 = vsel %vm1405_vm2, %v1043_v5, %v1391_v51 }
 0x156   : > { %v1739_v5 = vsel %vm1576_vm11, 1.0, %v1786_v46 }
 0x157   : > { %v1398_v60 = vrot.slane %v1223_v19, 7 }
 0x158   : > { %v1465_v22 = vpop.f32.mrf.mxu1 }
 0x159   : > { %v1468_v25 = vperm.slane %v1465_v22, 0 }
 0x15d   : > { %v2433_v6 = vpop.f32.mrf.mxu3 }
 0x15e   : > { %v1302_v15 = vpop.f32.mrf.mxu2  ;;  %v1163_v63 = vadd.f32 %v2433_v6, %v659_v44  ;;  %v1388_v6 = vrot.slane %v983_v10, 3  ;;  %v1389_v44 = vrot.slane %v1003_v13, 2  ;;  %v1433_v10 = vsel %vm1405_vm2, %v1203_v23, %v1398_v60 }
 0x15f   : > { %v1303_v41 = vadd.f32 %v1302_v15, %v666_v1 }
 0x160   : > { %v1396_v36 = vrot.slane %v1163_v63, 2  ;;  %v1423_v16 = vsel %vm1413_vm4, %v1389_v44, %v1390_v61  ;;  %v1422_v61 = vsel %vm1411_vm5, %v1387_v50, %v1388_v6  ;;  %v465_v6 = vmax.f32 %v460_v24, 0.0 }
 0x161   : > { %v1402_v0 = vrot.slane %v1303_v41, 3  ;;  %v1424_v13 = vsel %vm1415_vm7, %v1422_v61, %v1423_v16  ;;  %v1738_v16 = vsel %vm1575_vm12, 1.0, %v1786_v46 }
 0x162   : > { %v1430_v33 = vsel %vm1413_vm4, %v1396_v36, %v1397_v39 }
 0x163   : > { %v1436_v15 = vsel %vm1411_vm5, %v1401_v26, %v1402_v0 }
 0x166   : > { %v1242_v55 = vpop.f32.mrf.mxu3 }
 0x167   : > { %v1243_v37 = vadd.f32 %v1242_v55, %v663_v45  ;;  %v1395_v45 = vrot.slane %v1143_v38, 3  ;;  %v1392_v55 = vrot.slane %v1083_v47, 6  ;;  %v2628_v38 = vrot.slane %v2449_v17, 3 }
 0x168   : > { %v2631_v47 = vrot.slane %v2435_v7, 6 }
 0x169   : > { %v1399_v57 = vrot.slane %v1243_v37, 6  ;;  %v1429_v21 = vsel %vm1411_vm5, %v1394_v56, %v1395_v45  ;;  %v1427_v35 = vsel %vm1407_vm3, %v1392_v55, %v1393_v9  ;;  %v1420_v9 = vsel %vm1407_vm3, %v1385_v48, %v2627_v8 }
 0x16a   : > { %v1431_v32 = vsel %vm1415_vm7, %v1429_v21, %v1430_v33  ;;  %v1428_v18 = vsel %vm1409_vm6, %v1426_v43, %v1427_v35  ;;  %v1412_v50 = vsel %vm1411_vm5, %v2629_v30, %v2628_v38  ;;  %v1408_v19 = vsel %vm1407_vm3, %v2631_v47, %v2630_v12 }
 0x16b   : > { %v1434_v34 = vsel %vm1407_vm3, %v1399_v57, %v1400_v11  ;;  %v1432_v41 = vsel %vm1417_vm8, %v1428_v18, %v1431_v32  ;;  %v1416_v17 = vsel %vm1415_vm7, %v1412_v50, %v1414_v2  ;;  %v1410_v54 = vsel %vm1409_vm6, %v2391_v40, %v1408_v19  ;;  %v1764_v40 = vld [vmem:[%s2624_s9] ss:$0 sm:$0xff] }
 0x16c   : > { %v1435_v53 = vsel %vm1409_vm6, %v1433_v10, %v1434_v34  ;;  %v1418_v7 = vsel %vm1417_vm8, %v1410_v54, %v1416_v17  ;;  %v1558_v56 = vlaneseq  ;;  %v1757_v21 = vpack.i.bf16 %v1739_v5, %v1738_v16 }
 0x16e   : > { %v1322_v62 = vpop.f32.mrf.mxu3  ;;  %v2582_v36 = vand.u32 127, %v1558_v56 }
 0x16f   : > { %v1323_v1 = vadd.f32 %v1322_v62, %v667_v58  ;;  %v1421_v58 = vsel %vm1409_vm6, %v1419_v28, %v1420_v9 }
 0x170   : > { %v1425_v3 = vsel %vm1417_vm8, %v1421_v58, %v1424_v13 }
 0x171   : > { %v1403_v37 = vrot.slane %v1323_v1, 2 }
 0x173   : > { %v1437_v63 = vsel %vm1413_vm4, %v1403_v37, %v1404_v27 }
 0x174   : > { %v1438_v14 = vsel %vm1415_vm7, %v1436_v15, %v1437_v63 }
 0x175   : > { %v1439_v4 = vsel %vm1417_vm8, %v1435_v53, %v1438_v14 }
 0x176   : > { %1487 = vmatpush.msra.mxu2 %v1439_v4 }
 0x178   : > { %1488 = vmatpush.msra.mxu2 %v1432_v41 }
 0x17a   : > { %1489 = vmatpush.msra.mxu2 %v1425_v3 }
 0x17c   : > { %1490 = vmatpush.msra.mxu2 %v1418_v7 }
 0x17d   : > { %1736 = vmatmul.msk.f32.vlgmr.msra.gmra.mxu2 %vm701_vm1, %v465_v6 }
 0x185   : > { %1737 = vmatmul.msk.f32.gmra.mxu2 %vm701_vm1, %v466_v20  ;;  %vm1585_vm1 = vcmp.eq.s32.totalorder %v2582_v36, 10 }
 0x19f   : > { %v1565_v39 = vpop.permute.xlu1 %1564 }
 0x1a0   : > { %vm1567_vm9 = vcmp.eq.s32.totalorder %v2582_v36, %v1565_v39 }
 0x1be   : > { %v1562_v0 = vpop.permute.xlu1 %1561 }
 0x1bf   : > { %vm1566_vm10 = vcmp.eq.s32.totalorder %v2582_v36, %v1562_v0 }
 0x200   : > { %v1492_v59 = vpop.f32.mrf.mxu2 }
 0x201   : > { %v1493_v55 = vadd.f32 %v1492_v59, %v1468_v25 }
 0x203   : > { %v1502_v60 = vadd.f32 %v1764_v40, %v1493_v55 }
 0x205   : > { %v1568_v1 = vsel %vm1566_vm10, %v1502_v60, 0.0 }
 0x208   : > { %v1495_v57 = vpop.f32.mrf.mxu2 }
 0x209   : > { %v1496_v11 = vadd.f32 %v1495_v57, %v1468_v25 }
 0x20b   : > { %v1503_v44 = vadd.f32 %v1764_v40, %v1496_v11 }
 0x20d   : > { %v1506_v31 = vsel %vm1405_vm2, %v1503_v44, -inf  ;;  %v1569_v45 = vsel %vm1567_vm9, %v1503_v44, 0.0 }
 0x20e   : > { %1507 = vmax.xlane.f32.xlu0 %v1506_v31  ;;  %v1572_v62 = vsel %vm1405_vm2, %v1569_v45, 0.0 }
 0x20f   : > { %1573 = vadd.xlane.f32.xlu1 %v1572_v62 }
 0x216   : > { %1504 = vmax.xlane.f32.xlu0 %v1502_v60 }
 0x21e   : > { %1570 = vadd.xlane.f32.xlu0 %v1568_v1 }
 0x281   : > { %v1508_v48 = vpop.xlane.xlu0 %1507 }
 0x282   : > { %v1510_v26 = vsub.f32 %v1503_v44, %v1508_v48  ;;  %v1574_v52 = vpop.xlane.xlu1 %1573 }
 0x284   : > { %v1513_v33 = vmul.f32 1.442695, %v1510_v26 }
 0x289   : > { %v1505_v51 = vpop.xlane.xlu0 %1504 }
 0x28a   : > { %v1509_v23 = vsub.f32 %v1502_v60, %v1505_v51 }
 0x28c   : > { %v1511_v27 = vmul.f32 1.442695, %v1509_v23 }
 0x28e   : > { %1765 = vpow2.f32 %v1511_v27 }
 0x28f   : > { %1767 = vpow2.f32 %v1513_v33 }
 0x291   : > { %v1571_v53 = vpop.xlane.xlu0 %1570 }
 0x294   : > { %v2591_v34 = vpop.eup %1765 }
 0x295   : > { %1515 = vadd.xlane.f32.xlu2 %v2591_v34  ;;  %v1768_v37 = vpop.eup %1767 }
 0x296   : > { %v1517_v42 = vsel %vm1405_vm2, %v1768_v37, 0.0  ;;  %vm1586_vm2 = vcmp.eq.s32.totalorder %v2582_v36, 11 }
 0x29d   : > { %1518 = vadd.xlane.f32.xlu2 %v1517_v42 }
 0x2b5   : > { %1758 = vperm.xlu2 %1756, %v1757_v21  }
 0x308   : > { %v1516_v35 = vpop.xlane.xlu2 %1515 }
 0x309   : > { %1769 = vlog2.f32 %v1516_v35  ;;  %v1531_v22 = vand.u32 2147483648, %v1516_v35  ;;  %vm1525_vm4 = vweird.f32 %v1516_v35  ;;  %v1529_v56 = vand.u32 2147483647, %v1516_v35 }
 0x30b   : > { %v1532_v57 = vor.u32 1.1754944e-38, %v1531_v22  ;;  %vm1530_vm6 = vcmp.eq.f32.partialorder %v1529_v56, 8.507059e+37 }
 0x30f   : > { %v1770_v10 = vpop.eup %1769 }
 0x310   : > { %v1519_v15 = vpop.xlane.xlu2 %1518  ;;  %v1551_v63 = vmul.f32 0.6931472, %v1770_v10 }
 0x311   : > { %1771 = vlog2.f32 %v1519_v15  ;;  %v1546_v30 = vand.u32 2147483648, %v1519_v15  ;;  %vm1540_vm14 = vweird.f32 %v1519_v15  ;;  %v1544_v12 = vand.u32 2147483647, %v1519_v15 }
 0x312   : > { %v1554_v2 = vadd.f32 %v1551_v63, %v1505_v51  ;;  %1773 = vrcp.f32 %v1519_v15 }
 0x313   : > { %1775 = vrcp.f32 %v1516_v35  ;;  %v1547_v28 = vor.u32 1.1754944e-38, %v1546_v30  ;;  %vm1545_vm0 = vcmp.eq.f32.partialorder %v1544_v12, 8.507059e+37 }
 0x314   : > { %v1581_v14 = vsub.f32 %v1554_v2, %v1571_v53 }
 0x316   : > { %v1583_v61 = vmul.f32 %v1738_v16, %v1581_v14 }
 0x317   : > { %v1772_v32 = vpop.eup %1771 }
 0x318   : > { %v1553_v8 = vmul.f32 0.6931472, %v1772_v32  ;;  %1601 = vperm.xlu0 %1762, %v1583_v61   ;;  %v1774_v4 = vpop.eup %1773  ;;  %v1759_v41 = vpop.permute.xlu2 %1758 }
 0x319   : > { %v1536_v24 = vmul.f32 %v1774_v4, %v1519_v15  ;;  %vm1541_vm13 = vweird.f32 %v1774_v4  ;;  %v1776_v50 = vpop.eup %1775  ;;  %v1761_v3 = vunpack.i.h.bf16 %v1759_v41  ;;  %v1760_v40 = vunpack.i.l.bf16 %v1759_v41 }
 0x31a   : > { %v1555_v49 = vadd.f32 %v1553_v8, %v1508_v48  ;;  %vm1542_vm15 = vmor %vm1540_vm14, %vm1541_vm13  ;;  %v1521_v19 = vmul.f32 %v1776_v50, %v1516_v35  ;;  %vm1526_vm3 = vweird.f32 %v1776_v50 }
 0x31b   : > { %v1537_v18 = vsub.f32 1.0, %v1536_v24  ;;  %vm1527_vm5 = vmor %vm1525_vm4, %vm1526_vm3 }
 0x31c   : > { %v1582_v9 = vsub.f32 %v1555_v49, %v1574_v52  ;;  %v1522_v17 = vsub.f32 1.0, %v1521_v19 }
 0x31d   : > { %v1538_v13 = vmul.f32 %v1774_v4, %v1537_v18 }
 0x31e   : > { %v1584_v43 = vmul.f32 %v1739_v5, %v1582_v9  ;;  %v1523_v6 = vmul.f32 %v1776_v50, %v1522_v17 }
 0x31f   : > { %v1539_v38 = vadd.f32 %v1774_v4, %v1538_v13 }
 0x320   : > { %1606 = vperm.xlu2 %1756, %v1584_v43   ;;  %v1524_v59 = vadd.f32 %v1776_v50, %v1523_v6 }
 0x321   : > { %v1543_v47 = vsel %vm1542_vm15, %v1774_v4, %v1539_v38 }
 0x322   : > { %v1548_v58 = vsel %vm1545_vm0, %v1547_v28, %v1543_v47  ;;  %v1528_v25 = vsel %vm1527_vm5, %v1776_v50, %v1524_v59 }
 0x323   : > { %v1549_v54 = vmul.f32 %v1768_v37, %v1548_v58  ;;  %v1533_v39 = vsel %vm1530_vm6, %v1532_v57, %v1528_v25 }
 0x324   : > { %v1534_v11 = vmul.f32 %v2591_v34, %v1533_v39 }
 0x325   : > { %v1598_v29 = vsel %vm1586_vm2, %v1761_v3, %v1549_v54 }
 0x326   : > { %v1597_v44 = vsel %vm1586_vm2, %v1760_v40, %v1534_v11 }
 0x37a   : > { %v1607_v7 = vpop.permute.xlu2 %1606 }
 0x37b   : > { %v1610_v20 = vsel %vm1585_vm1, %v1607_v7, %v1598_v29 }
 0x37c   : > { %1612 = vst [vmem:[%s420_s16 + $0x8] sm:$0x1] %v1610_v20 }
 0x38a   : > { %v1602_v31 = vpop.permute.xlu0 %1601 }
 0x38b   : > { %v1609_v45 = vsel %vm1585_vm1, %v1602_v31, %v1597_v44 }
 0x38c   : > { %1611 = vst [vmem:[%s420_s16] sm:$0xff] %v1609_v45 }
 0x38d PF: > { %s21_s17 = sadd.s32 1, %s1783_s17  }
 0x38e   : > { %p18_p4 = scmp.ge.s32.totalorder %s21_s17, 4  }
 0x390   :  { %20 = sbr.rel (!%p18_p4) target bundleno = 1 (0x1), region = 100 }

// kernel: forward.2
= control target key start
LH: loop header
LB: loop body
LE: loop exit
PB: predicated region body
PF: predicated region fallthrough
CT: control target
= control target key end

     0   :  { %v4907_v8 = vmov 0.0   ;;  %s4908_s17 = smov 64   ;;  %s4909_s18 = smov 32   ;;  %vm32_vm8 = vcmask 261120   ;;  %s6328_s2 = inlined_call_operand.vmem [shape: f32[6,32,128], index: 2, kind: input, shape index: {}]   ;;  %s6329_s0 = inlined_call_operand.vmem [shape: f32[72,128], index: 0, kind: input, shape index: {}]   ;;  %s6330_s1 = inlined_call_operand.vmem [shape: f32[72,128], index: 1, kind: input, shape index: {}]   ;;  %s6331_s3 = inlined_call_operand.vmem [shape: f32[8,32,128], index: 3, kind: input, shape index: {}]   ;;  %s6332_s4 = inlined_call_operand.vmem [shape: f32[4,1,128], index: 4, kind: input, shape index: {}]   ;;  %s6333_s5 = inlined_call_operand.vmem [shape: f32[72,32], index: 5, kind: output, shape index: {0}]   ;;  %s6334_s6 = inlined_call_operand.vmem [shape: f32[72,32], index: 6, kind: output, shape index: {1}]  }
   0x1   :  { %v4948_v0 = vld [vmem:[%s6328_s2 + $0x18] sm:$0xff]  ;;  %v4958_v2 = vld [vmem:[%s6328_s2 + $0x10] sm:$0xff]  ;;  %v4970_v4 = vld [vmem:[%s6328_s2 + $0x8] sm:$0xff] }
   0x2   :  { %v4953_v1 = vld [vmem:[%s6328_s2 + $0x38] sm:$0xff]  ;;  %48 = vmatpush.msra.mxu0 %v4948_v0  ;;  %v4965_v3 = vld [vmem:[%s6328_s2 + $0x30] sm:$0xff]  ;;  %v4975_v5 = vld [vmem:[%s6328_s2 + $0x28] sm:$0xff]  ;;  %178 = vmatpush.msra.mxu2 %v4948_v0 }
   0x3   :  { %70 = vmatpush.msra.mxu1 %v4953_v1  ;;  %202 = vmatpush.msra.mxu3 %v4953_v1  ;;  %v4984_v6 = vld [vmem:[%s6328_s2] sm:$0xff]  ;;  %v163_v61 = vld [vmem:[%s6329_s0 + $0x8] sm:$0xff]  ;;  %v187_v62 = vld [vmem:[%s6330_s1 + $0x38] sm:$0xff] }
   0x4   :  { %49 = vmatpush.msra.mxu0 %v4958_v2  ;;  %v4989_v7 = vld [vmem:[%s6328_s2 + $0x20] sm:$0xff]  ;;  %179 = vmatpush.msra.mxu2 %v4958_v2 }
   0x5   :  { %71 = vmatpush.msra.mxu1 %v4965_v3  ;;  %203 = vmatpush.msra.mxu3 %v4965_v3  ;;  %v31_v9 = vld [vmem:[%s6329_s0] sm:$0xff] }
   0x6   :  { %50 = vmatpush.msra.mxu0 %v4970_v4  ;;  %180 = vmatpush.msra.mxu2 %v4970_v4  ;;  %v57_v10 = vld [vmem:[%s6330_s1 + $0x40] sm:$0xff] }
   0x7   :  { %72 = vmatpush.msra.mxu1 %v4975_v5  ;;  %204 = vmatpush.msra.mxu3 %v4975_v5 }
   0x8   :  { %51 = vmatpush.msra.mxu0 %v4984_v6  ;;  %181 = vmatpush.msra.mxu2 %v4984_v6 }
   0x9   :  { %73 = vmatpush.msra.mxu1 %v4989_v7  ;;  %52 = vmatmul.f32.vlgmr.msra.gmra.mxu0 %v4907_v8 }
   0xa   :  { %74 = vmatmul.f32.vlgmr.msra.gmra.mxu1 %v4907_v8  ;;  %205 = vmatpush.msra.mxu3 %v4989_v7 }
   0xb   :  { %334 = vmatpush.msrb.mxu1 %v4953_v1  ;;  %310 = vmatpush.msrb.mxu0 %v4948_v0 }
   0xc   :  { %466 = vmatpush.msrb.mxu3 %v4953_v1  ;;  %442 = vmatpush.msrb.mxu2 %v4948_v0 }
   0xd   :  { %335 = vmatpush.msrb.mxu1 %v4965_v3  ;;  %311 = vmatpush.msrb.mxu0 %v4958_v2 }
   0xe   :  { %467 = vmatpush.msrb.mxu3 %v4965_v3  ;;  %443 = vmatpush.msrb.mxu2 %v4958_v2 }
   0xf   :  { %336 = vmatpush.msrb.mxu1 %v4975_v5  ;;  %312 = vmatpush.msrb.mxu0 %v4970_v4 }
  0x10   :  { %468 = vmatpush.msrb.mxu3 %v4975_v5  ;;  %444 = vmatpush.msrb.mxu2 %v4970_v4 }
  0x11   :  { %337 = vmatpush.msrb.mxu1 %v4989_v7  ;;  %313 = vmatpush.msrb.mxu0 %v4984_v6 }
  0x12   :  { %469 = vmatpush.msrb.mxu3 %v4989_v7  ;;  %445 = vmatpush.msrb.mxu2 %v4984_v6 }
  0x13   :  { %598 = vmatpush.msra.mxu1 %v4953_v1  ;;  %574 = vmatpush.msra.mxu0 %v4948_v0 }
  0x15   :  { %599 = vmatpush.msra.mxu1 %v4965_v3  ;;  %575 = vmatpush.msra.mxu0 %v4958_v2 }
  0x17   :  { %600 = vmatpush.msra.mxu1 %v4975_v5  ;;  %576 = vmatpush.msra.mxu0 %v4970_v4 }
  0x19   :  { %601 = vmatpush.msra.mxu1 %v4989_v7  ;;  %577 = vmatpush.msra.mxu0 %v4984_v6 }
  0x86   :  { %v53_v11 = vpop.f32.mrf.mxu0 }
  0x87   :  { %v75_v12 = vpop.f32.mrf.mxu1  ;;  %v56_v13 = vadd.f32 %v53_v11, %v31_v9 }
  0x88   :  { %v78_v14 = vadd.f32 %v75_v12, %v57_v10 }
  0x89   :  { %4473 = vtanh.f32 %v56_v13  ;;  %v4245_v17 = vmul.f32 -1.442695, %v56_v13 }
  0x8a   :  { %4475 = vtanh.f32 %v78_v14  ;;  %v4246_v18 = vmul.f32 -1.442695, %v78_v14 }
  0x8b   :  { %4477 = vpow2.f32 %v4245_v17 }
  0x8c   :  { %4479 = vpow2.f32 %v4246_v18 }
  0x8f   :  { %v4474_v15 = vpop.eup %4473 }
  0x90   :  { %v4476_v16 = vpop.eup %4475  ;;  %121 = vrot.lane.b32.xlu1 %v4474_v15, %s4908_s17 }
  0x91   :  { %138 = vrot.lane.b32.xlu0 %v4476_v16, %s4908_s17  ;;  %v4478_v19 = vpop.eup %4477 }
  0x92   :  { %v4480_v20 = vpop.eup %4479  ;;  %v82_v21 = vadd.f32 1.0, %v4478_v19 }
  0x93   :  { %v102_v22 = vadd.f32 1.0, %v4480_v20 }
  0x94   :  { %4481 = vrcp.f32 %v82_v21  ;;  %vm88_vm0 = vweird.f32 %v82_v21  ;;  %v94_v31 = vand.u32 2147483648, %v82_v21  ;;  %v92_v33 = vand.u32 2147483647, %v82_v21 }
  0x95   :  { %4483 = vrcp.f32 %v102_v22  ;;  %v114_v35 = vand.u32 2147483648, %v102_v22  ;;  %vm108_vm4 = vweird.f32 %v102_v22  ;;  %v112_v36 = vand.u32 2147483647, %v102_v22 }
  0x96   :  { %v95_v37 = vor.u32 1.1754944e-38, %v94_v31  ;;  %vm93_vm6 = vcmp.eq.f32.partialorder %v92_v33, 8.507059e+37 }
  0x97   :  { %v115_v40 = vor.u32 1.1754944e-38, %v114_v35  ;;  %vm113_vm7 = vcmp.eq.f32.partialorder %v112_v36, 8.507059e+37 }
  0x9a   :  { %v4482_v23 = vpop.eup %4481 }
  0x9b   :  { %v4484_v24 = vpop.eup %4483  ;;  %v84_v25 = vmul.f32 %v4482_v23, %v82_v21  ;;  %vm89_vm1 = vweird.f32 %v4482_v23 }
  0x9c   :  { %v104_v26 = vmul.f32 %v4484_v24, %v102_v22  ;;  %vm109_vm2 = vweird.f32 %v4484_v24  ;;  %vm90_vm3 = vmor %vm88_vm0, %vm89_vm1 }
  0x9d   :  { %v85_v27 = vsub.f32 1.0, %v84_v25  ;;  %vm110_vm5 = vmor %vm108_vm4, %vm109_vm2 }
  0x9e   :  { %v105_v28 = vsub.f32 1.0, %v104_v26 }
  0x9f   :  { %v86_v29 = vmul.f32 %v4482_v23, %v85_v27 }
  0xa0   :  { %v106_v30 = vmul.f32 %v4484_v24, %v105_v28 }
  0xa1   :  { %v87_v32 = vadd.f32 %v4482_v23, %v86_v29 }
  0xa2   :  { %v107_v34 = vadd.f32 %v4484_v24, %v106_v30 }
  0xa3   :  { %v91_v38 = vsel %vm90_vm3, %v4482_v23, %v87_v32 }
  0xa4   :  { %v111_v39 = vsel %vm110_vm5, %v4484_v24, %v107_v34  ;;  %v96_v42 = vsel %vm93_vm6, %v95_v37, %v91_v38 }
  0xa5   :  { %v116_v44 = vsel %vm113_vm7, %v115_v40, %v111_v39  ;;  %v119_v47 = vmul.f32 0.0, %v96_v42 }
  0xa6   :  { %v136_v51 = vmul.f32 0.0, %v116_v44 }
 0x102   :  { %v122_v41 = vpop.permute.xlu1 %121 }
 0x103   :  { %v139_v43 = vpop.permute.xlu0 %138  ;;  %v124_v45 = vmul.f32 %v122_v41, %v96_v42 }
 0x104   :  { %v141_v46 = vmul.f32 %v139_v43, %v116_v44 }
 0x105   :  { %126 = vrot.lane.b32.xlu2 %v124_v45, %s4909_s18 }
 0x106   :  { %143 = vrot.lane.b32.xlu0 %v141_v46, %s4909_s18 }
 0x15f   :  { %v127_v48 = vpop.permute.xlu2 %126 }
 0x160   :  { %v5037_v49 = vadd.f32 %v127_v48, %v119_v47 }
 0x162   :  { %4485 = vtanh.f32 %v5037_v49 }
 0x168   :  { %v4486_v50 = vpop.eup %4485 }
 0x169   :  { %132 = vrot.lane.b32.xlu0 %v4486_v50, %s4908_s17 }
 0x178   :  { %v144_v52 = vpop.permute.xlu0 %143 }
 0x179   :  { %v5041_v53 = vadd.f32 %v144_v52, %v136_v51 }
 0x17b   :  { %4487 = vtanh.f32 %v5041_v53 }
 0x181   :  { %v4488_v54 = vpop.eup %4487 }
 0x182   :  { %149 = vrot.lane.b32.xlu1 %v4488_v54, %s4908_s17 }
 0x1db   :  { %v133_v55 = vpop.permute.xlu0 %132 }
 0x1dc   :  { %v135_v56 = vmul.f32 %v133_v55, %v96_v42 }
 0x1de   :  { %154 = vrot.lane.b32.xlu1 %v135_v56, %s4909_s18 }
 0x1f4   :  { %v150_v57 = vpop.permute.xlu1 %149 }
 0x1f5   :  { %v152_v58 = vmul.f32 %v150_v57, %v116_v44 }
 0x1f7   :  { %159 = vrot.lane.b32.xlu2 %v152_v58, %s4909_s18  ;;  %v319_v58 = vld [vmem:[%s6330_s1 + $0x30] sm:$0xff] }
 0x250   :  { %v155_v59 = vpop.permute.xlu1 %154 }
 0x251   :  { %v160_v60 = vpop.permute.xlu2 %159  ;;  %157 = vst.msk [vmem:[#allocation4] sm:$0xff] %vm32_vm8, %v155_v59  ;;  %4247 = vmatmul.msk.f32.vlgmr.msra.gmra.mxu2 %vm32_vm8, %v155_v59 }
 0x252   :  { %162 = vst.msk [vmem:[#allocation5 + $0x40] sm:$0xff] %vm32_vm8, %v160_v60  ;;  %4248 = vmatmul.msk.f32.vlgmr.msra.gmra.mxu3 %vm32_vm8, %v160_v60  ;;  %706 = vmatpush.msra.mxu2 %v4948_v0 }
 0x253   :  { %730 = vmatpush.msra.mxu3 %v4953_v1 }
 0x254   :  { %707 = vmatpush.msra.mxu2 %v4958_v2 }
 0x255   :  { %731 = vmatpush.msra.mxu3 %v4965_v3 }
 0x256   :  { %708 = vmatpush.msra.mxu2 %v4970_v4 }
 0x257   :  { %732 = vmatpush.msra.mxu3 %v4975_v5 }
 0x258   :  { %709 = vmatpush.msra.mxu2 %v4984_v6 }
 0x259   :  { %733 = vmatpush.msra.mxu3 %v4989_v7 }
 0x2d4   :  { %v183_v63 = vpop.f32.mrf.mxu2 }
 0x2d5   :  { %v186_v9 = vadd.f32 %v183_v63, %v163_v61  ;;  %v207_v10 = vpop.f32.mrf.mxu3 }
 0x2d6   :  { %v210_v11 = vadd.f32 %v207_v10, %v187_v62  ;;  %v295_v62 = vld [vmem:[%s6329_s0 + $0x10] sm:$0xff] }
 0x2d7   :  { %4489 = vtanh.f32 %v186_v9  ;;  %v4249_v18 = vmul.f32 -1.442695, %v186_v9 }
 0x2d8   :  { %4491 = vtanh.f32 %v210_v11  ;;  %v4250_v14 = vmul.f32 -1.442695, %v210_v11 }
 0x2da   :  { %4493 = vpow2.f32 %v4250_v14 }
 0x2dd   :  { %v4490_v12 = vpop.eup %4489 }
 0x2de   :  { %v4492_v13 = vpop.eup %4491  ;;  %253 = vrot.lane.b32.xlu1 %v4490_v12, %s4908_s17 }
 0x2df   :  { %270 = vrot.lane.b32.xlu2 %v4492_v13, %s4908_s17 }
 0x2e0   :  { %v4494_v15 = vpop.eup %4493 }
 0x2e1   :  { %v234_v16 = vadd.f32 1.0, %v4494_v15 }
 0x2e3   :  { %4495 = vrcp.f32 %v234_v16  ;;  %v246_v25 = vand.u32 2147483648, %v234_v16  ;;  %vm240_vm10 = vweird.f32 %v234_v16  ;;  %v244_v26 = vand.u32 2147483647, %v234_v16 }
 0x2e4   :  { %4497 = vpow2.f32 %v4249_v18 }
 0x2e5   :  { %v247_v28 = vor.u32 1.1754944e-38, %v246_v25  ;;  %vm245_vm12 = vcmp.eq.f32.partialorder %v244_v26, 8.507059e+37 }
 0x2e9   :  { %v4496_v17 = vpop.eup %4495 }
 0x2ea   :  { %v236_v19 = vmul.f32 %v4496_v17, %v234_v16  ;;  %v4498_v21 = vpop.eup %4497  ;;  %vm241_vm9 = vweird.f32 %v4496_v17 }
 0x2eb   :  { %v214_v23 = vadd.f32 1.0, %v4498_v21  ;;  %vm242_vm11 = vmor %vm240_vm10, %vm241_vm9 }
 0x2ec   :  { %v237_v20 = vsub.f32 1.0, %v236_v19 }
 0x2ed   :  { %4499 = vrcp.f32 %v214_v23  ;;  %v226_v37 = vand.u32 2147483648, %v214_v23  ;;  %vm220_vm14 = vweird.f32 %v214_v23  ;;  %v224_v38 = vand.u32 2147483647, %v214_v23 }
 0x2ee   :  { %v238_v22 = vmul.f32 %v4496_v17, %v237_v20 }
 0x2ef   :  { %v227_v40 = vor.u32 1.1754944e-38, %v226_v37  ;;  %vm225_vm0 = vcmp.eq.f32.partialorder %v224_v38, 8.507059e+37 }
 0x2f0   :  { %v239_v24 = vadd.f32 %v4496_v17, %v238_v22 }
 0x2f2   :  { %v243_v27 = vsel %vm242_vm11, %v4496_v17, %v239_v24 }
 0x2f3   :  { %v248_v30 = vsel %vm245_vm12, %v247_v28, %v243_v27  ;;  %v4500_v31 = vpop.eup %4499 }
 0x2f4   :  { %v216_v33 = vmul.f32 %v4500_v31, %v214_v23  ;;  %vm221_vm13 = vweird.f32 %v4500_v31  ;;  %v268_v44 = vmul.f32 %v248_v30, %v5041_v53 }
 0x2f5   :  { %vm222_vm15 = vmor %vm220_vm14, %vm221_vm13 }
 0x2f6   :  { %v217_v34 = vsub.f32 1.0, %v216_v33 }
 0x2f8   :  { %v218_v35 = vmul.f32 %v4500_v31, %v217_v34 }
 0x2fa   :  { %v219_v36 = vadd.f32 %v4500_v31, %v218_v35 }
 0x2fc   :  { %v223_v39 = vsel %vm222_vm15, %v4500_v31, %v219_v36 }
 0x2fd   :  { %v228_v42 = vsel %vm225_vm0, %v227_v40, %v223_v39 }
 0x2fe   :  { %v251_v48 = vmul.f32 %v228_v42, %v5037_v49 }
 0x339   :  { %v271_v29 = vpop.permute.xlu2 %270 }
 0x33a   :  { %v273_v32 = vmul.f32 %v271_v29, %v248_v30 }
 0x33c   :  { %275 = vrot.lane.b32.xlu0 %v273_v32, %s4909_s18 }
 0x350   :  { %v254_v41 = vpop.permute.xlu1 %253 }
 0x351   :  { %v256_v43 = vmul.f32 %v254_v41, %v228_v42 }
 0x353   :  { %258 = vrot.lane.b32.xlu0 %v256_v43, %s4909_s18 }
 0x3ae   :  { %v276_v45 = vpop.permute.xlu0 %275 }
 0x3af   :  { %v5070_v46 = vadd.f32 %v276_v45, %v268_v44 }
 0x3b1   :  { %4501 = vtanh.f32 %v5070_v46 }
 0x3b7   :  { %v4502_v47 = vpop.eup %4501 }
 0x3b8   :  { %281 = vrot.lane.b32.xlu2 %v4502_v47, %s4908_s17 }
 0x3c5   :  { %v259_v50 = vpop.permute.xlu0 %258 }
 0x3c6   :  { %v5075_v51 = vadd.f32 %v259_v50, %v251_v48 }
 0x3c8   :  { %4503 = vtanh.f32 %v5075_v51 }
 0x3ce   :  { %v4504_v52 = vpop.eup %4503 }
 0x3cf   :  { %264 = vrot.lane.b32.xlu2 %v4504_v52, %s4908_s17 }
 0x412   :  { %v282_v54 = vpop.permute.xlu2 %281 }
 0x413   :  { %v284_v53 = vmul.f32 %v282_v54, %v248_v30 }
 0x415   :  { %291 = vrot.lane.b32.xlu1 %v284_v53, %s4909_s18 }
 0x429   :  { %v265_v55 = vpop.permute.xlu2 %264 }
 0x42a   :  { %v267_v56 = vmul.f32 %v265_v55, %v228_v42 }
 0x42c   :  { %286 = vrot.lane.b32.xlu0 %v267_v56, %s4909_s18 }
 0x487   :  { %v292_v57 = vpop.permute.xlu1 %291 }
 0x488   :  { %294 = vst.msk [vmem:[#allocation5 + $0x38] sm:$0xff] %vm32_vm8, %v292_v57  ;;  %4252 = vmatmul.msk.f32.vlgmr.msrb.gmra.mxu1 %vm32_vm8, %v292_v57  ;;  %v451_v57 = vld [vmem:[%s6330_s1 + $0x28] sm:$0xff] }
 0x489   :  { %862 = vmatpush.msrb.mxu1 %v4953_v1 }
 0x48b   :  { %863 = vmatpush.msrb.mxu1 %v4965_v3 }
 0x48d   :  { %864 = vmatpush.msrb.mxu1 %v4975_v5 }
 0x48f   :  { %865 = vmatpush.msrb.mxu1 %v4989_v7 }
 0x49e   :  { %v287_v49 = vpop.permute.xlu0 %286 }
 0x49f   :  { %289 = vst.msk [vmem:[#allocation4 + $0x8] sm:$0xff] %vm32_vm8, %v287_v49  ;;  %4251 = vmatmul.msk.f32.vlgmr.msrb.gmra.mxu0 %vm32_vm8, %v287_v49 }
 0x4a0   :  { %838 = vmatpush.msrb.mxu0 %v4948_v0 }
 0x4a2   :  { %839 = vmatpush.msrb.mxu0 %v4958_v2 }
 0x4a4   :  { %840 = vmatpush.msrb.mxu0 %v4970_v4 }
 0x4a6   :  { %841 = vmatpush.msrb.mxu0 %v4984_v6 }
 0x505   :  { %v339_v59 = vpop.f32.mrf.mxu1 }
 0x506   :  { %v342_v60 = vadd.f32 %v339_v59, %v319_v58 }
 0x508   :  { %4505 = vtanh.f32 %v342_v60  ;;  %v4254_v11 = vmul.f32 -1.442695, %v342_v60 }
 0x50e   :  { %v4506_v61 = vpop.eup %4505 }
 0x50f   :  { %402 = vrot.lane.b32.xlu1 %v4506_v61, %s4908_s17 }
 0x51c   :  { %v315_v63 = vpop.f32.mrf.mxu0 }
 0x51d   :  { %v318_v9 = vadd.f32 %v315_v63, %v295_v62 }
 0x51f   :  { %4507 = vtanh.f32 %v318_v9  ;;  %v4253_v15 = vmul.f32 -1.442695, %v318_v9 }
 0x520   :  { %4509 = vpow2.f32 %v4254_v11 }
 0x525   :  { %v4508_v10 = vpop.eup %4507 }
 0x526   :  { %385 = vrot.lane.b32.xlu0 %v4508_v10, %s4908_s17  ;;  %v4510_v12 = vpop.eup %4509 }
 0x527   :  { %v366_v13 = vadd.f32 1.0, %v4510_v12 }
 0x529   :  { %4511 = vrcp.f32 %v366_v13  ;;  %v378_v22 = vand.u32 2147483648, %v366_v13  ;;  %vm372_vm2 = vweird.f32 %v366_v13  ;;  %v376_v23 = vand.u32 2147483647, %v366_v13 }
 0x52a   :  { %4513 = vpow2.f32 %v4253_v15 }
 0x52b   :  { %v379_v25 = vor.u32 1.1754944e-38, %v378_v22  ;;  %vm377_vm4 = vcmp.eq.f32.partialorder %v376_v23, 8.507059e+37 }
 0x52f   :  { %v4512_v14 = vpop.eup %4511 }
 0x530   :  { %v368_v16 = vmul.f32 %v4512_v14, %v366_v13  ;;  %v4514_v18 = vpop.eup %4513  ;;  %vm373_vm1 = vweird.f32 %v4512_v14 }
 0x531   :  { %v346_v20 = vadd.f32 1.0, %v4514_v18  ;;  %vm374_vm3 = vmor %vm372_vm2, %vm373_vm1 }
 0x532   :  { %v369_v17 = vsub.f32 1.0, %v368_v16 }
 0x533   :  { %4515 = vrcp.f32 %v346_v20  ;;  %v358_v34 = vand.u32 2147483648, %v346_v20  ;;  %vm352_vm6 = vweird.f32 %v346_v20  ;;  %v356_v35 = vand.u32 2147483647, %v346_v20 }
 0x534   :  { %v370_v19 = vmul.f32 %v4512_v14, %v369_v17 }
 0x535   :  { %v359_v37 = vor.u32 1.1754944e-38, %v358_v34  ;;  %vm357_vm9 = vcmp.eq.f32.partialorder %v356_v35, 8.507059e+37 }
 0x536   :  { %v371_v21 = vadd.f32 %v4512_v14, %v370_v19 }
 0x538   :  { %v375_v24 = vsel %vm374_vm3, %v4512_v14, %v371_v21 }
 0x539   :  { %v380_v27 = vsel %vm377_vm4, %v379_v25, %v375_v24  ;;  %v4516_v28 = vpop.eup %4515 }
 0x53a   :  { %v348_v30 = vmul.f32 %v4516_v28, %v346_v20  ;;  %vm353_vm5 = vweird.f32 %v4516_v28  ;;  %v400_v41 = vmul.f32 %v380_v27, %v5070_v46 }
 0x53b   :  { %vm354_vm7 = vmor %vm352_vm6, %vm353_vm5 }
 0x53c   :  { %v349_v31 = vsub.f32 1.0, %v348_v30 }
 0x53e   :  { %v350_v32 = vmul.f32 %v4516_v28, %v349_v31 }
 0x540   :  { %v351_v33 = vadd.f32 %v4516_v28, %v350_v32 }
 0x542   :  { %v355_v36 = vsel %vm354_vm7, %v4516_v28, %v351_v33 }
 0x543   :  { %v360_v39 = vsel %vm357_vm9, %v359_v37, %v355_v36 }
 0x544   :  { %v383_v45 = vmul.f32 %v360_v39, %v5075_v51  ;;  %v427_v51 = vld [vmem:[%s6329_s0 + $0x18] sm:$0xff] }
 0x581   :  { %v403_v26 = vpop.permute.xlu1 %402 }
 0x582   :  { %v405_v29 = vmul.f32 %v403_v26, %v380_v27 }
 0x584   :  { %407 = vrot.lane.b32.xlu2 %v405_v29, %s4909_s18 }
 0x598   :  { %v386_v38 = vpop.permute.xlu0 %385 }
 0x599   :  { %v388_v40 = vmul.f32 %v386_v38, %v360_v39 }
 0x59b   :  { %390 = vrot.lane.b32.xlu2 %v388_v40, %s4909_s18 }
 0x5de   :  { %v408_v42 = vpop.permute.xlu2 %407 }
 0x5df   :  { %v5104_v43 = vadd.f32 %v408_v42, %v400_v41 }
 0x5e1   :  { %4517 = vtanh.f32 %v5104_v43 }
 0x5e7   :  { %v4518_v44 = vpop.eup %4517 }
 0x5e8   :  { %413 = vrot.lane.b32.xlu1 %v4518_v44, %s4908_s17 }
 0x5f5   :  { %v391_v47 = vpop.permute.xlu2 %390 }
 0x5f6   :  { %v5109_v48 = vadd.f32 %v391_v47, %v383_v45 }
 0x5f8   :  { %4519 = vtanh.f32 %v5109_v48 }
 0x5fe   :  { %v4520_v50 = vpop.eup %4519 }
 0x5ff   :  { %396 = vrot.lane.b32.xlu1 %v4520_v50, %s4908_s17 }
 0x65a   :  { %v414_v52 = vpop.permute.xlu1 %413 }
 0x65b   :  { %v416_v46 = vmul.f32 %v414_v52, %v380_v27 }
 0x65d   :  { %423 = vrot.lane.b32.xlu0 %v416_v46, %s4909_s18 }
 0x671   :  { %v397_v54 = vpop.permute.xlu1 %396 }
 0x672   :  { %v399_v53 = vmul.f32 %v397_v54, %v360_v39 }
 0x674   :  { %418 = vrot.lane.b32.xlu2 %v399_v53, %s4909_s18 }
 0x6ce   :  { %v419_v55 = vpop.permute.xlu2 %418 }
 0x6cf   :  { %v424_v56 = vpop.permute.xlu0 %423  ;;  %421 = vst.msk [vmem:[#allocation4 + $0x10] sm:$0xff] %vm32_vm8, %v419_v55  ;;  %4255 = vmatmul.msk.f32.vlgmr.msrb.gmra.mxu2 %vm32_vm8, %v419_v55 }
 0x6d0   :  { %426 = vst.msk [vmem:[#allocation5 + $0x30] sm:$0xff] %vm32_vm8, %v424_v56  ;;  %4256 = vmatmul.msk.f32.vlgmr.msrb.gmra.mxu3 %vm32_vm8, %v424_v56  ;;  %970 = vmatpush.msrb.mxu2 %v4948_v0 }
 0x6d1   :  { %994 = vmatpush.msrb.mxu3 %v4953_v1 }
 0x6d2   :  { %971 = vmatpush.msrb.mxu2 %v4958_v2 }
 0x6d3   :  { %995 = vmatpush.msrb.mxu3 %v4965_v3 }
 0x6d4   :  { %972 = vmatpush.msrb.mxu2 %v4970_v4 }
 0x6d5   :  { %996 = vmatpush.msrb.mxu3 %v4975_v5 }
 0x6d6   :  { %973 = vmatpush.msrb.mxu2 %v4984_v6 }
 0x6d7   :  { %997 = vmatpush.msrb.mxu3 %v4989_v7 }
 0x752   :  { %v447_v49 = vpop.f32.mrf.mxu2 }
 0x753   :  { %v450_v58 = vadd.f32 %v447_v49, %v427_v51  ;;  %v471_v59 = vpop.f32.mrf.mxu3 }
 0x754   :  { %v474_v60 = vadd.f32 %v471_v59, %v451_v57 }
 0x755   :  { %4521 = vtanh.f32 %v450_v58  ;;  %v4257_v9 = vmul.f32 -1.442695, %v450_v58 }
 0x756   :  { %4523 = vtanh.f32 %v474_v60  ;;  %v4258_v63 = vmul.f32 -1.442695, %v474_v60 }
 0x758   :  { %4525 = vpow2.f32 %v4258_v63 }
 0x759   :  { %4527 = vpow2.f32 %v4257_v9 }
 0x75b   :  { %v4522_v61 = vpop.eup %4521 }
 0x75c   :  { %v4524_v62 = vpop.eup %4523  ;;  %517 = vrot.lane.b32.xlu2 %v4522_v61, %s4908_s17 }
 0x75d   :  { %534 = vrot.lane.b32.xlu0 %v4524_v62, %s4908_s17 }
 0x75e   :  { %v4526_v10 = vpop.eup %4525 }
 0x75f   :  { %v498_v11 = vadd.f32 1.0, %v4526_v10  ;;  %v4528_v12 = vpop.eup %4527 }
 0x760   :  { %v478_v13 = vadd.f32 1.0, %v4528_v12 }
 0x761   :  { %4529 = vrcp.f32 %v498_v11  ;;  %v510_v22 = vand.u32 2147483648, %v498_v11  ;;  %vm504_vm11 = vweird.f32 %v498_v11  ;;  %v508_v23 = vand.u32 2147483647, %v498_v11 }
 0x762   :  { %4531 = vrcp.f32 %v478_v13  ;;  %v490_v31 = vand.u32 2147483648, %v478_v13  ;;  %vm484_vm15 = vweird.f32 %v478_v13  ;;  %v488_v32 = vand.u32 2147483647, %v478_v13 }
 0x763   :  { %v511_v26 = vor.u32 1.1754944e-38, %v510_v22  ;;  %vm509_vm13 = vcmp.eq.f32.partialorder %v508_v23, 8.507059e+37 }
 0x764   :  { %v491_v35 = vor.u32 1.1754944e-38, %v490_v31  ;;  %vm489_vm1 = vcmp.eq.f32.partialorder %v488_v32, 8.507059e+37 }
 0x767   :  { %v4530_v14 = vpop.eup %4529 }
 0x768   :  { %v500_v15 = vmul.f32 %v4530_v14, %v498_v11  ;;  %v4532_v17 = vpop.eup %4531  ;;  %vm505_vm10 = vweird.f32 %v4530_v14 }
 0x769   :  { %v480_v18 = vmul.f32 %v4532_v17, %v478_v13  ;;  %vm506_vm12 = vmor %vm504_vm11, %vm505_vm10  ;;  %vm485_vm14 = vweird.f32 %v4532_v17 }
 0x76a   :  { %v501_v16 = vsub.f32 1.0, %v500_v15  ;;  %vm486_vm0 = vmor %vm484_vm15, %vm485_vm14 }
 0x76b   :  { %v481_v20 = vsub.f32 1.0, %v480_v18 }
 0x76c   :  { %v502_v19 = vmul.f32 %v4530_v14, %v501_v16 }
 0x76d   :  { %v482_v24 = vmul.f32 %v4532_v17, %v481_v20 }
 0x76e   :  { %v503_v21 = vadd.f32 %v4530_v14, %v502_v19 }
 0x76f   :  { %v483_v29 = vadd.f32 %v4532_v17, %v482_v24 }
 0x770   :  { %v507_v25 = vsel %vm506_vm12, %v4530_v14, %v503_v21 }
 0x771   :  { %v512_v28 = vsel %vm509_vm13, %v511_v26, %v507_v25  ;;  %v487_v33 = vsel %vm486_vm0, %v4532_v17, %v483_v29 }
 0x772   :  { %v492_v36 = vsel %vm489_vm1, %v491_v35, %v487_v33  ;;  %v532_v38 = vmul.f32 %v512_v28, %v5104_v43 }
 0x773   :  { %v515_v41 = vmul.f32 %v492_v36, %v5109_v48 }
 0x7b6   :  { %v518_v34 = vpop.permute.xlu2 %517 }
 0x7b7   :  { %v520_v37 = vmul.f32 %v518_v34, %v492_v36 }
 0x7cf   :  { %v535_v27 = vpop.permute.xlu0 %534 }
 0x7d0   :  { %v537_v30 = vmul.f32 %v535_v27, %v512_v28 }
 0x7d2   :  { %539 = vrot.lane.b32.xlu1 %v537_v30, %s4909_s18 }
 0x7da   :  { %522 = vrot.lane.b32.xlu1 %v520_v37, %s4909_s18 }
 0x844   :  { %v540_v39 = vpop.permute.xlu1 %539 }
 0x845   :  { %v5138_v40 = vadd.f32 %v540_v39, %v532_v38 }
 0x847   :  { %4533 = vtanh.f32 %v5138_v40 }
 0x84c   :  { %v523_v42 = vpop.permute.xlu1 %522 }
 0x84d   :  { %v4534_v44 = vpop.eup %4533  ;;  %v5142_v45 = vadd.f32 %v523_v42, %v515_v41  ;;  %v715_v41 = vld [vmem:[%s6330_s1 + $0x18] sm:$0xff] }
 0x84e   :  { %545 = vrot.lane.b32.xlu0 %v4534_v44, %s4908_s17 }
 0x84f   :  { %4535 = vtanh.f32 %v5142_v45 }
 0x855   :  { %v4536_v47 = vpop.eup %4535 }
 0x856   :  { %528 = vrot.lane.b32.xlu0 %v4536_v47, %s4908_s17  ;;  %v691_v47 = vld [vmem:[%s6329_s0 + $0x28] sm:$0xff] }
 0x8c0   :  { %v546_v50 = vpop.permute.xlu0 %545 }
 0x8c1   :  { %v548_v43 = vmul.f32 %v546_v50, %v512_v28 }
 0x8c3   :  { %555 = vrot.lane.b32.xlu2 %v548_v43, %s4909_s18 }
 0x8c8   :  { %v529_v52 = vpop.permute.xlu0 %528 }
 0x8c9   :  { %v531_v46 = vmul.f32 %v529_v52, %v492_v36 }
 0x8cb   :  { %550 = vrot.lane.b32.xlu1 %v531_v46, %s4909_s18 }
 0x91d   :  { %v556_v48 = vpop.permute.xlu2 %555 }
 0x91e   :  { %558 = vst.msk [vmem:[#allocation5 + $0x28] sm:$0xff] %vm32_vm8, %v556_v48  ;;  %4260 = vmatmul.msk.f32.vlgmr.msra.gmra.mxu1 %vm32_vm8, %v556_v48 }
 0x91f   :  { %1126 = vmatpush.msra.mxu1 %v4953_v1  ;;  %v583_v1 = vld [vmem:[%s6330_s1 + $0x20] sm:$0xff] }
 0x921   :  { %1127 = vmatpush.msra.mxu1 %v4965_v3 }
 0x923   :  { %1128 = vmatpush.msra.mxu1 %v4975_v5 }
 0x925   :  { %1129 = vmatpush.msra.mxu1 %v4989_v7 }
 0x93d   :  { %v551_v54 = vpop.permute.xlu1 %550 }
 0x93e   :  { %553 = vst.msk [vmem:[#allocation4 + $0x18] sm:$0xff] %vm32_vm8, %v551_v54  ;;  %4259 = vmatmul.msk.f32.vlgmr.msra.gmra.mxu0 %vm32_vm8, %v551_v54 }
 0x93f   :  { %1102 = vmatpush.msra.mxu0 %v4948_v0  ;;  %v559_v0 = vld [vmem:[%s6329_s0 + $0x20] sm:$0xff] }
 0x941   :  { %1103 = vmatpush.msra.mxu0 %v4958_v2 }
 0x943   :  { %1104 = vmatpush.msra.mxu0 %v4970_v4 }
 0x945   :  { %1105 = vmatpush.msra.mxu0 %v4984_v6 }
 0x99b   :  { %v603_v3 = vpop.f32.mrf.mxu1 }
 0x99c   :  { %v606_v5 = vadd.f32 %v603_v3, %v583_v1 }
 0x99e   :  { %4537 = vtanh.f32 %v606_v5  ;;  %v4262_v6 = vmul.f32 -1.442695, %v606_v5 }
 0x9a4   :  { %v4538_v7 = vpop.eup %4537 }
 0x9a5   :  { %666 = vrot.lane.b32.xlu2 %v4538_v7, %s4908_s17 }
 0x9bb   :  { %v579_v53 = vpop.f32.mrf.mxu0 }
 0x9bc   :  { %v582_v2 = vadd.f32 %v579_v53, %v559_v0 }
 0x9be   :  { %4539 = vtanh.f32 %v582_v2  ;;  %v4261_v12 = vmul.f32 -1.442695, %v582_v2 }
 0x9bf   :  { %4541 = vpow2.f32 %v4262_v6 }
 0x9c4   :  { %v4540_v4 = vpop.eup %4539 }
 0x9c5   :  { %649 = vrot.lane.b32.xlu1 %v4540_v4, %s4908_s17  ;;  %v4542_v55 = vpop.eup %4541 }
 0x9c6   :  { %v630_v56 = vadd.f32 1.0, %v4542_v55 }
 0x9c8   :  { %4543 = vrcp.f32 %v630_v56  ;;  %v642_v60 = vand.u32 2147483648, %v630_v56  ;;  %vm636_vm3 = vweird.f32 %v630_v56  ;;  %v640_v61 = vand.u32 2147483647, %v630_v56 }
 0x9c9   :  { %4545 = vpow2.f32 %v4261_v12 }
 0x9ca   :  { %v643_v63 = vor.u32 1.1754944e-38, %v642_v60  ;;  %vm641_vm5 = vcmp.eq.f32.partialorder %v640_v61, 8.507059e+37 }
 0x9ce   :  { %v4544_v51 = vpop.eup %4543 }
 0x9cf   :  { %v632_v57 = vmul.f32 %v4544_v51, %v630_v56  ;;  %vm637_vm2 = vweird.f32 %v4544_v51  ;;  %v4546_v13 = vpop.eup %4545 }
 0x9d0   :  { %vm638_vm4 = vmor %vm636_vm3, %vm637_vm2  ;;  %v610_v14 = vadd.f32 1.0, %v4546_v13 }
 0x9d1   :  { %v633_v49 = vsub.f32 1.0, %v632_v57 }
 0x9d2   :  { %4547 = vrcp.f32 %v610_v14  ;;  %v622_v20 = vand.u32 2147483648, %v610_v14  ;;  %vm616_vm7 = vweird.f32 %v610_v14  ;;  %v620_v21 = vand.u32 2147483647, %v610_v14 }
 0x9d3   :  { %v634_v58 = vmul.f32 %v4544_v51, %v633_v49 }
 0x9d4   :  { %v623_v23 = vor.u32 1.1754944e-38, %v622_v20  ;;  %vm621_vm10 = vcmp.eq.f32.partialorder %v620_v21, 8.507059e+37 }
 0x9d5   :  { %v635_v59 = vadd.f32 %v4544_v51, %v634_v58 }
 0x9d7   :  { %v639_v62 = vsel %vm638_vm4, %v4544_v51, %v635_v59 }
 0x9d8   :  { %v644_v10 = vsel %vm641_vm5, %v643_v63, %v639_v62  ;;  %v4548_v15 = vpop.eup %4547 }
 0x9d9   :  { %v612_v16 = vmul.f32 %v4548_v15, %v610_v14  ;;  %vm617_vm6 = vweird.f32 %v4548_v15  ;;  %v664_v27 = vmul.f32 %v644_v10, %v5138_v40 }
 0x9da   :  { %vm618_vm9 = vmor %vm616_vm7, %vm617_vm6 }
 0x9db   :  { %v613_v17 = vsub.f32 1.0, %v612_v16 }
 0x9dd   :  { %v614_v18 = vmul.f32 %v4548_v15, %v613_v17 }
 0x9df   :  { %v615_v19 = vadd.f32 %v4548_v15, %v614_v18 }
 0x9e1   :  { %v619_v22 = vsel %vm618_vm9, %v4548_v15, %v615_v19 }
 0x9e2   :  { %v624_v25 = vsel %vm621_vm10, %v623_v23, %v619_v22 }
 0x9e3   :  { %v647_v31 = vmul.f32 %v624_v25, %v5142_v45 }
 0x9ff   :  { %v667_v9 = vpop.permute.xlu2 %666 }
 0xa00   :  { %v669_v11 = vmul.f32 %v667_v9, %v644_v10 }
 0xa02   :  { %671 = vrot.lane.b32.xlu0 %v669_v11, %s4909_s18 }
 0xa37   :  { %v650_v24 = vpop.permute.xlu1 %649 }
 0xa38   :  { %v652_v26 = vmul.f32 %v650_v24, %v624_v25 }
 0xa3a   :  { %654 = vrot.lane.b32.xlu0 %v652_v26, %s4909_s18 }
 0xa74   :  { %v672_v28 = vpop.permute.xlu0 %671 }
 0xa75   :  { %v5172_v29 = vadd.f32 %v672_v28, %v664_v27 }
 0xa77   :  { %4549 = vtanh.f32 %v5172_v29 }
 0xa7d   :  { %v4550_v30 = vpop.eup %4549 }
 0xa7e   :  { %677 = vrot.lane.b32.xlu2 %v4550_v30, %s4908_s17  ;;  %v847_v30 = vld [vmem:[%s6330_s1 + $0x10] sm:$0xff] }
 0xaac   :  { %v655_v32 = vpop.permute.xlu0 %654 }
 0xaad   :  { %v5177_v33 = vadd.f32 %v655_v32, %v647_v31 }
 0xaaf   :  { %4551 = vtanh.f32 %v5177_v33 }
 0xab5   :  { %v4552_v34 = vpop.eup %4551 }
 0xab6   :  { %660 = vrot.lane.b32.xlu2 %v4552_v34, %s4908_s17  ;;  %v823_v34 = vld [vmem:[%s6329_s0 + $0x30] sm:$0xff] }
 0xad8   :  { %v678_v35 = vpop.permute.xlu2 %677 }
 0xad9   :  { %v680_v36 = vmul.f32 %v678_v35, %v644_v10 }
 0xadb   :  { %687 = vrot.lane.b32.xlu1 %v680_v36, %s4909_s18 }
 0xb10   :  { %v661_v37 = vpop.permute.xlu2 %660 }
 0xb11   :  { %v663_v38 = vmul.f32 %v661_v37, %v624_v25 }
 0xb13   :  { %682 = vrot.lane.b32.xlu0 %v663_v38, %s4909_s18 }
 0xb4d   :  { %v688_v39 = vpop.permute.xlu1 %687 }
 0xb4e   :  { %690 = vst.msk [vmem:[#allocation5 + $0x20] sm:$0xff] %vm32_vm8, %v688_v39  ;;  %4264 = vmatmul.msk.f32.vlgmr.msra.gmra.mxu3 %vm32_vm8, %v688_v39 }
 0xb85   :  { %v683_v40 = vpop.permute.xlu0 %682 }
 0xb86   :  { %685 = vst.msk [vmem:[#allocation4 + $0x20] sm:$0xff] %vm32_vm8, %v683_v40  ;;  %4263 = vmatmul.msk.f32.vlgmr.msra.gmra.mxu2 %vm32_vm8, %v683_v40 }
 0xbd1   :  { %v735_v42 = vpop.f32.mrf.mxu3 }
 0xbd2   :  { %v738_v44 = vadd.f32 %v735_v42, %v715_v41 }
 0xbd4   :  { %4553 = vtanh.f32 %v738_v44  ;;  %v4266_v46 = vmul.f32 -1.442695, %v738_v44 }
 0xbda   :  { %v4554_v45 = vpop.eup %4553 }
 0xbdb   :  { %798 = vrot.lane.b32.xlu1 %v4554_v45, %s4908_s17 }
 0xc09   :  { %v711_v50 = vpop.f32.mrf.mxu2 }
 0xc0a   :  { %v714_v43 = vadd.f32 %v711_v50, %v691_v47 }
 0xc0c   :  { %4555 = vtanh.f32 %v714_v43  ;;  %v4265_v57 = vmul.f32 -1.442695, %v714_v43 }
 0xc0d   :  { %4557 = vpow2.f32 %v4266_v46 }
 0xc12   :  { %v4556_v52 = vpop.eup %4555 }
 0xc13   :  { %781 = vrot.lane.b32.xlu0 %v4556_v52, %s4908_s17  ;;  %v4558_v48 = vpop.eup %4557 }
 0xc14   :  { %v762_v54 = vadd.f32 1.0, %v4558_v48 }
 0xc16   :  { %4559 = vrcp.f32 %v762_v54  ;;  %v774_v53 = vand.u32 2147483648, %v762_v54  ;;  %vm768_vm12 = vweird.f32 %v762_v54  ;;  %v772_v2 = vand.u32 2147483647, %v762_v54 }
 0xc17   :  { %4561 = vpow2.f32 %v4265_v57 }
 0xc18   :  { %v775_v6 = vor.u32 1.1754944e-38, %v774_v53  ;;  %vm773_vm14 = vcmp.eq.f32.partialorder %v772_v2, 8.507059e+37 }
 0xc1c   :  { %v4560_v1 = vpop.eup %4559 }
 0xc1d   :  { %v764_v3 = vmul.f32 %v4560_v1, %v762_v54  ;;  %vm769_vm11 = vweird.f32 %v4560_v1  ;;  %v4562_v49 = vpop.eup %4561 }
 0xc1e   :  { %vm770_vm13 = vmor %vm768_vm12, %vm769_vm11  ;;  %v742_v58 = vadd.f32 1.0, %v4562_v49 }
 0xc1f   :  { %v765_v5 = vsub.f32 1.0, %v764_v3 }
 0xc20   :  { %4563 = vrcp.f32 %v742_v58  ;;  %v754_v9 = vand.u32 2147483648, %v742_v58  ;;  %vm748_vm0 = vweird.f32 %v742_v58  ;;  %v752_v10 = vand.u32 2147483647, %v742_v58 }
 0xc21   :  { %v766_v7 = vmul.f32 %v4560_v1, %v765_v5 }
 0xc22   :  { %v755_v12 = vor.u32 1.1754944e-38, %v754_v9  ;;  %vm753_vm2 = vcmp.eq.f32.partialorder %v752_v10, 8.507059e+37 }
 0xc23   :  { %v767_v0 = vadd.f32 %v4560_v1, %v766_v7 }
 0xc25   :  { %v771_v4 = vsel %vm770_vm13, %v4560_v1, %v767_v0 }
 0xc26   :  { %v776_v56 = vsel %vm773_vm14, %v775_v6, %v771_v4  ;;  %v4564_v59 = vpop.eup %4563 }
 0xc27   :  { %v744_v60 = vmul.f32 %v4564_v59, %v742_v58  ;;  %vm749_vm15 = vweird.f32 %v4564_v59  ;;  %v796_v16 = vmul.f32 %v776_v56, %v5172_v29 }
 0xc28   :  { %vm750_vm1 = vmor %vm748_vm0, %vm749_vm15 }
 0xc29   :  { %v745_v61 = vsub.f32 1.0, %v744_v60 }
 0xc2b   :  { %v746_v62 = vmul.f32 %v4564_v59, %v745_v61 }
 0xc2d   :  { %v747_v63 = vadd.f32 %v4564_v59, %v746_v62 }
 0xc2f   :  { %v751_v11 = vsel %vm750_vm1, %v4564_v59, %v747_v63 }
 0xc30   :  { %v756_v14 = vsel %vm753_vm2, %v755_v12, %v751_v11 }
 0xc31   :  { %v779_v20 = vmul.f32 %v756_v14, %v5177_v33 }
 0xc4d   :  { %v799_v55 = vpop.permute.xlu1 %798 }
 0xc4e   :  { %v801_v51 = vmul.f32 %v799_v55, %v776_v56 }
 0xc50   :  { %803 = vrot.lane.b32.xlu2 %v801_v51, %s4909_s18 }
 0xc85   :  { %v782_v13 = vpop.permute.xlu0 %781 }
 0xc86   :  { %v784_v15 = vmul.f32 %v782_v13, %v756_v14 }
 0xc88   :  { %786 = vrot.lane.b32.xlu2 %v784_v15, %s4909_s18 }
 0xcaa   :  { %v804_v17 = vpop.permute.xlu2 %803 }
 0xcab   :  { %v5198_v18 = vadd.f32 %v804_v17, %v796_v16  ;;  %v1240_v17 = vld [vmem:[%s6331_s3 + $0x18] sm:$0xff] }
 0xcac   :  { %1356 = vmatpush.msra.mxu3 %v1240_v17 }
 0xcad   :  { %4565 = vtanh.f32 %v5198_v18 }
 0xcb3   :  { %v4566_v19 = vpop.eup %4565 }
 0xcb4   :  { %809 = vrot.lane.b32.xlu1 %v4566_v19, %s4908_s17  ;;  %v1238_v19 = vld [vmem:[%s6331_s3 + $0x8] sm:$0xff] }
 0xce2   :  { %v787_v21 = vpop.permute.xlu2 %786 }
 0xce3   :  { %v5203_v22 = vadd.f32 %v787_v21, %v779_v20  ;;  %v1237_v20 = vld [vmem:[%s6331_s3] sm:$0xff] }
 0xce5   :  { %4567 = vtanh.f32 %v5203_v22 }
 0xceb   :  { %v4568_v23 = vpop.eup %4567 }
 0xcec   :  { %792 = vrot.lane.b32.xlu1 %v4568_v23, %s4908_s17  ;;  %v5253_v23 = vld [vmem:[#allocation4 + $0x8] sm:$0xff] }
 0xd26   :  { %v810_v24 = vpop.permute.xlu1 %809 }
 0xd27   :  { %v812_v25 = vmul.f32 %v810_v24, %v776_v56  ;;  %v5257_v24 = vld [vmem:[#allocation4 + $0x10] sm:$0xff] }
 0xd29   :  { %819 = vrot.lane.b32.xlu0 %v812_v25, %s4909_s18 }
 0xd5e   :  { %v793_v26 = vpop.permute.xlu1 %792 }
 0xd5f   :  { %v795_v27 = vmul.f32 %v793_v26, %v756_v14  ;;  %v5261_v26 = vld [vmem:[#allocation4 + $0x18] sm:$0xff] }
 0xd61   :  { %814 = vrot.lane.b32.xlu2 %v795_v27, %s4909_s18  ;;  %v5267_v27 = vld [vmem:[#allocation4 + $0x20] sm:$0xff] }
 0xd9b   :  { %v820_v28 = vpop.permute.xlu0 %819 }
 0xd9c   :  { %822 = vst.msk [vmem:[#allocation5 + $0x18] sm:$0xff] %vm32_vm8, %v820_v28  ;;  %4268 = vmatmul.msk.f32.vlgmr.msrb.gmra.mxu1 %vm32_vm8, %v820_v28 }
 0xdbb   :  { %v815_v29 = vpop.permute.xlu2 %814 }
 0xdbc   :  { %817 = vst.msk [vmem:[#allocation4 + $0x28] sm:$0xff] %vm32_vm8, %v815_v29  ;;  %4267 = vmatmul.msk.f32.vlgmr.msrb.gmra.mxu0 %vm32_vm8, %v815_v29 }
 0xdc3   :  { %v5271_v28 = vld [vmem:[#allocation4 + $0x28] sm:$0xff] }
 0xe19   :  { %v867_v31 = vpop.f32.mrf.mxu1 }
 0xe1a   :  { %v870_v32 = vadd.f32 %v867_v31, %v847_v30  ;;  %v979_v30 = vld [vmem:[%s6330_s1 + $0x8] sm:$0xff] }
 0xe1c   :  { %4569 = vtanh.f32 %v870_v32  ;;  %v4270_v38 = vmul.f32 -1.442695, %v870_v32 }
 0xe22   :  { %v4570_v33 = vpop.eup %4569 }
 0xe23   :  { %930 = vrot.lane.b32.xlu0 %v4570_v33, %s4908_s17 }
 0xe39   :  { %v843_v35 = vpop.f32.mrf.mxu0 }
 0xe3a   :  { %v846_v36 = vadd.f32 %v843_v35, %v823_v34  ;;  %v955_v34 = vld [vmem:[%s6329_s0 + $0x38] sm:$0xff] }
 0xe3c   :  { %4571 = vtanh.f32 %v846_v36  ;;  %v4269_v39 = vmul.f32 -1.442695, %v846_v36 }
 0xe3d   :  { %4573 = vpow2.f32 %v4270_v38 }
 0xe3e   :  { %4575 = vpow2.f32 %v4269_v39 }
 0xe42   :  { %v4572_v37 = vpop.eup %4571 }
 0xe43   :  { %913 = vrot.lane.b32.xlu2 %v4572_v37, %s4908_s17  ;;  %v4574_v40 = vpop.eup %4573 }
 0xe44   :  { %v894_v41 = vadd.f32 1.0, %v4574_v40  ;;  %v4576_v42 = vpop.eup %4575 }
 0xe45   :  { %v874_v44 = vadd.f32 1.0, %v4576_v42 }
 0xe46   :  { %4577 = vrcp.f32 %v894_v41  ;;  %v906_v1 = vand.u32 2147483648, %v894_v41  ;;  %vm900_vm4 = vweird.f32 %v894_v41  ;;  %v904_v3 = vand.u32 2147483647, %v894_v41 }
 0xe47   :  { %4579 = vrcp.f32 %v874_v44  ;;  %v886_v55 = vand.u32 2147483648, %v874_v44  ;;  %vm880_vm9 = vweird.f32 %v874_v44  ;;  %v884_v56 = vand.u32 2147483647, %v874_v44 }
 0xe48   :  { %v907_v0 = vor.u32 1.1754944e-38, %v906_v1  ;;  %vm905_vm6 = vcmp.eq.f32.partialorder %v904_v3, 8.507059e+37 }
 0xe49   :  { %v887_v57 = vor.u32 1.1754944e-38, %v886_v55  ;;  %vm885_vm11 = vcmp.eq.f32.partialorder %v884_v56, 8.507059e+37 }
 0xe4c   :  { %v4578_v45 = vpop.eup %4577 }
 0xe4d   :  { %v896_v47 = vmul.f32 %v4578_v45, %v894_v41  ;;  %v4580_v43 = vpop.eup %4579  ;;  %vm901_vm3 = vweird.f32 %v4578_v45 }
 0xe4e   :  { %v876_v46 = vmul.f32 %v4580_v43, %v874_v44  ;;  %vm902_vm5 = vmor %vm900_vm4, %vm901_vm3  ;;  %vm881_vm7 = vweird.f32 %v4580_v43 }
 0xe4f   :  { %v897_v50 = vsub.f32 1.0, %v896_v47  ;;  %vm882_vm10 = vmor %vm880_vm9, %vm881_vm7 }
 0xe50   :  { %v877_v54 = vsub.f32 1.0, %v876_v46 }
 0xe51   :  { %v898_v52 = vmul.f32 %v4578_v45, %v897_v50 }
 0xe52   :  { %v878_v7 = vmul.f32 %v4580_v43, %v877_v54 }
 0xe53   :  { %v899_v48 = vadd.f32 %v4578_v45, %v898_v52 }
 0xe54   :  { %v879_v6 = vadd.f32 %v4580_v43, %v878_v7 }
 0xe55   :  { %v903_v5 = vsel %vm902_vm5, %v4578_v45, %v899_v48 }
 0xe56   :  { %v908_v2 = vsel %vm905_vm6, %v907_v0, %v903_v5  ;;  %v883_v51 = vsel %vm882_vm10, %v4580_v43, %v879_v6 }
 0xe57   :  { %v888_v58 = vsel %vm885_vm11, %v887_v57, %v883_v51  ;;  %v928_v60 = vmul.f32 %v908_v2, %v5198_v18  ;;  %v1239_v18 = vld [vmem:[%s6331_s3 + $0x10] sm:$0xff] }
 0xe58   :  { %v911_v63 = vmul.f32 %v888_v58, %v5203_v22  ;;  %1357 = vmatpush.msra.mxu3 %v1239_v18  ;;  %v5249_v22 = vld [vmem:[#allocation4] sm:$0xff]  ;;  %v4303_v18 = vld [vmem:[%s6331_s3 + $0x50] sm:$0xff] }
 0xe5a   :  { %1358 = vmatpush.msra.mxu3 %v1238_v19  ;;  %v4302_v19 = vld [vmem:[%s6331_s3 + $0x48] sm:$0xff] }
 0xe5c   :  { %1359 = vmatpush.msra.mxu3 %v1237_v20  ;;  %v4301_v20 = vld [vmem:[%s6331_s3 + $0x40] sm:$0xff] }
 0xe95   :  { %v931_v53 = vpop.permute.xlu0 %930 }
 0xe96   :  { %v933_v4 = vmul.f32 %v931_v53, %v908_v2 }
 0xe98   :  { %935 = vrot.lane.b32.xlu1 %v933_v4, %s4909_s18 }
 0xe9d   :  { %v914_v49 = vpop.permute.xlu2 %913 }
 0xe9e   :  { %v916_v59 = vmul.f32 %v914_v49, %v888_v58 }
 0xea0   :  { %918 = vrot.lane.b32.xlu1 %v916_v59, %s4909_s18 }
 0xf0a   :  { %v936_v61 = vpop.permute.xlu1 %935 }
 0xf0b   :  { %v5224_v62 = vadd.f32 %v936_v61, %v928_v60 }
 0xf0d   :  { %4581 = vtanh.f32 %v5224_v62 }
 0xf12   :  { %v919_v9 = vpop.permute.xlu1 %918 }
 0xf13   :  { %v4582_v10 = vpop.eup %4581  ;;  %v5228_v11 = vadd.f32 %v919_v9, %v911_v63 }
 0xf14   :  { %941 = vrot.lane.b32.xlu0 %v4582_v10, %s4908_s17 }
 0xf15   :  { %4583 = vtanh.f32 %v5228_v11 }
 0xf1b   :  { %v4584_v12 = vpop.eup %4583 }
 0xf1c   :  { %924 = vrot.lane.b32.xlu0 %v4584_v12, %s4908_s17 }
 0xf86   :  { %v942_v13 = vpop.permute.xlu0 %941 }
 0xf87   :  { %v944_v14 = vmul.f32 %v942_v13, %v908_v2 }
 0xf89   :  { %951 = vrot.lane.b32.xlu2 %v944_v14, %s4909_s18 }
 0xf8e   :  { %v925_v15 = vpop.permute.xlu0 %924 }
 0xf8f   :  { %v927_v16 = vmul.f32 %v925_v15, %v888_v58 }
 0xf91   :  { %946 = vrot.lane.b32.xlu1 %v927_v16, %s4909_s18 }
 0xfe3   :  { %v952_v21 = vpop.permute.xlu2 %951 }
 0xfe4   :  { %954 = vst.msk [vmem:[#allocation5 + $0x10] sm:$0xff] %vm32_vm8, %v952_v21  ;;  %4272 = vmatmul.msk.f32.vlgmr.msrb.gmra.mxu3 %vm32_vm8, %v952_v21 }
 0xfec   :  { %4292 = vmatmul.msk.f32.vlgmr.msra.gmra.mxu3 %vm32_vm8, %v5249_v22 }
 0xff4   :  { %4293 = vmatmul.msk.f32.gmra.mxu3 %vm32_vm8, %v5253_v23 }
 0xffc   :  { %4294 = vmatmul.msk.f32.gmra.mxu3 %vm32_vm8, %v5257_v24 }
0x1003   :  { %v947_v25 = vpop.permute.xlu1 %946 }
0x1004   :  { %949 = vst.msk [vmem:[#allocation4 + $0x30] sm:$0xff] %vm32_vm8, %v947_v25  ;;  %4271 = vmatmul.msk.f32.vlgmr.msrb.gmra.mxu2 %vm32_vm8, %v947_v25  ;;  %4295 = vmatmul.msk.f32.gmra.mxu3 %vm32_vm8, %v5261_v26 }
0x100b   :  { %v5275_v29 = vld [vmem:[#allocation4 + $0x30] sm:$0xff] }
0x100c   :  { %4296 = vmatmul.msk.f32.gmra.mxu3 %vm32_vm8, %v5267_v27 }
0x1014   :  { %4297 = vmatmul.msk.f32.gmra.mxu3 %vm32_vm8, %v5271_v28 }
0x101c   :  { %4298 = vmatmul.msk.f32.gmra.mxu3 %vm32_vm8, %v5275_v29 }
0x1067   :  { %v999_v31 = vpop.f32.mrf.mxu3 }
0x1068   :  { %v1002_v32 = vadd.f32 %v999_v31, %v979_v30 }
0x106a   :  { %4585 = vtanh.f32 %v1002_v32  ;;  %v4274_v38 = vmul.f32 -1.442695, %v1002_v32 }
0x1070   :  { %v4586_v33 = vpop.eup %4585 }
0x1071   :  { %1062 = vrot.lane.b32.xlu2 %v4586_v33, %s4908_s17 }
0x1087   :  { %v975_v35 = vpop.f32.mrf.mxu2 }
0x1088   :  { %v978_v36 = vadd.f32 %v975_v35, %v955_v34 }
0x108a   :  { %4587 = vtanh.f32 %v978_v36  ;;  %v4273_v3 = vmul.f32 -1.442695, %v978_v36 }
0x108b   :  { %4589 = vpow2.f32 %v4274_v38 }
0x1090   :  { %v4588_v37 = vpop.eup %4587 }
0x1091   :  { %1045 = vrot.lane.b32.xlu1 %v4588_v37, %s4908_s17  ;;  %v4590_v39 = vpop.eup %4589 }
0x1092   :  { %v1026_v40 = vadd.f32 1.0, %v4590_v39 }
0x1094   :  { %4591 = vrcp.f32 %v1026_v40  ;;  %v1038_v50 = vand.u32 2147483648, %v1026_v40  ;;  %vm1032_vm13 = vweird.f32 %v1026_v40  ;;  %v1036_v43 = vand.u32 2147483647, %v1026_v40 }
0x1095   :  { %4593 = vpow2.f32 %v4273_v3 }
0x1096   :  { %v1039_v46 = vor.u32 1.1754944e-38, %v1038_v50  ;;  %vm1037_vm15 = vcmp.eq.f32.partialorder %v1036_v43, 8.507059e+37 }
0x109a   :  { %v4592_v41 = vpop.eup %4591 }
0x109b   :  { %v1028_v42 = vmul.f32 %v4592_v41, %v1026_v40  ;;  %vm1033_vm12 = vweird.f32 %v4592_v41  ;;  %v4594_v5 = vpop.eup %4593 }
0x109c   :  { %vm1034_vm14 = vmor %vm1032_vm13, %vm1033_vm12  ;;  %v1006_v7 = vadd.f32 1.0, %v4594_v5 }
0x109d   :  { %v1029_v44 = vsub.f32 1.0, %v1028_v42 }
0x109e   :  { %4595 = vrcp.f32 %v1006_v7  ;;  %v1018_v55 = vand.u32 2147483648, %v1006_v7  ;;  %vm1012_vm1 = vweird.f32 %v1006_v7  ;;  %v1016_v56 = vand.u32 2147483647, %v1006_v7 }
0x109f   :  { %v1030_v45 = vmul.f32 %v4592_v41, %v1029_v44 }
0x10a0   :  { %v1019_v57 = vor.u32 1.1754944e-38, %v1018_v55  ;;  %vm1017_vm3 = vcmp.eq.f32.partialorder %v1016_v56, 8.507059e+37 }
0x10a1   :  { %v1031_v47 = vadd.f32 %v4592_v41, %v1030_v45 }
0x10a3   :  { %v1035_v52 = vsel %vm1034_vm14, %v4592_v41, %v1031_v47 }
0x10a4   :  { %v1040_v54 = vsel %vm1037_vm15, %v1039_v46, %v1035_v52  ;;  %v4596_v0 = vpop.eup %4595 }
0x10a5   :  { %v1008_v53 = vmul.f32 %v4596_v0, %v1006_v7  ;;  %vm1013_vm0 = vweird.f32 %v4596_v0  ;;  %v1060_v60 = vmul.f32 %v1040_v54, %v5224_v62 }
0x10a6   :  { %vm1014_vm2 = vmor %vm1012_vm1, %vm1013_vm0 }
0x10a7   :  { %v1009_v2 = vsub.f32 1.0, %v1008_v53 }
0x10a9   :  { %v1010_v4 = vmul.f32 %v4596_v0, %v1009_v2 }
0x10ab   :  { %v1011_v6 = vadd.f32 %v4596_v0, %v1010_v4 }
0x10ad   :  { %v1015_v51 = vsel %vm1014_vm2, %v4596_v0, %v1011_v6 }
0x10ae   :  { %v1020_v58 = vsel %vm1017_vm3, %v1019_v57, %v1015_v51 }
0x10af   :  { %v1043_v10 = vmul.f32 %v1020_v58, %v5228_v11  ;;  %v4304_v11 = vld [vmem:[%s6331_s3 + $0x58] sm:$0xff] }
0x10b0   :  { %1476 = vmatpush.msrb.mxu1 %v4304_v11  ;;  %v4280_v11 = vld [vmem:[%s6331_s3 + $0x28] sm:$0xff] }
0x10b2   :  { %1477 = vmatpush.msrb.mxu1 %v4303_v18  ;;  %v4305_v18 = vld [vmem:[%s6331_s3 + $0x60] sm:$0xff] }
0x10b4   :  { %1478 = vmatpush.msrb.mxu1 %v4302_v19  ;;  %v4279_v19 = vld [vmem:[%s6331_s3 + $0x20] sm:$0xff] }
0x10b6   :  { %1479 = vmatpush.msrb.mxu1 %v4301_v20  ;;  %v5383_v20 = vld [vmem:[%s6328_s2 + $0x70] sm:$0xff] }
0x10cb   :  { %v1063_v48 = vpop.permute.xlu2 %1062 }
0x10cc   :  { %v1065_v1 = vmul.f32 %v1063_v48, %v1040_v54 }
0x10ce   :  { %1067 = vrot.lane.b32.xlu0 %v1065_v1, %s4909_s18 }
0x1103   :  { %v1046_v49 = vpop.permute.xlu1 %1045 }
0x1104   :  { %v1048_v59 = vmul.f32 %v1046_v49, %v1020_v58 }
0x1106   :  { %1050 = vrot.lane.b32.xlu0 %v1048_v59, %s4909_s18 }
0x1140   :  { %v1068_v61 = vpop.permute.xlu0 %1067 }
0x1141   :  { %v5290_v63 = vadd.f32 %v1068_v61, %v1060_v60 }
0x1143   :  { %4597 = vtanh.f32 %v5290_v63 }
0x1149   :  { %v4598_v9 = vpop.eup %4597 }
0x114a   :  { %1073 = vrot.lane.b32.xlu2 %v4598_v9, %s4908_s17 }
0x1178   :  { %v1051_v12 = vpop.permute.xlu0 %1050 }
0x1179   :  { %v5295_v13 = vadd.f32 %v1051_v12, %v1043_v10 }
0x117b   :  { %4599 = vtanh.f32 %v5295_v13 }
0x1181   :  { %v4600_v14 = vpop.eup %4599 }
0x1182   :  { %1056 = vrot.lane.b32.xlu2 %v4600_v14, %s4908_s17  ;;  %v4308_v14 = vld [vmem:[%s6331_s3 + $0x78] sm:$0xff] }
0x1183   :  { %1432 = vmatpush.msrb.mxu0 %v4308_v14 }
0x11a4   :  { %v1074_v15 = vpop.permute.xlu2 %1073 }
0x11a5   :  { %v1076_v62 = vmul.f32 %v1074_v15, %v1040_v54  ;;  %v4282_v15 = vld [vmem:[%s6331_s3 + $0x38] sm:$0xff] }
0x11a6   :  { %1285 = vmatpush.msra.mxu2 %v4282_v15 }
0x11a7   :  { %1083 = vrot.lane.b32.xlu1 %v1076_v62, %s4909_s18  ;;  %v4307_v62 = vld [vmem:[%s6331_s3 + $0x70] sm:$0xff] }
0x11a8   :  { %1433 = vmatpush.msrb.mxu0 %v4307_v62 }
0x11dc   :  { %v1057_v16 = vpop.permute.xlu2 %1056 }
0x11dd   :  { %v1059_v17 = vmul.f32 %v1057_v16, %v1020_v58  ;;  %v4281_v16 = vld [vmem:[%s6331_s3 + $0x30] sm:$0xff] }
0x11de   :  { %1286 = vmatpush.msra.mxu2 %v4281_v16 }
0x11df   :  { %1078 = vrot.lane.b32.xlu0 %v1059_v17, %s4909_s18  ;;  %v4306_v17 = vld [vmem:[%s6331_s3 + $0x68] sm:$0xff] }
0x11e0   :  { %1434 = vmatpush.msrb.mxu0 %v4306_v17  ;;  %1287 = vmatpush.msra.mxu2 %v4280_v11 }
0x11e2   :  { %1435 = vmatpush.msrb.mxu0 %v4305_v18  ;;  %1288 = vmatpush.msra.mxu2 %v4279_v19 }
0x1219   :  { %v1084_v21 = vpop.permute.xlu1 %1083 }
0x121a   :  { %1086 = vst.msk [vmem:[#allocation5 + $0x8] sm:$0xff] %vm32_vm8, %v1084_v21  ;;  %4276 = vmatmul.msk.f32.vlgmr.msra.gmra.mxu1 %vm32_vm8, %v1084_v21 }
0x1222   :  { %4318 = vmatmul.msk.f32.vlgmr.msrb.gmra.mxu1 %vm32_vm8, %v5249_v22 }
0x122a   :  { %4319 = vmatmul.msk.f32.gmra.mxu1 %vm32_vm8, %v5253_v23  ;;  %v1111_v23 = vld [vmem:[%s6330_s1] sm:$0xff] }
0x1232   :  { %4320 = vmatmul.msk.f32.gmra.mxu1 %vm32_vm8, %v5257_v24 }
0x123a   :  { %4321 = vmatmul.msk.f32.gmra.mxu1 %vm32_vm8, %v5261_v26 }
0x1242   :  { %4322 = vmatmul.msk.f32.gmra.mxu1 %vm32_vm8, %v5267_v27 }
0x124a   :  { %4323 = vmatmul.msk.f32.gmra.mxu1 %vm32_vm8, %v5271_v28  ;;  %v1087_v28 = vld [vmem:[%s6329_s0 + $0x40] sm:$0xff] }
0x1251   :  { %v1079_v25 = vpop.permute.xlu0 %1078 }
0x1252   :  { %1081 = vst.msk [vmem:[#allocation4 + $0x38] sm:$0xff] %vm32_vm8, %v1079_v25  ;;  %4275 = vmatmul.msk.f32.vlgmr.msra.gmra.mxu0 %vm32_vm8, %v1079_v25  ;;  %4324 = vmatmul.msk.f32.gmra.mxu1 %vm32_vm8, %v5275_v29  ;;  %v5391_v25 = vld [vmem:[%s6328_s2 + $0x68] sm:$0xff] }
0x1259   :  { %v1226_v22 = vld [vmem:[#allocation4 + $0x38] sm:$0xff] }
0x125a   :  { %4299 = vmatmul.msk.f32.gmra.mxu3 %vm32_vm8, %v1226_v22  ;;  %4325 = vmatmul.msk.f32.gmra.mxu1 %vm32_vm8, %v1226_v22 }
0x1297   :  { %v1131_v24 = vpop.f32.mrf.mxu1 }
0x1298   :  { %v1134_v26 = vadd.f32 %v1131_v24, %v1111_v23  ;;  %v1229_v23 = vld [vmem:[#allocation5 + $0x8] sm:$0xff]  ;;  %v5402_v24 = vld [vmem:[%s6328_s2 + $0x60] sm:$0xff] }
0x129a   :  { %4601 = vtanh.f32 %v1134_v26  ;;  %v4278_v32 = vmul.f32 -1.442695, %v1134_v26  ;;  %v1230_v26 = vld [vmem:[#allocation5 + $0x10] sm:$0xff] }
0x12a0   :  { %v4602_v27 = vpop.eup %4601 }
0x12a1   :  { %1194 = vrot.lane.b32.xlu1 %v4602_v27, %s4908_s17  ;;  %v5417_v27 = vld [vmem:[%s6328_s2 + $0x58] sm:$0xff] }
0x12a2   :  { %1554 = vmatpush.msrb.mxu2 %v5417_v27  ;;  %1684 = vmatpush.msra.mxu0 %v5417_v27 }
0x12cf   :  { %v1107_v29 = vpop.f32.mrf.mxu0 }
0x12d0   :  { %v1110_v30 = vadd.f32 %v1107_v29, %v1087_v28  ;;  %v1231_v29 = vld [vmem:[#allocation5 + $0x18] sm:$0xff] }
0x12d2   :  { %4603 = vtanh.f32 %v1110_v30  ;;  %v4277_v43 = vmul.f32 -1.442695, %v1110_v30  ;;  %v1232_v30 = vld [vmem:[#allocation5 + $0x20] sm:$0xff] }
0x12d3   :  { %4605 = vpow2.f32 %v4278_v32  ;;  %v5433_v32 = vld [vmem:[%s6328_s2 + $0x50] sm:$0xff] }
0x12d4   :  { %1555 = vmatpush.msrb.mxu2 %v5433_v32  ;;  %1685 = vmatpush.msra.mxu0 %v5433_v32 }
0x12d8   :  { %v4604_v31 = vpop.eup %4603 }
0x12d9   :  { %1177 = vrot.lane.b32.xlu0 %v4604_v31, %s4908_s17  ;;  %v4606_v33 = vpop.eup %4605 }
0x12da   :  { %v1158_v34 = vadd.f32 1.0, %v4606_v33  ;;  %v5438_v33 = vld [vmem:[%s6328_s2 + $0x48] sm:$0xff] }
0x12db   :  { %1556 = vmatpush.msrb.mxu2 %v5438_v33  ;;  %1686 = vmatpush.msra.mxu0 %v5438_v33 }
0x12dc   :  { %4607 = vrcp.f32 %v1158_v34  ;;  %v1170_v40 = vand.u32 2147483648, %v1158_v34  ;;  %vm1164_vm5 = vweird.f32 %v1158_v34  ;;  %v1168_v41 = vand.u32 2147483647, %v1158_v34 }
0x12dd   :  { %4609 = vpow2.f32 %v4277_v43 }
0x12de   :  { %v1171_v44 = vor.u32 1.1754944e-38, %v1170_v40  ;;  %vm1169_vm7 = vcmp.eq.f32.partialorder %v1168_v41, 8.507059e+37  ;;  %v5477_v40 = vpop.f32.mrf.mxu1 }
0x12e2   :  { %v4608_v35 = vpop.eup %4607 }
0x12e3   :  { %v1160_v36 = vmul.f32 %v4608_v35, %v1158_v34  ;;  %vm1165_vm4 = vweird.f32 %v4608_v35  ;;  %v4610_v52 = vpop.eup %4609  ;;  %v5445_v34 = vld [vmem:[%s6328_s2 + $0x40] sm:$0xff] }
0x12e4   :  { %vm1166_vm6 = vmor %vm1164_vm5, %vm1165_vm4  ;;  %v1138_v46 = vadd.f32 1.0, %v4610_v52  ;;  %1557 = vmatpush.msrb.mxu2 %v5445_v34  ;;  %1687 = vmatpush.msra.mxu0 %v5445_v34 }
0x12e5   :  { %v1161_v37 = vsub.f32 1.0, %v1160_v36  ;;  %v1234_v36 = vld [vmem:[#allocation5 + $0x30] sm:$0xff] }
0x12e6   :  { %4611 = vrcp.f32 %v1138_v46  ;;  %v1150_v7 = vand.u32 2147483648, %v1138_v46  ;;  %vm1144_vm10 = vweird.f32 %v1138_v46  ;;  %v1148_v0 = vand.u32 2147483647, %v1138_v46 }
0x12e7   :  { %v1162_v38 = vmul.f32 %v4608_v35, %v1161_v37  ;;  %v1235_v37 = vld [vmem:[#allocation5 + $0x38] sm:$0xff] }
0x12e8   :  { %v1151_v2 = vor.u32 1.1754944e-38, %v1150_v7  ;;  %vm1149_vm12 = vcmp.eq.f32.partialorder %v1148_v0, 8.507059e+37 }
0x12e9   :  { %v1163_v39 = vadd.f32 %v4608_v35, %v1162_v38  ;;  %v1236_v38 = vld [vmem:[#allocation5 + $0x40] sm:$0xff] }
0x12eb   :  { %v1167_v42 = vsel %vm1166_vm6, %v4608_v35, %v1163_v39  ;;  %v1233_v35 = vld [vmem:[#allocation5 + $0x28] sm:$0xff]  ;;  %v1361_v39 = vpop.f32.mrf.mxu3 }
0x12ec   :  { %v1172_v47 = vsel %vm1169_vm7, %v1171_v44, %v1167_v42  ;;  %v4612_v48 = vpop.eup %4611  ;;  %v5481_v42 = vpop.f32.mrf.mxu1 }
0x12ed   :  { %v1140_v54 = vmul.f32 %v4612_v48, %v1138_v46  ;;  %vm1145_vm9 = vweird.f32 %v4612_v48  ;;  %v1192_v56 = vmul.f32 %v1172_v47, %v5290_v63  ;;  %v5351_v63 = vld [vmem:[%s6328_s2 + $0x78] sm:$0xff] }
0x12ee   :  { %vm1146_vm11 = vmor %vm1144_vm10, %vm1145_vm9  ;;  %1576 = vmatpush.msrb.mxu3 %v5351_v63  ;;  %1708 = vmatpush.msra.mxu1 %v5351_v63 }
0x12ef   :  { %v1141_v1 = vsub.f32 1.0, %v1140_v54 }
0x12f0   :  { %1577 = vmatpush.msrb.mxu3 %v5383_v20  ;;  %1709 = vmatpush.msra.mxu1 %v5383_v20 }
0x12f1   :  { %v1142_v3 = vmul.f32 %v4612_v48, %v1141_v1 }
0x12f2   :  { %1578 = vmatpush.msrb.mxu3 %v5391_v25  ;;  %1710 = vmatpush.msra.mxu1 %v5391_v25 }
0x12f3   :  { %v1143_v5 = vadd.f32 %v4612_v48, %v1142_v3  ;;  %v5479_v41 = vpop.f32.mrf.mxu3 }
0x12f4   :  { %1579 = vmatpush.msrb.mxu3 %v5402_v24  ;;  %1711 = vmatpush.msra.mxu1 %v5402_v24 }
0x12f5   :  { %v1147_v53 = vsel %vm1146_vm11, %v4612_v48, %v1143_v5 }
0x12f6   :  { %v1152_v6 = vsel %vm1149_vm12, %v1151_v2, %v1147_v53  ;;  %1840 = vmatpush.msra.mxu3 %v5351_v63  ;;  %1972 = vmatpush.msrb.mxu1 %v5351_v63  ;;  %v5506_v2 = vld [vmem:[%s6332_s4] ss:$0 sm:$0xff] }
0x12f7   :  { %v1175_v58 = vmul.f32 %v1152_v6, %v5295_v13 }
0x12f8   :  { %1841 = vmatpush.msra.mxu3 %v5383_v20  ;;  %1973 = vmatpush.msrb.mxu1 %v5383_v20 }
0x12fa   :  { %1842 = vmatpush.msra.mxu3 %v5391_v25  ;;  %1974 = vmatpush.msrb.mxu1 %v5391_v25 }
0x12fc   :  { %1843 = vmatpush.msra.mxu3 %v5402_v24  ;;  %1975 = vmatpush.msrb.mxu1 %v5402_v24 }
0x1313   :  { %v1195_v45 = vpop.permute.xlu1 %1194 }
0x1314   :  { %v1197_v50 = vmul.f32 %v1195_v45, %v1172_v47  ;;  %v5485_v45 = vpop.f32.mrf.mxu3 }
0x1316   :  { %1199 = vrot.lane.b32.xlu2 %v1197_v50, %s4909_s18  ;;  %v5487_v50 = vpop.f32.mrf.mxu1 }
0x131c   :  { %v1370_v52 = vpop.f32.mrf.mxu3 }
0x131e   :  { %v5495_v54 = vpop.f32.mrf.mxu1 }
0x1324   :  { %v1373_v3 = vpop.f32.mrf.mxu3 }
0x1326   :  { %v5501_v7 = vpop.f32.mrf.mxu1 }
0x134b   :  { %v1178_v4 = vpop.permute.xlu0 %1177 }
0x134c   :  { %v1180_v55 = vmul.f32 %v1178_v4, %v1152_v6  ;;  %v1376_v4 = vpop.f32.mrf.mxu3 }
0x134e   :  { %1182 = vrot.lane.b32.xlu2 %v1180_v55, %s4909_s18 }
0x1370   :  { %v1200_v51 = vpop.permute.xlu2 %1199 }
0x1371   :  { %v1202_v57 = vadd.f32 %v1200_v51, %v1192_v56  ;;  %v5513_v56 = vpop.f32.mrf.mxu1 }
0x1373   :  { %4613 = vtanh.f32 %v1202_v57 }
0x1379   :  { %v4614_v49 = vpop.eup %4613 }
0x137a   :  { %1205 = vrot.lane.b32.xlu1 %v4614_v49, %s4908_s17 }
0x13a8   :  { %v1183_v59 = vpop.permute.xlu2 %1182 }
0x13a9   :  { %v1185_v60 = vadd.f32 %v1183_v59, %v1175_v58  ;;  %v1379_v59 = vpop.f32.mrf.mxu3 }
0x13ab   :  { %4615 = vtanh.f32 %v1185_v60 }
0x13b1   :  { %v4616_v61 = vpop.eup %4615 }
0x13b2   :  { %1188 = vrot.lane.b32.xlu1 %v4616_v61, %s4908_s17  ;;  %v5520_v61 = vpop.f32.mrf.mxu1 }
0x13ba   :  { %v1502_v62 = vpop.f32.mrf.mxu1 }
0x13ec   :  { %v1206_v9 = vpop.permute.xlu1 %1205 }
0x13ed   :  { %v1208_v10 = vmul.f32 %v1206_v9, %v1172_v47 }
0x13ef   :  { %1215 = vrot.lane.b32.xlu0 %v1208_v10, %s4909_s18 }
0x1424   :  { %v1189_v12 = vpop.permute.xlu1 %1188 }
0x1425   :  { %v1191_v13 = vmul.f32 %v1189_v12, %v1152_v6 }
0x1427   :  { %1210 = vrot.lane.b32.xlu2 %v1191_v13, %s4909_s18  ;;  %v1382_v13 = vpop.f32.mrf.mxu3 }
0x1461   :  { %v1216_v21 = vpop.permute.xlu0 %1215 }
0x1462   :  { %1218 = vst.msk [vmem:[#allocation5] sm:$0xff] %vm32_vm8, %v1216_v21 }
0x1469   :  { %v1228_v22 = vld [vmem:[#allocation5] sm:$0xff] }
0x146a   :  { %4283 = vmatmul.msk.f32.vlgmr.msra.gmra.mxu2 %vm32_vm8, %v1228_v22  ;;  %4309 = vmatmul.msk.f32.vlgmr.msrb.gmra.mxu0 %vm32_vm8, %v1228_v22 }
0x146b   :  { %1816 = vmatpush.msra.mxu2 %v5417_v27  ;;  %1948 = vmatpush.msrb.mxu0 %v5417_v27 }
0x146d   :  { %1817 = vmatpush.msra.mxu2 %v5433_v32  ;;  %1949 = vmatpush.msrb.mxu0 %v5433_v32 }
0x146f   :  { %1818 = vmatpush.msra.mxu2 %v5438_v33  ;;  %1950 = vmatpush.msrb.mxu0 %v5438_v33 }
0x1471   :  { %1819 = vmatpush.msra.mxu2 %v5445_v34  ;;  %1951 = vmatpush.msrb.mxu0 %v5445_v34 }
0x1472   :  { %4284 = vmatmul.msk.f32.gmra.mxu2 %vm32_vm8, %v1229_v23  ;;  %4310 = vmatmul.msk.f32.gmra.mxu0 %vm32_vm8, %v1229_v23 }
0x147a   :  { %4285 = vmatmul.msk.f32.gmra.mxu2 %vm32_vm8, %v1230_v26  ;;  %4311 = vmatmul.msk.f32.gmra.mxu0 %vm32_vm8, %v1230_v26 }
0x1481   :  { %v1211_v28 = vpop.permute.xlu2 %1210 }
0x1482   :  { %1213 = vst.msk [vmem:[#allocation4 + $0x40] sm:$0xff] %vm32_vm8, %v1211_v28  ;;  %4286 = vmatmul.msk.f32.gmra.mxu2 %vm32_vm8, %v1231_v29  ;;  %4312 = vmatmul.msk.f32.gmra.mxu0 %vm32_vm8, %v1231_v29  ;;  %v5538_v29 = vld [vmem:[%s6332_s4 + $0x1] ss:$0 sm:$0xff] }
0x1489   :  { %v1227_v31 = vld [vmem:[#allocation4 + $0x40] sm:$0xff] }
0x148a   :  { %4287 = vmatmul.msk.f32.gmra.mxu2 %vm32_vm8, %v1232_v30  ;;  %4300 = vmatmul.msk.f32.gmra.mxu3 %vm32_vm8, %v1227_v31 }
0x148b   :  { %4313 = vmatmul.msk.f32.gmra.mxu0 %vm32_vm8, %v1232_v30  ;;  %4326 = vmatmul.msk.f32.gmra.mxu1 %vm32_vm8, %v1227_v31 }
0x1492   :  { %4288 = vmatmul.msk.f32.gmra.mxu2 %vm32_vm8, %v1233_v35  ;;  %1580 = vmatmul.f32.vlgmr.msrb.gmra.mxu3 %v4907_v8 }
0x1493   :  { %4314 = vmatmul.msk.f32.gmra.mxu0 %vm32_vm8, %v1233_v35  ;;  %2104 = vmatpush.msrb.mxu3 %v5351_v63 }
0x1495   :  { %2105 = vmatpush.msrb.mxu3 %v5383_v20 }
0x1497   :  { %2106 = vmatpush.msrb.mxu3 %v5391_v25 }
0x1499   :  { %2107 = vmatpush.msrb.mxu3 %v5402_v24 }
0x149a   :  { %4289 = vmatmul.msk.f32.gmra.mxu2 %vm32_vm8, %v1234_v36 }
0x149b   :  { %4315 = vmatmul.msk.f32.gmra.mxu0 %vm32_vm8, %v1234_v36 }
0x14a2   :  { %4290 = vmatmul.msk.f32.gmra.mxu2 %vm32_vm8, %v1235_v37 }
0x14a3   :  { %4316 = vmatmul.msk.f32.gmra.mxu0 %vm32_vm8, %v1235_v37 }
0x14aa   :  { %4291 = vmatmul.msk.f32.gmra.mxu2 %vm32_vm8, %v1236_v38 }
0x14ab   :  { %4317 = vmatmul.msk.f32.gmra.mxu0 %vm32_vm8, %v1236_v38 }
0x14b2   :  { %1558 = vmatmul.f32.vlgmr.msrb.gmra.mxu2 %v4907_v8 }
0x14b3   :  { %2080 = vmatpush.msrb.mxu2 %v5417_v27 }
0x14b5   :  { %2081 = vmatpush.msrb.mxu2 %v5433_v32 }
0x14b7   :  { %2082 = vmatpush.msrb.mxu2 %v5438_v33 }
0x14b9   :  { %2083 = vmatpush.msrb.mxu2 %v5445_v34 }
0x14e7   :  { %v5483_v44 = vpop.f32.mrf.mxu0 }
0x14ed   :  { %v1290_v47 = vpop.f32.mrf.mxu2 }
0x14ee   :  { %v1362_v38 = vadd.f32 %v1361_v39, %v1290_v47 }
0x14ef   :  { %v5489_v43 = vpop.f32.mrf.mxu0 }
0x14f5   :  { %v5491_v46 = vpop.f32.mrf.mxu2 }
0x14f7   :  { %v5493_v48 = vpop.f32.mrf.mxu0 }
0x14fd   :  { %v5497_v1 = vpop.f32.mrf.mxu2 }
0x14ff   :  { %v5499_v5 = vpop.f32.mrf.mxu0 }
0x1505   :  { %v1299_v0 = vpop.f32.mrf.mxu2 }
0x1506   :  { %v1371_v53 = vadd.f32 %v1370_v52, %v1299_v0 }
0x1508   :  { %v5508_v6 = vpop.f32.mrf.mxu0  ;;  %v5511_v55 = vadd.f32 %v5506_v2, %v1371_v53  ;;  %v1505_v22 = vpop.f32.mrf.mxu1 }
0x150d   :  { %v1302_v51 = vpop.f32.mrf.mxu2  ;;  %v1385_v18 = vpop.f32.mrf.mxu3 }
0x150e   :  { %v1374_v57 = vadd.f32 %v1373_v3, %v1302_v51  ;;  %v1392_v3 = vadd.f32 %v5506_v2, %v1362_v38 }
0x1510   :  { %v5515_v49 = vpop.f32.mrf.mxu0  ;;  %v5518_v58 = vadd.f32 %v5506_v2, %v1374_v57 }
0x1515   :  { %v1305_v60 = vpop.f32.mrf.mxu2  ;;  %v1581_v30 = vpop.f32.mrf.mxu3 }
0x1516   :  { %v1377_v9 = vadd.f32 %v1376_v4, %v1305_v60 }
0x1518   :  { %v5522_v10 = vpop.f32.mrf.mxu0  ;;  %v5525_v12 = vadd.f32 %v5506_v2, %v1377_v9 }
0x151d   :  { %v1308_v14 = vpop.f32.mrf.mxu2 }
0x151e   :  { %v1380_v15 = vadd.f32 %v1379_v59, %v1308_v14 }
0x1520   :  { %v1458_v16 = vpop.f32.mrf.mxu0  ;;  %v5528_v17 = vadd.f32 %v5506_v2, %v1380_v15 }
0x1521   :  { %v5530_v11 = vadd.f32 %v1502_v62, %v1458_v16 }
0x1525   :  { %v1311_v19 = vpop.f32.mrf.mxu2 }
0x1526   :  { %v1383_v21 = vadd.f32 %v1382_v13, %v1311_v19 }
0x1528   :  { %v1461_v23 = vpop.f32.mrf.mxu0  ;;  %v5533_v26 = vadd.f32 %v5506_v2, %v1383_v21 }
0x1529   :  { %v1506_v28 = vadd.f32 %v1505_v22, %v1461_v23 }
0x152b   :  { %v1521_v31 = vadd.f32 %v5538_v29, %v1506_v28 }
0x152d   :  { %v1584_v35 = vadd.f32 %v1581_v30, %v1521_v31  ;;  %v1314_v36 = vpop.f32.mrf.mxu2 }
0x152e   :  { %v1386_v37 = vadd.f32 %v1385_v18, %v1314_v36 }
0x152f   :  { %4617 = vtanh.f32 %v1584_v35  ;;  %v4337_v57 = vmul.f32 -1.442695, %v1584_v35 }
0x1530   :  { %v5542_v52 = vadd.f32 %v5506_v2, %v1386_v37 }
0x1535   :  { %v4618_v0 = vpop.eup %4617  ;;  %v1559_v53 = vpop.f32.mrf.mxu2 }
0x1536   :  { %v1562_v4 = vadd.f32 %v1559_v53, %v1392_v3  ;;  %1644 = vrot.lane.b32.xlu0 %v4618_v0, %s4908_s17 }
0x1538   :  { %4619 = vtanh.f32 %v1562_v4  ;;  %v4336_v59 = vmul.f32 -1.442695, %v1562_v4 }
0x1539   :  { %4621 = vpow2.f32 %v4337_v57 }
0x153a   :  { %4623 = vpow2.f32 %v4336_v59 }
0x153e   :  { %v4620_v51 = vpop.eup %4619 }
0x153f   :  { %1627 = vrot.lane.b32.xlu2 %v4620_v51, %s4908_s17  ;;  %v4622_v60 = vpop.eup %4621 }
0x1540   :  { %v1608_v39 = vadd.f32 1.0, %v4622_v60  ;;  %v4624_v47 = vpop.eup %4623 }
0x1541   :  { %v1588_v9 = vadd.f32 1.0, %v4624_v47 }
0x1542   :  { %4625 = vrcp.f32 %v1608_v39  ;;  %v1620_v22 = vand.u32 2147483648, %v1608_v39  ;;  %vm1614_vm14 = vweird.f32 %v1608_v39  ;;  %v1618_v23 = vand.u32 2147483647, %v1608_v39 }
0x1543   :  { %4627 = vrcp.f32 %v1588_v9  ;;  %v1600_v3 = vand.u32 2147483648, %v1588_v9  ;;  %vm1594_vm2 = vweird.f32 %v1588_v9  ;;  %v1598_v0 = vand.u32 2147483647, %v1588_v9 }
0x1544   :  { %v1621_v31 = vor.u32 1.1754944e-38, %v1620_v22  ;;  %vm1619_vm0 = vcmp.eq.f32.partialorder %v1618_v23, 8.507059e+37 }
0x1545   :  { %v1601_v4 = vor.u32 1.1754944e-38, %v1600_v3  ;;  %vm1599_vm4 = vcmp.eq.f32.partialorder %v1598_v0, 8.507059e+37 }
0x1548   :  { %v4626_v13 = vpop.eup %4625 }
0x1549   :  { %v1610_v14 = vmul.f32 %v4626_v13, %v1608_v39  ;;  %v4628_v62 = vpop.eup %4627  ;;  %vm1615_vm13 = vweird.f32 %v4626_v13 }
0x154a   :  { %v1590_v16 = vmul.f32 %v4628_v62, %v1588_v9  ;;  %vm1616_vm15 = vmor %vm1614_vm14, %vm1615_vm13  ;;  %vm1595_vm1 = vweird.f32 %v4628_v62 }
0x154b   :  { %v1611_v15 = vsub.f32 1.0, %v1610_v14  ;;  %vm1596_vm3 = vmor %vm1594_vm2, %vm1595_vm1 }
0x154c   :  { %v1591_v19 = vsub.f32 1.0, %v1590_v16 }
0x154d   :  { %v1612_v18 = vmul.f32 %v4626_v13, %v1611_v15 }
0x154e   :  { %v1592_v28 = vmul.f32 %v4628_v62, %v1591_v19 }
0x154f   :  { %v1613_v21 = vadd.f32 %v4626_v13, %v1612_v18 }
0x1550   :  { %v1593_v37 = vadd.f32 %v4628_v62, %v1592_v28  ;;  %v1520_v28 = vadd.f32 %v5538_v29, %v5530_v11 }
0x1551   :  { %v1617_v30 = vsel %vm1616_vm15, %v4626_v13, %v1613_v21 }
0x1552   :  { %v1622_v36 = vsel %vm1619_vm0, %v1621_v31, %v1617_v30  ;;  %v1597_v53 = vsel %vm1596_vm3, %v4628_v62, %v1593_v37 }
0x1553   :  { %v1602_v57 = vsel %vm1599_vm4, %v1601_v4, %v1597_v53  ;;  %v1642_v60 = vmul.f32 0.0, %v1622_v36 }
0x1554   :  { %v1625_v13 = vmul.f32 0.0, %v1602_v57 }
0x1599   :  { %v1628_v51 = vpop.permute.xlu2 %1627 }
0x159a   :  { %v1630_v59 = vmul.f32 %v1628_v51, %v1602_v57 }
0x15a8   :  { %v1645_v35 = vpop.permute.xlu0 %1644 }
0x15a9   :  { %v1647_v38 = vmul.f32 %v1645_v35, %v1622_v36 }
0x15ab   :  { %1649 = vrot.lane.b32.xlu1 %v1647_v38, %s4909_s18 }
0x15b3   :  { %1632 = vrot.lane.b32.xlu1 %v1630_v59, %s4909_s18 }
0x161d   :  { %v1650_v39 = vpop.permute.xlu1 %1649 }
0x161e   :  { %v5549_v47 = vadd.f32 %v1650_v39, %v1642_v60 }
0x1620   :  { %4629 = vtanh.f32 %v5549_v47 }
0x1625   :  { %v1633_v14 = vpop.permute.xlu1 %1632 }
0x1626   :  { %v4630_v9 = vpop.eup %4629  ;;  %v5552_v15 = vadd.f32 %v1633_v14, %v1625_v13 }
0x1627   :  { %1655 = vrot.lane.b32.xlu0 %v4630_v9, %s4908_s17 }
0x1628   :  { %4631 = vtanh.f32 %v5552_v15 }
0x162e   :  { %v4632_v62 = vpop.eup %4631 }
0x162f   :  { %1638 = vrot.lane.b32.xlu0 %v4632_v62, %s4908_s17 }
0x1699   :  { %v1656_v16 = vpop.permute.xlu0 %1655 }
0x169a   :  { %v1658_v18 = vmul.f32 %v1656_v16, %v1622_v36  ;;  %v1365_v36 = vadd.f32 %v5479_v41, %v5491_v46 }
0x169c   :  { %1665 = vrot.lane.b32.xlu2 %v1658_v18, %s4909_s18  ;;  %v1393_v37 = vadd.f32 %v5506_v2, %v1365_v36 }
0x16a1   :  { %v1639_v19 = vpop.permute.xlu0 %1638 }
0x16a2   :  { %v1641_v21 = vmul.f32 %v1639_v19, %v1602_v57 }
0x16a4   :  { %1660 = vrot.lane.b32.xlu1 %v1641_v21, %s4909_s18 }
0x16f6   :  { %v1666_v22 = vpop.permute.xlu2 %1665 }
0x16f7   :  { %1668 = vst.msk [vmem:[#allocation5 + $0x40] sm:$0xff] %vm32_vm8, %v1666_v22  ;;  %4339 = vmatmul.msk.f32.vlgmr.msra.gmra.mxu1 %vm32_vm8, %v1666_v22 }
0x16f8   :  { %2236 = vmatpush.msra.mxu1 %v5351_v63 }
0x16fa   :  { %2237 = vmatpush.msra.mxu1 %v5383_v20 }
0x16fc   :  { %2238 = vmatpush.msra.mxu1 %v5391_v25 }
0x16fe   :  { %2239 = vmatpush.msra.mxu1 %v5402_v24 }
0x1716   :  { %v1661_v23 = vpop.permute.xlu1 %1660 }
0x1717   :  { %1663 = vst.msk [vmem:[#allocation4] sm:$0xff] %vm32_vm8, %v1661_v23  ;;  %4338 = vmatmul.msk.f32.vlgmr.msra.gmra.mxu0 %vm32_vm8, %v1661_v23 }
0x1718   :  { %2212 = vmatpush.msra.mxu0 %v5417_v27 }
0x171a   :  { %2213 = vmatpush.msra.mxu0 %v5433_v32 }
0x171c   :  { %2214 = vmatpush.msra.mxu0 %v5438_v33 }
0x171e   :  { %2215 = vmatpush.msra.mxu0 %v5445_v34 }
0x1774   :  { %v1713_v30 = vpop.f32.mrf.mxu1 }
0x1775   :  { %v1716_v31 = vadd.f32 %v1713_v30, %v1520_v28 }
0x1777   :  { %4633 = vtanh.f32 %v1716_v31  ;;  %v4341_v53 = vmul.f32 -1.442695, %v1716_v31 }
0x177d   :  { %v4634_v35 = vpop.eup %4633 }
0x177e   :  { %1776 = vrot.lane.b32.xlu2 %v4634_v35, %s4908_s17 }
0x1794   :  { %v1689_v38 = vpop.f32.mrf.mxu0 }
0x1795   :  { %v1692_v3 = vadd.f32 %v1689_v38, %v1393_v37 }
0x1797   :  { %4635 = vtanh.f32 %v1692_v3  ;;  %v4340_v18 = vmul.f32 -1.442695, %v1692_v3 }
0x1798   :  { %4637 = vpow2.f32 %v4341_v53 }
0x179d   :  { %v4636_v0 = vpop.eup %4635 }
0x179e   :  { %1759 = vrot.lane.b32.xlu1 %v4636_v0, %s4908_s17  ;;  %v4638_v11 = vpop.eup %4637 }
0x179f   :  { %v1740_v4 = vadd.f32 1.0, %v4638_v11 }
0x17a1   :  { %4639 = vrcp.f32 %v1740_v4  ;;  %v1752_v41 = vand.u32 2147483648, %v1740_v4  ;;  %vm1746_vm6 = vweird.f32 %v1740_v4  ;;  %v1750_v46 = vand.u32 2147483647, %v1740_v4 }
0x17a2   :  { %4641 = vpow2.f32 %v4340_v18 }
0x17a3   :  { %v1753_v14 = vor.u32 1.1754944e-38, %v1752_v41  ;;  %vm1751_vm9 = vcmp.eq.f32.partialorder %v1750_v46, 8.507059e+37 }
0x17a7   :  { %v4640_v51 = vpop.eup %4639 }
0x17a8   :  { %v1742_v57 = vmul.f32 %v4640_v51, %v1740_v4  ;;  %vm1747_vm5 = vweird.f32 %v4640_v51  ;;  %v4642_v19 = vpop.eup %4641 }
0x17a9   :  { %vm1748_vm7 = vmor %vm1746_vm6, %vm1747_vm5  ;;  %v1720_v21 = vadd.f32 1.0, %v4642_v19 }
0x17aa   :  { %v1743_v59 = vsub.f32 1.0, %v1742_v57 }
0x17ab   :  { %4643 = vrcp.f32 %v1720_v21  ;;  %v1732_v35 = vand.u32 2147483648, %v1720_v21  ;;  %vm1726_vm11 = vweird.f32 %v1720_v21  ;;  %v1730_v36 = vand.u32 2147483647, %v1720_v21 }
0x17ac   :  { %v1744_v60 = vmul.f32 %v4640_v51, %v1743_v59 }
0x17ad   :  { %v1733_v38 = vor.u32 1.1754944e-38, %v1732_v35  ;;  %vm1731_vm13 = vcmp.eq.f32.partialorder %v1730_v36, 8.507059e+37 }
0x17ae   :  { %v1745_v39 = vadd.f32 %v4640_v51, %v1744_v60 }
0x17b0   :  { %v1749_v13 = vsel %vm1748_vm7, %v4640_v51, %v1745_v39 }
0x17b1   :  { %v1754_v62 = vsel %vm1751_vm9, %v1753_v14, %v1749_v13  ;;  %v4644_v22 = vpop.eup %4643 }
0x17b2   :  { %v1722_v23 = vmul.f32 %v4644_v22, %v1720_v21  ;;  %vm1727_vm10 = vweird.f32 %v4644_v22  ;;  %v1774_v11 = vmul.f32 %v1754_v62, %v5549_v47 }
0x17b3   :  { %vm1728_vm12 = vmor %vm1726_vm11, %vm1727_vm10 }
0x17b4   :  { %v1723_v28 = vsub.f32 1.0, %v1722_v23 }
0x17b6   :  { %v1724_v30 = vmul.f32 %v4644_v22, %v1723_v28 }
0x17b8   :  { %v1725_v31 = vadd.f32 %v4644_v22, %v1724_v30 }
0x17ba   :  { %v1729_v37 = vsel %vm1728_vm12, %v4644_v22, %v1725_v31  ;;  %v1368_v22 = vadd.f32 %v5485_v45, %v5497_v1 }
0x17bb   :  { %v1734_v53 = vsel %vm1731_vm13, %v1733_v38, %v1729_v37 }
0x17bc   :  { %v1757_v59 = vmul.f32 %v1734_v53, %v5552_v15  ;;  %v1394_v23 = vadd.f32 %v5506_v2, %v1368_v22 }
0x17d8   :  { %v1777_v9 = vpop.permute.xlu2 %1776 }
0x17d9   :  { %v1779_v16 = vmul.f32 %v1777_v9, %v1754_v62 }
0x17db   :  { %1781 = vrot.lane.b32.xlu0 %v1779_v16, %s4909_s18 }
0x1810   :  { %v1760_v0 = vpop.permute.xlu1 %1759 }
0x1811   :  { %v1762_v3 = vmul.f32 %v1760_v0, %v1734_v53 }
0x1813   :  { %1764 = vrot.lane.b32.xlu0 %v1762_v3, %s4909_s18 }
0x184d   :  { %v1782_v4 = vpop.permute.xlu0 %1781 }
0x184e   :  { %v5581_v51 = vadd.f32 %v1782_v4, %v1774_v11 }
0x1850   :  { %4645 = vtanh.f32 %v5581_v51 }
0x1856   :  { %v4646_v57 = vpop.eup %4645 }
0x1857   :  { %1787 = vrot.lane.b32.xlu2 %v4646_v57, %s4908_s17 }
0x1885   :  { %v1765_v60 = vpop.permute.xlu0 %1764 }
0x1886   :  { %v5586_v39 = vadd.f32 %v1765_v60, %v1757_v59 }
0x1888   :  { %4647 = vtanh.f32 %v5586_v39 }
0x188e   :  { %v4648_v41 = vpop.eup %4647 }
0x188f   :  { %1770 = vrot.lane.b32.xlu2 %v4648_v41, %s4908_s17 }
0x18b1   :  { %v1788_v46 = vpop.permute.xlu2 %1787 }
0x18b2   :  { %v1790_v47 = vmul.f32 %v1788_v46, %v1754_v62  ;;  %v1500_v62 = vadd.f32 %v5520_v61, %v5522_v10 }
0x18b4   :  { %1797 = vrot.lane.b32.xlu1 %v1790_v47, %s4909_s18  ;;  %v1519_v16 = vadd.f32 %v5538_v29, %v1500_v62 }
0x18e9   :  { %v1771_v13 = vpop.permute.xlu2 %1770 }
0x18ea   :  { %v1773_v14 = vmul.f32 %v1771_v13, %v1734_v53 }
0x18ec   :  { %1792 = vrot.lane.b32.xlu0 %v1773_v14, %s4909_s18 }
0x1926   :  { %v1798_v9 = vpop.permute.xlu1 %1797 }
0x1927   :  { %1800 = vst.msk [vmem:[#allocation5 + $0x38] sm:$0xff] %vm32_vm8, %v1798_v9  ;;  %4343 = vmatmul.msk.f32.vlgmr.msra.gmra.mxu3 %vm32_vm8, %v1798_v9 }
0x1928   :  { %2368 = vmatpush.msra.mxu3 %v5351_v63 }
0x192a   :  { %2369 = vmatpush.msra.mxu3 %v5383_v20 }
0x192c   :  { %2370 = vmatpush.msra.mxu3 %v5391_v25 }
0x192e   :  { %2371 = vmatpush.msra.mxu3 %v5402_v24 }
0x195e   :  { %v1793_v15 = vpop.permute.xlu0 %1792 }
0x195f   :  { %1795 = vst.msk [vmem:[#allocation4 + $0x8] sm:$0xff] %vm32_vm8, %v1793_v15  ;;  %4342 = vmatmul.msk.f32.vlgmr.msra.gmra.mxu2 %vm32_vm8, %v1793_v15 }
0x1960   :  { %2344 = vmatpush.msra.mxu2 %v5417_v27 }
0x1962   :  { %2345 = vmatpush.msra.mxu2 %v5433_v32 }
0x1964   :  { %2346 = vmatpush.msra.mxu2 %v5438_v33 }
0x1966   :  { %2347 = vmatpush.msra.mxu2 %v5445_v34 }
0x19aa   :  { %v1845_v18 = vpop.f32.mrf.mxu3 }
0x19ab   :  { %v1848_v19 = vadd.f32 %v1845_v18, %v1519_v16 }
0x19ad   :  { %4649 = vtanh.f32 %v1848_v19  ;;  %v4345_v61 = vmul.f32 -1.442695, %v1848_v19 }
0x19b3   :  { %v4650_v21 = vpop.eup %4649 }
0x19b4   :  { %1908 = vrot.lane.b32.xlu1 %v4650_v21, %s4908_s17 }
0x19e2   :  { %v1821_v28 = vpop.f32.mrf.mxu2 }
0x19e3   :  { %v1824_v30 = vadd.f32 %v1821_v28, %v1394_v23 }
0x19e5   :  { %4651 = vtanh.f32 %v1824_v30  ;;  %v4344_v59 = vmul.f32 -1.442695, %v1824_v30 }
0x19e6   :  { %4653 = vpow2.f32 %v4345_v61 }
0x19eb   :  { %v4652_v31 = vpop.eup %4651 }
0x19ec   :  { %1891 = vrot.lane.b32.xlu0 %v4652_v31, %s4908_s17  ;;  %v4654_v10 = vpop.eup %4653 }
0x19ed   :  { %v1872_v35 = vadd.f32 1.0, %v4654_v10 }
0x19ef   :  { %4655 = vrcp.f32 %v1872_v35  ;;  %v1884_v45 = vand.u32 2147483648, %v1872_v35  ;;  %vm1878_vm15 = vweird.f32 %v1872_v35  ;;  %v1882_v1 = vand.u32 2147483647, %v1872_v35 }
0x19f0   :  { %4657 = vpow2.f32 %v4344_v59 }
0x19f1   :  { %v1885_v3 = vor.u32 1.1754944e-38, %v1884_v45  ;;  %vm1883_vm1 = vcmp.eq.f32.partialorder %v1882_v1, 8.507059e+37  ;;  %v1497_v45 = vadd.f32 %v5513_v56, %v5515_v49 }
0x19f3   :  { %v1518_v1 = vadd.f32 %v5538_v29, %v1497_v45 }
0x19f5   :  { %v4656_v36 = vpop.eup %4655 }
0x19f6   :  { %v1874_v37 = vmul.f32 %v4656_v36, %v1872_v35  ;;  %vm1879_vm14 = vweird.f32 %v4656_v36  ;;  %v4658_v60 = vpop.eup %4657 }
0x19f7   :  { %vm1880_vm0 = vmor %vm1878_vm15, %vm1879_vm14  ;;  %v1852_v41 = vadd.f32 1.0, %v4658_v60 }
0x19f8   :  { %v1875_v38 = vsub.f32 1.0, %v1874_v37 }
0x19f9   :  { %4659 = vrcp.f32 %v1852_v41  ;;  %v1864_v15 = vand.u32 2147483648, %v1852_v41  ;;  %vm1858_vm3 = vweird.f32 %v1852_v41  ;;  %v1862_v62 = vand.u32 2147483647, %v1852_v41 }
0x19fa   :  { %v1876_v0 = vmul.f32 %v4656_v36, %v1875_v38 }
0x19fb   :  { %v1865_v18 = vor.u32 1.1754944e-38, %v1864_v15  ;;  %vm1863_vm5 = vcmp.eq.f32.partialorder %v1862_v62, 8.507059e+37 }
0x19fc   :  { %v1877_v53 = vadd.f32 %v4656_v36, %v1876_v0 }
0x19fe   :  { %v1881_v2 = vsel %vm1880_vm0, %v4656_v36, %v1877_v53 }
0x19ff   :  { %v1886_v4 = vsel %vm1883_vm1, %v1885_v3, %v1881_v2  ;;  %v4660_v46 = vpop.eup %4659 }
0x1a00   :  { %v1854_v47 = vmul.f32 %v4660_v46, %v1852_v41  ;;  %vm1859_vm2 = vweird.f32 %v4660_v46  ;;  %v1906_v23 = vmul.f32 %v1886_v4, %v5581_v51 }
0x1a01   :  { %vm1860_vm4 = vmor %vm1858_vm3, %vm1859_vm2 }
0x1a02   :  { %v1855_v13 = vsub.f32 1.0, %v1854_v47 }
0x1a04   :  { %v1856_v14 = vmul.f32 %v4660_v46, %v1855_v13 }
0x1a06   :  { %v1857_v9 = vadd.f32 %v4660_v46, %v1856_v14 }
0x1a08   :  { %v1861_v16 = vsel %vm1860_vm4, %v4660_v46, %v1857_v9 }
0x1a09   :  { %v1866_v21 = vsel %vm1863_vm5, %v1865_v18, %v1861_v16 }
0x1a0a   :  { %v1889_v61 = vmul.f32 %v1866_v21, %v5586_v39 }
0x1a26   :  { %v1909_v11 = vpop.permute.xlu1 %1908 }
0x1a27   :  { %v1911_v57 = vmul.f32 %v1909_v11, %v1886_v4 }
0x1a29   :  { %1913 = vrot.lane.b32.xlu2 %v1911_v57, %s4909_s18 }
0x1a5e   :  { %v1892_v19 = vpop.permute.xlu0 %1891 }
0x1a5f   :  { %v1894_v22 = vmul.f32 %v1892_v19, %v1866_v21 }
0x1a61   :  { %1896 = vrot.lane.b32.xlu2 %v1894_v22, %s4909_s18 }
0x1a83   :  { %v1914_v28 = vpop.permute.xlu2 %1913 }
0x1a84   :  { %v5615_v30 = vadd.f32 %v1914_v28, %v1906_v23 }
0x1a86   :  { %4661 = vtanh.f32 %v5615_v30 }
0x1a8c   :  { %v4662_v31 = vpop.eup %4661 }
0x1a8d   :  { %1919 = vrot.lane.b32.xlu1 %v4662_v31, %s4908_s17 }
0x1abb   :  { %v1897_v10 = vpop.permute.xlu2 %1896 }
0x1abc   :  { %v5620_v35 = vadd.f32 %v1897_v10, %v1889_v61 }
0x1abe   :  { %4663 = vtanh.f32 %v5620_v35 }
0x1ac4   :  { %v4664_v36 = vpop.eup %4663 }
0x1ac5   :  { %1902 = vrot.lane.b32.xlu1 %v4664_v36, %s4908_s17 }
0x1aff   :  { %v1920_v37 = vpop.permute.xlu1 %1919 }
0x1b00   :  { %v1922_v51 = vmul.f32 %v1920_v37, %v1886_v4 }
0x1b02   :  { %1929 = vrot.lane.b32.xlu0 %v1922_v51, %s4909_s18 }
0x1b37   :  { %v1903_v38 = vpop.permute.xlu1 %1902 }
0x1b38   :  { %v1905_v0 = vmul.f32 %v1903_v38, %v1866_v21 }
0x1b3a   :  { %1924 = vrot.lane.b32.xlu2 %v1905_v0, %s4909_s18 }
0x1b74   :  { %v1930_v53 = vpop.permute.xlu0 %1929 }
0x1b75   :  { %1932 = vst.msk [vmem:[#allocation5 + $0x30] sm:$0xff] %vm32_vm8, %v1930_v53  ;;  %4347 = vmatmul.msk.f32.vlgmr.msrb.gmra.mxu1 %vm32_vm8, %v1930_v53 }
0x1b76   :  { %2500 = vmatpush.msrb.mxu1 %v5351_v63 }
0x1b78   :  { %2501 = vmatpush.msrb.mxu1 %v5383_v20 }
0x1b7a   :  { %2502 = vmatpush.msrb.mxu1 %v5391_v25 }
0x1b7c   :  { %2503 = vmatpush.msrb.mxu1 %v5402_v24 }
0x1b94   :  { %v1925_v39 = vpop.permute.xlu2 %1924 }
0x1b95   :  { %1927 = vst.msk [vmem:[#allocation4 + $0x10] sm:$0xff] %vm32_vm8, %v1925_v39  ;;  %4346 = vmatmul.msk.f32.vlgmr.msrb.gmra.mxu0 %vm32_vm8, %v1925_v39 }
0x1b96   :  { %2476 = vmatpush.msrb.mxu0 %v5417_v27 }
0x1b98   :  { %2477 = vmatpush.msrb.mxu0 %v5433_v32 }
0x1b9a   :  { %2478 = vmatpush.msrb.mxu0 %v5438_v33 }
0x1b9c   :  { %2479 = vmatpush.msrb.mxu0 %v5445_v34 }
0x1bf2   :  { %v1977_v2 = vpop.f32.mrf.mxu1 }
0x1bf3   :  { %v1980_v3 = vadd.f32 %v1977_v2, %v1518_v1 }
0x1bf5   :  { %4665 = vtanh.f32 %v1980_v3  ;;  %v4349_v60 = vmul.f32 -1.442695, %v1980_v3 }
0x1bfb   :  { %v4666_v11 = vpop.eup %4665 }
0x1bfc   :  { %2040 = vrot.lane.b32.xlu0 %v4666_v11, %s4908_s17 }
0x1c12   :  { %v1953_v4 = vpop.f32.mrf.mxu0 }
0x1c13   :  { %v1956_v57 = vadd.f32 %v1953_v4, %v5511_v55 }
0x1c15   :  { %4667 = vtanh.f32 %v1956_v57  ;;  %v4348_v41 = vmul.f32 -1.442695, %v1956_v57 }
0x1c16   :  { %4669 = vpow2.f32 %v4349_v60 }
0x1c17   :  { %4671 = vpow2.f32 %v4348_v41 }
0x1c1b   :  { %v4668_v59 = vpop.eup %4667 }
0x1c1c   :  { %2023 = vrot.lane.b32.xlu2 %v4668_v59, %s4908_s17  ;;  %v4670_v46 = vpop.eup %4669 }
0x1c1d   :  { %v2004_v56 = vadd.f32 1.0, %v4670_v46  ;;  %v4672_v49 = vpop.eup %4671 }
0x1c1e   :  { %v1984_v47 = vadd.f32 1.0, %v4672_v49 }
0x1c1f   :  { %4673 = vrcp.f32 %v2004_v56  ;;  %v2016_v19 = vand.u32 2147483648, %v2004_v56  ;;  %vm2010_vm7 = vweird.f32 %v2004_v56  ;;  %v2014_v21 = vand.u32 2147483647, %v2004_v56 }
0x1c20   :  { %4675 = vrcp.f32 %v1984_v47  ;;  %v1996_v37 = vand.u32 2147483648, %v1984_v47  ;;  %vm1990_vm12 = vweird.f32 %v1984_v47  ;;  %v1994_v51 = vand.u32 2147483647, %v1984_v47 }
0x1c21   :  { %v2017_v28 = vor.u32 1.1754944e-38, %v2016_v19  ;;  %vm2015_vm10 = vcmp.eq.f32.partialorder %v2014_v21, 8.507059e+37 }
0x1c22   :  { %v1997_v0 = vor.u32 1.1754944e-38, %v1996_v37  ;;  %vm1995_vm14 = vcmp.eq.f32.partialorder %v1994_v51, 8.507059e+37 }
0x1c25   :  { %v4674_v13 = vpop.eup %4673 }
0x1c26   :  { %v2006_v14 = vmul.f32 %v4674_v13, %v2004_v56  ;;  %v4676_v15 = vpop.eup %4675  ;;  %vm2011_vm6 = vweird.f32 %v4674_v13 }
0x1c27   :  { %v1986_v55 = vmul.f32 %v4676_v15, %v1984_v47  ;;  %vm2012_vm9 = vmor %vm2010_vm7, %vm2011_vm6  ;;  %vm1991_vm11 = vweird.f32 %v4676_v15 }
0x1c28   :  { %v2007_v9 = vsub.f32 1.0, %v2006_v14  ;;  %vm1992_vm13 = vmor %vm1990_vm12, %vm1991_vm11 }
0x1c29   :  { %v1987_v18 = vsub.f32 1.0, %v1986_v55 }
0x1c2a   :  { %v2008_v62 = vmul.f32 %v4674_v13, %v2007_v9 }
0x1c2b   :  { %v1988_v23 = vmul.f32 %v4676_v15, %v1987_v18 }
0x1c2c   :  { %v2009_v16 = vadd.f32 %v4674_v13, %v2008_v62 }
0x1c2d   :  { %v1989_v36 = vadd.f32 %v4676_v15, %v1988_v23 }
0x1c2e   :  { %v2013_v22 = vsel %vm2012_vm9, %v4674_v13, %v2009_v16 }
0x1c2f   :  { %v2018_v61 = vsel %vm2015_vm10, %v2017_v28, %v2013_v22  ;;  %v1993_v38 = vsel %vm1992_vm13, %v4676_v15, %v1989_v36 }
0x1c30   :  { %v1998_v39 = vsel %vm1995_vm14, %v1997_v0, %v1993_v38  ;;  %v2038_v1 = vmul.f32 %v2018_v61, %v5615_v30 }
0x1c31   :  { %v2021_v11 = vmul.f32 %v1998_v39, %v5620_v35 }
0x1c6e   :  { %v2041_v31 = vpop.permute.xlu0 %2040 }
0x1c6f   :  { %v2043_v10 = vmul.f32 %v2041_v31, %v2018_v61 }
0x1c71   :  { %2045 = vrot.lane.b32.xlu1 %v2043_v10, %s4909_s18 }
0x1c76   :  { %v2024_v53 = vpop.permute.xlu2 %2023 }
0x1c77   :  { %v2026_v45 = vmul.f32 %v2024_v53, %v1998_v39 }
0x1c79   :  { %2028 = vrot.lane.b32.xlu1 %v2026_v45, %s4909_s18 }
0x1ce3   :  { %v2046_v2 = vpop.permute.xlu1 %2045 }
0x1ce4   :  { %v5647_v3 = vadd.f32 %v2046_v2, %v2038_v1 }
0x1ce6   :  { %4677 = vtanh.f32 %v5647_v3 }
0x1ceb   :  { %v2029_v4 = vpop.permute.xlu1 %2028 }
0x1cec   :  { %v4678_v57 = vpop.eup %4677  ;;  %v5651_v59 = vadd.f32 %v2029_v4, %v2021_v11 }
0x1ced   :  { %2051 = vrot.lane.b32.xlu0 %v4678_v57, %s4908_s17 }
0x1cee   :  { %4679 = vtanh.f32 %v5651_v59 }
0x1cf4   :  { %v4680_v60 = vpop.eup %4679 }
0x1cf5   :  { %2034 = vrot.lane.b32.xlu0 %v4680_v60, %s4908_s17 }
0x1d5f   :  { %v2052_v41 = vpop.permute.xlu0 %2051 }
0x1d60   :  { %v2054_v30 = vmul.f32 %v2052_v41, %v2018_v61 }
0x1d62   :  { %2061 = vrot.lane.b32.xlu2 %v2054_v30, %s4909_s18 }
0x1d67   :  { %v2035_v46 = vpop.permute.xlu0 %2034 }
0x1d68   :  { %v2037_v56 = vmul.f32 %v2035_v46, %v1998_v39 }
0x1d6a   :  { %2056 = vrot.lane.b32.xlu1 %v2037_v56, %s4909_s18 }
0x1dbc   :  { %v2062_v35 = vpop.permute.xlu2 %2061 }
0x1dbd   :  { %2064 = vst.msk [vmem:[#allocation5 + $0x28] sm:$0xff] %vm32_vm8, %v2062_v35  ;;  %4351 = vmatmul.msk.f32.vlgmr.msrb.gmra.mxu3 %vm32_vm8, %v2062_v35 }
0x1dbe   :  { %2632 = vmatpush.msrb.mxu3 %v5351_v63  ;;  %v1494_v63 = vadd.f32 %v5501_v7, %v5508_v6 }
0x1dc0   :  { %2633 = vmatpush.msrb.mxu3 %v5383_v20  ;;  %v1517_v20 = vadd.f32 %v5538_v29, %v1494_v63 }
0x1dc2   :  { %2634 = vmatpush.msrb.mxu3 %v5391_v25 }
0x1dc4   :  { %2635 = vmatpush.msrb.mxu3 %v5402_v24 }
0x1ddc   :  { %v2057_v49 = vpop.permute.xlu1 %2056 }
0x1ddd   :  { %2059 = vst.msk [vmem:[#allocation4 + $0x18] sm:$0xff] %vm32_vm8, %v2057_v49  ;;  %4350 = vmatmul.msk.f32.vlgmr.msrb.gmra.mxu2 %vm32_vm8, %v2057_v49 }
0x1dde   :  { %2608 = vmatpush.msrb.mxu2 %v5417_v27 }
0x1de0   :  { %2609 = vmatpush.msrb.mxu2 %v5433_v32 }
0x1de2   :  { %2610 = vmatpush.msrb.mxu2 %v5438_v33 }
0x1de4   :  { %2611 = vmatpush.msrb.mxu2 %v5445_v34 }
0x1e40   :  { %v2109_v25 = vpop.f32.mrf.mxu3 }
0x1e41   :  { %v2112_v24 = vadd.f32 %v2109_v25, %v1517_v20  ;;  %v1491_v25 = vadd.f32 %v5495_v54, %v5499_v5 }
0x1e43   :  { %4681 = vtanh.f32 %v2112_v24  ;;  %v4353_v33 = vmul.f32 -1.442695, %v2112_v24  ;;  %v1516_v24 = vadd.f32 %v5538_v29, %v1491_v25 }
0x1e49   :  { %v4682_v47 = vpop.eup %4681 }
0x1e4a   :  { %2172 = vrot.lane.b32.xlu2 %v4682_v47, %s4908_s17 }
0x1e60   :  { %v2085_v13 = vpop.f32.mrf.mxu2 }
0x1e61   :  { %v2088_v27 = vadd.f32 %v2085_v13, %v5518_v58 }
0x1e63   :  { %4683 = vtanh.f32 %v2088_v27  ;;  %v4352_v23 = vmul.f32 -1.442695, %v2088_v27 }
0x1e64   :  { %4685 = vpow2.f32 %v4353_v33 }
0x1e69   :  { %v4684_v32 = vpop.eup %4683 }
0x1e6a   :  { %2155 = vrot.lane.b32.xlu1 %v4684_v32, %s4908_s17  ;;  %v4686_v34 = vpop.eup %4685 }
0x1e6b   :  { %v2136_v14 = vadd.f32 1.0, %v4686_v34 }
0x1e6d   :  { %4687 = vrcp.f32 %v2136_v14  ;;  %v2148_v55 = vand.u32 2147483648, %v2136_v14  ;;  %vm2142_vm0 = vweird.f32 %v2136_v14  ;;  %v2146_v16 = vand.u32 2147483647, %v2136_v14 }
0x1e6e   :  { %4689 = vpow2.f32 %v4352_v23 }
0x1e6f   :  { %v2149_v18 = vor.u32 1.1754944e-38, %v2148_v55  ;;  %vm2147_vm2 = vcmp.eq.f32.partialorder %v2146_v16, 8.507059e+37 }
0x1e73   :  { %v4688_v7 = vpop.eup %4687 }
0x1e74   :  { %v2138_v6 = vmul.f32 %v4688_v7, %v2136_v14  ;;  %vm2143_vm15 = vweird.f32 %v4688_v7  ;;  %v4690_v28 = vpop.eup %4689 }
0x1e75   :  { %vm2144_vm1 = vmor %vm2142_vm0, %vm2143_vm15  ;;  %v2116_v31 = vadd.f32 1.0, %v4690_v28 }
0x1e76   :  { %v2139_v9 = vsub.f32 1.0, %v2138_v6 }
0x1e77   :  { %4691 = vrcp.f32 %v2116_v31  ;;  %v2128_v38 = vand.u32 2147483648, %v2116_v31  ;;  %vm2122_vm4 = vweird.f32 %v2116_v31  ;;  %v2126_v0 = vand.u32 2147483647, %v2116_v31 }
0x1e78   :  { %v2140_v15 = vmul.f32 %v4688_v7, %v2139_v9 }
0x1e79   :  { %v2129_v39 = vor.u32 1.1754944e-38, %v2128_v38  ;;  %vm2127_vm6 = vcmp.eq.f32.partialorder %v2126_v0, 8.507059e+37 }
0x1e7a   :  { %v2141_v62 = vadd.f32 %v4688_v7, %v2140_v15 }
0x1e7c   :  { %v2145_v58 = vsel %vm2144_vm1, %v4688_v7, %v2141_v62 }
0x1e7d   :  { %v2150_v21 = vsel %vm2147_vm2, %v2149_v18, %v2145_v58  ;;  %v4692_v61 = vpop.eup %4691 }
0x1e7e   :  { %v2118_v10 = vmul.f32 %v4692_v61, %v2116_v31  ;;  %vm2123_vm3 = vweird.f32 %v4692_v61  ;;  %v2170_v11 = vmul.f32 %v2150_v21, %v5647_v3 }
0x1e7f   :  { %vm2124_vm5 = vmor %vm2122_vm4, %vm2123_vm3 }
0x1e80   :  { %v2119_v36 = vsub.f32 1.0, %v2118_v10 }
0x1e82   :  { %v2120_v37 = vmul.f32 %v4692_v61, %v2119_v36 }
0x1e84   :  { %v2121_v51 = vadd.f32 %v4692_v61, %v2120_v37 }
0x1e86   :  { %v2125_v53 = vsel %vm2124_vm5, %v4692_v61, %v2121_v51 }
0x1e87   :  { %v2130_v1 = vsel %vm2127_vm6, %v2129_v39, %v2125_v53 }
0x1e88   :  { %v2153_v41 = vmul.f32 %v2130_v1, %v5651_v59 }
0x1ea4   :  { %v2173_v19 = vpop.permute.xlu2 %2172 }
0x1ea5   :  { %v2175_v22 = vmul.f32 %v2173_v19, %v2150_v21 }
0x1ea7   :  { %2177 = vrot.lane.b32.xlu0 %v2175_v22, %s4909_s18 }
0x1edc   :  { %v2156_v45 = vpop.permute.xlu1 %2155 }
0x1edd   :  { %v2158_v2 = vmul.f32 %v2156_v45, %v2130_v1 }
0x1edf   :  { %2160 = vrot.lane.b32.xlu0 %v2158_v2, %s4909_s18 }
0x1f19   :  { %v2178_v4 = vpop.permute.xlu0 %2177 }
0x1f1a   :  { %v5679_v57 = vadd.f32 %v2178_v4, %v2170_v11 }
0x1f1c   :  { %4693 = vtanh.f32 %v5679_v57 }
0x1f22   :  { %v4694_v60 = vpop.eup %4693 }
0x1f23   :  { %2183 = vrot.lane.b32.xlu2 %v4694_v60, %s4908_s17 }
0x1f51   :  { %v2161_v30 = vpop.permute.xlu0 %2160 }
0x1f52   :  { %v5684_v46 = vadd.f32 %v2161_v30, %v2153_v41 }
0x1f54   :  { %4695 = vtanh.f32 %v5684_v46 }
0x1f5a   :  { %v4696_v56 = vpop.eup %4695 }
0x1f5b   :  { %2166 = vrot.lane.b32.xlu2 %v4696_v56, %s4908_s17 }
0x1f7d   :  { %v2184_v35 = vpop.permute.xlu2 %2183 }
0x1f7e   :  { %v2186_v3 = vmul.f32 %v2184_v35, %v2150_v21 }
0x1f80   :  { %2193 = vrot.lane.b32.xlu1 %v2186_v3, %s4909_s18 }
0x1fb5   :  { %v2167_v49 = vpop.permute.xlu2 %2166 }
0x1fb6   :  { %v2169_v63 = vmul.f32 %v2167_v49, %v2130_v1 }
0x1fb8   :  { %2188 = vrot.lane.b32.xlu0 %v2169_v63, %s4909_s18 }
0x1ff2   :  { %v2194_v20 = vpop.permute.xlu1 %2193 }
0x1ff3   :  { %2196 = vst.msk [vmem:[#allocation5 + $0x20] sm:$0xff] %vm32_vm8, %v2194_v20  ;;  %4355 = vmatmul.msk.f32.vlgmr.msra.gmra.mxu1 %vm32_vm8, %v2194_v20  ;;  %v1488_v20 = vadd.f32 %v5487_v50, %v5493_v48 }
0x202a   :  { %v2189_v59 = vpop.permute.xlu0 %2188 }
0x202b   :  { %2191 = vst.msk [vmem:[#allocation4 + $0x20] sm:$0xff] %vm32_vm8, %v2189_v59  ;;  %4354 = vmatmul.msk.f32.vlgmr.msra.gmra.mxu0 %vm32_vm8, %v2189_v59  ;;  %v5723_v59 = vld [vmem:[%s6332_s4 + $0x1] ss:$0 sm:$0xff] }
0x202c   :  { %v1515_v25 = vadd.f32 %v5723_v59, %v1488_v20  ;;  %v5761_v20 = vld [vmem:[#allocation4 + $0x8] sm:$0xff] }
0x2070   :  { %v2241_v47 = vpop.f32.mrf.mxu1 }
0x2071   :  { %v2244_v13 = vadd.f32 %v2241_v47, %v1516_v24 }
0x2073   :  { %4697 = vtanh.f32 %v2244_v13  ;;  %v4357_v14 = vmul.f32 -1.442695, %v2244_v13 }
0x2079   :  { %v4698_v27 = vpop.eup %4697 }
0x207a   :  { %2304 = vrot.lane.b32.xlu1 %v4698_v27, %s4908_s17 }
0x20a8   :  { %v2217_v32 = vpop.f32.mrf.mxu0 }
0x20a9   :  { %v2220_v33 = vadd.f32 %v2217_v32, %v5525_v12 }
0x20ab   :  { %4699 = vtanh.f32 %v2220_v33  ;;  %v4356_v21 = vmul.f32 -1.442695, %v2220_v33 }
0x20ac   :  { %4701 = vpow2.f32 %v4357_v14 }
0x20b1   :  { %v4700_v34 = vpop.eup %4699 }
0x20b2   :  { %2287 = vrot.lane.b32.xlu0 %v4700_v34, %s4908_s17  ;;  %v4702_v7 = vpop.eup %4701 }
0x20b3   :  { %v2268_v6 = vadd.f32 1.0, %v4702_v7 }
0x20b5   :  { %4703 = vrcp.f32 %v2268_v6  ;;  %v2280_v62 = vand.u32 2147483648, %v2268_v6  ;;  %vm2274_vm9 = vweird.f32 %v2268_v6  ;;  %v2278_v55 = vand.u32 2147483647, %v2268_v6 }
0x20b6   :  { %4705 = vpow2.f32 %v4356_v21 }
0x20b7   :  { %v2281_v16 = vor.u32 1.1754944e-38, %v2280_v62  ;;  %vm2279_vm11 = vcmp.eq.f32.partialorder %v2278_v55, 8.507059e+37 }
0x20bb   :  { %v4704_v54 = vpop.eup %4703 }
0x20bc   :  { %v2270_v5 = vmul.f32 %v4704_v54, %v2268_v6  ;;  %vm2275_vm7 = vweird.f32 %v4704_v54  ;;  %v4706_v22 = vpop.eup %4705 }
0x20bd   :  { %vm2276_vm10 = vmor %vm2274_vm9, %vm2275_vm7  ;;  %v2248_v23 = vadd.f32 1.0, %v4706_v22 }
0x20be   :  { %v2271_v29 = vsub.f32 1.0, %v2270_v5 }
0x20bf   :  { %4707 = vrcp.f32 %v2248_v23  ;;  %v2260_v37 = vand.u32 2147483648, %v2248_v23  ;;  %vm2254_vm13 = vweird.f32 %v2248_v23  ;;  %v2258_v51 = vand.u32 2147483647, %v2248_v23 }
0x20c0   :  { %v2272_v9 = vmul.f32 %v4704_v54, %v2271_v29 }
0x20c1   :  { %v2261_v0 = vor.u32 1.1754944e-38, %v2260_v37  ;;  %vm2259_vm15 = vcmp.eq.f32.partialorder %v2258_v51, 8.507059e+37 }
0x20c2   :  { %v2273_v15 = vadd.f32 %v4704_v54, %v2272_v9 }
0x20c4   :  { %v2277_v12 = vsel %vm2276_vm10, %v4704_v54, %v2273_v15 }
0x20c5   :  { %v2282_v18 = vsel %vm2279_vm11, %v2281_v16, %v2277_v12  ;;  %v4708_v28 = vpop.eup %4707 }
0x20c6   :  { %v2250_v31 = vmul.f32 %v4708_v28, %v2248_v23  ;;  %vm2255_vm12 = vweird.f32 %v4708_v28  ;;  %v2302_v1 = vmul.f32 %v2282_v18, %v5679_v57 }
0x20c7   :  { %vm2256_vm14 = vmor %vm2254_vm13, %vm2255_vm12 }
0x20c8   :  { %v2251_v61 = vsub.f32 1.0, %v2250_v31 }
0x20ca   :  { %v2252_v10 = vmul.f32 %v4708_v28, %v2251_v61 }
0x20cc   :  { %v2253_v36 = vadd.f32 %v4708_v28, %v2252_v10 }
0x20ce   :  { %v2257_v38 = vsel %vm2256_vm14, %v4708_v28, %v2253_v36 }
0x20cf   :  { %v2262_v39 = vsel %vm2259_vm15, %v2261_v0, %v2257_v38 }
0x20d0   :  { %v2285_v60 = vmul.f32 %v2262_v39, %v5684_v46 }
0x20ec   :  { %v2305_v58 = vpop.permute.xlu1 %2304 }
0x20ed   :  { %v2307_v19 = vmul.f32 %v2305_v58, %v2282_v18 }
0x20ef   :  { %2309 = vrot.lane.b32.xlu2 %v2307_v19, %s4909_s18 }
0x2124   :  { %v2288_v53 = vpop.permute.xlu0 %2287 }
0x2125   :  { %v2290_v45 = vmul.f32 %v2288_v53, %v2262_v39 }
0x2127   :  { %2292 = vrot.lane.b32.xlu2 %v2290_v45, %s4909_s18 }
0x2149   :  { %v2310_v2 = vpop.permute.xlu2 %2309 }
0x214a   :  { %v5703_v11 = vadd.f32 %v2310_v2, %v2302_v1 }
0x214c   :  { %4709 = vtanh.f32 %v5703_v11 }
0x2152   :  { %v4710_v4 = vpop.eup %4709 }
0x2153   :  { %2315 = vrot.lane.b32.xlu1 %v4710_v4, %s4908_s17 }
0x2181   :  { %v2293_v41 = vpop.permute.xlu2 %2292 }
0x2182   :  { %v5708_v30 = vadd.f32 %v2293_v41, %v2285_v60 }
0x2184   :  { %4711 = vtanh.f32 %v5708_v30 }
0x218a   :  { %v4712_v56 = vpop.eup %4711 }
0x218b   :  { %2298 = vrot.lane.b32.xlu1 %v4712_v56, %s4908_s17 }
0x21c5   :  { %v2316_v35 = vpop.permute.xlu1 %2315 }
0x21c6   :  { %v2318_v57 = vmul.f32 %v2316_v35, %v2282_v18 }
0x21c8   :  { %2325 = vrot.lane.b32.xlu0 %v2318_v57, %s4909_s18  ;;  %v4372_v57 = vld [vmem:[%s6331_s3 + $0x90] sm:$0xff] }
0x21fd   :  { %v2299_v3 = vpop.permute.xlu1 %2298 }
0x21fe   :  { %v2301_v49 = vmul.f32 %v2299_v3, %v2262_v39  ;;  %v4371_v3 = vld [vmem:[%s6331_s3 + $0x88] sm:$0xff] }
0x2200   :  { %2320 = vrot.lane.b32.xlu2 %v2301_v49, %s4909_s18  ;;  %v4370_v49 = vld [vmem:[%s6331_s3 + $0x80] sm:$0xff] }
0x223a   :  { %v2326_v63 = vpop.permute.xlu0 %2325 }
0x223b   :  { %2328 = vst.msk [vmem:[#allocation5 + $0x18] sm:$0xff] %vm32_vm8, %v2326_v63  ;;  %4359 = vmatmul.msk.f32.vlgmr.msra.gmra.mxu3 %vm32_vm8, %v2326_v63 }
0x225a   :  { %v2321_v46 = vpop.permute.xlu2 %2320 }
0x225b   :  { %2323 = vst.msk [vmem:[#allocation4 + $0x28] sm:$0xff] %vm32_vm8, %v2321_v46  ;;  %4358 = vmatmul.msk.f32.vlgmr.msra.gmra.mxu2 %vm32_vm8, %v2321_v46  ;;  %v5757_v46 = vld [vmem:[#allocation4] sm:$0xff] }
0x22be   :  { %v2373_v24 = vpop.f32.mrf.mxu3 }
0x22bf   :  { %v2376_v47 = vadd.f32 %v2373_v24, %v1515_v25  ;;  %v5765_v25 = vld [vmem:[#allocation4 + $0x10] sm:$0xff] }
0x22c1   :  { %4713 = vtanh.f32 %v2376_v47  ;;  %v4361_v50 = vmul.f32 -1.442695, %v2376_v47  ;;  %v5769_v47 = vld [vmem:[#allocation4 + $0x18] sm:$0xff] }
0x22c7   :  { %v4714_v13 = vpop.eup %4713 }
0x22c8   :  { %2436 = vrot.lane.b32.xlu0 %v4714_v13, %s4908_s17  ;;  %v5775_v13 = vld [vmem:[#allocation4 + $0x20] sm:$0xff] }
0x22de   :  { %v2349_v27 = vpop.f32.mrf.mxu2 }
0x22df   :  { %v2352_v32 = vadd.f32 %v2349_v27, %v5528_v17  ;;  %v5779_v27 = vld [vmem:[#allocation4 + $0x28] sm:$0xff] }
0x22e1   :  { %4715 = vtanh.f32 %v2352_v32  ;;  %v4360_v48 = vmul.f32 -1.442695, %v2352_v32 }
0x22e2   :  { %4717 = vpow2.f32 %v4361_v50 }
0x22e3   :  { %4719 = vpow2.f32 %v4360_v48 }
0x22e7   :  { %v4716_v33 = vpop.eup %4715 }
0x22e8   :  { %2419 = vrot.lane.b32.xlu2 %v4716_v33, %s4908_s17  ;;  %v4718_v34 = vpop.eup %4717  ;;  %v1485_v33 = vadd.f32 %v5481_v42, %v5489_v43 }
0x22e9   :  { %v2400_v14 = vadd.f32 1.0, %v4718_v34  ;;  %v4720_v7 = vpop.eup %4719 }
0x22ea   :  { %v2380_v6 = vadd.f32 1.0, %v4720_v7  ;;  %v1514_v50 = vadd.f32 %v5723_v59, %v1485_v33  ;;  %v4398_v33 = vld [vmem:[%s6331_s3 + $0xc8] sm:$0xff] }
0x22eb   :  { %4721 = vrcp.f32 %v2400_v14  ;;  %v2412_v12 = vand.u32 2147483648, %v2400_v14  ;;  %vm2406_vm1 = vweird.f32 %v2400_v14  ;;  %v2410_v16 = vand.u32 2147483647, %v2400_v14 }
0x22ec   :  { %4723 = vrcp.f32 %v2380_v6  ;;  %v2392_v31 = vand.u32 2147483648, %v2380_v6  ;;  %vm2386_vm5 = vweird.f32 %v2380_v6  ;;  %v2390_v61 = vand.u32 2147483647, %v2380_v6 }
0x22ed   :  { %v2413_v19 = vor.u32 1.1754944e-38, %v2412_v12  ;;  %vm2411_vm3 = vcmp.eq.f32.partialorder %v2410_v16, 8.507059e+37 }
0x22ee   :  { %v2393_v36 = vor.u32 1.1754944e-38, %v2392_v31  ;;  %vm2391_vm7 = vcmp.eq.f32.partialorder %v2390_v61, 8.507059e+37 }
0x22f1   :  { %v4722_v54 = vpop.eup %4721 }
0x22f2   :  { %v2402_v5 = vmul.f32 %v4722_v54, %v2400_v14  ;;  %v4724_v9 = vpop.eup %4723  ;;  %vm2407_vm0 = vweird.f32 %v4722_v54 }
0x22f3   :  { %v2382_v17 = vmul.f32 %v4724_v9, %v2380_v6  ;;  %vm2408_vm2 = vmor %vm2406_vm1, %vm2407_vm0  ;;  %vm2387_vm4 = vweird.f32 %v4724_v9 }
0x22f4   :  { %v2403_v29 = vsub.f32 1.0, %v2402_v5  ;;  %vm2388_vm6 = vmor %vm2386_vm5, %vm2387_vm4 }
0x22f5   :  { %v2383_v55 = vsub.f32 1.0, %v2382_v17 }
0x22f6   :  { %v2404_v15 = vmul.f32 %v4722_v54, %v2403_v29 }
0x22f7   :  { %v2384_v18 = vmul.f32 %v4724_v9, %v2383_v55 }
0x22f8   :  { %v2405_v62 = vadd.f32 %v4722_v54, %v2404_v15 }
0x22f9   :  { %v2385_v28 = vadd.f32 %v4724_v9, %v2384_v18 }
0x22fa   :  { %v2409_v58 = vsel %vm2408_vm2, %v4722_v54, %v2405_v62 }
0x22fb   :  { %v2414_v22 = vsel %vm2411_vm3, %v2413_v19, %v2409_v58  ;;  %v2389_v10 = vsel %vm2388_vm6, %v4724_v9, %v2385_v28 }
0x22fc   :  { %v2394_v51 = vsel %vm2391_vm7, %v2393_v36, %v2389_v10  ;;  %v2434_v0 = vmul.f32 %v2414_v22, %v5703_v11 }
0x22fd   :  { %v2417_v45 = vmul.f32 %v2394_v51, %v5708_v30  ;;  %v4373_v30 = vld [vmem:[%s6331_s3 + $0x98] sm:$0xff] }
0x22fe   :  { %2863 = vmatpush.msra.mxu1 %v4373_v30 }
0x2300   :  { %2864 = vmatpush.msra.mxu1 %v4372_v57 }
0x2302   :  { %2865 = vmatpush.msra.mxu1 %v4371_v3 }
0x2304   :  { %2866 = vmatpush.msra.mxu1 %v4370_v49 }
0x233a   :  { %v2437_v21 = vpop.permute.xlu0 %2436 }
0x233b   :  { %v2439_v23 = vmul.f32 %v2437_v21, %v2414_v22 }
0x233d   :  { %2441 = vrot.lane.b32.xlu1 %v2439_v23, %s4909_s18 }
0x2342   :  { %v2420_v37 = vpop.permute.xlu2 %2419 }
0x2343   :  { %v2422_v38 = vmul.f32 %v2420_v37, %v2394_v51 }
0x2345   :  { %2424 = vrot.lane.b32.xlu1 %v2422_v38, %s4909_s18 }
0x23af   :  { %v2442_v53 = vpop.permute.xlu1 %2441 }
0x23b0   :  { %v5732_v39 = vadd.f32 %v2442_v53, %v2434_v0 }
0x23b2   :  { %4725 = vtanh.f32 %v5732_v39 }
0x23b7   :  { %v2425_v1 = vpop.permute.xlu1 %2424 }
0x23b8   :  { %v4726_v2 = vpop.eup %4725  ;;  %v5736_v4 = vadd.f32 %v2425_v1, %v2417_v45 }
0x23b9   :  { %2447 = vrot.lane.b32.xlu0 %v4726_v2, %s4908_s17 }
0x23ba   :  { %4727 = vtanh.f32 %v5736_v4 }
0x23c0   :  { %v4728_v60 = vpop.eup %4727 }
0x23c1   :  { %2430 = vrot.lane.b32.xlu0 %v4728_v60, %s4908_s17 }
0x242b   :  { %v2448_v41 = vpop.permute.xlu0 %2447 }
0x242c   :  { %v2450_v11 = vmul.f32 %v2448_v41, %v2414_v22 }
0x242e   :  { %2457 = vrot.lane.b32.xlu2 %v2450_v11, %s4909_s18 }
0x2433   :  { %v2431_v56 = vpop.permute.xlu0 %2430 }
0x2434   :  { %v2433_v35 = vmul.f32 %v2431_v56, %v2394_v51 }
0x2436   :  { %2452 = vrot.lane.b32.xlu1 %v2433_v35, %s4909_s18 }
0x2488   :  { %v2458_v63 = vpop.permute.xlu2 %2457 }
0x2489   :  { %2460 = vst.msk [vmem:[#allocation5 + $0x10] sm:$0xff] %vm32_vm8, %v2458_v63  ;;  %4363 = vmatmul.msk.f32.vlgmr.msrb.gmra.mxu1 %vm32_vm8, %v2458_v63 }
0x2491   :  { %4387 = vmatmul.msk.f32.vlgmr.msra.gmra.mxu1 %vm32_vm8, %v5757_v46 }
0x2499   :  { %4388 = vmatmul.msk.f32.gmra.mxu1 %vm32_vm8, %v5761_v20 }
0x24a1   :  { %4389 = vmatmul.msk.f32.gmra.mxu1 %vm32_vm8, %v5765_v25 }
0x24a8   :  { %v2453_v24 = vpop.permute.xlu1 %2452 }
0x24a9   :  { %2455 = vst.msk [vmem:[#allocation4 + $0x30] sm:$0xff] %vm32_vm8, %v2453_v24  ;;  %4362 = vmatmul.msk.f32.vlgmr.msrb.gmra.mxu0 %vm32_vm8, %v2453_v24  ;;  %4390 = vmatmul.msk.f32.gmra.mxu1 %vm32_vm8, %v5769_v47  ;;  %v4399_v24 = vld [vmem:[%s6331_s3 + $0xd0] sm:$0xff] }
0x24b0   :  { %v5783_v32 = vld [vmem:[#allocation4 + $0x30] sm:$0xff] }
0x24b1   :  { %4391 = vmatmul.msk.f32.gmra.mxu1 %vm32_vm8, %v5775_v13 }
0x24b9   :  { %4392 = vmatmul.msk.f32.gmra.mxu1 %vm32_vm8, %v5779_v27 }
0x24c1   :  { %4393 = vmatmul.msk.f32.gmra.mxu1 %vm32_vm8, %v5783_v32 }
0x2506   :  { %v2505_v48 = vpop.f32.mrf.mxu1 }
0x2507   :  { %v2508_v34 = vadd.f32 %v2505_v48, %v1514_v50  ;;  %v4397_v50 = vld [vmem:[%s6331_s3 + $0xc0] sm:$0xff] }
0x2509   :  { %4729 = vtanh.f32 %v2508_v34  ;;  %v4365_v5 = vmul.f32 -1.442695, %v2508_v34 }
0x250f   :  { %v4730_v14 = vpop.eup %4729 }
0x2510   :  { %2568 = vrot.lane.b32.xlu2 %v4730_v14, %s4908_s17 }
0x2526   :  { %v2481_v7 = vpop.f32.mrf.mxu0 }
0x2527   :  { %v2484_v6 = vadd.f32 %v2481_v7, %v5533_v26 }
0x2529   :  { %4731 = vtanh.f32 %v2484_v6  ;;  %v4364_v21 = vmul.f32 -1.442695, %v2484_v6 }
0x252a   :  { %4733 = vpow2.f32 %v4365_v5 }
0x252f   :  { %v4732_v54 = vpop.eup %4731 }
0x2530   :  { %2551 = vrot.lane.b32.xlu1 %v4732_v54, %s4908_s17  ;;  %v4734_v29 = vpop.eup %4733 }
0x2531   :  { %v2532_v9 = vadd.f32 1.0, %v4734_v29 }
0x2533   :  { %4735 = vrcp.f32 %v2532_v9  ;;  %v2544_v55 = vand.u32 2147483648, %v2532_v9  ;;  %vm2538_vm10 = vweird.f32 %v2532_v9  ;;  %v2542_v12 = vand.u32 2147483647, %v2532_v9 }
0x2534   :  { %4737 = vpow2.f32 %v4364_v21 }
0x2535   :  { %v2545_v16 = vor.u32 1.1754944e-38, %v2544_v55  ;;  %vm2543_vm12 = vcmp.eq.f32.partialorder %v2542_v12, 8.507059e+37 }
0x2539   :  { %v4736_v42 = vpop.eup %4735 }
0x253a   :  { %v2534_v43 = vmul.f32 %v4736_v42, %v2532_v9  ;;  %vm2539_vm9 = vweird.f32 %v4736_v42  ;;  %v4738_v22 = vpop.eup %4737 }
0x253b   :  { %vm2540_vm11 = vmor %vm2538_vm10, %vm2539_vm9  ;;  %v2512_v23 = vadd.f32 1.0, %v4738_v22 }
0x253c   :  { %v2535_v15 = vsub.f32 1.0, %v2534_v43 }
0x253d   :  { %4739 = vrcp.f32 %v2512_v23  ;;  %v2524_v37 = vand.u32 2147483648, %v2512_v23  ;;  %vm2518_vm14 = vweird.f32 %v2512_v23  ;;  %v2522_v51 = vand.u32 2147483647, %v2512_v23 }
0x253e   :  { %v2536_v17 = vmul.f32 %v4736_v42, %v2535_v15 }
0x253f   :  { %v2525_v0 = vor.u32 1.1754944e-38, %v2524_v37  ;;  %vm2523_vm0 = vcmp.eq.f32.partialorder %v2522_v51, 8.507059e+37 }
0x2540   :  { %v2537_v62 = vadd.f32 %v4736_v42, %v2536_v17 }
0x2542   :  { %v2541_v26 = vsel %vm2540_vm11, %v4736_v42, %v2537_v62 }
0x2543   :  { %v2546_v18 = vsel %vm2543_vm12, %v2545_v16, %v2541_v26  ;;  %v4740_v28 = vpop.eup %4739 }
0x2544   :  { %v2514_v31 = vmul.f32 %v4740_v28, %v2512_v23  ;;  %vm2519_vm13 = vweird.f32 %v4740_v28  ;;  %v2566_v2 = vmul.f32 %v2546_v18, %v5732_v39 }
0x2545   :  { %vm2520_vm15 = vmor %vm2518_vm14, %vm2519_vm13 }
0x2546   :  { %v2515_v61 = vsub.f32 1.0, %v2514_v31 }
0x2548   :  { %v2516_v10 = vmul.f32 %v4740_v28, %v2515_v61 }
0x254a   :  { %v2517_v36 = vadd.f32 %v4740_v28, %v2516_v10 }
0x254c   :  { %v2521_v38 = vsel %vm2520_vm15, %v4740_v28, %v2517_v36 }
0x254d   :  { %v2526_v45 = vsel %vm2523_vm0, %v2525_v0, %v2521_v38 }
0x254e   :  { %v2549_v56 = vmul.f32 %v2526_v45, %v5736_v4  ;;  %v4400_v4 = vld [vmem:[%s6331_s3 + $0xd8] sm:$0xff] }
0x254f   :  { %2984 = vmatpush.msra.mxu3 %v4400_v4  ;;  %v4401_v4 = vld [vmem:[%s6331_s3 + $0xe0] sm:$0xff] }
0x2551   :  { %2985 = vmatpush.msra.mxu3 %v4399_v24  ;;  %v4374_v24 = vld [vmem:[%s6331_s3 + $0xa0] sm:$0xff] }
0x2553   :  { %2986 = vmatpush.msra.mxu3 %v4398_v33  ;;  %v5880_v33 = vld [vmem:[%s6328_s2 + $0x98] sm:$0xff] }
0x2555   :  { %2987 = vmatpush.msra.mxu3 %v4397_v50  ;;  %v5885_v50 = vld [vmem:[%s6328_s2 + $0xb8] sm:$0xff] }
0x2556   :  { %3084 = vmatpush.msrb.mxu1 %v5885_v50 }
0x256a   :  { %v2569_v58 = vpop.permute.xlu2 %2568 }
0x256b   :  { %v2571_v19 = vmul.f32 %v2569_v58, %v2546_v18 }
0x256d   :  { %2573 = vrot.lane.b32.xlu0 %v2571_v19, %s4909_s18 }
0x25a2   :  { %v2552_v53 = vpop.permute.xlu1 %2551 }
0x25a3   :  { %v2554_v1 = vmul.f32 %v2552_v53, %v2526_v45 }
0x25a5   :  { %2556 = vrot.lane.b32.xlu0 %v2554_v1, %s4909_s18 }
0x25df   :  { %v2574_v60 = vpop.permute.xlu0 %2573 }
0x25e0   :  { %v5796_v41 = vadd.f32 %v2574_v60, %v2566_v2 }
0x25e2   :  { %4741 = vtanh.f32 %v5796_v41 }
0x25e8   :  { %v4742_v11 = vpop.eup %4741 }
0x25e9   :  { %2579 = vrot.lane.b32.xlu2 %v4742_v11, %s4908_s17 }
0x2617   :  { %v2557_v35 = vpop.permute.xlu0 %2556 }
0x2618   :  { %v5801_v30 = vadd.f32 %v2557_v35, %v2549_v56 }
0x261a   :  { %4743 = vtanh.f32 %v5801_v30 }
0x2620   :  { %v4744_v57 = vpop.eup %4743 }
0x2621   :  { %2562 = vrot.lane.b32.xlu2 %v4744_v57, %s4908_s17  ;;  %v4404_v57 = vld [vmem:[%s6331_s3 + $0xf8] sm:$0xff] }
0x2622   :  { %2940 = vmatpush.msra.mxu2 %v4404_v57 }
0x2643   :  { %v2580_v3 = vpop.permute.xlu2 %2579 }
0x2644   :  { %v2582_v39 = vmul.f32 %v2580_v3, %v2546_v18  ;;  %v4403_v3 = vld [vmem:[%s6331_s3 + $0xf0] sm:$0xff] }
0x2645   :  { %2941 = vmatpush.msra.mxu2 %v4403_v3 }
0x2646   :  { %2589 = vrot.lane.b32.xlu1 %v2582_v39, %s4909_s18  ;;  %v4376_v39 = vld [vmem:[%s6331_s3 + $0xb0] sm:$0xff] }
0x267b   :  { %v2563_v49 = vpop.permute.xlu2 %2562 }
0x267c   :  { %v2565_v63 = vmul.f32 %v2563_v49, %v2526_v45  ;;  %v4402_v49 = vld [vmem:[%s6331_s3 + $0xe8] sm:$0xff] }
0x267d   :  { %2942 = vmatpush.msra.mxu2 %v4402_v49 }
0x267e   :  { %2584 = vrot.lane.b32.xlu0 %v2565_v63, %s4909_s18  ;;  %v4375_v63 = vld [vmem:[%s6331_s3 + $0xa8] sm:$0xff] }
0x267f   :  { %2943 = vmatpush.msra.mxu2 %v4401_v4 }
0x26b8   :  { %v2590_v48 = vpop.permute.xlu1 %2589 }
0x26b9   :  { %2592 = vst.msk [vmem:[#allocation5 + $0x8] sm:$0xff] %vm32_vm8, %v2590_v48  ;;  %4367 = vmatmul.msk.f32.vlgmr.msrb.gmra.mxu3 %vm32_vm8, %v2590_v48  ;;  %v5894_v48 = vld [vmem:[%s6328_s2 + $0x90] sm:$0xff] }
0x26ba   :  { %3216 = vmatpush.msrb.mxu3 %v5885_v50 }
0x26c1   :  { %4414 = vmatmul.msk.f32.vlgmr.msra.gmra.mxu3 %vm32_vm8, %v5757_v46 }
0x26c9   :  { %4415 = vmatmul.msk.f32.gmra.mxu3 %vm32_vm8, %v5761_v20  ;;  %v1482_v20 = vadd.f32 %v5477_v40, %v5483_v44 }
0x26d1   :  { %4416 = vmatmul.msk.f32.gmra.mxu3 %vm32_vm8, %v5765_v25  ;;  %v1513_v25 = vadd.f32 %v5723_v59, %v1482_v20 }
0x26d9   :  { %4417 = vmatmul.msk.f32.gmra.mxu3 %vm32_vm8, %v5769_v47 }
0x26e1   :  { %4418 = vmatmul.msk.f32.gmra.mxu3 %vm32_vm8, %v5775_v13 }
0x26e9   :  { %4419 = vmatmul.msk.f32.gmra.mxu3 %vm32_vm8, %v5779_v27 }
0x26f0   :  { %v2585_v34 = vpop.permute.xlu0 %2584 }
0x26f1   :  { %2587 = vst.msk [vmem:[#allocation4 + $0x38] sm:$0xff] %vm32_vm8, %v2585_v34  ;;  %4366 = vmatmul.msk.f32.vlgmr.msrb.gmra.mxu2 %vm32_vm8, %v2585_v34  ;;  %4420 = vmatmul.msk.f32.gmra.mxu3 %vm32_vm8, %v5783_v32  ;;  %v5899_v34 = vld [vmem:[%s6328_s2 + $0xb0] sm:$0xff] }
0x26f2   :  { %3192 = vmatpush.msrb.mxu2 %v5880_v33  ;;  %3085 = vmatpush.msrb.mxu1 %v5899_v34 }
0x26f3   :  { %3217 = vmatpush.msrb.mxu3 %v5899_v34 }
0x26f4   :  { %3193 = vmatpush.msrb.mxu2 %v5894_v48 }
0x26f8   :  { %v2732_v46 = vld [vmem:[#allocation4 + $0x38] sm:$0xff] }
0x26f9   :  { %4394 = vmatmul.msk.f32.gmra.mxu1 %vm32_vm8, %v2732_v46  ;;  %4421 = vmatmul.msk.f32.gmra.mxu3 %vm32_vm8, %v2732_v46 }
0x273c   :  { %v2637_v47 = vpop.f32.mrf.mxu3 }
0x273d   :  { %v2640_v13 = vadd.f32 %v2637_v47, %v1513_v25  ;;  %v5911_v25 = vld [vmem:[%s6328_s2 + $0x88] sm:$0xff] }
0x273e   :  { %v5916_v47 = vld [vmem:[%s6328_s2 + $0xa8] sm:$0xff]  ;;  %3194 = vmatpush.msrb.mxu2 %v5911_v25 }
0x273f   :  { %4745 = vtanh.f32 %v2640_v13  ;;  %v4369_v6 = vmul.f32 -1.442695, %v2640_v13  ;;  %3086 = vmatpush.msrb.mxu1 %v5916_v47  ;;  %3218 = vmatpush.msrb.mxu3 %v5916_v47  ;;  %v2735_v13 = vld [vmem:[#allocation5 + $0x8] sm:$0xff] }
0x2745   :  { %v4746_v27 = vpop.eup %4745 }
0x2746   :  { %2700 = vrot.lane.b32.xlu1 %v4746_v27, %s4908_s17  ;;  %v2736_v27 = vld [vmem:[#allocation5 + $0x10] sm:$0xff] }
0x2774   :  { %v2613_v14 = vpop.f32.mrf.mxu2 }
0x2775   :  { %v2616_v7 = vadd.f32 %v2613_v14, %v5542_v52 }
0x2777   :  { %4747 = vtanh.f32 %v2616_v7  ;;  %v4368_v12 = vmul.f32 -1.442695, %v2616_v7  ;;  %v2737_v7 = vld [vmem:[#allocation5 + $0x18] sm:$0xff] }
0x2778   :  { %4749 = vpow2.f32 %v4369_v6  ;;  %v5937_v6 = vld [vmem:[%s6328_s2 + $0xa0] sm:$0xff] }
0x2779   :  { %3087 = vmatpush.msrb.mxu1 %v5937_v6  ;;  %3219 = vmatpush.msrb.mxu3 %v5937_v6 }
0x277b   :  { %3348 = vmatpush.msra.mxu1 %v5885_v50  ;;  %3480 = vmatpush.msra.mxu3 %v5885_v50 }
0x277d   :  { %v4748_v32 = vpop.eup %4747  ;;  %3349 = vmatpush.msra.mxu1 %v5899_v34  ;;  %3481 = vmatpush.msra.mxu3 %v5899_v34 }
0x277e   :  { %2683 = vrot.lane.b32.xlu0 %v4748_v32, %s4908_s17  ;;  %v4750_v54 = vpop.eup %4749  ;;  %v5932_v32 = vld [vmem:[%s6328_s2 + $0x80] sm:$0xff] }
0x277f   :  { %v2664_v5 = vadd.f32 1.0, %v4750_v54  ;;  %3195 = vmatpush.msrb.mxu2 %v5932_v32  ;;  %v2738_v54 = vld [vmem:[#allocation5 + $0x20] sm:$0xff]  ;;  %3350 = vmatpush.msra.mxu1 %v5916_v47 }
0x2780   :  { %3482 = vmatpush.msra.mxu3 %v5916_v47 }
0x2781   :  { %4751 = vrcp.f32 %v2664_v5  ;;  %v2676_v42 = vand.u32 2147483648, %v2664_v5  ;;  %vm2670_vm2 = vweird.f32 %v2664_v5  ;;  %v2674_v43 = vand.u32 2147483647, %v2664_v5  ;;  %3351 = vmatpush.msra.mxu1 %v5937_v6 }
0x2782   :  { %4753 = vpow2.f32 %v4368_v12  ;;  %3483 = vmatpush.msra.mxu3 %v5937_v6 }
0x2783   :  { %v2677_v15 = vor.u32 1.1754944e-38, %v2676_v42  ;;  %vm2675_vm4 = vcmp.eq.f32.partialorder %v2674_v43, 8.507059e+37  ;;  %v5981_v42 = vpop.f32.mrf.mxu3 }
0x2787   :  { %v4752_v40 = vpop.eup %4751 }
0x2788   :  { %v2666_v44 = vmul.f32 %v4752_v40, %v2664_v5  ;;  %vm2671_vm1 = vweird.f32 %v4752_v40  ;;  %v4754_v26 = vpop.eup %4753 }
0x2789   :  { %vm2672_vm3 = vmor %vm2670_vm2, %vm2671_vm1  ;;  %v2644_v16 = vadd.f32 1.0, %v4754_v26  ;;  %v4471_v26 = vld [vmem:[%s6332_s4 + $0x2] ss:$0 sm:$0xff] }
0x278a   :  { %v2667_v59 = vsub.f32 1.0, %v2666_v44  ;;  %v2740_v44 = vld [vmem:[#allocation5 + $0x30] sm:$0xff] }
0x278b   :  { %4755 = vrcp.f32 %v2644_v16  ;;  %v2656_v23 = vand.u32 2147483648, %v2644_v16  ;;  %vm2650_vm6 = vweird.f32 %v2644_v16  ;;  %v2654_v28 = vand.u32 2147483647, %v2644_v16 }
0x278c   :  { %v2668_v29 = vmul.f32 %v4752_v40, %v2667_v59  ;;  %v2741_v59 = vld [vmem:[#allocation5 + $0x38] sm:$0xff] }
0x278d   :  { %v2657_v61 = vor.u32 1.1754944e-38, %v2656_v23  ;;  %vm2655_vm9 = vcmp.eq.f32.partialorder %v2654_v28, 8.507059e+37 }
0x278e   :  { %v2669_v9 = vadd.f32 %v4752_v40, %v2668_v29  ;;  %v2742_v29 = vld [vmem:[#allocation5 + $0x40] sm:$0xff] }
0x2790   :  { %v2673_v52 = vsel %vm2672_vm3, %v4752_v40, %v2669_v9  ;;  %v2739_v40 = vld [vmem:[#allocation5 + $0x28] sm:$0xff]  ;;  %v2868_v9 = vpop.f32.mrf.mxu1 }
0x2791   :  { %v2678_v62 = vsel %vm2675_vm4, %v2677_v15, %v2673_v52  ;;  %v4756_v58 = vpop.eup %4755 }
0x2792   :  { %v2646_v18 = vmul.f32 %v4756_v58, %v2644_v16  ;;  %vm2651_vm5 = vweird.f32 %v4756_v58  ;;  %v2698_v51 = vmul.f32 %v2678_v62, %v5796_v41 }
0x2793   :  { %vm2652_vm7 = vmor %vm2650_vm6, %vm2651_vm5 }
0x2794   :  { %v2647_v19 = vsub.f32 1.0, %v2646_v18 }
0x2796   :  { %v2648_v21 = vmul.f32 %v4756_v58, %v2647_v19 }
0x2798   :  { %v2649_v22 = vadd.f32 %v4756_v58, %v2648_v21  ;;  %v2871_v43 = vpop.f32.mrf.mxu1 }
0x279a   :  { %v2653_v31 = vsel %vm2652_vm7, %v4756_v58, %v2649_v22 }
0x279b   :  { %v2658_v36 = vsel %vm2655_vm9, %v2657_v61, %v2653_v31 }
0x279c   :  { %v2681_v45 = vmul.f32 %v2658_v36, %v5801_v30  ;;  %v4377_v30 = vld [vmem:[%s6331_s3 + $0xb8] sm:$0xff] }
0x279d   :  { %2792 = vmatpush.msra.mxu0 %v4377_v30 }
0x279f   :  { %2793 = vmatpush.msra.mxu0 %v4376_v39 }
0x27a1   :  { %2794 = vmatpush.msra.mxu0 %v4375_v63 }
0x27a3   :  { %2795 = vmatpush.msra.mxu0 %v4374_v24 }
0x27a5   :  { %3062 = vmatpush.msrb.mxu0 %v5880_v33 }
0x27a7   :  { %3063 = vmatpush.msrb.mxu0 %v5894_v48 }
0x27a9   :  { %3064 = vmatpush.msrb.mxu0 %v5911_v25 }
0x27ab   :  { %3065 = vmatpush.msrb.mxu0 %v5932_v32 }
0x27b8   :  { %v2701_v17 = vpop.permute.xlu1 %2700 }
0x27b9   :  { %v2703_v55 = vmul.f32 %v2701_v17, %v2678_v62  ;;  %v5983_v17 = vpop.f32.mrf.mxu3 }
0x27bb   :  { %2705 = vrot.lane.b32.xlu2 %v2703_v55, %s4909_s18  ;;  %v2874_v55 = vpop.f32.mrf.mxu1 }
0x27c1   :  { %v5992_v58 = vpop.f32.mrf.mxu3 }
0x27c3   :  { %v2877_v22 = vpop.f32.mrf.mxu1 }
0x27c9   :  { %v6000_v31 = vpop.f32.mrf.mxu3 }
0x27f0   :  { %v2684_v10 = vpop.permute.xlu0 %2683 }
0x27f1   :  { %v2686_v37 = vmul.f32 %v2684_v10, %v2658_v36 }
0x27f3   :  { %2688 = vrot.lane.b32.xlu2 %v2686_v37, %s4909_s18  ;;  %v2880_v37 = vpop.f32.mrf.mxu1 }
0x2815   :  { %v2706_v38 = vpop.permute.xlu2 %2705 }
0x2816   :  { %v2708_v0 = vadd.f32 %v2706_v38, %v2698_v51 }
0x2818   :  { %4757 = vtanh.f32 %v2708_v0  ;;  %v6006_v0 = vpop.f32.mrf.mxu3 }
0x281e   :  { %v4758_v53 = vpop.eup %4757 }
0x281f   :  { %2711 = vrot.lane.b32.xlu1 %v4758_v53, %s4908_s17 }
0x284d   :  { %v2689_v1 = vpop.permute.xlu2 %2688 }
0x284e   :  { %v2691_v2 = vadd.f32 %v2689_v1, %v2681_v45  ;;  %v2883_v1 = vpop.f32.mrf.mxu1 }
0x2850   :  { %4759 = vtanh.f32 %v2691_v2 }
0x2856   :  { %v4760_v60 = vpop.eup %4759  ;;  %v2886_v57 = vpop.f32.mrf.mxu1 }
0x2857   :  { %2694 = vrot.lane.b32.xlu1 %v4760_v60, %s4908_s17 }
0x285e   :  { %v2889_v4 = vpop.f32.mrf.mxu1 }
0x2891   :  { %v2712_v11 = vpop.permute.xlu1 %2711 }
0x2892   :  { %v2714_v56 = vmul.f32 %v2712_v11, %v2678_v62 }
0x2894   :  { %2721 = vrot.lane.b32.xlu0 %v2714_v56, %s4909_s18  ;;  %v6012_v56 = vpop.f32.mrf.mxu3 }
0x289c   :  { %v6020_v49 = vpop.f32.mrf.mxu3 }
0x28c9   :  { %v2695_v35 = vpop.permute.xlu1 %2694 }
0x28ca   :  { %v2697_v41 = vmul.f32 %v2695_v35, %v2658_v36 }
0x28cc   :  { %2716 = vrot.lane.b32.xlu2 %v2697_v41, %s4909_s18 }
0x2906   :  { %v2722_v46 = vpop.permute.xlu0 %2721 }
0x2907   :  { %2724 = vst.msk [vmem:[#allocation5] sm:$0xff] %vm32_vm8, %v2722_v46 }
0x290e   :  { %v2734_v20 = vld [vmem:[#allocation5] sm:$0xff] }
0x290f   :  { %4378 = vmatmul.msk.f32.vlgmr.msra.gmra.mxu0 %vm32_vm8, %v2734_v20  ;;  %4405 = vmatmul.msk.f32.vlgmr.msra.gmra.mxu2 %vm32_vm8, %v2734_v20 }
0x2910   :  { %3324 = vmatpush.msra.mxu0 %v5880_v33  ;;  %3456 = vmatpush.msra.mxu2 %v5880_v33 }
0x2912   :  { %3325 = vmatpush.msra.mxu0 %v5894_v48  ;;  %3457 = vmatpush.msra.mxu2 %v5894_v48 }
0x2914   :  { %3326 = vmatpush.msra.mxu0 %v5911_v25  ;;  %3458 = vmatpush.msra.mxu2 %v5911_v25 }
0x2916   :  { %3327 = vmatpush.msra.mxu0 %v5932_v32  ;;  %3459 = vmatpush.msra.mxu2 %v5932_v32 }
0x2917   :  { %4379 = vmatmul.msk.f32.gmra.mxu0 %vm32_vm8, %v2735_v13  ;;  %4406 = vmatmul.msk.f32.gmra.mxu2 %vm32_vm8, %v2735_v13  ;;  %v3010_v13 = vpop.f32.mrf.mxu3 }
0x291f   :  { %4380 = vmatmul.msk.f32.gmra.mxu0 %vm32_vm8, %v2736_v27  ;;  %4407 = vmatmul.msk.f32.gmra.mxu2 %vm32_vm8, %v2736_v27 }
0x2926   :  { %v2717_v14 = vpop.permute.xlu2 %2716 }
0x2927   :  { %2719 = vst.msk [vmem:[#allocation4 + $0x40] sm:$0xff] %vm32_vm8, %v2717_v14  ;;  %4381 = vmatmul.msk.f32.gmra.mxu0 %vm32_vm8, %v2737_v7  ;;  %4408 = vmatmul.msk.f32.gmra.mxu2 %vm32_vm8, %v2737_v7 }
0x292e   :  { %v2733_v5 = vld [vmem:[#allocation4 + $0x40] sm:$0xff] }
0x292f   :  { %4382 = vmatmul.msk.f32.gmra.mxu0 %vm32_vm8, %v2738_v54  ;;  %4395 = vmatmul.msk.f32.gmra.mxu1 %vm32_vm8, %v2733_v5 }
0x2930   :  { %4409 = vmatmul.msk.f32.gmra.mxu2 %vm32_vm8, %v2738_v54  ;;  %4422 = vmatmul.msk.f32.gmra.mxu3 %vm32_vm8, %v2733_v5 }
0x2937   :  { %4383 = vmatmul.msk.f32.gmra.mxu0 %vm32_vm8, %v2739_v40  ;;  %3088 = vmatmul.f32.vlgmr.msrb.gmra.mxu1 %v4907_v8 }
0x2938   :  { %4410 = vmatmul.msk.f32.gmra.mxu2 %vm32_vm8, %v2739_v40  ;;  %3612 = vmatpush.msrb.mxu1 %v5885_v50 }
0x293a   :  { %3613 = vmatpush.msrb.mxu1 %v5899_v34 }
0x293c   :  { %3614 = vmatpush.msrb.mxu1 %v5916_v47 }
0x293e   :  { %3615 = vmatpush.msrb.mxu1 %v5937_v6 }
0x293f   :  { %4384 = vmatmul.msk.f32.gmra.mxu0 %vm32_vm8, %v2740_v44 }
0x2940   :  { %4411 = vmatmul.msk.f32.gmra.mxu2 %vm32_vm8, %v2740_v44 }
0x2947   :  { %4385 = vmatmul.msk.f32.gmra.mxu0 %vm32_vm8, %v2741_v59 }
0x2948   :  { %4412 = vmatmul.msk.f32.gmra.mxu2 %vm32_vm8, %v2741_v59 }
0x294f   :  { %4386 = vmatmul.msk.f32.gmra.mxu0 %vm32_vm8, %v2742_v29 }
0x2950   :  { %4413 = vmatmul.msk.f32.gmra.mxu2 %vm32_vm8, %v2742_v29 }
0x2957   :  { %3066 = vmatmul.f32.vlgmr.msrb.gmra.mxu0 %v4907_v8 }
0x2958   :  { %3588 = vmatpush.msrb.mxu0 %v5880_v33 }
0x295a   :  { %3589 = vmatpush.msrb.mxu0 %v5894_v48 }
0x295c   :  { %3590 = vmatpush.msrb.mxu0 %v5911_v25 }
0x295e   :  { %3591 = vmatpush.msrb.mxu0 %v5932_v32 }
0x298c   :  { %v2797_v52 = vpop.f32.mrf.mxu0 }
0x298d   :  { %v2869_v15 = vadd.f32 %v2868_v9, %v2797_v52  ;;  %v6033_v52 = vld [vmem:[%s6332_s4 + $0x3] ss:$0 sm:$0xff] }
0x298f   :  { %v2900_v29 = vadd.f32 %v4471_v26, %v2869_v15 }
0x2992   :  { %v5985_v62 = vpop.f32.mrf.mxu2 }
0x2994   :  { %v2800_v8 = vpop.f32.mrf.mxu0 }
0x2995   :  { %v2872_v12 = vadd.f32 %v2871_v43, %v2800_v8 }
0x2997   :  { %v5990_v16 = vadd.f32 %v4471_v26, %v2872_v12 }
0x299a   :  { %v5994_v18 = vpop.f32.mrf.mxu2 }
0x299c   :  { %v2803_v19 = vpop.f32.mrf.mxu0 }
0x299d   :  { %v2875_v21 = vadd.f32 %v2874_v55, %v2803_v19 }
0x299f   :  { %v5996_v23 = vadd.f32 %v4471_v26, %v2875_v21 }
0x29a2   :  { %v5998_v28 = vpop.f32.mrf.mxu2 }
0x29a4   :  { %v2806_v61 = vpop.f32.mrf.mxu0 }
0x29a5   :  { %v2878_v10 = vadd.f32 %v2877_v22, %v2806_v61 }
0x29a7   :  { %v6002_v36 = vadd.f32 %v4471_v26, %v2878_v10 }
0x29aa   :  { %v6004_v51 = vpop.f32.mrf.mxu2 }
0x29ac   :  { %v2809_v38 = vpop.f32.mrf.mxu0  ;;  %v2892_v14 = vpop.f32.mrf.mxu1 }
0x29ad   :  { %v2881_v53 = vadd.f32 %v2880_v37, %v2809_v38 }
0x29af   :  { %v6008_v45 = vadd.f32 %v4471_v26, %v2881_v53 }
0x29b3   :  { %v6010_v2 = vpop.f32.mrf.mxu2  ;;  %v3013_v44 = vpop.f32.mrf.mxu3 }
0x29b4   :  { %v2812_v60 = vpop.f32.mrf.mxu0  ;;  %v3089_v8 = vpop.f32.mrf.mxu1 }
0x29b5   :  { %v2884_v11 = vadd.f32 %v2883_v1, %v2812_v60 }
0x29b7   :  { %v6014_v35 = vadd.f32 %v4471_v26, %v2884_v11 }
0x29bb   :  { %v6016_v41 = vpop.f32.mrf.mxu2 }
0x29bc   :  { %v2815_v30 = vpop.f32.mrf.mxu0 }
0x29bd   :  { %v2887_v3 = vadd.f32 %v2886_v57, %v2815_v30 }
0x29bf   :  { %v6018_v39 = vadd.f32 %v4471_v26, %v2887_v3 }
0x29c3   :  { %v6022_v63 = vpop.f32.mrf.mxu2 }
0x29c4   :  { %v2818_v24 = vpop.f32.mrf.mxu0 }
0x29c5   :  { %v2890_v46 = vadd.f32 %v2889_v4, %v2818_v24 }
0x29c7   :  { %v6024_v20 = vadd.f32 %v4471_v26, %v2890_v46 }
0x29cb   :  { %v2966_v27 = vpop.f32.mrf.mxu2 }
0x29cc   :  { %v6026_v7 = vadd.f32 %v3010_v13, %v2966_v27  ;;  %v2821_v54 = vpop.f32.mrf.mxu0 }
0x29cd   :  { %v2893_v5 = vadd.f32 %v2892_v14, %v2821_v54 }
0x29cf   :  { %v6028_v40 = vadd.f32 %v4471_v26, %v2893_v5 }
0x29d3   :  { %v2969_v59 = vpop.f32.mrf.mxu2 }
0x29d4   :  { %v3014_v9 = vadd.f32 %v3013_v44, %v2969_v59  ;;  %v3067_v43 = vpop.f32.mrf.mxu0 }
0x29d5   :  { %v3070_v55 = vadd.f32 %v3067_v43, %v2900_v29 }
0x29d6   :  { %v3029_v12 = vadd.f32 %v6033_v52, %v3014_v9 }
0x29d7   :  { %4761 = vtanh.f32 %v3070_v55  ;;  %v4432_v15 = vmul.f32 -1.442695, %v3070_v55 }
0x29d8   :  { %v3092_v19 = vadd.f32 %v3089_v8, %v3029_v12 }
0x29da   :  { %4763 = vtanh.f32 %v3092_v19  ;;  %v4433_v26 = vmul.f32 -1.442695, %v3092_v19 }
0x29db   :  { %4765 = vpow2.f32 %v4432_v15 }
0x29dc   :  { %4767 = vpow2.f32 %v4433_v26 }
0x29dd   :  { %v4762_v21 = vpop.eup %4761 }
0x29de   :  { %3135 = vrot.lane.b32.xlu0 %v4762_v21, %s4908_s17 }
0x29e0   :  { %v4764_v22 = vpop.eup %4763 }
0x29e1   :  { %3152 = vrot.lane.b32.xlu1 %v4764_v22, %s4908_s17  ;;  %v4766_v61 = vpop.eup %4765 }
0x29e2   :  { %v4768_v10 = vpop.eup %4767  ;;  %v3096_v37 = vadd.f32 1.0, %v4766_v61 }
0x29e3   :  { %v3116_v38 = vadd.f32 1.0, %v4768_v10 }
0x29e4   :  { %4769 = vrcp.f32 %v3096_v37  ;;  %v3108_v46 = vand.u32 2147483648, %v3096_v37  ;;  %vm3102_vm11 = vweird.f32 %v3096_v37  ;;  %v3106_v13 = vand.u32 2147483647, %v3096_v37 }
0x29e5   :  { %4771 = vrcp.f32 %v3116_v38  ;;  %v3128_v54 = vand.u32 2147483648, %v3116_v38  ;;  %vm3122_vm14 = vweird.f32 %v3116_v38  ;;  %v3126_v44 = vand.u32 2147483647, %v3116_v38 }
0x29e6   :  { %v3109_v5 = vor.u32 1.1754944e-38, %v3108_v46  ;;  %vm3107_vm15 = vcmp.eq.f32.partialorder %v3106_v13, 8.507059e+37 }
0x29e7   :  { %v3129_v55 = vor.u32 1.1754944e-38, %v3128_v54  ;;  %vm3127_vm1 = vcmp.eq.f32.partialorder %v3126_v44, 8.507059e+37 }
0x29ea   :  { %v4770_v53 = vpop.eup %4769 }
0x29eb   :  { %v4772_v1 = vpop.eup %4771  ;;  %v3098_v60 = vmul.f32 %v4770_v53, %v3096_v37  ;;  %vm3103_vm10 = vweird.f32 %v4770_v53 }
0x29ec   :  { %v3118_v11 = vmul.f32 %v4772_v1, %v3116_v38  ;;  %vm3104_vm12 = vmor %vm3102_vm11, %vm3103_vm10  ;;  %vm3123_vm13 = vweird.f32 %v4772_v1 }
0x29ed   :  { %v3099_v57 = vsub.f32 1.0, %v3098_v60  ;;  %vm3124_vm0 = vmor %vm3122_vm14, %vm3123_vm13 }
0x29ee   :  { %v3119_v30 = vsub.f32 1.0, %v3118_v11 }
0x29ef   :  { %v3100_v3 = vmul.f32 %v4770_v53, %v3099_v57 }
0x29f0   :  { %v3120_v4 = vmul.f32 %v4772_v1, %v3119_v30 }
0x29f1   :  { %v3101_v24 = vadd.f32 %v4770_v53, %v3100_v3 }
0x29f2   :  { %v3121_v27 = vadd.f32 %v4772_v1, %v3120_v4 }
0x29f3   :  { %v3105_v14 = vsel %vm3104_vm12, %v4770_v53, %v3101_v24  ;;  %v3028_v24 = vadd.f32 %v6033_v52, %v6026_v7 }
0x29f4   :  { %v3110_v29 = vsel %vm3107_vm15, %v3109_v5, %v3105_v14  ;;  %v3125_v9 = vsel %vm3124_vm0, %v4772_v1, %v3121_v27 }
0x29f5   :  { %v3130_v12 = vsel %vm3127_vm1, %v3129_v55, %v3125_v9  ;;  %v3133_v21 = vmul.f32 0.0, %v3110_v29 }
0x29f6   :  { %v3150_v61 = vmul.f32 0.0, %v3130_v12 }
0x2a50   :  { %v3136_v59 = vpop.permute.xlu0 %3135 }
0x2a51   :  { %v3138_v43 = vmul.f32 %v3136_v59, %v3110_v29 }
0x2a53   :  { %v3153_v8 = vpop.permute.xlu1 %3152  ;;  %3140 = vrot.lane.b32.xlu2 %v3138_v43, %s4909_s18 }
0x2a54   :  { %v3155_v19 = vmul.f32 %v3153_v8, %v3130_v12 }
0x2a56   :  { %3157 = vrot.lane.b32.xlu0 %v3155_v19, %s4909_s18 }
0x2aad   :  { %v3141_v22 = vpop.permute.xlu2 %3140 }
0x2aae   :  { %v6040_v15 = vadd.f32 %v3141_v22, %v3133_v21 }
0x2ab0   :  { %4773 = vtanh.f32 %v6040_v15 }
0x2ab6   :  { %v4774_v26 = vpop.eup %4773 }
0x2ab7   :  { %3146 = vrot.lane.b32.xlu1 %v4774_v26, %s4908_s17 }
0x2ac8   :  { %v3158_v10 = vpop.permute.xlu0 %3157 }
0x2ac9   :  { %v6044_v37 = vadd.f32 %v3158_v10, %v3150_v61 }
0x2acb   :  { %4775 = vtanh.f32 %v6044_v37 }
0x2ad1   :  { %v4776_v38 = vpop.eup %4775 }
0x2ad2   :  { %3163 = vrot.lane.b32.xlu2 %v4776_v38, %s4908_s17 }
0x2b29   :  { %v3147_v53 = vpop.permute.xlu1 %3146 }
0x2b2a   :  { %v3149_v1 = vmul.f32 %v3147_v53, %v3110_v29 }
0x2b2c   :  { %v3164_v60 = vpop.permute.xlu2 %3163  ;;  %3168 = vrot.lane.b32.xlu0 %v3149_v1, %s4909_s18 }
0x2b2d   :  { %v3166_v11 = vmul.f32 %v3164_v60, %v3130_v12 }
0x2b2f   :  { %3173 = vrot.lane.b32.xlu1 %v3166_v11, %s4909_s18 }
0x2b9e   :  { %v3169_v57 = vpop.permute.xlu0 %3168 }
0x2b9f   :  { %3171 = vst.msk [vmem:[%s6333_s5] sm:$0xff] %vm32_vm8, %v3169_v57  ;;  %4434 = vmatmul.msk.f32.vlgmr.msrb.gmra.mxu2 %vm32_vm8, %v3169_v57 }
0x2ba0   :  { %3720 = vmatpush.msrb.mxu2 %v5880_v33 }
0x2ba1   :  { %v3174_v30 = vpop.permute.xlu1 %3173 }
0x2ba2   :  { %3176 = vst.msk [vmem:[%s6334_s6 + $0x40] sm:$0xff] %vm32_vm8, %v3174_v30  ;;  %4435 = vmatmul.msk.f32.vlgmr.msrb.gmra.mxu3 %vm32_vm8, %v3174_v30  ;;  %3721 = vmatpush.msrb.mxu2 %v5894_v48 }
0x2ba3   :  { %3744 = vmatpush.msrb.mxu3 %v5885_v50 }
0x2ba4   :  { %3722 = vmatpush.msrb.mxu2 %v5911_v25 }
0x2ba5   :  { %3745 = vmatpush.msrb.mxu3 %v5899_v34 }
0x2ba6   :  { %3723 = vmatpush.msrb.mxu2 %v5932_v32 }
0x2ba7   :  { %3746 = vmatpush.msrb.mxu3 %v5916_v47 }
0x2ba9   :  { %3747 = vmatpush.msrb.mxu3 %v5937_v6 }
0x2c22   :  { %v3197_v3 = vpop.f32.mrf.mxu2 }
0x2c23   :  { %v3200_v4 = vadd.f32 %v3197_v3, %v5990_v16 }
0x2c25   :  { %4777 = vtanh.f32 %v3200_v4  ;;  %v3221_v46 = vpop.f32.mrf.mxu3  ;;  %v4436_v54 = vmul.f32 -1.442695, %v3200_v4 }
0x2c26   :  { %v3224_v13 = vadd.f32 %v3221_v46, %v3028_v24 }
0x2c28   :  { %4779 = vtanh.f32 %v3224_v13  ;;  %v4437_v29 = vmul.f32 -1.442695, %v3224_v13 }
0x2c29   :  { %4781 = vpow2.f32 %v4436_v54 }
0x2c2b   :  { %v4778_v27 = vpop.eup %4777 }
0x2c2c   :  { %3267 = vrot.lane.b32.xlu2 %v4778_v27, %s4908_s17 }
0x2c2e   :  { %v4780_v14 = vpop.eup %4779 }
0x2c2f   :  { %3284 = vrot.lane.b32.xlu0 %v4780_v14, %s4908_s17  ;;  %v4782_v5 = vpop.eup %4781 }
0x2c30   :  { %v3228_v44 = vadd.f32 1.0, %v4782_v5 }
0x2c32   :  { %4783 = vrcp.f32 %v3228_v44  ;;  %v3240_v8 = vand.u32 2147483648, %v3228_v44  ;;  %vm3234_vm3 = vweird.f32 %v3228_v44  ;;  %v3238_v19 = vand.u32 2147483647, %v3228_v44 }
0x2c33   :  { %4785 = vpow2.f32 %v4437_v29 }
0x2c34   :  { %v3241_v22 = vor.u32 1.1754944e-38, %v3240_v8  ;;  %vm3239_vm5 = vcmp.eq.f32.partialorder %v3238_v19, 8.507059e+37 }
0x2c38   :  { %v4784_v59 = vpop.eup %4783 }
0x2c39   :  { %v3230_v16 = vmul.f32 %v4784_v59, %v3228_v44  ;;  %v4786_v43 = vpop.eup %4785  ;;  %vm3235_vm2 = vweird.f32 %v4784_v59 }
0x2c3a   :  { %v3248_v12 = vadd.f32 1.0, %v4786_v43  ;;  %vm3236_vm4 = vmor %vm3234_vm3, %vm3235_vm2 }
0x2c3b   :  { %v3231_v9 = vsub.f32 1.0, %v3230_v16 }
0x2c3c   :  { %4787 = vrcp.f32 %v3248_v12  ;;  %v3260_v57 = vand.u32 2147483648, %v3248_v12  ;;  %vm3254_vm7 = vweird.f32 %v3248_v12  ;;  %v3258_v30 = vand.u32 2147483647, %v3248_v12 }
0x2c3d   :  { %v3232_v7 = vmul.f32 %v4784_v59, %v3231_v9 }
0x2c3e   :  { %v3261_v4 = vor.u32 1.1754944e-38, %v3260_v57  ;;  %vm3259_vm10 = vcmp.eq.f32.partialorder %v3258_v30, 8.507059e+37 }
0x2c3f   :  { %v3233_v55 = vadd.f32 %v4784_v59, %v3232_v7 }
0x2c41   :  { %v3237_v21 = vsel %vm3236_vm4, %v4784_v59, %v3233_v55 }
0x2c42   :  { %v3242_v61 = vsel %vm3239_vm5, %v3241_v22, %v3237_v21  ;;  %v4788_v38 = vpop.eup %4787  ;;  %v3008_v21 = vadd.f32 %v6020_v49, %v6022_v63 }
0x2c43   :  { %v3250_v53 = vmul.f32 %v4788_v38, %v3248_v12  ;;  %vm3255_vm6 = vweird.f32 %v4788_v38  ;;  %v3265_v27 = vmul.f32 %v3242_v61, %v6040_v15 }
0x2c44   :  { %vm3256_vm9 = vmor %vm3254_vm7, %vm3255_vm6  ;;  %v3027_v22 = vadd.f32 %v6033_v52, %v3008_v21 }
0x2c45   :  { %v3251_v1 = vsub.f32 1.0, %v3250_v53 }
0x2c47   :  { %v3252_v60 = vmul.f32 %v4788_v38, %v3251_v1 }
0x2c49   :  { %v3253_v11 = vadd.f32 %v4788_v38, %v3252_v60 }
0x2c4b   :  { %v3257_v3 = vsel %vm3256_vm9, %v4788_v38, %v3253_v11 }
0x2c4c   :  { %v3262_v46 = vsel %vm3259_vm10, %v3261_v4, %v3257_v3 }
0x2c4d   :  { %v3282_v5 = vmul.f32 %v3262_v46, %v6044_v37 }
0x2c86   :  { %v3268_v26 = vpop.permute.xlu2 %3267 }
0x2c87   :  { %v3270_v10 = vmul.f32 %v3268_v26, %v3242_v61 }
0x2c89   :  { %3272 = vrot.lane.b32.xlu1 %v3270_v10, %s4909_s18 }
0x2ca1   :  { %v3285_v24 = vpop.permute.xlu0 %3284 }
0x2ca2   :  { %v3287_v13 = vmul.f32 %v3285_v24, %v3262_v46 }
0x2ca4   :  { %3289 = vrot.lane.b32.xlu2 %v3287_v13, %s4909_s18 }
0x2cfb   :  { %v3273_v14 = vpop.permute.xlu1 %3272 }
0x2cfc   :  { %v6076_v54 = vadd.f32 %v3273_v14, %v3265_v27 }
0x2cfe   :  { %4789 = vtanh.f32 %v6076_v54  ;;  %v3290_v44 = vpop.permute.xlu2 %3289 }
0x2cff   :  { %v6080_v59 = vadd.f32 %v3290_v44, %v3282_v5 }
0x2d01   :  { %4791 = vtanh.f32 %v6080_v59 }
0x2d04   :  { %v4790_v16 = vpop.eup %4789 }
0x2d05   :  { %3278 = vrot.lane.b32.xlu0 %v4790_v16, %s4908_s17 }
0x2d07   :  { %v4792_v29 = vpop.eup %4791 }
0x2d08   :  { %3295 = vrot.lane.b32.xlu1 %v4792_v29, %s4908_s17 }
0x2d77   :  { %v3279_v9 = vpop.permute.xlu0 %3278 }
0x2d78   :  { %v3281_v15 = vmul.f32 %v3279_v9, %v3242_v61 }
0x2d7a   :  { %v3296_v7 = vpop.permute.xlu1 %3295  ;;  %3300 = vrot.lane.b32.xlu2 %v3281_v15, %s4909_s18 }
0x2d7b   :  { %v3298_v43 = vmul.f32 %v3296_v7, %v3262_v46 }
0x2d7d   :  { %3305 = vrot.lane.b32.xlu0 %v3298_v43, %s4909_s18 }
0x2dd4   :  { %v3301_v37 = vpop.permute.xlu2 %3300 }
0x2dd5   :  { %3303 = vst.msk [vmem:[%s6333_s5 + $0x8] sm:$0xff] %vm32_vm8, %v3301_v37  ;;  %4438 = vmatmul.msk.f32.vlgmr.msra.gmra.mxu0 %vm32_vm8, %v3301_v37 }
0x2dd6   :  { %3852 = vmatpush.msra.mxu0 %v5880_v33 }
0x2dd8   :  { %3853 = vmatpush.msra.mxu0 %v5894_v48 }
0x2dda   :  { %3854 = vmatpush.msra.mxu0 %v5911_v25 }
0x2ddc   :  { %3855 = vmatpush.msra.mxu0 %v5932_v32 }
0x2def   :  { %v3306_v55 = vpop.permute.xlu0 %3305 }
0x2df0   :  { %3308 = vst.msk [vmem:[%s6334_s6 + $0x38] sm:$0xff] %vm32_vm8, %v3306_v55  ;;  %4439 = vmatmul.msk.f32.vlgmr.msra.gmra.mxu1 %vm32_vm8, %v3306_v55 }
0x2df1   :  { %3876 = vmatpush.msra.mxu1 %v5885_v50 }
0x2df3   :  { %3877 = vmatpush.msra.mxu1 %v5899_v34 }
0x2df5   :  { %3878 = vmatpush.msra.mxu1 %v5916_v47 }
0x2df7   :  { %3879 = vmatpush.msra.mxu1 %v5937_v6 }
0x2e52   :  { %v3329_v8 = vpop.f32.mrf.mxu0 }
0x2e53   :  { %v3332_v12 = vadd.f32 %v3329_v8, %v5996_v23 }
0x2e55   :  { %4793 = vtanh.f32 %v3332_v12  ;;  %v4440_v38 = vmul.f32 -1.442695, %v3332_v12 }
0x2e5b   :  { %v4794_v19 = vpop.eup %4793 }
0x2e5c   :  { %3399 = vrot.lane.b32.xlu1 %v4794_v19, %s4908_s17 }
0x2e6d   :  { %v3353_v26 = vpop.f32.mrf.mxu1 }
0x2e6e   :  { %v3356_v61 = vadd.f32 %v3353_v26, %v3027_v22 }
0x2e70   :  { %4795 = vtanh.f32 %v3356_v61  ;;  %v4441_v53 = vmul.f32 -1.442695, %v3356_v61 }
0x2e71   :  { %4797 = vpow2.f32 %v4440_v38 }
0x2e72   :  { %4799 = vpow2.f32 %v4441_v53 }
0x2e76   :  { %v4796_v10 = vpop.eup %4795 }
0x2e77   :  { %3416 = vrot.lane.b32.xlu2 %v4796_v10, %s4908_s17  ;;  %v4798_v23 = vpop.eup %4797 }
0x2e78   :  { %v4800_v1 = vpop.eup %4799  ;;  %v3360_v60 = vadd.f32 1.0, %v4798_v23 }
0x2e79   :  { %v3380_v11 = vadd.f32 1.0, %v4800_v1 }
0x2e7a   :  { %4801 = vrcp.f32 %v3360_v60  ;;  %v3372_v27 = vand.u32 2147483648, %v3360_v60  ;;  %vm3366_vm12 = vweird.f32 %v3360_v60  ;;  %v3370_v14 = vand.u32 2147483647, %v3360_v60 }
0x2e7b   :  { %4803 = vrcp.f32 %v3380_v11  ;;  %v3392_v16 = vand.u32 2147483648, %v3380_v11  ;;  %vm3386_vm15 = vweird.f32 %v3380_v11  ;;  %v3390_v9 = vand.u32 2147483647, %v3380_v11 }
0x2e7c   :  { %v3373_v29 = vor.u32 1.1754944e-38, %v3372_v27  ;;  %vm3371_vm0 = vcmp.eq.f32.partialorder %v3370_v14, 8.507059e+37 }
0x2e7d   :  { %v3393_v55 = vor.u32 1.1754944e-38, %v3392_v16  ;;  %vm3391_vm2 = vcmp.eq.f32.partialorder %v3390_v9, 8.507059e+37 }
0x2e80   :  { %v4802_v57 = vpop.eup %4801 }
0x2e81   :  { %v4804_v49 = vpop.eup %4803  ;;  %v3362_v63 = vmul.f32 %v4802_v57, %v3360_v60  ;;  %vm3367_vm11 = vweird.f32 %v4802_v57 }
0x2e82   :  { %v3382_v30 = vmul.f32 %v4804_v49, %v3380_v11  ;;  %vm3368_vm13 = vmor %vm3366_vm12, %vm3367_vm11  ;;  %vm3387_vm14 = vweird.f32 %v4804_v49 }
0x2e83   :  { %v3363_v3 = vsub.f32 1.0, %v3362_v63  ;;  %vm3388_vm1 = vmor %vm3386_vm15, %vm3387_vm14 }
0x2e84   :  { %v3383_v4 = vsub.f32 1.0, %v3382_v30 }
0x2e85   :  { %v3364_v24 = vmul.f32 %v4802_v57, %v3363_v3 }
0x2e86   :  { %v3384_v46 = vmul.f32 %v4804_v49, %v3383_v4 }
0x2e87   :  { %v3365_v13 = vadd.f32 %v4802_v57, %v3364_v24 }
0x2e88   :  { %v3385_v5 = vadd.f32 %v4804_v49, %v3384_v46 }
0x2e89   :  { %v3369_v44 = vsel %vm3368_vm13, %v4802_v57, %v3365_v13 }
0x2e8a   :  { %v3374_v15 = vsel %vm3371_vm0, %v3373_v29, %v3369_v44  ;;  %v3389_v43 = vsel %vm3388_vm1, %v4804_v49, %v3385_v5  ;;  %v3005_v49 = vadd.f32 %v6012_v56, %v6016_v41 }
0x2e8b   :  { %v3394_v12 = vsel %vm3391_vm2, %v3393_v55, %v3389_v43  ;;  %v3397_v21 = vmul.f32 %v3374_v15, %v6076_v54 }
0x2e8c   :  { %v3414_v61 = vmul.f32 %v3394_v12, %v6080_v59  ;;  %v3026_v3 = vadd.f32 %v6033_v52, %v3005_v49 }
0x2ece   :  { %v3400_v7 = vpop.permute.xlu1 %3399 }
0x2ecf   :  { %v3402_v37 = vmul.f32 %v3400_v7, %v3374_v15 }
0x2ed1   :  { %v3417_v8 = vpop.permute.xlu2 %3416  ;;  %3404 = vrot.lane.b32.xlu0 %v3402_v37, %s4909_s18 }
0x2ed2   :  { %v3419_v19 = vmul.f32 %v3417_v8, %v3394_v12 }
0x2ed4   :  { %3421 = vrot.lane.b32.xlu1 %v3419_v19, %s4909_s18 }
0x2f43   :  { %v3405_v22 = vpop.permute.xlu0 %3404 }
0x2f44   :  { %v6114_v26 = vadd.f32 %v3405_v22, %v3397_v21 }
0x2f46   :  { %4805 = vtanh.f32 %v6114_v26  ;;  %v3422_v10 = vpop.permute.xlu1 %3421 }
0x2f47   :  { %v6118_v38 = vadd.f32 %v3422_v10, %v3414_v61 }
0x2f49   :  { %4807 = vtanh.f32 %v6118_v38 }
0x2f4c   :  { %v4806_v53 = vpop.eup %4805 }
0x2f4d   :  { %3410 = vrot.lane.b32.xlu2 %v4806_v53, %s4908_s17 }
0x2f4f   :  { %v4808_v23 = vpop.eup %4807 }
0x2f50   :  { %3427 = vrot.lane.b32.xlu0 %v4808_v23, %s4908_s17 }
0x2fa7   :  { %v3411_v1 = vpop.permute.xlu2 %3410 }
0x2fa8   :  { %v3413_v54 = vmul.f32 %v3411_v1, %v3374_v15 }
0x2faa   :  { %3432 = vrot.lane.b32.xlu1 %v3413_v54, %s4909_s18 }
0x2fc2   :  { %v3428_v60 = vpop.permute.xlu0 %3427 }
0x2fc3   :  { %v3430_v11 = vmul.f32 %v3428_v60, %v3394_v12 }
0x2fc5   :  { %3437 = vrot.lane.b32.xlu2 %v3430_v11, %s4909_s18 }
0x301c   :  { %v3433_v59 = vpop.permute.xlu1 %3432 }
0x301d   :  { %3435 = vst.msk [vmem:[%s6333_s5 + $0x10] sm:$0xff] %vm32_vm8, %v3433_v59  ;;  %4442 = vmatmul.msk.f32.vlgmr.msra.gmra.mxu2 %vm32_vm8, %v3433_v59 }
0x301e   :  { %3984 = vmatpush.msra.mxu2 %v5880_v33 }
0x301f   :  { %v3438_v57 = vpop.permute.xlu2 %3437 }
0x3020   :  { %3440 = vst.msk [vmem:[%s6334_s6 + $0x30] sm:$0xff] %vm32_vm8, %v3438_v57  ;;  %4443 = vmatmul.msk.f32.vlgmr.msra.gmra.mxu3 %vm32_vm8, %v3438_v57  ;;  %3985 = vmatpush.msra.mxu2 %v5894_v48 }
0x3021   :  { %4008 = vmatpush.msra.mxu3 %v5885_v50 }
0x3022   :  { %3986 = vmatpush.msra.mxu2 %v5911_v25 }
0x3023   :  { %4009 = vmatpush.msra.mxu3 %v5899_v34 }
0x3024   :  { %3987 = vmatpush.msra.mxu2 %v5932_v32 }
0x3025   :  { %4010 = vmatpush.msra.mxu3 %v5916_v47 }
0x3027   :  { %4011 = vmatpush.msra.mxu3 %v5937_v6 }
0x30a0   :  { %v3461_v63 = vpop.f32.mrf.mxu2 }
0x30a1   :  { %v3464_v30 = vadd.f32 %v3461_v63, %v6002_v36 }
0x30a3   :  { %4809 = vtanh.f32 %v3464_v30  ;;  %v3485_v4 = vpop.f32.mrf.mxu3  ;;  %v4444_v27 = vmul.f32 -1.442695, %v3464_v30 }
0x30a4   :  { %v3488_v24 = vadd.f32 %v3485_v4, %v3026_v3 }
0x30a6   :  { %4811 = vtanh.f32 %v3488_v24  ;;  %v4445_v14 = vmul.f32 -1.442695, %v3488_v24 }
0x30a7   :  { %4813 = vpow2.f32 %v4444_v27 }
0x30a8   :  { %4815 = vpow2.f32 %v4445_v14 }
0x30a9   :  { %v4810_v46 = vpop.eup %4809 }
0x30aa   :  { %3531 = vrot.lane.b32.xlu0 %v4810_v46, %s4908_s17 }
0x30ac   :  { %v4812_v13 = vpop.eup %4811 }
0x30ad   :  { %3548 = vrot.lane.b32.xlu1 %v4812_v13, %s4908_s17  ;;  %v4814_v56 = vpop.eup %4813 }
0x30ae   :  { %v4816_v41 = vpop.eup %4815  ;;  %v3492_v5 = vadd.f32 1.0, %v4814_v56 }
0x30af   :  { %v3512_v36 = vadd.f32 1.0, %v4816_v41 }
0x30b0   :  { %4817 = vrcp.f32 %v3492_v5  ;;  %v3504_v8 = vand.u32 2147483648, %v3492_v5  ;;  %vm3498_vm4 = vweird.f32 %v3492_v5  ;;  %v3502_v12 = vand.u32 2147483647, %v3492_v5 }
0x30b1   :  { %4819 = vrcp.f32 %v3512_v36  ;;  %v3524_v22 = vand.u32 2147483648, %v3512_v36  ;;  %vm3518_vm7 = vweird.f32 %v3512_v36  ;;  %v3522_v10 = vand.u32 2147483647, %v3512_v36 }
0x30b2   :  { %v3505_v61 = vor.u32 1.1754944e-38, %v3504_v8  ;;  %vm3503_vm9 = vcmp.eq.f32.partialorder %v3502_v12, 8.507059e+37 }
0x30b3   :  { %v3525_v60 = vor.u32 1.1754944e-38, %v3524_v22  ;;  %vm3523_vm11 = vcmp.eq.f32.partialorder %v3522_v10, 8.507059e+37 }
0x30b6   :  { %v4818_v44 = vpop.eup %4817 }
0x30b7   :  { %v4820_v16 = vpop.eup %4819  ;;  %v3494_v29 = vmul.f32 %v4818_v44, %v3492_v5  ;;  %vm3499_vm3 = vweird.f32 %v4818_v44 }
0x30b8   :  { %v3514_v9 = vmul.f32 %v4820_v16, %v3512_v36  ;;  %vm3500_vm5 = vmor %vm3498_vm4, %vm3499_vm3  ;;  %vm3519_vm6 = vweird.f32 %v4820_v16 }
0x30b9   :  { %v3495_v15 = vsub.f32 1.0, %v3494_v29  ;;  %vm3520_vm10 = vmor %vm3518_vm7, %vm3519_vm6 }
0x30ba   :  { %v3515_v7 = vsub.f32 1.0, %v3514_v9 }
0x30bb   :  { %v3496_v43 = vmul.f32 %v4818_v44, %v3495_v15 }
0x30bc   :  { %v3516_v37 = vmul.f32 %v4820_v16, %v3515_v7 }
0x30bd   :  { %v3497_v55 = vadd.f32 %v4818_v44, %v3496_v43 }
0x30be   :  { %v3517_v19 = vadd.f32 %v4820_v16, %v3516_v37 }
0x30bf   :  { %v3501_v21 = vsel %vm3500_vm5, %v4818_v44, %v3497_v55 }
0x30c0   :  { %v3506_v23 = vsel %vm3503_vm9, %v3505_v61, %v3501_v21  ;;  %v3521_v1 = vsel %vm3520_vm10, %v4820_v16, %v3517_v19 }
0x30c1   :  { %v3526_v11 = vsel %vm3523_vm11, %v3525_v60, %v3521_v1  ;;  %v3529_v49 = vmul.f32 %v3506_v23, %v6114_v26 }
0x30c2   :  { %v3546_v4 = vmul.f32 %v3526_v11, %v6118_v38 }
0x311c   :  { %v3532_v53 = vpop.permute.xlu0 %3531 }
0x311d   :  { %v3534_v54 = vmul.f32 %v3532_v53, %v3506_v23 }
0x311f   :  { %v3549_v59 = vpop.permute.xlu1 %3548  ;;  %3536 = vrot.lane.b32.xlu2 %v3534_v54, %s4909_s18 }
0x3120   :  { %v3551_v57 = vmul.f32 %v3549_v59, %v3526_v11 }
0x3122   :  { %3553 = vrot.lane.b32.xlu0 %v3551_v57, %s4909_s18 }
0x3179   :  { %v3537_v63 = vpop.permute.xlu2 %3536 }
0x317a   :  { %v6152_v30 = vadd.f32 %v3537_v63, %v3529_v49 }
0x317c   :  { %4821 = vtanh.f32 %v6152_v30 }
0x3182   :  { %v4822_v3 = vpop.eup %4821 }
0x3183   :  { %3542 = vrot.lane.b32.xlu1 %v4822_v3, %s4908_s17 }
0x3194   :  { %v3554_v24 = vpop.permute.xlu0 %3553 }
0x3195   :  { %v6157_v46 = vadd.f32 %v3554_v24, %v3546_v4 }
0x3197   :  { %4823 = vtanh.f32 %v6157_v46 }
0x319d   :  { %v4824_v13 = vpop.eup %4823 }
0x319e   :  { %3559 = vrot.lane.b32.xlu2 %v4824_v13, %s4908_s17 }
0x31f5   :  { %v3543_v27 = vpop.permute.xlu1 %3542 }
0x31f6   :  { %v3545_v26 = vmul.f32 %v3543_v27, %v3506_v23 }
0x31f8   :  { %v3560_v14 = vpop.permute.xlu2 %3559  ;;  %3564 = vrot.lane.b32.xlu0 %v3545_v26, %s4909_s18 }
0x31f9   :  { %v3562_v56 = vmul.f32 %v3560_v14, %v3526_v11 }
0x31fb   :  { %3569 = vrot.lane.b32.xlu1 %v3562_v56, %s4909_s18 }
0x326a   :  { %v3565_v41 = vpop.permute.xlu0 %3564 }
0x326b   :  { %3567 = vst.msk [vmem:[%s6333_s5 + $0x18] sm:$0xff] %vm32_vm8, %v3565_v41  ;;  %4446 = vmatmul.msk.f32.vlgmr.msrb.gmra.mxu0 %vm32_vm8, %v3565_v41 }
0x326c   :  { %4116 = vmatpush.msrb.mxu0 %v5880_v33  ;;  %v3002_v33 = vadd.f32 %v6006_v0, %v6010_v2 }
0x326d   :  { %v3570_v38 = vpop.permute.xlu1 %3569 }
0x326e   :  { %3572 = vst.msk [vmem:[%s6334_s6 + $0x28] sm:$0xff] %vm32_vm8, %v3570_v38  ;;  %4447 = vmatmul.msk.f32.vlgmr.msrb.gmra.mxu1 %vm32_vm8, %v3570_v38  ;;  %4117 = vmatpush.msrb.mxu0 %v5894_v48  ;;  %v3025_v48 = vadd.f32 %v6033_v52, %v3002_v33 }
0x326f   :  { %4140 = vmatpush.msrb.mxu1 %v5885_v50 }
0x3270   :  { %4118 = vmatpush.msrb.mxu0 %v5911_v25 }
0x3271   :  { %4141 = vmatpush.msrb.mxu1 %v5899_v34 }
0x3272   :  { %4119 = vmatpush.msrb.mxu0 %v5932_v32 }
0x3273   :  { %4142 = vmatpush.msrb.mxu1 %v5916_v47 }
0x3275   :  { %4143 = vmatpush.msrb.mxu1 %v5937_v6 }
0x32e8   :  { %v3593_v5 = vpop.f32.mrf.mxu0 }
0x32e9   :  { %v3596_v36 = vadd.f32 %v3593_v5, %v6008_v45 }
0x32eb   :  { %4825 = vtanh.f32 %v3596_v36  ;;  %v3617_v50 = vpop.f32.mrf.mxu1  ;;  %v4448_v47 = vmul.f32 -1.442695, %v3596_v36 }
0x32ec   :  { %v3620_v44 = vadd.f32 %v3617_v50, %v3025_v48  ;;  %v2999_v50 = vadd.f32 %v6000_v31, %v6004_v51 }
0x32ee   :  { %4827 = vtanh.f32 %v3620_v44  ;;  %v4449_v45 = vmul.f32 -1.442695, %v3620_v44  ;;  %v3024_v44 = vadd.f32 %v6033_v52, %v2999_v50 }
0x32ef   :  { %4829 = vpow2.f32 %v4448_v47 }
0x32f1   :  { %v4826_v25 = vpop.eup %4825 }
0x32f2   :  { %3663 = vrot.lane.b32.xlu2 %v4826_v25, %s4908_s17 }
0x32f4   :  { %v4828_v34 = vpop.eup %4827 }
0x32f5   :  { %3680 = vrot.lane.b32.xlu0 %v4828_v34, %s4908_s17  ;;  %v4830_v32 = vpop.eup %4829 }
0x32f6   :  { %v3624_v6 = vadd.f32 1.0, %v4830_v32 }
0x32f8   :  { %4831 = vrcp.f32 %v3624_v6  ;;  %v3636_v7 = vand.u32 2147483648, %v3624_v6  ;;  %vm3630_vm13 = vweird.f32 %v3624_v6  ;;  %v3634_v37 = vand.u32 2147483647, %v3624_v6 }
0x32f9   :  { %4833 = vpow2.f32 %v4449_v45 }
0x32fa   :  { %v3637_v8 = vor.u32 1.1754944e-38, %v3636_v7  ;;  %vm3635_vm15 = vcmp.eq.f32.partialorder %v3634_v37, 8.507059e+37 }
0x32fe   :  { %v4832_v0 = vpop.eup %4831 }
0x32ff   :  { %v3626_v2 = vmul.f32 %v4832_v0, %v3624_v6  ;;  %v4834_v9 = vpop.eup %4833  ;;  %vm3631_vm12 = vweird.f32 %v4832_v0 }
0x3300   :  { %v3644_v43 = vadd.f32 1.0, %v4834_v9  ;;  %vm3632_vm14 = vmor %vm3630_vm13, %vm3631_vm12 }
0x3301   :  { %v3627_v16 = vsub.f32 1.0, %v3626_v2 }
0x3302   :  { %4835 = vrcp.f32 %v3644_v43  ;;  %v3656_v1 = vand.u32 2147483648, %v3644_v43  ;;  %vm3650_vm1 = vweird.f32 %v3644_v43  ;;  %v3654_v54 = vand.u32 2147483647, %v3644_v43 }
0x3303   :  { %v3628_v29 = vmul.f32 %v4832_v0, %v3627_v16 }
0x3304   :  { %v3657_v11 = vor.u32 1.1754944e-38, %v3656_v1  ;;  %vm3655_vm3 = vcmp.eq.f32.partialorder %v3654_v54, 8.507059e+37 }
0x3305   :  { %v3629_v15 = vadd.f32 %v4832_v0, %v3628_v29 }
0x3307   :  { %v3633_v55 = vsel %vm3632_vm14, %v4832_v0, %v3629_v15 }
0x3308   :  { %v3638_v19 = vsel %vm3635_vm15, %v3637_v8, %v3633_v55  ;;  %v4836_v22 = vpop.eup %4835 }
0x3309   :  { %v3646_v61 = vmul.f32 %v4836_v22, %v3644_v43  ;;  %vm3651_vm0 = vweird.f32 %v4836_v22  ;;  %v3661_v63 = vmul.f32 %v3638_v19, %v6152_v30 }
0x330a   :  { %vm3652_vm2 = vmor %vm3650_vm1, %vm3651_vm0 }
0x330b   :  { %v3647_v10 = vsub.f32 1.0, %v3646_v61 }
0x330d   :  { %v3648_v53 = vmul.f32 %v4836_v22, %v3647_v10 }
0x330f   :  { %v3649_v23 = vadd.f32 %v4836_v22, %v3648_v53 }
0x3311   :  { %v3653_v60 = vsel %vm3652_vm2, %v4836_v22, %v3649_v23 }
0x3312   :  { %v3658_v57 = vsel %vm3655_vm3, %v3657_v11, %v3653_v60 }
0x3313   :  { %v3678_v24 = vmul.f32 %v3658_v57, %v6157_v46 }
0x334c   :  { %v3664_v12 = vpop.permute.xlu2 %3663 }
0x334d   :  { %v3666_v21 = vmul.f32 %v3664_v12, %v3638_v19 }
0x334f   :  { %3668 = vrot.lane.b32.xlu1 %v3666_v21, %s4909_s18 }
0x3367   :  { %v3681_v59 = vpop.permute.xlu0 %3680 }
0x3368   :  { %v3683_v49 = vmul.f32 %v3681_v59, %v3658_v57 }
0x336a   :  { %3685 = vrot.lane.b32.xlu2 %v3683_v49, %s4909_s18 }
0x33c1   :  { %v3669_v3 = vpop.permute.xlu1 %3668 }
0x33c2   :  { %v6190_v4 = vadd.f32 %v3669_v3, %v3661_v63 }
0x33c4   :  { %4837 = vtanh.f32 %v6190_v4  ;;  %v3686_v13 = vpop.permute.xlu2 %3685 }
0x33c5   :  { %v6194_v27 = vadd.f32 %v3686_v13, %v3678_v24 }
0x33c7   :  { %4839 = vtanh.f32 %v6194_v27 }
0x33ca   :  { %v4838_v26 = vpop.eup %4837 }
0x33cb   :  { %3674 = vrot.lane.b32.xlu0 %v4838_v26, %s4908_s17 }
0x33cd   :  { %v4840_v14 = vpop.eup %4839 }
0x33ce   :  { %3691 = vrot.lane.b32.xlu1 %v4840_v14, %s4908_s17 }
0x343d   :  { %v3675_v56 = vpop.permute.xlu0 %3674 }
0x343e   :  { %v3677_v30 = vmul.f32 %v3675_v56, %v3638_v19 }
0x3440   :  { %v3692_v41 = vpop.permute.xlu1 %3691  ;;  %3696 = vrot.lane.b32.xlu2 %v3677_v30, %s4909_s18 }
0x3441   :  { %v3694_v38 = vmul.f32 %v3692_v41, %v3658_v57 }
0x3443   :  { %3701 = vrot.lane.b32.xlu0 %v3694_v38, %s4909_s18  ;;  %v2996_v38 = vadd.f32 %v5992_v58, %v5998_v28 }
0x349a   :  { %v3697_v46 = vpop.permute.xlu2 %3696 }
0x349b   :  { %3699 = vst.msk [vmem:[%s6333_s5 + $0x20] sm:$0xff] %vm32_vm8, %v3697_v46  ;;  %4450 = vmatmul.msk.f32.vlgmr.msrb.gmra.mxu2 %vm32_vm8, %v3697_v46 }
0x34b5   :  { %v3702_v33 = vpop.permute.xlu0 %3701 }
0x34b6   :  { %3704 = vst.msk [vmem:[%s6334_s6 + $0x20] sm:$0xff] %vm32_vm8, %v3702_v33  ;;  %4451 = vmatmul.msk.f32.vlgmr.msrb.gmra.mxu3 %vm32_vm8, %v3702_v33 }
0x351e   :  { %v3725_v5 = vpop.f32.mrf.mxu2 }
0x351f   :  { %v3728_v36 = vadd.f32 %v3725_v5, %v6014_v35  ;;  %v6247_v5 = vld [vmem:[%s6332_s4 + $0x3] ss:$0 sm:$0xff] }
0x3521   :  { %4841 = vtanh.f32 %v3728_v36  ;;  %v4452_v32 = vmul.f32 -1.442695, %v3728_v36  ;;  %v3023_v36 = vadd.f32 %v6247_v5, %v2996_v38 }
0x3527   :  { %v4842_v48 = vpop.eup %4841 }
0x3528   :  { %3795 = vrot.lane.b32.xlu1 %v4842_v48, %s4908_s17 }
0x3539   :  { %v3749_v25 = vpop.f32.mrf.mxu3 }
0x353a   :  { %v3752_v34 = vadd.f32 %v3749_v25, %v3024_v44 }
0x353c   :  { %4843 = vtanh.f32 %v3752_v34  ;;  %v4453_v6 = vmul.f32 -1.442695, %v3752_v34 }
0x353d   :  { %4845 = vpow2.f32 %v4452_v32 }
0x353e   :  { %4847 = vpow2.f32 %v4453_v6 }
0x3542   :  { %v4844_v47 = vpop.eup %4843 }
0x3543   :  { %3812 = vrot.lane.b32.xlu2 %v4844_v47, %s4908_s17  ;;  %v4846_v35 = vpop.eup %4845 }
0x3544   :  { %v4848_v0 = vpop.eup %4847  ;;  %v3756_v2 = vadd.f32 1.0, %v4846_v35 }
0x3545   :  { %v3776_v45 = vadd.f32 1.0, %v4848_v0 }
0x3546   :  { %4849 = vrcp.f32 %v3756_v2  ;;  %v3768_v37 = vand.u32 2147483648, %v3756_v2  ;;  %vm3762_vm5 = vweird.f32 %v3756_v2  ;;  %v3766_v55 = vand.u32 2147483647, %v3756_v2 }
0x3547   :  { %4851 = vrcp.f32 %v3776_v45  ;;  %v3788_v19 = vand.u32 2147483648, %v3776_v45  ;;  %vm3782_vm9 = vweird.f32 %v3776_v45  ;;  %v3786_v22 = vand.u32 2147483647, %v3776_v45 }
0x3548   :  { %v3769_v21 = vor.u32 1.1754944e-38, %v3768_v37  ;;  %vm3767_vm10 = vcmp.eq.f32.partialorder %v3766_v55, 8.507059e+37 }
0x3549   :  { %v3789_v1 = vor.u32 1.1754944e-38, %v3788_v19  ;;  %vm3787_vm12 = vcmp.eq.f32.partialorder %v3786_v22, 8.507059e+37 }
0x354c   :  { %v4850_v16 = vpop.eup %4849 }
0x354d   :  { %v4852_v31 = vpop.eup %4851  ;;  %v3758_v51 = vmul.f32 %v4850_v16, %v3756_v2  ;;  %vm3763_vm4 = vweird.f32 %v4850_v16 }
0x354e   :  { %v3778_v52 = vmul.f32 %v4852_v31, %v3776_v45  ;;  %vm3764_vm6 = vmor %vm3762_vm5, %vm3763_vm4  ;;  %vm3783_vm7 = vweird.f32 %v4852_v31 }
0x354f   :  { %v3759_v29 = vsub.f32 1.0, %v3758_v51  ;;  %vm3784_vm11 = vmor %vm3782_vm9, %vm3783_vm7 }
0x3550   :  { %v3779_v9 = vsub.f32 1.0, %v3778_v52 }
0x3551   :  { %v3760_v15 = vmul.f32 %v4850_v16, %v3759_v29 }
0x3552   :  { %v3780_v7 = vmul.f32 %v4852_v31, %v3779_v9 }
0x3553   :  { %v3761_v43 = vadd.f32 %v4850_v16, %v3760_v15 }
0x3554   :  { %v3781_v8 = vadd.f32 %v4852_v31, %v3780_v7 }
0x3555   :  { %v3765_v12 = vsel %vm3764_vm6, %v4850_v16, %v3761_v43 }
0x3556   :  { %v3770_v61 = vsel %vm3767_vm10, %v3769_v21, %v3765_v12  ;;  %v3785_v53 = vsel %vm3784_vm11, %v4852_v31, %v3781_v8 }
0x3557   :  { %v3790_v60 = vsel %vm3787_vm12, %v3789_v1, %v3785_v53  ;;  %v3793_v59 = vmul.f32 %v3770_v61, %v6190_v4 }
0x3558   :  { %v3810_v63 = vmul.f32 %v3790_v60, %v6194_v27 }
0x359a   :  { %v3796_v10 = vpop.permute.xlu1 %3795 }
0x359b   :  { %v3798_v23 = vmul.f32 %v3796_v10, %v3770_v61 }
0x359d   :  { %v3813_v54 = vpop.permute.xlu2 %3812  ;;  %3800 = vrot.lane.b32.xlu0 %v3798_v23, %s4909_s18 }
0x359e   :  { %v3815_v11 = vmul.f32 %v3813_v54, %v3790_v60 }
0x35a0   :  { %3817 = vrot.lane.b32.xlu1 %v3815_v11, %s4909_s18 }
0x360f   :  { %v3801_v57 = vpop.permute.xlu0 %3800 }
0x3610   :  { %v6220_v49 = vadd.f32 %v3801_v57, %v3793_v59 }
0x3612   :  { %4853 = vtanh.f32 %v6220_v49  ;;  %v3818_v3 = vpop.permute.xlu1 %3817 }
0x3613   :  { %v6224_v24 = vadd.f32 %v3818_v3, %v3810_v63 }
0x3615   :  { %4855 = vtanh.f32 %v6224_v24 }
0x3618   :  { %v4854_v13 = vpop.eup %4853 }
0x3619   :  { %3806 = vrot.lane.b32.xlu2 %v4854_v13, %s4908_s17 }
0x361b   :  { %v4856_v26 = vpop.eup %4855 }
0x361c   :  { %3823 = vrot.lane.b32.xlu0 %v4856_v26, %s4908_s17 }
0x3673   :  { %v3807_v14 = vpop.permute.xlu2 %3806 }
0x3674   :  { %v3809_v4 = vmul.f32 %v3807_v14, %v3770_v61 }
0x3676   :  { %3828 = vrot.lane.b32.xlu1 %v3809_v4, %s4909_s18  ;;  %v2993_v4 = vadd.f32 %v5983_v17, %v5994_v18 }
0x368e   :  { %v3824_v56 = vpop.permute.xlu0 %3823 }
0x368f   :  { %v3826_v30 = vmul.f32 %v3824_v56, %v3790_v60 }
0x3691   :  { %3833 = vrot.lane.b32.xlu2 %v3826_v30, %s4909_s18 }
0x36e8   :  { %v3829_v27 = vpop.permute.xlu1 %3828 }
0x36e9   :  { %3831 = vst.msk [vmem:[%s6333_s5 + $0x28] sm:$0xff] %vm32_vm8, %v3829_v27  ;;  %4454 = vmatmul.msk.f32.vlgmr.msra.gmra.mxu0 %vm32_vm8, %v3829_v27  ;;  %v3022_v27 = vadd.f32 %v6247_v5, %v2993_v4 }
0x36eb   :  { %v3834_v41 = vpop.permute.xlu2 %3833 }
0x36ec   :  { %3836 = vst.msk [vmem:[%s6334_s6 + $0x18] sm:$0xff] %vm32_vm8, %v3834_v41  ;;  %4455 = vmatmul.msk.f32.vlgmr.msra.gmra.mxu1 %vm32_vm8, %v3834_v41 }
0x3766   :  { %v3857_v46 = vpop.f32.mrf.mxu0 }
0x3767   :  { %v3860_v33 = vadd.f32 %v3857_v46, %v6018_v39 }
0x3769   :  { %4857 = vtanh.f32 %v3860_v33  ;;  %v3881_v48 = vpop.f32.mrf.mxu1  ;;  %v4456_v58 = vmul.f32 -1.442695, %v3860_v33 }
0x376a   :  { %v3884_v50 = vadd.f32 %v3881_v48, %v3023_v36 }
0x376c   :  { %4859 = vtanh.f32 %v3884_v50  ;;  %v4457_v28 = vmul.f32 -1.442695, %v3884_v50 }
0x376d   :  { %4861 = vpow2.f32 %v4456_v58 }
0x376e   :  { %4863 = vpow2.f32 %v4457_v28 }
0x376f   :  { %v4858_v44 = vpop.eup %4857 }
0x3770   :  { %3927 = vrot.lane.b32.xlu0 %v4858_v44, %s4908_s17 }
0x3772   :  { %v4860_v25 = vpop.eup %4859 }
0x3773   :  { %3944 = vrot.lane.b32.xlu1 %v4860_v25, %s4908_s17  ;;  %v4862_v39 = vpop.eup %4861 }
0x3774   :  { %v4864_v34 = vpop.eup %4863  ;;  %v3888_v47 = vadd.f32 1.0, %v4862_v39 }
0x3775   :  { %v3908_v32 = vadd.f32 1.0, %v4864_v34 }
0x3776   :  { %4865 = vrcp.f32 %v3888_v47  ;;  %v3900_v29 = vand.u32 2147483648, %v3888_v47  ;;  %vm3894_vm14 = vweird.f32 %v3888_v47  ;;  %v3898_v9 = vand.u32 2147483647, %v3888_v47 }
0x3777   :  { %4867 = vrcp.f32 %v3908_v32  ;;  %v3920_v43 = vand.u32 2147483648, %v3908_v32  ;;  %vm3914_vm1 = vweird.f32 %v3908_v32  ;;  %v3918_v55 = vand.u32 2147483647, %v3908_v32 }
0x3778   :  { %v3901_v37 = vor.u32 1.1754944e-38, %v3900_v29  ;;  %vm3899_vm2 = vcmp.eq.f32.partialorder %v3898_v9, 8.507059e+37 }
0x3779   :  { %v3921_v22 = vor.u32 1.1754944e-38, %v3920_v43  ;;  %vm3919_vm4 = vcmp.eq.f32.partialorder %v3918_v55, 8.507059e+37 }
0x377c   :  { %v4866_v6 = vpop.eup %4865 }
0x377d   :  { %v4868_v35 = vpop.eup %4867  ;;  %v3890_v0 = vmul.f32 %v4866_v6, %v3888_v47  ;;  %vm3895_vm13 = vweird.f32 %v4866_v6 }
0x377e   :  { %v3910_v2 = vmul.f32 %v4868_v35, %v3908_v32  ;;  %vm3896_vm15 = vmor %vm3894_vm14, %vm3895_vm13  ;;  %vm3915_vm0 = vweird.f32 %v4868_v35 }
0x377f   :  { %v3891_v45 = vsub.f32 1.0, %v3890_v0  ;;  %vm3916_vm3 = vmor %vm3914_vm1, %vm3915_vm0 }
0x3780   :  { %v3911_v16 = vsub.f32 1.0, %v3910_v2 }
0x3781   :  { %v3892_v31 = vmul.f32 %v4866_v6, %v3891_v45 }
0x3782   :  { %v3912_v51 = vmul.f32 %v4868_v35, %v3911_v16 }
0x3783   :  { %v3893_v52 = vadd.f32 %v4866_v6, %v3892_v31 }
0x3784   :  { %v3913_v15 = vadd.f32 %v4868_v35, %v3912_v51 }
0x3785   :  { %v3897_v7 = vsel %vm3896_vm15, %v4866_v6, %v3893_v52 }
0x3786   :  { %v3902_v12 = vsel %vm3899_vm2, %v3901_v37, %v3897_v7  ;;  %v3917_v19 = vsel %vm3916_vm3, %v4868_v35, %v3913_v15 }
0x3787   :  { %v3922_v61 = vsel %vm3919_vm4, %v3921_v22, %v3917_v19  ;;  %v3925_v23 = vmul.f32 %v3902_v12, %v6220_v49 }
0x3788   :  { %v3942_v11 = vmul.f32 %v3922_v61, %v6224_v24 }
0x37e2   :  { %v3928_v8 = vpop.permute.xlu0 %3927 }
0x37e3   :  { %v3930_v21 = vmul.f32 %v3928_v8, %v3902_v12 }
0x37e5   :  { %v3945_v10 = vpop.permute.xlu1 %3944  ;;  %3932 = vrot.lane.b32.xlu2 %v3930_v21, %s4909_s18 }
0x37e6   :  { %v3947_v53 = vmul.f32 %v3945_v10, %v3922_v61 }
0x37e8   :  { %3949 = vrot.lane.b32.xlu0 %v3947_v53, %s4909_s18 }
0x383f   :  { %v3933_v1 = vpop.permute.xlu2 %3932 }
0x3840   :  { %v6255_v54 = vadd.f32 %v3933_v1, %v3925_v23 }
0x3842   :  { %4869 = vtanh.f32 %v6255_v54 }
0x3848   :  { %v4870_v60 = vpop.eup %4869 }
0x3849   :  { %3938 = vrot.lane.b32.xlu1 %v4870_v60, %s4908_s17 }
0x385a   :  { %v3950_v59 = vpop.permute.xlu0 %3949 }
0x385b   :  { %v6260_v57 = vadd.f32 %v3950_v59, %v3942_v11 }
0x385d   :  { %4871 = vtanh.f32 %v6260_v57 }
0x3863   :  { %v4872_v63 = vpop.eup %4871 }
0x3864   :  { %3955 = vrot.lane.b32.xlu2 %v4872_v63, %s4908_s17 }
0x38bb   :  { %v3939_v3 = vpop.permute.xlu1 %3938 }
0x38bc   :  { %v3941_v49 = vmul.f32 %v3939_v3, %v3902_v12 }
0x38be   :  { %v3956_v13 = vpop.permute.xlu2 %3955  ;;  %3960 = vrot.lane.b32.xlu0 %v3941_v49, %s4909_s18  ;;  %v2990_v49 = vadd.f32 %v5981_v42, %v5985_v62 }
0x38bf   :  { %v3958_v26 = vmul.f32 %v3956_v13, %v3922_v61 }
0x38c0   :  { %v3021_v13 = vadd.f32 %v6247_v5, %v2990_v49 }
0x38c1   :  { %3965 = vrot.lane.b32.xlu1 %v3958_v26, %s4909_s18 }
0x3930   :  { %v3961_v14 = vpop.permute.xlu0 %3960 }
0x3931   :  { %3963 = vst.msk [vmem:[%s6333_s5 + $0x30] sm:$0xff] %vm32_vm8, %v3961_v14  ;;  %4458 = vmatmul.msk.f32.vlgmr.msra.gmra.mxu2 %vm32_vm8, %v3961_v14 }
0x3933   :  { %v3966_v24 = vpop.permute.xlu1 %3965 }
0x3934   :  { %3968 = vst.msk [vmem:[%s6334_s6 + $0x10] sm:$0xff] %vm32_vm8, %v3966_v24  ;;  %4459 = vmatmul.msk.f32.vlgmr.msra.gmra.mxu3 %vm32_vm8, %v3966_v24 }
0x39b4   :  { %v3989_v56 = vpop.f32.mrf.mxu2 }
0x39b5   :  { %v3992_v30 = vadd.f32 %v3989_v56, %v6024_v20 }
0x39b7   :  { %4873 = vtanh.f32 %v3992_v30  ;;  %v4013_v41 = vpop.f32.mrf.mxu3  ;;  %v4460_v36 = vmul.f32 -1.442695, %v3992_v30 }
0x39b8   :  { %v4016_v38 = vadd.f32 %v4013_v41, %v3022_v27 }
0x39ba   :  { %4875 = vtanh.f32 %v4016_v38  ;;  %v4461_v20 = vmul.f32 -1.442695, %v4016_v38 }
0x39bb   :  { %4877 = vpow2.f32 %v4460_v36 }
0x39bd   :  { %v4874_v46 = vpop.eup %4873 }
0x39be   :  { %4059 = vrot.lane.b32.xlu2 %v4874_v46, %s4908_s17 }
0x39c0   :  { %v4876_v33 = vpop.eup %4875 }
0x39c1   :  { %4076 = vrot.lane.b32.xlu0 %v4876_v33, %s4908_s17  ;;  %v4878_v48 = vpop.eup %4877 }
0x39c2   :  { %v4020_v50 = vadd.f32 1.0, %v4878_v48 }
0x39c4   :  { %4879 = vrcp.f32 %v4020_v50  ;;  %v4032_v39 = vand.u32 2147483648, %v4020_v50  ;;  %vm4026_vm6 = vweird.f32 %v4020_v50  ;;  %v4030_v47 = vand.u32 2147483647, %v4020_v50 }
0x39c5   :  { %4881 = vpow2.f32 %v4461_v20 }
0x39c6   :  { %v4033_v6 = vor.u32 1.1754944e-38, %v4032_v39  ;;  %vm4031_vm9 = vcmp.eq.f32.partialorder %v4030_v47, 8.507059e+37 }
0x39ca   :  { %v4880_v17 = vpop.eup %4879 }
0x39cb   :  { %v4022_v18 = vmul.f32 %v4880_v17, %v4020_v50  ;;  %v4882_v58 = vpop.eup %4881  ;;  %vm4027_vm5 = vweird.f32 %v4880_v17 }
0x39cc   :  { %v4040_v34 = vadd.f32 1.0, %v4882_v58  ;;  %vm4028_vm7 = vmor %vm4026_vm6, %vm4027_vm5 }
0x39cd   :  { %v4023_v44 = vsub.f32 1.0, %v4022_v18 }
0x39ce   :  { %4883 = vrcp.f32 %v4040_v34  ;;  %v4052_v29 = vand.u32 2147483648, %v4040_v34  ;;  %vm4046_vm11 = vweird.f32 %v4040_v34  ;;  %v4050_v9 = vand.u32 2147483647, %v4040_v34 }
0x39cf   :  { %v4024_v25 = vmul.f32 %v4880_v17, %v4023_v44 }
0x39d0   :  { %v4053_v7 = vor.u32 1.1754944e-38, %v4052_v29  ;;  %vm4051_vm13 = vcmp.eq.f32.partialorder %v4050_v9, 8.507059e+37 }
0x39d1   :  { %v4025_v28 = vadd.f32 %v4880_v17, %v4024_v25 }
0x39d3   :  { %v4029_v32 = vsel %vm4028_vm7, %v4880_v17, %v4025_v28 }
0x39d4   :  { %v4034_v0 = vsel %vm4031_vm9, %v4033_v6, %v4029_v32  ;;  %v4884_v45 = vpop.eup %4883 }
0x39d5   :  { %v4042_v16 = vmul.f32 %v4884_v45, %v4040_v34  ;;  %vm4047_vm10 = vweird.f32 %v4884_v45  ;;  %v4057_v8 = vmul.f32 %v4034_v0, %v6255_v54 }
0x39d6   :  { %vm4048_vm12 = vmor %vm4046_vm11, %vm4047_vm10 }
0x39d7   :  { %v4043_v31 = vsub.f32 1.0, %v4042_v16 }
0x39d9   :  { %v4044_v51 = vmul.f32 %v4884_v45, %v4043_v31 }
0x39db   :  { %v4045_v52 = vadd.f32 %v4884_v45, %v4044_v51 }
0x39dd   :  { %v4049_v15 = vsel %vm4048_vm12, %v4884_v45, %v4045_v52 }
0x39de   :  { %v4054_v37 = vsel %vm4051_vm13, %v4053_v7, %v4049_v15 }
0x39df   :  { %v4074_v21 = vmul.f32 %v4054_v37, %v6260_v57 }
0x3a18   :  { %v4060_v35 = vpop.permute.xlu2 %4059 }
0x3a19   :  { %v4062_v2 = vmul.f32 %v4060_v35, %v4034_v0 }
0x3a1b   :  { %4064 = vrot.lane.b32.xlu1 %v4062_v2, %s4909_s18 }
0x3a33   :  { %v4077_v43 = vpop.permute.xlu0 %4076 }
0x3a34   :  { %v4079_v55 = vmul.f32 %v4077_v43, %v4054_v37 }
0x3a36   :  { %4081 = vrot.lane.b32.xlu2 %v4079_v55, %s4909_s18 }
0x3a8d   :  { %v4065_v12 = vpop.permute.xlu1 %4064 }
0x3a8e   :  { %v6285_v19 = vadd.f32 %v4065_v12, %v4057_v8 }
0x3a90   :  { %4885 = vtanh.f32 %v6285_v19  ;;  %v4082_v22 = vpop.permute.xlu2 %4081 }
0x3a91   :  { %v6289_v61 = vadd.f32 %v4082_v22, %v4074_v21 }
0x3a93   :  { %4887 = vtanh.f32 %v6289_v61 }
0x3a96   :  { %v4886_v10 = vpop.eup %4885 }
0x3a97   :  { %4070 = vrot.lane.b32.xlu0 %v4886_v10, %s4908_s17 }
0x3a99   :  { %v4888_v53 = vpop.eup %4887 }
0x3a9a   :  { %4087 = vrot.lane.b32.xlu1 %v4888_v53, %s4908_s17 }
0x3b09   :  { %v4071_v23 = vpop.permute.xlu0 %4070 }
0x3b0a   :  { %v4073_v1 = vmul.f32 %v4071_v23, %v4034_v0 }
0x3b0c   :  { %v4088_v54 = vpop.permute.xlu1 %4087  ;;  %4092 = vrot.lane.b32.xlu2 %v4073_v1, %s4909_s18 }
0x3b0d   :  { %v4090_v60 = vmul.f32 %v4088_v54, %v4054_v37 }
0x3b0f   :  { %4097 = vrot.lane.b32.xlu0 %v4090_v60, %s4909_s18 }
0x3b66   :  { %v4093_v11 = vpop.permute.xlu2 %4092 }
0x3b67   :  { %4095 = vst.msk [vmem:[%s6333_s5 + $0x38] sm:$0xff] %vm32_vm8, %v4093_v11  ;;  %4462 = vmatmul.msk.f32.vlgmr.msrb.gmra.mxu0 %vm32_vm8, %v4093_v11 }
0x3b81   :  { %v4098_v59 = vpop.permute.xlu0 %4097 }
0x3b82   :  { %4100 = vst.msk [vmem:[%s6334_s6 + $0x8] sm:$0xff] %vm32_vm8, %v4098_v59  ;;  %4463 = vmatmul.msk.f32.vlgmr.msrb.gmra.mxu1 %vm32_vm8, %v4098_v59 }
0x3be4   :  { %v4121_v57 = vpop.f32.mrf.mxu0 }
0x3be5   :  { %v4124_v63 = vadd.f32 %v4121_v57, %v6028_v40 }
0x3be7   :  { %4889 = vtanh.f32 %v4124_v63  ;;  %v4464_v4 = vmul.f32 -1.442695, %v4124_v63 }
0x3bed   :  { %v4890_v3 = vpop.eup %4889 }
0x3bee   :  { %4191 = vrot.lane.b32.xlu1 %v4890_v3, %s4908_s17 }
0x3bff   :  { %v4145_v26 = vpop.f32.mrf.mxu1 }
0x3c00   :  { %v4148_v14 = vadd.f32 %v4145_v26, %v3021_v13 }
0x3c02   :  { %4891 = vtanh.f32 %v4148_v14  ;;  %v4465_v56 = vmul.f32 -1.442695, %v4148_v14 }
0x3c03   :  { %4893 = vpow2.f32 %v4464_v4 }
0x3c04   :  { %4895 = vpow2.f32 %v4465_v56 }
0x3c08   :  { %v4892_v24 = vpop.eup %4891 }
0x3c09   :  { %4208 = vrot.lane.b32.xlu2 %v4892_v24, %s4908_s17  ;;  %v4894_v40 = vpop.eup %4893 }
0x3c0a   :  { %v4896_v30 = vpop.eup %4895  ;;  %v4152_v27 = vadd.f32 1.0, %v4894_v40 }
0x3c0b   :  { %v4172_v41 = vadd.f32 1.0, %v4896_v30 }
0x3c0c   :  { %4897 = vrcp.f32 %v4152_v27  ;;  %v4164_v17 = vand.u32 2147483648, %v4152_v27  ;;  %vm4158_vm15 = vweird.f32 %v4152_v27  ;;  %v4162_v18 = vand.u32 2147483647, %v4152_v27 }
0x3c0d   :  { %4899 = vrcp.f32 %v4172_v41  ;;  %v4184_v25 = vand.u32 2147483648, %v4172_v41  ;;  %vm4178_vm2 = vweird.f32 %v4172_v41  ;;  %v4182_v28 = vand.u32 2147483647, %v4172_v41 }
0x3c0e   :  { %v4165_v58 = vor.u32 1.1754944e-38, %v4164_v17  ;;  %vm4163_vm3 = vcmp.eq.f32.partialorder %v4162_v18, 8.507059e+37 }
0x3c0f   :  { %v4185_v6 = vor.u32 1.1754944e-38, %v4184_v25  ;;  %vm4183_vm5 = vcmp.eq.f32.partialorder %v4182_v28, 8.507059e+37 }
0x3c12   :  { %v4898_v38 = vpop.eup %4897 }
0x3c13   :  { %v4900_v42 = vpop.eup %4899  ;;  %v4154_v62 = vmul.f32 %v4898_v38, %v4152_v27  ;;  %vm4159_vm14 = vweird.f32 %v4898_v38 }
0x3c14   :  { %v4174_v5 = vmul.f32 %v4900_v42, %v4172_v41  ;;  %vm4160_vm0 = vmor %vm4158_vm15, %vm4159_vm14  ;;  %vm4179_vm1 = vweird.f32 %v4900_v42 }
0x3c15   :  { %v4155_v46 = vsub.f32 1.0, %v4154_v62  ;;  %vm4180_vm4 = vmor %vm4178_vm2, %vm4179_vm1 }
0x3c16   :  { %v4175_v33 = vsub.f32 1.0, %v4174_v5 }
0x3c17   :  { %v4156_v36 = vmul.f32 %v4898_v38, %v4155_v46 }
0x3c18   :  { %v4176_v48 = vmul.f32 %v4900_v42, %v4175_v33 }
0x3c19   :  { %v4157_v50 = vadd.f32 %v4898_v38, %v4156_v36 }
0x3c1a   :  { %v4177_v20 = vadd.f32 %v4900_v42, %v4176_v48 }
0x3c1b   :  { %v4161_v44 = vsel %vm4160_vm0, %v4898_v38, %v4157_v50 }
0x3c1c   :  { %v4166_v34 = vsel %vm4163_vm3, %v4165_v58, %v4161_v44  ;;  %v4181_v47 = vsel %vm4180_vm4, %v4900_v42, %v4177_v20 }
0x3c1d   :  { %v4186_v0 = vsel %vm4183_vm5, %v4185_v6, %v4181_v47  ;;  %v4189_v45 = vmul.f32 %v4166_v34, %v6285_v19 }
0x3c1e   :  { %v4206_v51 = vmul.f32 %v4186_v0, %v6289_v61 }
0x3c60   :  { %v4192_v39 = vpop.permute.xlu1 %4191 }
0x3c61   :  { %v4194_v32 = vmul.f32 %v4192_v39, %v4166_v34 }
0x3c63   :  { %v4209_v35 = vpop.permute.xlu2 %4208  ;;  %4196 = vrot.lane.b32.xlu0 %v4194_v32, %s4909_s18 }
0x3c64   :  { %v4211_v2 = vmul.f32 %v4209_v35, %v4186_v0 }
0x3c66   :  { %4213 = vrot.lane.b32.xlu1 %v4211_v2, %s4909_s18 }
0x3cd5   :  { %v4197_v16 = vpop.permute.xlu0 %4196 }
0x3cd6   :  { %v4199_v31 = vadd.f32 %v4197_v16, %v4189_v45 }
0x3cd8   :  { %4901 = vtanh.f32 %v4199_v31  ;;  %v4214_v52 = vpop.permute.xlu1 %4213 }
0x3cd9   :  { %v4216_v29 = vadd.f32 %v4214_v52, %v4206_v51 }
0x3cdb   :  { %4903 = vtanh.f32 %v4216_v29 }
0x3cde   :  { %v4902_v9 = vpop.eup %4901 }
0x3cdf   :  { %4202 = vrot.lane.b32.xlu2 %v4902_v9, %s4908_s17 }
0x3ce1   :  { %v4904_v15 = vpop.eup %4903 }
0x3ce2   :  { %4219 = vrot.lane.b32.xlu0 %v4904_v15, %s4908_s17 }
0x3d39   :  { %v4203_v7 = vpop.permute.xlu2 %4202 }
0x3d3a   :  { %v4205_v43 = vmul.f32 %v4203_v7, %v4166_v34 }
0x3d3c   :  { %4224 = vrot.lane.b32.xlu1 %v4205_v43, %s4909_s18 }
0x3d54   :  { %v4220_v37 = vpop.permute.xlu0 %4219 }
0x3d55   :  { %v4222_v55 = vmul.f32 %v4220_v37, %v4186_v0 }
0x3d57   :  { %4229 = vrot.lane.b32.xlu2 %v4222_v55, %s4909_s18 }
0x3dae   :  { %v4225_v8 = vpop.permute.xlu1 %4224 }
0x3daf   :  { %4227 = vst.msk [vmem:[%s6333_s5 + $0x40] sm:$0xff] %vm32_vm8, %v4225_v8 }
0x3db1   :  { %v4230_v12 = vpop.permute.xlu2 %4229 }
0x3db2   :  { %4232 = vst.msk [vmem:[%s6334_s6] sm:$0xff] %vm32_vm8, %v4230_v12 }

</bundles_post_ra>
